<compile_context>
chip_gen: v6e
topology: v6e:2x2x1
jax: 0.10.0
libtpu: 0.0.40
codegen_flags: <defaults>
</compile_context>

<pallas_src>
import functools

import jax
import jax.numpy as jnp
import numpy as np
from jax.experimental import pallas as pl
from jax.experimental.pallas import tpu as pltpu


# ----------------------------- Fused Pallas kernel -------------------------


def _fused_forward_kernel(x_ref,
                          w1_ref, b1_ref, w2_ref, b2_ref,
                          w3_ref, b3_ref, w4_ref, b4_ref,
                          hw1_ref, hb1_ref, hw2_ref, hb2_ref,
                          o_ref, *, matmul_dtype):
    """Whole network for one batch tile.

    x_ref:   (B, Lin, Cin)  channels-last input tile
    w*_ref:  (K, Cin, Cout) conv taps      b*_ref: (1, Cout)
    hw1_ref: (L4, C4, classes*H)  (flatten folded into the weight layout)
    hb1_ref: (1, classes*H)
    hw2_ref: (classes*H, C_pad)   block-diagonal, zero-padded to 128 lanes
    hb2_ref: (1, C_pad)
    o_ref:   (B, C_pad)           lane-dense padded output slab
    """
    md = matmul_dtype

    def conv_taps(x, w_ref_):
        # sum_k x[:, k:k+Lout, :] @ w[k] with batch folded into the MXU M dim:
        # one (B*Lout, Cin) x (Cin, Cout) matmul per tap (static unroll over K).
        B, Lin, Cin = x.shape
        K, _, Cout = w_ref_.shape
        Lout = Lin - K + 1
        xm = x.astype(md)
        acc = jnp.zeros((B * Lout, Cout), jnp.float32)
        for k in range(K):
            xk = xm[:, k:k + Lout, :].reshape(B * Lout, Cin)
            acc = acc + jnp.dot(xk, w_ref_[k].astype(md),
                                preferred_element_type=jnp.float32)
        return acc, B, Lout, Cout

    def conv_relu(x, w_ref_, b_ref_, pool):
        acc, B, Lout, Cout = conv_taps(x, w_ref_)
        y = jnp.maximum(acc + b_ref_[...], 0.0)          # bias + ReLU in f32 (VPU)
        y = y.reshape(B, Lout, Cout)
        if pool:                                          # MaxPool1d(2, 2), floor
            Lp = Lout // 2
            y = jnp.max(y[:, :2 * Lp, :].reshape(B, Lp, 2, Cout), axis=2)
        return y

    x = x_ref[...].astype(jnp.float32)                    # (B, Lin, Cin)
    y = conv_relu(x, w1_ref, b1_ref, pool=False)
    y = conv_relu(y, w2_ref, b2_ref, pool=True)           # Dropout(0.5): identity (eval)
    y = conv_relu(y, w3_ref, b3_ref, pool=False)
    y = conv_relu(y, w4_ref, b4_ref, pool=True)           # Dropout(0.5): identity (eval)

    # Heads stage 1: flatten + Linear fused as a "kernel-size-L4" conv over the
    # channels-last activation (hw1 pre-permuted), so no transpose is needed.
    hacc, _, _, _ = conv_taps(y, hw1_ref)                 # (B, classes*H), Lout == 1
    h = jnp.maximum(hacc + hb1_ref[...], 0.0)

    # Heads stage 2: all `classes` heads as one MXU matmul against a block-diagonal
    # weight padded to a lane-dense 128-wide output slab.
    logits = jnp.dot(h.astype(md), hw2_ref[...].astype(md),
                     preferred_element_type=jnp.float32) + hb2_ref[...]
    o_ref[...] = jax.nn.sigmoid(logits).astype(o_ref.dtype)


# ----------------------------- Wrapper --------------------------------------


def model_forward(x_ncl, params, *, batch_tile=8, matmul_dtype=jnp.float32):
    """Fused Pallas forward. x_ncl: (N, numChannels, winlen) like PyTorch."""
    N, Cin, Lin = x_ncl.shape
    classes = params['hb2'].shape[1]
    H = params['hw2'].shape[1]
    CH = classes * H

    # Batch tile: must divide N and (unless it equals N) be a multiple of 8 so the
    # padded output block keeps an (8,128)-aligned shape.
    bt = batch_tile if batch_tile is not None else min(N, 8)
    if N % bt != 0 or (bt != N and bt % 8 != 0):
        bt = N
    grid = (N // bt,)

    # ---- one-time weight re-layout (tiny; constant-folded under jit) ----
    def conv_w(w_oik):                                    # (Cout,Cin,K) -> (K,Cin,Cout)
        return jnp.transpose(w_oik, (2, 1, 0))

    w1 = conv_w(params['w1']); b1 = params['b1'][None, :]
    w2 = conv_w(params['w2']); b2 = params['b2'][None, :]
    w3 = conv_w(params['w3']); b3 = params['b3'][None, :]
    w4 = conv_w(params['w4']); b4 = params['b4'][None, :]

    C4 = params['w4'].shape[0]
    F = params['hw1'].shape[0]
    L4 = F // C4

    # hw1 rows are PyTorch channel-major features (index c*L4 + l); re-index to the
    # kernel's channels-last (l, c) order -> (L4, C4, classes*H). Removes the
    # flatten transpose between the conv stack and the heads.
    hw1_r = jnp.transpose(params['hw1'].reshape(C4, L4, CH), (1, 0, 2))
    hb1 = params['hb1']

    # hw2 -> block-diagonal (classes*H, C_pad), output padded to a 128-lane slab.
    C_pad = ((classes + 127) // 128) * 128
    eye = jnp.eye(classes, C_pad, dtype=jnp.float32)
    hw2_bd = (params['hw2'][:, :, None] * eye[:, None, :]).reshape(CH, C_pad)
    hb2_p = jnp.pad(params['hb2'], ((0, 0), (0, C_pad - classes)))

    x_nlc = jnp.transpose(x_ncl, (0, 2, 1))               # NCL -> NLC (channels last)

    def full(shape):
        return pl.BlockSpec(shape, lambda n: (0,) * len(shape))

    kern = functools.partial(_fused_forward_kernel, matmul_dtype=matmul_dtype)
    out = pl.pallas_call(
        kern,
        out_shape=jax.ShapeDtypeStruct((N, C_pad), x_ncl.dtype),
        grid=grid,
        in_specs=[
            pl.BlockSpec((bt, Lin, Cin), lambda n: (n, 0, 0)),
            full(w1.shape), full(b1.shape), full(w2.shape), full(b2.shape),
            full(w3.shape), full(b3.shape), full(w4.shape), full(b4.shape),
            full(hw1_r.shape), full(hb1.shape), full(hw2_bd.shape), full(hb2_p.shape),
        ],
        out_specs=pl.BlockSpec((bt, C_pad), lambda n: (n, 0)),
        compiler_params=pltpu.CompilerParams(
            dimension_semantics=("parallel",)),            # >=2 steps -> v7x TC sharding
    )(x_nlc, w1, b1, w2, b2, w3, b3, w4, b4, hw1_r, hb1, hw2_bd, hb2_p)
    return out[:, :classes]


# ----------------------------- Init & pure-JAX reference --------------------


def init_params(key, num_channels, classes, winlen, num_nodes):
    keys = jax.random.split(key, 12)

    def conv_init(kw, kb, cin, cout, ksz=3):
        bound = 1.0 / float(np.sqrt(cin * ksz))
        w = jax.random.uniform(kw, (cout, cin, ksz), jnp.float32, -bound, bound)
        b = jax.random.uniform(kb, (cout,), jnp.float32, -bound, bound)
        return w, b

    w1, b1 = conv_init(keys[0], keys[1], num_channels, num_nodes[0])
    w2, b2 = conv_init(keys[2], keys[3], num_nodes[0], num_nodes[1])
    w3, b3 = conv_init(keys[4], keys[5], num_nodes[1], num_nodes[2])
    w4, b4 = conv_init(keys[6], keys[7], num_nodes[2], num_nodes[3])

    # n_features exactly as the PyTorch dummy-forward computes it.
    L = (winlen - 2 - 2) // 2
    L = (L - 2 - 2) // 2
    F = num_nodes[3] * L
    H = num_nodes[4]
    bnd1 = 1.0 / float(np.sqrt(F))
    hw1 = jax.random.uniform(keys[8], (F, classes * H), jnp.float32, -bnd1, bnd1)
    hb1 = jax.random.uniform(keys[9], (1, classes * H), jnp.float32, -bnd1, bnd1)
    bnd2 = 1.0 / float(np.sqrt(H))
    hw2 = jax.random.uniform(keys[10], (classes, H), jnp.float32, -bnd2, bnd2)
    hb2 = jax.random.uniform(keys[11], (1, classes), jnp.float32, -bnd2, bnd2)
    return dict(w1=w1, b1=b1, w2=w2, b2=b2, w3=w3, b3=b3, w4=w4, b4=b4,
                hw1=hw1, hb1=hb1, hw2=hw2, hb2=hb2)


def ref_forward(x_ncl, params, classes, hidden):
    """Pure-JAX reference (lax.conv) for correctness checking."""
    def conv(x, w, b):
        y = jax.lax.conv_general_dilated(
            x, w, window_strides=(1,), padding='VALID',
            dimension_numbers=('NCH', 'OIH', 'NCH'))
        return jnp.maximum(y + b[None, :, None], 0.0)

    def pool(x):
        N, C, L = x.shape
        Lp = L // 2
        return jnp.max(x[:, :, :2 * Lp].reshape(N, C, Lp, 2), axis=-1)

    x = conv(x_ncl, params['w1'], params['b1'])
    x = pool(conv(x, params['w2'], params['b2']))
    x = conv(x, params['w3'], params['b3'])
    x = pool(conv(x, params['w4'], params['b4']))
    f = x.reshape(x.shape[0], -1)
    h = jnp.maximum(f @ params['hw1'] + params['hb1'][0], 0.0)
    h = h.reshape(f.shape[0], classes, hidden)
    logits = jnp.sum(h * params['hw2'][None], axis=-1) + params['hb2'][0]
    return jax.nn.sigmoid(logits)


if __name__ == "__main__":
    # Small, forward-consistent shapes (default module config would be 64ch/len-120).
    num_channels, classes, winlen = 4, 4, 32
    num_nodes = [8, 8, 8, 8, 16]
    batch = 16                     # 2 batch tiles of 8 -> 2 "parallel" grid steps

    key = jax.random.PRNGKey(0)
    kx, kp = jax.random.split(key)
    x = jax.random.normal(kx, (batch, num_channels, winlen), jnp.float32)  # NCL
    params = init_params(kp, num_channels, classes, winlen, num_nodes)

    out = jax.block_until_ready(model_forward(x, params, batch_tile=8))
    ref = ref_forward(x, params, classes, num_nodes[4])
    assert out.shape == (batch, classes), out.shape
    np.testing.assert_allclose(np.asarray(out), np.asarray(ref), rtol=1e-5, atol=1e-5)

    # bf16 MXU operands with f32 accumulation (v6e/v7x fast path); loose tolerance.
    out_bf16 = jax.block_until_ready(
        model_forward(x, params, batch_tile=8, matmul_dtype=jnp.bfloat16))
    np.testing.assert_allclose(np.asarray(out_bf16), np.asarray(ref), atol=1e-1)

    print("KERNEL_OK")
</pallas_src>

<mosaic_0001>
module attributes {stable_mosaic.version = 11 : i64} {
  func.func @_fused_forward_kernel(%arg0: i32, %arg1: memref<8x32x4xf32, #tpu.memory_space<vmem>>, %arg2: memref<3x4x8xf32, #tpu.memory_space<vmem>>, %arg3: memref<1x8xf32, #tpu.memory_space<vmem>>, %arg4: memref<3x8x8xf32, #tpu.memory_space<vmem>>, %arg5: memref<1x8xf32, #tpu.memory_space<vmem>>, %arg6: memref<3x8x8xf32, #tpu.memory_space<vmem>>, %arg7: memref<1x8xf32, #tpu.memory_space<vmem>>, %arg8: memref<3x8x8xf32, #tpu.memory_space<vmem>>, %arg9: memref<1x8xf32, #tpu.memory_space<vmem>>, %arg10: memref<5x8x64xf32, #tpu.memory_space<vmem>>, %arg11: memref<1x64xf32, #tpu.memory_space<vmem>>, %arg12: memref<64x128xf32, #tpu.memory_space<vmem>>, %arg13: memref<1x128xf32, #tpu.memory_space<vmem>>, %arg14: memref<8x128xf32, #tpu.memory_space<vmem>>) attributes {dimension_semantics = [#tpu.dimension_semantics<parallel>], iteration_bounds = array<i64: 2>, scalar_prefetch = 0 : i64, scratch_operands = 0 : i64, tpu.core_type = #tpu.core_type<tc>, window_params = [{transform_indices = @transform_0, window_bounds = array<i64: 8, 32, 4>}, {pipeline_mode = #tpu.pipeline_mode<synchronous>, transform_indices = @transform_1, window_bounds = array<i64: 3, 4, 8>}, {pipeline_mode = #tpu.pipeline_mode<synchronous>, transform_indices = @transform_2, window_bounds = array<i64: 1, 8>}, {pipeline_mode = #tpu.pipeline_mode<synchronous>, transform_indices = @transform_3, window_bounds = array<i64: 3, 8, 8>}, {pipeline_mode = #tpu.pipeline_mode<synchronous>, transform_indices = @transform_4, window_bounds = array<i64: 1, 8>}, {pipeline_mode = #tpu.pipeline_mode<synchronous>, transform_indices = @transform_5, window_bounds = array<i64: 3, 8, 8>}, {pipeline_mode = #tpu.pipeline_mode<synchronous>, transform_indices = @transform_6, window_bounds = array<i64: 1, 8>}, {pipeline_mode = #tpu.pipeline_mode<synchronous>, transform_indices = @transform_7, window_bounds = array<i64: 3, 8, 8>}, {pipeline_mode = #tpu.pipeline_mode<synchronous>, transform_indices = @transform_8, window_bounds = array<i64: 1, 8>}, {pipeline_mode = #tpu.pipeline_mode<synchronous>, transform_indices = @transform_9, window_bounds = array<i64: 5, 8, 64>}, {pipeline_mode = #tpu.pipeline_mode<synchronous>, transform_indices = @transform_10, window_bounds = array<i64: 1, 64>}, {pipeline_mode = #tpu.pipeline_mode<synchronous>, transform_indices = @transform_11, window_bounds = array<i64: 64, 128>}, {pipeline_mode = #tpu.pipeline_mode<synchronous>, transform_indices = @transform_12, window_bounds = array<i64: 1, 128>}, {transform_indices = @transform_13, window_bounds = array<i64: 8, 128>}]} {
    %c0 = arith.constant 0 : index
    %c0_0 = arith.constant 0 : index
    %c0_1 = arith.constant 0 : index
    %0 = vector.load %arg1[%c0, %c0_0, %c0_1] : memref<8x32x4xf32, #tpu.memory_space<vmem>>, vector<8x32x4xf32>
    %cst = arith.constant 0.000000e+00 : f32
    %1 = vector.broadcast %cst : f32 to vector<240x8xf32>
    %2 = vector.extract_strided_slice %0 {offsets = [0, 0, 0], sizes = [8, 30, 4], strides = [1, 1, 1]} : vector<8x32x4xf32> to vector<8x30x4xf32>
    %3 = vector.shape_cast %2 : vector<8x30x4xf32> to vector<240x4xf32>
    %c0_2 = arith.constant 0 : index
    %c0_3 = arith.constant 0 : index
    %c0_4 = arith.constant 0 : index
    %4 = vector.load %arg2[%c0_2, %c0_3, %c0_4] : memref<3x4x8xf32, #tpu.memory_space<vmem>>, vector<1x4x8xf32>
    %5 = vector.shape_cast %4 : vector<1x4x8xf32> to vector<4x8xf32>
    %cst_5 = arith.constant dense<0.000000e+00> : vector<240x8xf32>
    %6 = tpu.matmul %3, %5, %cst_5 {dimension_numbers = #tpu.dot_dimension_numbers<[1], [0], [0], [1], [0, 0, 1, 1], [], []>} : vector<240x4xf32>, vector<4x8xf32>, vector<240x8xf32> -> vector<240x8xf32>
    %7 = arith.addf %1, %6 : vector<240x8xf32>
    %8 = vector.extract_strided_slice %0 {offsets = [0, 1, 0], sizes = [8, 30, 4], strides = [1, 1, 1]} : vector<8x32x4xf32> to vector<8x30x4xf32>
    %9 = vector.shape_cast %8 : vector<8x30x4xf32> to vector<240x4xf32>
    %c1 = arith.constant 1 : index
    %c0_6 = arith.constant 0 : index
    %c0_7 = arith.constant 0 : index
    %10 = vector.load %arg2[%c1, %c0_6, %c0_7] : memref<3x4x8xf32, #tpu.memory_space<vmem>>, vector<1x4x8xf32>
    %11 = vector.shape_cast %10 : vector<1x4x8xf32> to vector<4x8xf32>
    %cst_8 = arith.constant dense<0.000000e+00> : vector<240x8xf32>
    %12 = tpu.matmul %9, %11, %cst_8 {dimension_numbers = #tpu.dot_dimension_numbers<[1], [0], [0], [1], [0, 0, 1, 1], [], []>} : vector<240x4xf32>, vector<4x8xf32>, vector<240x8xf32> -> vector<240x8xf32>
    %13 = arith.addf %7, %12 : vector<240x8xf32>
    %14 = vector.extract_strided_slice %0 {offsets = [0, 2, 0], sizes = [8, 30, 4], strides = [1, 1, 1]} : vector<8x32x4xf32> to vector<8x30x4xf32>
    %15 = vector.shape_cast %14 : vector<8x30x4xf32> to vector<240x4xf32>
    %c2 = arith.constant 2 : index
    %c0_9 = arith.constant 0 : index
    %c0_10 = arith.constant 0 : index
    %16 = vector.load %arg2[%c2, %c0_9, %c0_10] : memref<3x4x8xf32, #tpu.memory_space<vmem>>, vector<1x4x8xf32>
    %17 = vector.shape_cast %16 : vector<1x4x8xf32> to vector<4x8xf32>
    %cst_11 = arith.constant dense<0.000000e+00> : vector<240x8xf32>
    %18 = tpu.matmul %15, %17, %cst_11 {dimension_numbers = #tpu.dot_dimension_numbers<[1], [0], [0], [1], [0, 0, 1, 1], [], []>} : vector<240x4xf32>, vector<4x8xf32>, vector<240x8xf32> -> vector<240x8xf32>
    %19 = arith.addf %13, %18 : vector<240x8xf32>
    %c0_12 = arith.constant 0 : index
    %c0_13 = arith.constant 0 : index
    %20 = vector.load %arg3[%c0_12, %c0_13] : memref<1x8xf32, #tpu.memory_space<vmem>>, vector<1x8xf32>
    %21 = vector.broadcast %20 : vector<1x8xf32> to vector<240x8xf32>
    %22 = arith.addf %19, %21 : vector<240x8xf32>
    %cst_14 = arith.constant 0.000000e+00 : f32
    %23 = vector.broadcast %cst_14 : f32 to vector<240x8xf32>
    %24 = arith.maximumf %22, %23 : vector<240x8xf32>
    %25 = vector.shape_cast %24 : vector<240x8xf32> to vector<8x30x8xf32>
    %cst_15 = arith.constant 0.000000e+00 : f32
    %26 = vector.broadcast %cst_15 : f32 to vector<224x8xf32>
    %27 = vector.extract_strided_slice %25 {offsets = [0, 0, 0], sizes = [8, 28, 8], strides = [1, 1, 1]} : vector<8x30x8xf32> to vector<8x28x8xf32>
    %28 = vector.shape_cast %27 : vector<8x28x8xf32> to vector<224x8xf32>
    %c0_16 = arith.constant 0 : index
    %c0_17 = arith.constant 0 : index
    %c0_18 = arith.constant 0 : index
    %29 = vector.load %arg4[%c0_16, %c0_17, %c0_18] : memref<3x8x8xf32, #tpu.memory_space<vmem>>, vector<1x8x8xf32>
    %30 = vector.shape_cast %29 : vector<1x8x8xf32> to vector<8x8xf32>
    %cst_19 = arith.constant dense<0.000000e+00> : vector<224x8xf32>
    %31 = tpu.matmul %28, %30, %cst_19 {dimension_numbers = #tpu.dot_dimension_numbers<[1], [0], [0], [1], [0, 0, 1, 1], [], []>} : vector<224x8xf32>, vector<8x8xf32>, vector<224x8xf32> -> vector<224x8xf32>
    %32 = arith.addf %26, %31 : vector<224x8xf32>
    %33 = vector.extract_strided_slice %25 {offsets = [0, 1, 0], sizes = [8, 28, 8], strides = [1, 1, 1]} : vector<8x30x8xf32> to vector<8x28x8xf32>
    %34 = vector.shape_cast %33 : vector<8x28x8xf32> to vector<224x8xf32>
    %c1_20 = arith.constant 1 : index
    %c0_21 = arith.constant 0 : index
    %c0_22 = arith.constant 0 : index
    %35 = vector.load %arg4[%c1_20, %c0_21, %c0_22] : memref<3x8x8xf32, #tpu.memory_space<vmem>>, vector<1x8x8xf32>
    %36 = vector.shape_cast %35 : vector<1x8x8xf32> to vector<8x8xf32>
    %cst_23 = arith.constant dense<0.000000e+00> : vector<224x8xf32>
    %37 = tpu.matmul %34, %36, %cst_23 {dimension_numbers = #tpu.dot_dimension_numbers<[1], [0], [0], [1], [0, 0, 1, 1], [], []>} : vector<224x8xf32>, vector<8x8xf32>, vector<224x8xf32> -> vector<224x8xf32>
    %38 = arith.addf %32, %37 : vector<224x8xf32>
    %39 = vector.extract_strided_slice %25 {offsets = [0, 2, 0], sizes = [8, 28, 8], strides = [1, 1, 1]} : vector<8x30x8xf32> to vector<8x28x8xf32>
    %40 = vector.shape_cast %39 : vector<8x28x8xf32> to vector<224x8xf32>
    %c2_24 = arith.constant 2 : index
    %c0_25 = arith.constant 0 : index
    %c0_26 = arith.constant 0 : index
    %41 = vector.load %arg4[%c2_24, %c0_25, %c0_26] : memref<3x8x8xf32, #tpu.memory_space<vmem>>, vector<1x8x8xf32>
    %42 = vector.shape_cast %41 : vector<1x8x8xf32> to vector<8x8xf32>
    %cst_27 = arith.constant dense<0.000000e+00> : vector<224x8xf32>
    %43 = tpu.matmul %40, %42, %cst_27 {dimension_numbers = #tpu.dot_dimension_numbers<[1], [0], [0], [1], [0, 0, 1, 1], [], []>} : vector<224x8xf32>, vector<8x8xf32>, vector<224x8xf32> -> vector<224x8xf32>
    %44 = arith.addf %38, %43 : vector<224x8xf32>
    %c0_28 = arith.constant 0 : index
    %c0_29 = arith.constant 0 : index
    %45 = vector.load %arg5[%c0_28, %c0_29] : memref<1x8xf32, #tpu.memory_space<vmem>>, vector<1x8xf32>
    %46 = vector.broadcast %45 : vector<1x8xf32> to vector<224x8xf32>
    %47 = arith.addf %44, %46 : vector<224x8xf32>
    %cst_30 = arith.constant 0.000000e+00 : f32
    %48 = vector.broadcast %cst_30 : f32 to vector<224x8xf32>
    %49 = arith.maximumf %47, %48 : vector<224x8xf32>
    %50 = vector.shape_cast %49 : vector<224x8xf32> to vector<8x28x8xf32>
    %51 = vector.shape_cast %50 : vector<8x28x8xf32> to vector<8x14x2x8xf32>
    %cst_31 = arith.constant dense<0xFF800000> : vector<8x14x8xf32>
    %52 = vector.multi_reduction <maximumf>, %51, %cst_31 [2] : vector<8x14x2x8xf32> to vector<8x14x8xf32>
    %cst_32 = arith.constant 0.000000e+00 : f32
    %53 = vector.broadcast %cst_32 : f32 to vector<96x8xf32>
    %54 = vector.extract_strided_slice %52 {offsets = [0, 0, 0], sizes = [8, 12, 8], strides = [1, 1, 1]} : vector<8x14x8xf32> to vector<8x12x8xf32>
    %55 = vector.shape_cast %54 : vector<8x12x8xf32> to vector<96x8xf32>
    %c0_33 = arith.constant 0 : index
    %c0_34 = arith.constant 0 : index
    %c0_35 = arith.constant 0 : index
    %56 = vector.load %arg6[%c0_33, %c0_34, %c0_35] : memref<3x8x8xf32, #tpu.memory_space<vmem>>, vector<1x8x8xf32>
    %57 = vector.shape_cast %56 : vector<1x8x8xf32> to vector<8x8xf32>
    %cst_36 = arith.constant dense<0.000000e+00> : vector<96x8xf32>
    %58 = tpu.matmul %55, %57, %cst_36 {dimension_numbers = #tpu.dot_dimension_numbers<[1], [0], [0], [1], [0, 0, 1, 1], [], []>} : vector<96x8xf32>, vector<8x8xf32>, vector<96x8xf32> -> vector<96x8xf32>
    %59 = arith.addf %53, %58 : vector<96x8xf32>
    %60 = vector.extract_strided_slice %52 {offsets = [0, 1, 0], sizes = [8, 12, 8], strides = [1, 1, 1]} : vector<8x14x8xf32> to vector<8x12x8xf32>
    %61 = vector.shape_cast %60 : vector<8x12x8xf32> to vector<96x8xf32>
    %c1_37 = arith.constant 1 : index
    %c0_38 = arith.constant 0 : index
    %c0_39 = arith.constant 0 : index
    %62 = vector.load %arg6[%c1_37, %c0_38, %c0_39] : memref<3x8x8xf32, #tpu.memory_space<vmem>>, vector<1x8x8xf32>
    %63 = vector.shape_cast %62 : vector<1x8x8xf32> to vector<8x8xf32>
    %cst_40 = arith.constant dense<0.000000e+00> : vector<96x8xf32>
    %64 = tpu.matmul %61, %63, %cst_40 {dimension_numbers = #tpu.dot_dimension_numbers<[1], [0], [0], [1], [0, 0, 1, 1], [], []>} : vector<96x8xf32>, vector<8x8xf32>, vector<96x8xf32> -> vector<96x8xf32>
    %65 = arith.addf %59, %64 : vector<96x8xf32>
    %66 = vector.extract_strided_slice %52 {offsets = [0, 2, 0], sizes = [8, 12, 8], strides = [1, 1, 1]} : vector<8x14x8xf32> to vector<8x12x8xf32>
    %67 = vector.shape_cast %66 : vector<8x12x8xf32> to vector<96x8xf32>
    %c2_41 = arith.constant 2 : index
    %c0_42 = arith.constant 0 : index
    %c0_43 = arith.constant 0 : index
    %68 = vector.load %arg6[%c2_41, %c0_42, %c0_43] : memref<3x8x8xf32, #tpu.memory_space<vmem>>, vector<1x8x8xf32>
    %69 = vector.shape_cast %68 : vector<1x8x8xf32> to vector<8x8xf32>
    %cst_44 = arith.constant dense<0.000000e+00> : vector<96x8xf32>
    %70 = tpu.matmul %67, %69, %cst_44 {dimension_numbers = #tpu.dot_dimension_numbers<[1], [0], [0], [1], [0, 0, 1, 1], [], []>} : vector<96x8xf32>, vector<8x8xf32>, vector<96x8xf32> -> vector<96x8xf32>
    %71 = arith.addf %65, %70 : vector<96x8xf32>
    %c0_45 = arith.constant 0 : index
    %c0_46 = arith.constant 0 : index
    %72 = vector.load %arg7[%c0_45, %c0_46] : memref<1x8xf32, #tpu.memory_space<vmem>>, vector<1x8xf32>
    %73 = vector.broadcast %72 : vector<1x8xf32> to vector<96x8xf32>
    %74 = arith.addf %71, %73 : vector<96x8xf32>
    %cst_47 = arith.constant 0.000000e+00 : f32
    %75 = vector.broadcast %cst_47 : f32 to vector<96x8xf32>
    %76 = arith.maximumf %74, %75 : vector<96x8xf32>
    %77 = vector.shape_cast %76 : vector<96x8xf32> to vector<8x12x8xf32>
    %cst_48 = arith.constant 0.000000e+00 : f32
    %78 = vector.broadcast %cst_48 : f32 to vector<80x8xf32>
    %79 = vector.extract_strided_slice %77 {offsets = [0, 0, 0], sizes = [8, 10, 8], strides = [1, 1, 1]} : vector<8x12x8xf32> to vector<8x10x8xf32>
    %80 = vector.shape_cast %79 : vector<8x10x8xf32> to vector<80x8xf32>
    %c0_49 = arith.constant 0 : index
    %c0_50 = arith.constant 0 : index
    %c0_51 = arith.constant 0 : index
    %81 = vector.load %arg8[%c0_49, %c0_50, %c0_51] : memref<3x8x8xf32, #tpu.memory_space<vmem>>, vector<1x8x8xf32>
    %82 = vector.shape_cast %81 : vector<1x8x8xf32> to vector<8x8xf32>
    %cst_52 = arith.constant dense<0.000000e+00> : vector<80x8xf32>
    %83 = tpu.matmul %80, %82, %cst_52 {dimension_numbers = #tpu.dot_dimension_numbers<[1], [0], [0], [1], [0, 0, 1, 1], [], []>} : vector<80x8xf32>, vector<8x8xf32>, vector<80x8xf32> -> vector<80x8xf32>
    %84 = arith.addf %78, %83 : vector<80x8xf32>
    %85 = vector.extract_strided_slice %77 {offsets = [0, 1, 0], sizes = [8, 10, 8], strides = [1, 1, 1]} : vector<8x12x8xf32> to vector<8x10x8xf32>
    %86 = vector.shape_cast %85 : vector<8x10x8xf32> to vector<80x8xf32>
    %c1_53 = arith.constant 1 : index
    %c0_54 = arith.constant 0 : index
    %c0_55 = arith.constant 0 : index
    %87 = vector.load %arg8[%c1_53, %c0_54, %c0_55] : memref<3x8x8xf32, #tpu.memory_space<vmem>>, vector<1x8x8xf32>
    %88 = vector.shape_cast %87 : vector<1x8x8xf32> to vector<8x8xf32>
    %cst_56 = arith.constant dense<0.000000e+00> : vector<80x8xf32>
    %89 = tpu.matmul %86, %88, %cst_56 {dimension_numbers = #tpu.dot_dimension_numbers<[1], [0], [0], [1], [0, 0, 1, 1], [], []>} : vector<80x8xf32>, vector<8x8xf32>, vector<80x8xf32> -> vector<80x8xf32>
    %90 = arith.addf %84, %89 : vector<80x8xf32>
    %91 = vector.extract_strided_slice %77 {offsets = [0, 2, 0], sizes = [8, 10, 8], strides = [1, 1, 1]} : vector<8x12x8xf32> to vector<8x10x8xf32>
    %92 = vector.shape_cast %91 : vector<8x10x8xf32> to vector<80x8xf32>
    %c2_57 = arith.constant 2 : index
    %c0_58 = arith.constant 0 : index
    %c0_59 = arith.constant 0 : index
    %93 = vector.load %arg8[%c2_57, %c0_58, %c0_59] : memref<3x8x8xf32, #tpu.memory_space<vmem>>, vector<1x8x8xf32>
    %94 = vector.shape_cast %93 : vector<1x8x8xf32> to vector<8x8xf32>
    %cst_60 = arith.constant dense<0.000000e+00> : vector<80x8xf32>
    %95 = tpu.matmul %92, %94, %cst_60 {dimension_numbers = #tpu.dot_dimension_numbers<[1], [0], [0], [1], [0, 0, 1, 1], [], []>} : vector<80x8xf32>, vector<8x8xf32>, vector<80x8xf32> -> vector<80x8xf32>
    %96 = arith.addf %90, %95 : vector<80x8xf32>
    %c0_61 = arith.constant 0 : index
    %c0_62 = arith.constant 0 : index
    %97 = vector.load %arg9[%c0_61, %c0_62] : memref<1x8xf32, #tpu.memory_space<vmem>>, vector<1x8xf32>
    %98 = vector.broadcast %97 : vector<1x8xf32> to vector<80x8xf32>
    %99 = arith.addf %96, %98 : vector<80x8xf32>
    %cst_63 = arith.constant 0.000000e+00 : f32
    %100 = vector.broadcast %cst_63 : f32 to vector<80x8xf32>
    %101 = arith.maximumf %99, %100 : vector<80x8xf32>
    %102 = vector.shape_cast %101 : vector<80x8xf32> to vector<8x10x8xf32>
    %103 = vector.shape_cast %102 : vector<8x10x8xf32> to vector<8x5x2x8xf32>
    %cst_64 = arith.constant dense<0xFF800000> : vector<8x5x8xf32>
    %104 = vector.multi_reduction <maximumf>, %103, %cst_64 [2] : vector<8x5x2x8xf32> to vector<8x5x8xf32>
    %cst_65 = arith.constant 0.000000e+00 : f32
    %105 = vector.broadcast %cst_65 : f32 to vector<8x64xf32>
    %106 = vector.extract_strided_slice %104 {offsets = [0, 0, 0], sizes = [8, 1, 8], strides = [1, 1, 1]} : vector<8x5x8xf32> to vector<8x1x8xf32>
    %107 = vector.shape_cast %106 : vector<8x1x8xf32> to vector<8x8xf32>
    %c0_66 = arith.constant 0 : index
    %c0_67 = arith.constant 0 : index
    %c0_68 = arith.constant 0 : index
    %108 = vector.load %arg10[%c0_66, %c0_67, %c0_68] : memref<5x8x64xf32, #tpu.memory_space<vmem>>, vector<1x8x64xf32>
    %109 = vector.shape_cast %108 : vector<1x8x64xf32> to vector<8x64xf32>
    %cst_69 = arith.constant dense<0.000000e+00> : vector<8x64xf32>
    %110 = tpu.matmul %107, %109, %cst_69 {dimension_numbers = #tpu.dot_dimension_numbers<[1], [0], [0], [1], [0, 0, 1, 1], [], []>} : vector<8x8xf32>, vector<8x64xf32>, vector<8x64xf32> -> vector<8x64xf32>
    %111 = arith.addf %105, %110 : vector<8x64xf32>
    %112 = vector.extract_strided_slice %104 {offsets = [0, 1, 0], sizes = [8, 1, 8], strides = [1, 1, 1]} : vector<8x5x8xf32> to vector<8x1x8xf32>
    %113 = vector.shape_cast %112 : vector<8x1x8xf32> to vector<8x8xf32>
    %c1_70 = arith.constant 1 : index
    %c0_71 = arith.constant 0 : index
    %c0_72 = arith.constant 0 : index
    %114 = vector.load %arg10[%c1_70, %c0_71, %c0_72] : memref<5x8x64xf32, #tpu.memory_space<vmem>>, vector<1x8x64xf32>
    %115 = vector.shape_cast %114 : vector<1x8x64xf32> to vector<8x64xf32>
    %cst_73 = arith.constant dense<0.000000e+00> : vector<8x64xf32>
    %116 = tpu.matmul %113, %115, %cst_73 {dimension_numbers = #tpu.dot_dimension_numbers<[1], [0], [0], [1], [0, 0, 1, 1], [], []>} : vector<8x8xf32>, vector<8x64xf32>, vector<8x64xf32> -> vector<8x64xf32>
    %117 = arith.addf %111, %116 : vector<8x64xf32>
    %118 = vector.extract_strided_slice %104 {offsets = [0, 2, 0], sizes = [8, 1, 8], strides = [1, 1, 1]} : vector<8x5x8xf32> to vector<8x1x8xf32>
    %119 = vector.shape_cast %118 : vector<8x1x8xf32> to vector<8x8xf32>
    %c2_74 = arith.constant 2 : index
    %c0_75 = arith.constant 0 : index
    %c0_76 = arith.constant 0 : index
    %120 = vector.load %arg10[%c2_74, %c0_75, %c0_76] : memref<5x8x64xf32, #tpu.memory_space<vmem>>, vector<1x8x64xf32>
    %121 = vector.shape_cast %120 : vector<1x8x64xf32> to vector<8x64xf32>
    %cst_77 = arith.constant dense<0.000000e+00> : vector<8x64xf32>
    %122 = tpu.matmul %119, %121, %cst_77 {dimension_numbers = #tpu.dot_dimension_numbers<[1], [0], [0], [1], [0, 0, 1, 1], [], []>} : vector<8x8xf32>, vector<8x64xf32>, vector<8x64xf32> -> vector<8x64xf32>
    %123 = arith.addf %117, %122 : vector<8x64xf32>
    %124 = vector.extract_strided_slice %104 {offsets = [0, 3, 0], sizes = [8, 1, 8], strides = [1, 1, 1]} : vector<8x5x8xf32> to vector<8x1x8xf32>
    %125 = vector.shape_cast %124 : vector<8x1x8xf32> to vector<8x8xf32>
    %c3 = arith.constant 3 : index
    %c0_78 = arith.constant 0 : index
    %c0_79 = arith.constant 0 : index
    %126 = vector.load %arg10[%c3, %c0_78, %c0_79] : memref<5x8x64xf32, #tpu.memory_space<vmem>>, vector<1x8x64xf32>
    %127 = vector.shape_cast %126 : vector<1x8x64xf32> to vector<8x64xf32>
    %cst_80 = arith.constant dense<0.000000e+00> : vector<8x64xf32>
    %128 = tpu.matmul %125, %127, %cst_80 {dimension_numbers = #tpu.dot_dimension_numbers<[1], [0], [0], [1], [0, 0, 1, 1], [], []>} : vector<8x8xf32>, vector<8x64xf32>, vector<8x64xf32> -> vector<8x64xf32>
    %129 = arith.addf %123, %128 : vector<8x64xf32>
    %130 = vector.extract_strided_slice %104 {offsets = [0, 4, 0], sizes = [8, 1, 8], strides = [1, 1, 1]} : vector<8x5x8xf32> to vector<8x1x8xf32>
    %131 = vector.shape_cast %130 : vector<8x1x8xf32> to vector<8x8xf32>
    %c4 = arith.constant 4 : index
    %c0_81 = arith.constant 0 : index
    %c0_82 = arith.constant 0 : index
    %132 = vector.load %arg10[%c4, %c0_81, %c0_82] : memref<5x8x64xf32, #tpu.memory_space<vmem>>, vector<1x8x64xf32>
    %133 = vector.shape_cast %132 : vector<1x8x64xf32> to vector<8x64xf32>
    %cst_83 = arith.constant dense<0.000000e+00> : vector<8x64xf32>
    %134 = tpu.matmul %131, %133, %cst_83 {dimension_numbers = #tpu.dot_dimension_numbers<[1], [0], [0], [1], [0, 0, 1, 1], [], []>} : vector<8x8xf32>, vector<8x64xf32>, vector<8x64xf32> -> vector<8x64xf32>
    %135 = arith.addf %129, %134 : vector<8x64xf32>
    %c0_84 = arith.constant 0 : index
    %c0_85 = arith.constant 0 : index
    %136 = vector.load %arg11[%c0_84, %c0_85] : memref<1x64xf32, #tpu.memory_space<vmem>>, vector<1x64xf32>
    %137 = vector.broadcast %136 : vector<1x64xf32> to vector<8x64xf32>
    %138 = arith.addf %135, %137 : vector<8x64xf32>
    %cst_86 = arith.constant 0.000000e+00 : f32
    %139 = vector.broadcast %cst_86 : f32 to vector<8x64xf32>
    %140 = arith.maximumf %138, %139 : vector<8x64xf32>
    %c0_87 = arith.constant 0 : index
    %c0_88 = arith.constant 0 : index
    %141 = vector.load %arg12[%c0_87, %c0_88] : memref<64x128xf32, #tpu.memory_space<vmem>>, vector<64x128xf32>
    %cst_89 = arith.constant dense<0.000000e+00> : vector<8x128xf32>
    %142 = tpu.matmul %140, %141, %cst_89 {dimension_numbers = #tpu.dot_dimension_numbers<[1], [0], [0], [1], [0, 0, 1, 1], [], []>} : vector<8x64xf32>, vector<64x128xf32>, vector<8x128xf32> -> vector<8x128xf32>
    %c0_90 = arith.constant 0 : index
    %c0_91 = arith.constant 0 : index
    %143 = vector.load %arg13[%c0_90, %c0_91] : memref<1x128xf32, #tpu.memory_space<vmem>>, vector<1x128xf32>
    %144 = vector.broadcast %143 : vector<1x128xf32> to vector<8x128xf32>
    %145 = arith.addf %142, %144 : vector<8x128xf32>
    %146 = arith.negf %145 : vector<8x128xf32>
    %147 = math.exp %146 : vector<8x128xf32>
    %cst_92 = arith.constant 1.000000e+00 : f32
    %148 = vector.broadcast %cst_92 : f32 to vector<8x128xf32>
    %149 = arith.addf %148, %147 : vector<8x128xf32>
    %150 = arith.divf %148, %149 : vector<8x128xf32>
    %c0_93 = arith.constant 0 : index
    %c0_94 = arith.constant 0 : index
    %151 = vector.load %arg14[%c0_93, %c0_94] : memref<8x128xf32, #tpu.memory_space<vmem>>, vector<8x128xf32>
    tpu.vector_store %arg14[%c0_93, %c0_94], %150 {strides = array<i32>} : memref<8x128xf32, #tpu.memory_space<vmem>>, vector<8x128xf32>,
    return
  }
  func.func @transform_0(%arg0: i32) -> (i32, i32, i32) {
    %c0_i32 = arith.constant 0 : i32
    %c0_i32_0 = arith.constant 0 : i32
    %c0_i32_1 = arith.constant 0 : i32
    return %arg0, %c0_i32, %c0_i32_0 : i32, i32, i32
  }
  func.func @transform_1(%arg0: i32) -> (i32, i32, i32) {
    %c0_i32 = arith.constant 0 : i32
    %c0_i32_0 = arith.constant 0 : i32
    %c0_i32_1 = arith.constant 0 : i32
    %c0_i32_2 = arith.constant 0 : i32
    return %c0_i32, %c0_i32_0, %c0_i32_1 : i32, i32, i32
  }
  func.func @transform_2(%arg0: i32) -> (i32, i32) {
    %c0_i32 = arith.constant 0 : i32
    %c0_i32_0 = arith.constant 0 : i32
    %c0_i32_1 = arith.constant 0 : i32
    return %c0_i32, %c0_i32_0 : i32, i32
  }
  func.func @transform_3(%arg0: i32) -> (i32, i32, i32) {
    %c0_i32 = arith.constant 0 : i32
    %c0_i32_0 = arith.constant 0 : i32
    %c0_i32_1 = arith.constant 0 : i32
    %c0_i32_2 = arith.constant 0 : i32
    return %c0_i32, %c0_i32_0, %c0_i32_1 : i32, i32, i32
  }
  func.func @transform_4(%arg0: i32) -> (i32, i32) {
    %c0_i32 = arith.constant 0 : i32
    %c0_i32_0 = arith.constant 0 : i32
    %c0_i32_1 = arith.constant 0 : i32
    return %c0_i32, %c0_i32_0 : i32, i32
  }
  func.func @transform_5(%arg0: i32) -> (i32, i32, i32) {
    %c0_i32 = arith.constant 0 : i32
    %c0_i32_0 = arith.constant 0 : i32
    %c0_i32_1 = arith.constant 0 : i32
    %c0_i32_2 = arith.constant 0 : i32
    return %c0_i32, %c0_i32_0, %c0_i32_1 : i32, i32, i32
  }
  func.func @transform_6(%arg0: i32) -> (i32, i32) {
    %c0_i32 = arith.constant 0 : i32
    %c0_i32_0 = arith.constant 0 : i32
    %c0_i32_1 = arith.constant 0 : i32
    return %c0_i32, %c0_i32_0 : i32, i32
  }
  func.func @transform_7(%arg0: i32) -> (i32, i32, i32) {
    %c0_i32 = arith.constant 0 : i32
    %c0_i32_0 = arith.constant 0 : i32
    %c0_i32_1 = arith.constant 0 : i32
    %c0_i32_2 = arith.constant 0 : i32
    return %c0_i32, %c0_i32_0, %c0_i32_1 : i32, i32, i32
  }
  func.func @transform_8(%arg0: i32) -> (i32, i32) {
    %c0_i32 = arith.constant 0 : i32
    %c0_i32_0 = arith.constant 0 : i32
    %c0_i32_1 = arith.constant 0 : i32
    return %c0_i32, %c0_i32_0 : i32, i32
  }
  func.func @transform_9(%arg0: i32) -> (i32, i32, i32) {
    %c0_i32 = arith.constant 0 : i32
    %c0_i32_0 = arith.constant 0 : i32
    %c0_i32_1 = arith.constant 0 : i32
    %c0_i32_2 = arith.constant 0 : i32
    return %c0_i32, %c0_i32_0, %c0_i32_1 : i32, i32, i32
  }
  func.func @transform_10(%arg0: i32) -> (i32, i32) {
    %c0_i32 = arith.constant 0 : i32
    %c0_i32_0 = arith.constant 0 : i32
    %c0_i32_1 = arith.constant 0 : i32
    return %c0_i32, %c0_i32_0 : i32, i32
  }
  func.func @transform_11(%arg0: i32) -> (i32, i32) {
    %c0_i32 = arith.constant 0 : i32
    %c0_i32_0 = arith.constant 0 : i32
    %c0_i32_1 = arith.constant 0 : i32
    return %c0_i32, %c0_i32_0 : i32, i32
  }
  func.func @transform_12(%arg0: i32) -> (i32, i32) {
    %c0_i32 = arith.constant 0 : i32
    %c0_i32_0 = arith.constant 0 : i32
    %c0_i32_1 = arith.constant 0 : i32
    return %c0_i32, %c0_i32_0 : i32, i32
  }
  func.func @transform_13(%arg0: i32) -> (i32, i32) {
    %c0_i32 = arith.constant 0 : i32
    %c0_i32_0 = arith.constant 0 : i32
    return %arg0, %c0_i32 : i32, i32
  }
}

</mosaic_0001>

<bundles_post_ra>
// kernel: tpu_custom_call.1
= control target key start
LH: loop header
LB: loop body
LE: loop exit
PB: predicated region body
PF: predicated region fallthrough
CT: control target
= control target key end

     0   :  { %s18562_s0 = inlined_call_operand.vmem [shape: f32[16,32,4], index: 0, kind: input, shape index: {}]   ;;  %s18563_s1 = inlined_call_operand.vmem [shape: f32[3,4,8], index: 1, kind: input, shape index: {}]   ;;  %s18564_s2 = inlined_call_operand.vmem [shape: f32[1,8], index: 2, kind: input, shape index: {}]   ;;  %s18565_s3 = inlined_call_operand.vmem [shape: f32[3,8,8], index: 3, kind: input, shape index: {}]   ;;  %s18566_s4 = inlined_call_operand.vmem [shape: f32[1,8], index: 4, kind: input, shape index: {}]   ;;  %s18567_s5 = inlined_call_operand.vmem [shape: f32[3,8,8], index: 5, kind: input, shape index: {}]   ;;  %s18568_s6 = inlined_call_operand.vmem [shape: f32[1,8], index: 6, kind: input, shape index: {}]   ;;  %s18569_s7 = inlined_call_operand.vmem [shape: f32[3,8,8], index: 7, kind: input, shape index: {}]   ;;  %s18570_s8 = inlined_call_operand.vmem [shape: f32[1,8], index: 8, kind: input, shape index: {}]   ;;  %s18571_s9 = inlined_call_operand.vmem [shape: f32[5,8,64], index: 9, kind: input, shape index: {}]   ;;  %s18572_s10 = inlined_call_operand.vmem [shape: f32[1,64], index: 10, kind: input, shape index: {}]   ;;  %s18573_s11 = inlined_call_operand.vmem [shape: f32[64,128], index: 11, kind: input, shape index: {}]   ;;  %s18574_s12 = inlined_call_operand.vmem [shape: f32[1,128], index: 12, kind: input, shape index: {}]   ;;  %s18575_s13 = inlined_call_operand.hbm [shape: f32[16,128], index: 13, kind: output, shape index: {}]  }
   0x1   :  { %18919 = sst [smem:[#allocation99_spill]] %s18562_s0 }
   0x2   :  { %18920 = sst [smem:[#allocation100_spill]] %s18563_s1 }
   0x3   :  { %18921 = sst [smem:[#allocation101_spill]] %s18564_s2 }
   0x4   :  { %18922 = sst [smem:[#allocation102_spill]] %s18565_s3 }
   0x5   :  { %18 = vsyncpa [#allocation3], 0 }
   0x6   :  { %20 = vsyncpa [#allocation3 + $0x1], 0  ;;  %s13008_s25 = smov 0   ;;  %s13010_s26 = smov 0  }
   0x7   :  { %s13012_s27 = smov 0   ;;  %s13014_s28 = smov 0  }
   0x8 LB: > { %s13029_s29 = sadd.s32 4294967295, %s12932_s28   ;;  %s11777_s30 = sadd.s32 4294967294, %s12932_s28   ;;  %s12932_s28 = sphi %s13014_s28, %s19737_s28   ;;  %s12928_s27 = sphi %s13012_s27, %s19736_s27   ;;  %s12924_s26 = sphi %s13010_s26, %s19735_s26   ;;  %s12920_s25 = sphi %s13008_s25, %s19734_s25  }
   0x9   : > { %s13033_s14 = sadd.s32 1, %s12932_s28   ;;  %s311_s15 = sadd.s32 1, %s12928_s27 }
   0xa   : > { %s308_s16 = ssub.s32 %s12932_s28, %s13033_s14  ;;  %p321_p0 = scmp.ne.s32.totalorder %s12928_s27, %s12924_s26 }
   0xb   : > { %p309_p1 = scmp.eq.s32.totalorder %s308_s16, 0  ;;  %p322_p2 = scmp.eq.s32.totalorder %s13029_s29, 1 }
   0xc   : > { %p327_p3 = scmp.ne.s32.totalorder %s12924_s26, %s12920_s25  ;;  %p328_p4 = scmp.eq.s32.totalorder %s11777_s30, 1 }
   0xd   : > { %s13044_s17 = scalar_select %p309_p1, %s12928_s27, %s311_s15  }
   0xe   : > { %p13046_p5 = por %p322_p2, %p321_p0  ;;  %p13050_p6 = por %p328_p4, %p327_p3 }
   0xf   : > { %p11780_p7 = scmp.ge.s32.totalorder %s12932_s28, 1  ;;  %p392_p8 = scmp.lt.s32.totalorder %s12932_s28, 3 }
  0x11   : > { %p393_p9 = pnand %p11780_p7, %p392_p8 }
  0x13   : > { %396 = sbr.rel (%p393_p9) target bundleno = 2230 (0x8b6), region = 72 }
  0x18   : > { %s18925_s1 = sld [smem:[#allocation100_spill]]  ;;  %vm2001_vm0 = vcmask 1043456   ;;  %s11782_s22 = sshll.u32 %s13029_s29, 3  ;;  %v512_v1 = vlaneseq  ;;  %v12934_v2 = vmov 1983009808   ;;  %vm1053_vm1 = vcmask 1040384  }
  0x19   : > { %p438_p10 = scmp.lt.s32.totalorder %s11782_s22, 15  ;;  %v510_v3 = vunpack.c.l.s4 %v12934_v2  ;;  %vm1054_vm2 = vcmask 1042434   ;;  %vm1056_vm4 = vcmask 1044484   ;;  %s18927_s0 = sld [smem:[#allocation99_spill]]  ;;  %vm1058_vm5 = vcmask 1046534  }
  0x1a   : > { %v513_v5 = vshrl.u32 %v512_v1, 7  ;;  %vm1055_vm3 = vmor %vm1053_vm1, %vm1054_vm2  ;;  %v18928_v24 = vmov 0  ;;  %vm1940_vm8 = vcmask 31744   ;;  %s19005_s3 = sld [smem:[#allocation102_spill]]  ;;  %vm5258_vm9 = vcmask 64512   ;;  %s434_s21 = sand.u32 1, %s12924_s26  }
  0x1b   : > { %s19739_s22 = smov (!%p438_p10, %s11782_s22), 15  ;;  %v511_v6 = vunpack.c.0.s8 %v510_v3  ;;  %vm1057_vm6 = vmor %vm1055_vm3, %vm1056_vm4  ;;  %s19082_s2 = sld [smem:[#allocation101_spill]]  ;;  %vm7703_vm10 = vcmask 58368   ;;  %vm8587_vm11 = vcmask 1041409   ;;  %vm8590_vm12 = vcmask 1043459  }
  0x1c   : > { %s12089_s30 = sshll.u32 %s19739_s22, 5  ;;  %vm13110_vm7 = vmor %vm1057_vm6, %vm1058_vm5  ;;  %vm8593_vm13 = vcmask 1045509   ;;  %vm8596_vm14 = vcmask 1047559   ;;  %vm12936_vm15 = vmmov 0   ;;  %s11781_s22 = sshll.u32 %s434_s21, 3 }
  0x1d   : > { %v13073_v7 = vsub.s32 %v511_v6, %v513_v5  ;;  %v18929_v24 = vsel %vm13110_vm7, 4294967295, %v18928_v24  ;;  %s12086_s23 = sshll.u32 %s13029_s29, 7  ;;  %s436_s24 = scalar_lea.vmem [#allocation2], %s11781_s22 }
  0x1e   : > { %v11793_v0 = vld [vmem:[%s18925_s1 + $0x4] sm:$0xf]  ;;  %v13064_v4 = vld [vmem:[%s18925_s1] sm:$0xf]  ;;  %18930 = vst [vmem:[#allocation6_spill] sm:$0xff] %v18929_v24  ;;  %s11705_s16 = scalar_lea.sflag [#allocation3], %s434_s21 }
  0x1f   : > { %12361 = vmatprep.subr.msk.mxu0 %vm2001_vm0, %v11793_v0  ;;  %12789 = vmatprep.subr.msk.mxu1 %vm2001_vm0, %v13064_v4  ;;  %18926 = vst [vmem:[#allocation5_spill] sm:$0xff] %v13073_v7  ;;  %s13079_s20 = scalar_lea.vmem %s18927_s0, %s12089_s30  ;;  %s11718_s30 = sshll.u32 %s436_s24, 4  ;;  %s11719_s30 = int_to_ptr.vmem [resolvable:$true] %s11718_s30 }
  0x20   : > { %12362 = vmatpush3.msk.msra.mxu0 %vm2001_vm0, %v11793_v0  ;;  %12790 = vmatpush3.msk.msra.mxu1 %vm2001_vm0, %v13064_v4  ;;  %v444_v8 = vld [vmem:[%s13079_s20] sm:$0xff]  ;;  %v445_v9 = vld [vmem:[%s13079_s20 + $0x8] sm:$0xff]  ;;  %v446_v10 = vld [vmem:[%s13079_s20 + $0x10] sm:$0xff] }
  0x21   : > { %12408 = vmatprep.subr.msk.mxu0 %vm2001_vm0, %v13064_v4  ;;  %v508_v11 = vcombine.high %v444_v8, %v444_v8  ;;  %v13085_v12 = vrot.slane %v444_v8, %v13073_v7  ;;  %v525_v13 = vcombine.high %v445_v9, %v445_v9  ;;  %v13088_v14 = vrot.slane %v445_v9, %v13073_v7  ;;  %v447_v15 = vld [vmem:[%s13079_s20 + $0x18] sm:$0xff] }
  0x22   : > { %v13093_v16 = vrot.slane %v446_v10, %v13073_v7  ;;  %v542_v17 = vcombine.high %v446_v10, %v446_v10  ;;  %v559_v18 = vcombine.high %v447_v15, %v447_v15  ;;  %v13096_v19 = vrot.slane %v447_v15, %v13073_v7 }
  0x23   : > { %v13099_v20 = vrot.slane %v508_v11, %v13073_v7  ;;  %v13103_v21 = vcombine.high %v13085_v12, %v13085_v12  ;;  %v13106_v22 = vrot.slane %v525_v13, %v13073_v7  ;;  %v11785_v23 = vrot.slane %v13085_v12, 9  ;;  %v448_v11 = vld [vmem:[%s13079_s20 + $0x20] sm:$0xff] }
  0x24   : > { %v1071_v25 = vrot.slane %v13088_v14, 7  ;;  %v13117_v26 = vcombine.high %v13088_v14, %v13088_v14  ;;  %v1083_v27 = vrot.slane %v13093_v16, 7  ;;  %v13121_v28 = vrot.slane %v542_v17, %v13073_v7 }
  0x25   : > { %v13125_v29 = vcombine.high %v13099_v20, %v13099_v20  ;;  %v1062_v30 = vrot.slane %v13103_v21, 7  ;;  %v1065_v31 = vrot.slane %v13099_v20, 7  ;;  %v13131_v32 = vcombine.high %v13106_v22, %v13106_v22 }
  0x26   : > { %v1073_v33 = vrot.slane %v1071_v25, 2  ;;  %v1074_v34 = vrot.slane %v13117_v26, 7  ;;  %v1077_v35 = vrot.slane %v13106_v22, 7  ;;  %v13137_v36 = vcombine.high %v13093_v16, %v13093_v16 }
  0x27   : > { %v1063_v37 = vsel %vm13110_vm7, %v11785_v23, %v1062_v30  ;;  %v1064_v38 = vrot.slane %v1062_v30, 2  ;;  %v1067_v39 = vrot.slane %v1065_v31, 2  ;;  %v1068_v40 = vrot.slane %v13125_v29, 7 }
  0x28   : > { %v1075_v41 = vsel %vm13110_vm7, %v1073_v33, %v1074_v34  ;;  %v1076_v42 = vrot.slane %v1074_v34, 2  ;;  %v1079_v43 = vrot.slane %v1077_v35, 2  ;;  %v1080_v44 = vrot.slane %v13131_v32, 7 }
  0x29   : > { %v1066_v45 = vsel %vm13110_vm7, %v1064_v38, %v1065_v31  ;;  %v1069_v46 = vsel %vm13110_vm7, %v1067_v39, %v1068_v40  ;;  %v1070_v47 = vrot.slane %v1068_v40, 2  ;;  %v13151_v48 = vcombine.high %v13121_v28, %v13121_v28 }
  0x2a   : > { %v1430_v49 = vcombine.low %v1063_v37, %v1066_v45  ;;  %v1078_v50 = vsel %vm13110_vm7, %v1076_v42, %v1077_v35  ;;  %v1081_v51 = vsel %vm13110_vm7, %v1079_v43, %v1080_v44  ;;  %v1082_v52 = vrot.slane %v1080_v44, 2 }
  0x2b   : > { %v1072_v53 = vsel %vm13110_vm7, %v1070_v47, %v1071_v25  ;;  %v1447_v54 = vcombine.low %v1075_v41, %v1078_v50  ;;  %v13160_v55 = vrot.slane %v559_v18, %v13073_v7  ;;  %v1085_v56 = vrot.slane %v1083_v27, 2 }
  0x2c   : > { %v1431_v57 = vcombine.low %v1069_v46, %v1072_v53  ;;  %v1438_v58 = vrot.slane %v1430_v49, %v13073_v7  ;;  %v1084_v59 = vsel %vm13110_vm7, %v1082_v52, %v1083_v27  ;;  %v1086_v60 = vrot.slane %v13137_v36, 7  ;;  %v449_v53 = vld [vmem:[%s13079_s20 + $0x28] sm:$0xff] }
  0x2d   : > { %v1448_v61 = vcombine.low %v1081_v51, %v1084_v59  ;;  %v1455_v62 = vrot.slane %v1447_v54, %v13073_v7  ;;  %v1089_v63 = vrot.slane %v13121_v28, 7  ;;  %v1092_v0 = vrot.slane %v13151_v48, 7 }
  0x2e   : > { %v1445_v1 = vrot.slane %v1431_v57, %v13073_v7  ;;  %v1087_v2 = vsel %vm13110_vm7, %v1085_v56, %v1086_v60  ;;  %v1088_v3 = vrot.slane %v1086_v60, 2  ;;  %v1095_v5 = vrot.slane %v13096_v19, 7 }
  0x2f   : > { %v1462_v6 = vrot.slane %v1448_v61, %v13073_v7  ;;  %v1091_v8 = vrot.slane %v1089_v63, 2  ;;  %v1094_v9 = vrot.slane %v1092_v0, 2  ;;  %v2254_v10 = vcombine.low %v13093_v16, %v13137_v36 }
  0x30   : > { %v1446_v13 = vcombine.low %v1438_v58, %v1445_v1  ;;  %v1090_v15 = vsel %vm13110_vm7, %v1088_v3, %v1089_v63  ;;  %v2255_v17 = vcombine.low %v13121_v28, %v13151_v48  ;;  %v13183_v18 = vcombine.high %v13096_v19, %v13096_v19 }
  0x31   : > { %v1463_v23 = vcombine.low %v1455_v62, %v1462_v6  ;;  %v1093_v25 = vsel %vm13110_vm7, %v1091_v8, %v1092_v0  ;;  %v1096_v27 = vsel %vm13110_vm7, %v1094_v9, %v1095_v5  ;;  %v1464_v30 = vcombine.low %v1087_v2, %v1090_v15 }
  0x32   : > { %12363 = vmatprep.mubr.msk.f32.mxu0 %vm1940_vm8, %v1446_v13  ;;  %v1465_v31 = vcombine.low %v1093_v25, %v1096_v27  ;;  %v2262_v33 = vrot.slane %v2254_v10, %v13073_v7  ;;  %v2269_v34 = vrot.slane %v2255_v17, %v13073_v7  ;;  %v13193_v35 = vrot.slane %v448_v11, %v13073_v7  ;;  %v450_v25 = vld [vmem:[%s13079_s20 + $0x30] sm:$0xff] }
  0x33   : > { %12364 = vmatmul.mubr.msk.f32.vlgmr.msra.gmra.mxu0 %vm1940_vm8, %v1463_v23  ;;  %v1472_v37 = vrot.slane %v1464_v30, %v13073_v7  ;;  %v1045_v38 = vcombine.high %v13160_v55, %v13160_v55  ;;  %v1097_v39 = vrot.slane %v1095_v5, 2  ;;  %v1098_v40 = vrot.slane %v13183_v18, 7 }
  0x34   : > { %12409 = vmatpush3.msk.msra.mxu0 %vm2001_vm0, %v13064_v4  ;;  %v1479_v41 = vrot.slane %v1465_v31, %v13073_v7  ;;  %v2270_v42 = vcombine.low %v2262_v33, %v2269_v34  ;;  %v590_v43 = vcombine.high %v13193_v35, %v13193_v35  ;;  %v1101_v44 = vrot.slane %v13160_v55, 7 }
  0x35   : > { %v1099_v45 = vsel %vm13110_vm7, %v1097_v39, %v1098_v40  ;;  %v1100_v46 = vrot.slane %v1098_v40, 2  ;;  %v1104_v47 = vrot.slane %v1045_v38, 7  ;;  %v11786_v49 = vrot.slane %v13193_v35, 9 }
  0x36   : > { %v1480_v50 = vcombine.low %v1472_v37, %v1479_v41  ;;  %12413 = vmatprep.mubr.msk.f32.mxu1 %vm1940_vm8, %v2270_v42  ;;  %v1103_v51 = vrot.slane %v1101_v44, 2  ;;  %v1108_v4 = vrot.slane %v590_v43, 7  ;;  %v2271_v52 = vcombine.low %v13096_v19, %v13183_v18 }
  0x37   : > { %v1102_v54 = vsel %vm13110_vm7, %v1100_v46, %v1101_v44  ;;  %v2272_v56 = vcombine.low %v13160_v55, %v13193_v35  ;;  %v575_v57 = vcombine.high %v448_v11, %v448_v11  ;;  %v13218_v58 = vrot.slane %v449_v53, %v13073_v7 }
  0x38   : > { %12366 = vmatprep.mubr.msk.f32.mxu0 %vm1940_vm8, %v1480_v50  ;;  %v1105_v59 = vsel %vm13110_vm7, %v1103_v51, %v1104_v47  ;;  %v1109_v60 = vsel %vm13110_vm7, %v11786_v49, %v1108_v4  ;;  %v1481_v61 = vcombine.low %v1099_v45, %v1102_v54  ;;  %v2279_v62 = vrot.slane %v2271_v52, %v13073_v7 }
  0x39   : > { %v1482_v63 = vcombine.low %v1105_v59, %v1109_v60  ;;  %v2286_v0 = vrot.slane %v2272_v56, %v13073_v7  ;;  %v13228_v1 = vrot.slane %v575_v57, %v13073_v7  ;;  %v13232_v2 = vcombine.high %v13218_v58, %v13218_v58  ;;  %v451_v59 = vld [vmem:[%s13079_s20 + $0x38] sm:$0xff] }
  0x3a   : > { %v1489_v3 = vrot.slane %v1481_v61, %v13073_v7  ;;  %v1110_v5 = vrot.slane %v1108_v4, 2  ;;  %v1117_v6 = vrot.slane %v13218_v58, 7  ;;  %v592_v8 = vcombine.high %v449_v53, %v449_v53 }
  0x3b   : > { %v1496_v9 = vrot.slane %v1482_v63, %v13073_v7  ;;  %v2287_v10 = vcombine.low %v2279_v62, %v2286_v0  ;;  %v13239_v11 = vcombine.high %v13228_v1, %v13228_v1  ;;  %v1111_v13 = vrot.slane %v13228_v1, 7 }
  0x3c   : > { %v1119_v15 = vrot.slane %v1117_v6, 2  ;;  %v1120_v17 = vrot.slane %v13232_v2, 7  ;;  %v2288_v23 = vcombine.low %v590_v43, %v13228_v1  ;;  %v13246_v27 = vrot.slane %v592_v8, %v13073_v7 }
  0x3d   : > { %v1497_v30 = vcombine.low %v1489_v3, %v1496_v9  ;;  %12414 = vmatmul.mubr.msk.f32.vlgmr.msra.gmra.mxu1 %vm1940_vm8, %v2287_v10  ;;  %v1112_v31 = vsel %vm13110_vm7, %v1110_v5, %v1111_v13  ;;  %v1113_v33 = vrot.slane %v1111_v13, 2  ;;  %v1114_v34 = vrot.slane %v13239_v11, 7 }
  0x3e   : > { %v1121_v37 = vsel %vm13110_vm7, %v1119_v15, %v1120_v17  ;;  %v2289_v38 = vcombine.low %v13239_v11, %v13218_v58  ;;  %v2296_v39 = vrot.slane %v2288_v23, %v13073_v7  ;;  %v13259_v40 = vcombine.high %v13246_v27, %v13246_v27 }
  0x3f   : > { %12367 = vmatmul.mubr.msk.f32.gmra.mxu0 %vm1940_vm8, %v1497_v30  ;;  %v1115_v41 = vsel %vm13110_vm7, %v1113_v33, %v1114_v34  ;;  %v1116_v42 = vrot.slane %v1114_v34, 2  ;;  %v13265_v43 = vrot.slane %v450_v25, %v13073_v7  ;;  %v1122_v44 = vrot.slane %v1120_v17, 2 }
  0x40   : > { %v1498_v45 = vcombine.low %v1112_v31, %v1115_v41  ;;  %v2303_v46 = vrot.slane %v2289_v38, %v13073_v7  ;;  %v1123_v47 = vrot.slane %v13246_v27, 7  ;;  %v1126_v49 = vrot.slane %v13259_v40, 7 }
  0x41   : > { %v1118_v50 = vsel %vm13110_vm7, %v1116_v42, %v1117_v6  ;;  %v13274_v51 = vcombine.high %v13265_v43, %v13265_v43  ;;  %v1129_v4 = vrot.slane %v13265_v43, 7  ;;  %v2305_v52 = vcombine.low %v13232_v2, %v13246_v27 }
  0x42   : > { %v1499_v53 = vcombine.low %v1118_v50, %v1121_v37  ;;  %v1506_v54 = vrot.slane %v1498_v45, %v13073_v7  ;;  %v2304_v56 = vcombine.low %v2296_v39, %v2303_v46  ;;  %v1124_v57 = vsel %vm13110_vm7, %v1122_v44, %v1123_v47  ;;  %v452_v37 = vld [vmem:[%s13079_s20 + $0x40] sm:$0xff] }
  0x43   : > { %v1125_v60 = vrot.slane %v1123_v47, 2  ;;  %v1128_v61 = vrot.slane %v1126_v49, 2  ;;  %v1131_v62 = vrot.slane %v1129_v4, 2  ;;  %v1132_v63 = vrot.slane %v13274_v51, 7 }
  0x44   : > { %v1513_v0 = vrot.slane %v1499_v53, %v13073_v7  ;;  %12416 = vmatprep.mubr.msk.f32.mxu1 %vm1940_vm8, %v2304_v56  ;;  %v2306_v3 = vcombine.low %v13259_v40, %v13265_v43  ;;  %v2313_v5 = vrot.slane %v2305_v52, %v13073_v7  ;;  %v609_v6 = vcombine.high %v450_v25, %v450_v25 }
  0x45   : > { %v1127_v8 = vsel %vm13110_vm7, %v1125_v60, %v1126_v49  ;;  %v1130_v9 = vsel %vm13110_vm7, %v1128_v61, %v1129_v4  ;;  %v1133_v10 = vsel %vm13110_vm7, %v1131_v62, %v1132_v63  ;;  %v13296_v13 = vrot.slane %v451_v59, %v13073_v7 }
  0x46   : > { %v1514_v15 = vcombine.low %v1506_v54, %v1513_v0  ;;  %v1515_v17 = vcombine.low %v1124_v57, %v1127_v8  ;;  %v1516_v23 = vcombine.low %v1130_v9, %v1133_v10  ;;  %v2320_v30 = vrot.slane %v2306_v3, %v13073_v7 }
  0x47   : > { %v13300_v31 = vrot.slane %v609_v6, %v13073_v7  ;;  %v13304_v25 = vcombine.high %v13296_v13, %v13296_v13  ;;  %v1134_v33 = vrot.slane %v1132_v63, 2  ;;  %v1141_v34 = vrot.slane %v13296_v13, 7 }
  0x48   : > { %12369 = vmatprep.mubr.msk.f32.mxu0 %vm1940_vm8, %v1514_v15  ;;  %v1523_v38 = vrot.slane %v1515_v17, %v13073_v7  ;;  %v1530_v39 = vrot.slane %v1516_v23, %v13073_v7  ;;  %v2321_v41 = vcombine.low %v2313_v5, %v2320_v30  ;;  %v626_v42 = vcombine.high %v451_v59, %v451_v59 }
  0x49   : > { %v13313_v44 = vcombine.high %v13300_v31, %v13300_v31  ;;  %v1135_v45 = vrot.slane %v13300_v31, 7  ;;  %v1143_v46 = vrot.slane %v1141_v34, 2  ;;  %v1144_v47 = vrot.slane %v13304_v25, 7 }
  0x4a   : > { %v1531_v49 = vcombine.low %v1523_v38, %v1530_v39  ;;  %12417 = vmatmul.mubr.msk.f32.gmra.mxu1 %vm1940_vm8, %v2321_v41  ;;  %v2322_v50 = vcombine.low %v13274_v51, %v13300_v31  ;;  %v13321_v4 = vrot.slane %v626_v42, %v13073_v7  ;;  %v642_v52 = vcombine.high %v452_v37, %v452_v37 }
  0x4b   : > { %v1136_v53 = vsel %vm13110_vm7, %v1134_v33, %v1135_v45  ;;  %v1137_v54 = vrot.slane %v1135_v45, 2  ;;  %v1138_v56 = vrot.slane %v13313_v44, 7  ;;  %v1145_v57 = vsel %vm13110_vm7, %v1143_v46, %v1144_v47  ;;  %v453_v33 = vld [vmem:[%s13079_s20 + $0x48] sm:$0xff] }
  0x4c   : > { %12370 = vmatmul.mubr.msk.f32.gmra.mxu0 %vm1940_vm8, %v1531_v49  ;;  %v2323_v59 = vcombine.low %v13313_v44, %v13296_v13  ;;  %v2330_v60 = vrot.slane %v2322_v50, %v13073_v7  ;;  %v649_v61 = vrot.slane %v452_v37, %v13073_v7  ;;  %v13334_v62 = vrot.slane %v642_v52, %v13073_v7 }
  0x4d   : > { %v1139_v63 = vsel %vm13110_vm7, %v1137_v54, %v1138_v56  ;;  %v1140_v0 = vrot.slane %v1138_v56, 2  ;;  %v13340_v3 = vcombine.high %v13321_v4, %v13321_v4  ;;  %v1146_v5 = vrot.slane %v1144_v47, 2 }
  0x4e   : > { %v1532_v6 = vcombine.low %v1136_v53, %v1139_v63  ;;  %v2337_v8 = vrot.slane %v2323_v59, %v13073_v7  ;;  %v13343_v9 = vcombine.high %v649_v61, %v649_v61  ;;  %v1147_v10 = vrot.slane %v13321_v4, 7 }
  0x4f   : > { %v1142_v15 = vsel %vm13110_vm7, %v1140_v0, %v1141_v34  ;;  %v1150_v17 = vrot.slane %v13340_v3, 7  ;;  %v11787_v23 = vrot.slane %v649_v61, 9  ;;  %v1157_v30 = vrot.slane %v13334_v62, 7 }
  0x50   : > { %v1533_v37 = vcombine.low %v1142_v15, %v1145_v57  ;;  %v1540_v38 = vrot.slane %v1532_v6, %v13073_v7  ;;  %v2338_v39 = vcombine.low %v2330_v60, %v2337_v8  ;;  %v1148_v41 = vsel %vm13110_vm7, %v1146_v5, %v1147_v10 }
  0x51   : > { %v1149_v42 = vrot.slane %v1147_v10, 2  ;;  %v1154_v45 = vrot.slane %v13343_v9, 7  ;;  %v2339_v46 = vcombine.low %v13304_v25, %v13321_v4  ;;  %v2340_v34 = vcombine.low %v649_v61, %v13343_v9 }
  0x52   : > { %v1547_v47 = vrot.slane %v1533_v37, %v13073_v7  ;;  %12419 = vmatprep.mubr.msk.f32.mxu1 %vm1940_vm8, %v2338_v39  ;;  %v13362_v49 = vcombine.high %v13334_v62, %v13334_v62  ;;  %v659_v50 = vcombine.high %v453_v33, %v453_v33  ;;  %v13365_v52 = vrot.slane %v453_v33, %v13073_v7  ;;  %v454_v33 = vld [vmem:[%s13079_s20 + $0x50] sm:$0xff] }
  0x53   : > { %v1151_v53 = vsel %vm13110_vm7, %v1149_v42, %v1150_v17  ;;  %v1155_v54 = vsel %vm13110_vm7, %v11787_v23, %v1154_v45  ;;  %v1156_v56 = vrot.slane %v1154_v45, 2  ;;  %v2347_v57 = vrot.slane %v2339_v46, %v13073_v7 }
  0x54   : > { %v1548_v59 = vcombine.low %v1540_v38, %v1547_v47  ;;  %v1549_v60 = vcombine.low %v1148_v41, %v1151_v53  ;;  %v2354_v61 = vrot.slane %v2340_v34, %v13073_v7  ;;  %v13374_v63 = vrot.slane %v659_v50, %v13073_v7 }
  0x55   : > { %v1158_v0 = vsel %vm13110_vm7, %v1156_v56, %v1157_v30  ;;  %v13380_v5 = vcombine.high %v13365_v52, %v13365_v52  ;;  %v1159_v6 = vrot.slane %v1157_v30, 2  ;;  %v1160_v8 = vrot.slane %v13362_v49, 7 }
  0x56   : > { %12372 = vmatprep.mubr.msk.f32.mxu0 %vm1940_vm8, %v1548_v59  ;;  %v1550_v10 = vcombine.low %v1155_v54, %v1158_v0  ;;  %v1557_v15 = vrot.slane %v1549_v60, %v13073_v7  ;;  %v2355_v17 = vcombine.low %v2347_v57, %v2354_v61  ;;  %v1163_v23 = vrot.slane %v13365_v52, 7 }
  0x57   : > { %18931 = vst [vmem:[#allocation7_spill] sm:$0xff] %v13380_v5  ;;  %v1161_v37 = vsel %vm13110_vm7, %v1159_v6, %v1160_v8  ;;  %v1162_v38 = vrot.slane %v1160_v8, 2  ;;  %v1166_v39 = vrot.slane %v13380_v5, 7  ;;  %v1169_v41 = vrot.slane %v13374_v63, 7 }
  0x58   : > { %v1564_v30 = vrot.slane %v1550_v10, %v13073_v7  ;;  %12420 = vmatmul.mubr.msk.f32.gmra.mxu1 %vm1940_vm8, %v2355_v17  ;;  %v1165_v42 = vrot.slane %v1163_v23, 2  ;;  %v2356_v45 = vcombine.low %v13334_v62, %v13362_v49  ;;  %v2357_v46 = vcombine.low %v13365_v52, %v13380_v5 }
  0x59   : > { %v1164_v34 = vsel %vm13110_vm7, %v1162_v38, %v1163_v23  ;;  %v1168_v47 = vrot.slane %v1166_v39, 2  ;;  %v13401_v50 = vcombine.high %v13374_v63, %v13374_v63  ;;  %v676_v53 = vcombine.high %v454_v33, %v454_v33 }
  0x5a   : > { %v1565_v54 = vcombine.low %v1557_v15, %v1564_v30  ;;  %v1167_v56 = vsel %vm13110_vm7, %v1165_v42, %v1166_v39  ;;  %v1566_v57 = vcombine.low %v1161_v37, %v1164_v34  ;;  %v2364_v59 = vrot.slane %v2356_v45, %v13073_v7  ;;  %v455_v39 = vld [vmem:[%s13079_s20 + $0x58] sm:$0xff] }
  0x5b   : > { %18932 = vst [vmem:[#allocation8_spill] sm:$0xff] %v13401_v50  ;;  %v1170_v60 = vsel %vm13110_vm7, %v1168_v47, %v1169_v41  ;;  %v2371_v61 = vrot.slane %v2357_v46, %v13073_v7  ;;  %v13410_v0 = vrot.slane %v454_v33, %v13073_v7  ;;  %v13413_v6 = vrot.slane %v676_v53, %v13073_v7 }
  0x5c   : > { %12373 = vmatmul.mubr.msk.f32.gmra.mxu0 %vm1940_vm8, %v1565_v54  ;;  %v1567_v8 = vcombine.low %v1167_v56, %v1170_v60  ;;  %v1574_v10 = vrot.slane %v1566_v57, %v13073_v7  ;;  %v1171_v15 = vrot.slane %v1169_v41, 2  ;;  %v1172_v17 = vrot.slane %v13401_v50, 7 }
  0x5d   : > { %18933 = vst [vmem:[#allocation9_spill] sm:$0xff] %v13410_v0  ;;  %18934 = vst [vmem:[#allocation10_spill] sm:$0xff] %v13413_v6  ;;  %v2372_v23 = vcombine.low %v2364_v59, %v2371_v61  ;;  %v13420_v37 = vcombine.high %v13410_v0, %v13410_v0  ;;  %v1175_v38 = vrot.slane %v13410_v0, 7  ;;  %v1181_v33 = vrot.slane %v13413_v6, 7 }
  0x5e   : > { %v1581_v30 = vrot.slane %v1567_v8, %v13073_v7  ;;  %v1173_v42 = vsel %vm13110_vm7, %v1171_v15, %v1172_v17  ;;  %v1174_v45 = vrot.slane %v1172_v17, 2  ;;  %v2373_v41 = vcombine.low %v13374_v63, %v13401_v50 }
  0x5f   : > { %18935 = vst [vmem:[#allocation11_spill] sm:$0xff] %v13420_v37  ;;  %12422 = vmatprep.mubr.msk.f32.mxu1 %vm1940_vm8, %v2372_v23  ;;  %v1177_v46 = vrot.slane %v1175_v38, 2  ;;  %v1178_v34 = vrot.slane %v13420_v37, 7  ;;  %v2374_v47 = vcombine.low %v13410_v0, %v13420_v37  ;;  %v13436_v53 = vcombine.high %v13413_v6, %v13413_v6 }
  0x60   : > { %v1582_v54 = vcombine.low %v1574_v10, %v1581_v30  ;;  %v1176_v56 = vsel %vm13110_vm7, %v1174_v45, %v1175_v38  ;;  %v2381_v57 = vrot.slane %v2373_v41, %v13073_v7  ;;  %v693_v59 = vcombine.high %v455_v39, %v455_v39  ;;  %v456_v30 = vld [vmem:[%s13079_s20 + $0x60] sm:$0xff] }
  0x61   : > { %18936 = vst [vmem:[#allocation12_spill] sm:$0xff] %v13436_v53  ;;  %v1179_v60 = vsel %vm13110_vm7, %v1177_v46, %v1178_v34  ;;  %v1180_v61 = vrot.slane %v1178_v34, 2  ;;  %v1583_v8 = vcombine.low %v1173_v42, %v1176_v56  ;;  %v2388_v15 = vrot.slane %v2374_v47, %v13073_v7 }
  0x62   : > { %12375 = vmatprep.mubr.msk.f32.mxu0 %vm1940_vm8, %v1582_v54  ;;  %v13446_v17 = vrot.slane %v455_v39, %v13073_v7  ;;  %v13449_v10 = vrot.slane %v693_v59, %v13073_v7  ;;  %v1183_v23 = vrot.slane %v1181_v33, 2  ;;  %v1184_v38 = vrot.slane %v13436_v53, 7 }
  0x63   : > { %v1182_v45 = vsel %vm13110_vm7, %v1180_v61, %v1181_v33  ;;  %v1591_v41 = vrot.slane %v1583_v8, %v13073_v7  ;;  %v2389_v42 = vcombine.low %v2381_v57, %v2388_v15  ;;  %v2390_v46 = vcombine.low %v13413_v6, %v13436_v53 }
  0x64   : > { %18937 = vst [vmem:[#allocation13_spill] sm:$0xff] %v13446_v17  ;;  %18938 = vst [vmem:[#allocation14_spill] sm:$0xff] %v13449_v10  ;;  %v1584_v34 = vcombine.low %v1179_v60, %v1182_v45  ;;  %v13460_v39 = vcombine.high %v13446_v17, %v13446_v17  ;;  %v1185_v47 = vsel %vm13110_vm7, %v1183_v23, %v1184_v38  ;;  %v1186_v54 = vrot.slane %v1184_v38, 2 }
  0x65   : > { %12423 = vmatmul.mubr.msk.f32.gmra.mxu1 %vm1940_vm8, %v2389_v42  ;;  %v1187_v56 = vrot.slane %v13446_v17, 7  ;;  %v1193_v33 = vrot.slane %v13449_v10, 7  ;;  %v2398_v57 = vrot.slane %v2390_v46, %v13073_v7  ;;  %v709_v59 = vcombine.high %v456_v30, %v456_v30 }
  0x66   : > { %18939 = vst [vmem:[#allocation15_spill] sm:$0xff] %v13460_v39  ;;  %v1598_v61 = vrot.slane %v1584_v34, %v13073_v7  ;;  %v1190_v60 = vrot.slane %v13460_v39, 7  ;;  %v2391_v8 = vcombine.low %v13446_v17, %v13460_v39  ;;  %v13473_v15 = vrot.slane %v456_v30, %v13073_v7  ;;  %v457_v17 = vld [vmem:[%s13079_s20 + $0x68] sm:$0xff] }
  0x67   : > { %v1188_v23 = vsel %vm13110_vm7, %v1186_v54, %v1187_v56  ;;  %v1189_v38 = vrot.slane %v1187_v56, 2  ;;  %v13478_v45 = vrot.slane %v709_v59, %v13073_v7  ;;  %v1047_v42 = vcombine.high %v13449_v10, %v13449_v10 }
  0x68   : > { %18940 = vst [vmem:[#allocation16_spill] sm:$0xff] %v13473_v15  ;;  %v1599_v46 = vcombine.low %v1591_v41, %v1598_v61  ;;  %v1192_v34 = vrot.slane %v1190_v60, 2  ;;  %v1600_v53 = vcombine.low %v1185_v47, %v1188_v23  ;;  %v2405_v37 = vrot.slane %v2391_v8, %v13073_v7 }
  0x69   : > { %18941 = vst [vmem:[#allocation17_spill] sm:$0xff] %v13478_v45  ;;  %v1191_v30 = vsel %vm13110_vm7, %v1189_v38, %v1190_v60  ;;  %v724_v39 = vcombine.high %v13473_v15, %v13473_v15  ;;  %v13489_v54 = vcombine.high %v13478_v45, %v13478_v45  ;;  %v1195_v56 = vrot.slane %v1193_v33, 2 }
  0x6a   : > { %12376 = vmatmul.mubr.msk.f32.gmra.mxu0 %vm1940_vm8, %v1599_v46  ;;  %v1194_v41 = vsel %vm13110_vm7, %v1192_v34, %v1193_v33  ;;  %v1608_v47 = vrot.slane %v1600_v53, %v13073_v7  ;;  %v2406_v59 = vcombine.low %v2398_v57, %v2405_v37  ;;  %v1196_v61 = vrot.slane %v1047_v42, 7 }
  0x6b   : > { %18942 = vst [vmem:[#allocation18_spill] sm:$0xff] %v13489_v54  ;;  %v1601_v8 = vcombine.low %v1191_v30, %v1194_v41  ;;  %v11788_v60 = vrot.slane %v13473_v15, 9  ;;  %v1200_v23 = vrot.slane %v724_v39, 7  ;;  %v1203_v38 = vrot.slane %v13478_v45, 7 }
  0x6c   : > { %12425 = vmatprep.mubr.msk.f32.mxu1 %vm1940_vm8, %v2406_v59  ;;  %v1197_v6 = vsel %vm13110_vm7, %v1195_v56, %v1196_v61  ;;  %v1206_v46 = vrot.slane %v13489_v54, 7  ;;  %v2407_v53 = vcombine.low %v13449_v10, %v13473_v15  ;;  %v2408_v37 = vcombine.low %v724_v39, %v13478_v45  ;;  %v458_v45 = vld [vmem:[%s13079_s20 + $0x70] sm:$0xff] }
  0x6d   : > { %v1615_v33 = vrot.slane %v1601_v8, %v13073_v7  ;;  %v1201_v57 = vsel %vm13110_vm7, %v11788_v60, %v1200_v23  ;;  %v1202_v42 = vrot.slane %v1200_v23, 2  ;;  %v1205_v34 = vrot.slane %v1203_v38, 2 }
  0x6e   : > { %v1617_v30 = vcombine.low %v1197_v6, %v1201_v57  ;;  %v2415_v41 = vrot.slane %v2407_v53, %v13073_v7  ;;  %v2422_v56 = vrot.slane %v2408_v37, %v13073_v7  ;;  %v726_v59 = vcombine.high %v457_v17, %v457_v17 }
  0x6f   : > { %v1616_v61 = vcombine.low %v1608_v47, %v1615_v33  ;;  %v1204_v50 = vsel %vm13110_vm7, %v1202_v42, %v1203_v38  ;;  %v1207_v39 = vsel %vm13110_vm7, %v1205_v34, %v1206_v46  ;;  %v13515_v8 = vrot.slane %v457_v17, %v13073_v7 }
  0x70   : > { %v1618_v60 = vcombine.low %v1204_v50, %v1207_v39  ;;  %v1625_v23 = vrot.slane %v1617_v30, %v13073_v7  ;;  %v2423_v6 = vcombine.low %v2415_v41, %v2422_v56  ;;  %v13520_v53 = vrot.slane %v726_v59, %v13073_v7 }
  0x71   : > { %18943 = vst [vmem:[#allocation19_spill] sm:$0xff] %v13515_v8  ;;  %12378 = vmatprep.mubr.msk.f32.mxu0 %vm1940_vm8, %v1616_v61  ;;  %v13525_v47 = vcombine.high %v13515_v8, %v13515_v8  ;;  %v1208_v38 = vrot.slane %v1206_v46, 2  ;;  %v1209_v37 = vrot.slane %v13515_v8, 7  ;;  %v2424_v17 = vcombine.low %v13489_v54, %v13515_v8  ;;  %v11856_v46 = vld [vmem:[%s18925_s1 + $0x8] sm:$0xf] }
  0x72   : > { %18944 = vst [vmem:[#allocation20_spill] sm:$0xff] %v13520_v53  ;;  %v1632_v50 = vrot.slane %v1618_v60, %v13073_v7  ;;  %12426 = vmatmul.mubr.msk.f32.gmra.mxu1 %vm1940_vm8, %v2423_v6  ;;  %v13534_v33 = vcombine.high %v13520_v53, %v13520_v53  ;;  %v1215_v57 = vrot.slane %v13520_v53, 7  ;;  %v743_v42 = vcombine.high %v458_v45, %v458_v45 }
  0x73   : > { %18945 = vst [vmem:[#allocation21_spill] sm:$0xff] %v13525_v47  ;;  %v1210_v34 = vsel %vm13110_vm7, %v1208_v38, %v1209_v37  ;;  %v1211_v30 = vrot.slane %v1209_v37, 2  ;;  %v1212_v41 = vrot.slane %v13525_v47, 7  ;;  %v2425_v56 = vcombine.low %v13525_v47, %v13520_v53  ;;  %12455 = vmatprep.subr.msk.mxu0 %vm2001_vm0, %v11856_v46  ;;  %v460_v47 = vld [vmem:[%s13079_s20 + $0x80] sm:$0xff] }
  0x74   : > { %18946 = vst [vmem:[#allocation22_spill] sm:$0xff] %v13534_v33  ;;  %v1633_v59 = vcombine.low %v1625_v23, %v1632_v50  ;;  %v1217_v61 = vrot.slane %v1215_v57, 2  ;;  %v1218_v39 = vrot.slane %v13534_v33, 7  ;;  %v2432_v60 = vrot.slane %v2424_v17, %v13073_v7 }
  0x75   : > { %v1213_v6 = vsel %vm13110_vm7, %v1211_v30, %v1212_v41  ;;  %v1214_v8 = vrot.slane %v1212_v41, 2  ;;  %v2439_v38 = vrot.slane %v2425_v56, %v13073_v7  ;;  %v13552_v37 = vrot.slane %v458_v45, %v13073_v7 }
  0x76   : > { %12379 = vmatmul.mubr.msk.f32.gmra.mxu0 %vm1940_vm8, %v1633_v59  ;;  %v1219_v23 = vsel %vm13110_vm7, %v1217_v61, %v1218_v39  ;;  %v1634_v50 = vcombine.low %v1210_v34, %v1213_v6  ;;  %v13558_v46 = vrot.slane %v743_v42, %v13073_v7  ;;  %v1220_v17 = vrot.slane %v1218_v39, 2  ;;  %v459_v61 = vld [vmem:[%s13079_s20 + $0x78] sm:$0xff] }
  0x77   : > { %18947 = vst [vmem:[#allocation23_spill] sm:$0xff] %v13552_v37  ;;  %v1216_v30 = vsel %vm13110_vm7, %v1214_v8, %v1215_v57  ;;  %v2440_v41 = vcombine.low %v2432_v60, %v2439_v38  ;;  %v13564_v56 = vcombine.high %v13552_v37, %v13552_v37  ;;  %v1221_v45 = vrot.slane %v13552_v37, 7 }
  0x78   : > { %18948 = vst [vmem:[#allocation24_spill] sm:$0xff] %v13558_v46  ;;  %v1635_v53 = vcombine.low %v1216_v30, %v1219_v23  ;;  %v1642_v59 = vrot.slane %v1634_v50, %v13073_v7  ;;  %v13570_v34 = vcombine.high %v13558_v46, %v13558_v46  ;;  %v1227_v42 = vrot.slane %v13558_v46, 7 }
  0x79   : > { %18949 = vst [vmem:[#allocation25_spill] sm:$0xff] %v13564_v56  ;;  %12428 = vmatprep.mubr.msk.f32.mxu1 %vm1940_vm8, %v2440_v41  ;;  %v1222_v8 = vsel %vm13110_vm7, %v1220_v17, %v1221_v45  ;;  %v1223_v57 = vrot.slane %v1221_v45, 2  ;;  %v1224_v39 = vrot.slane %v13564_v56, 7  ;;  %v2441_v60 = vcombine.low %v13534_v33, %v13552_v37 }
  0x7a   : > { %18950 = vst [vmem:[#allocation26_spill] sm:$0xff] %v13570_v34  ;;  %v1649_v6 = vrot.slane %v1635_v53, %v13073_v7  ;;  %v1229_v38 = vrot.slane %v1227_v42, 2  ;;  %v1230_v23 = vrot.slane %v13570_v34, 7  ;;  %v2442_v50 = vcombine.low %v13564_v56, %v13558_v46 }
  0x7b   : > { %v1225_v30 = vsel %vm13110_vm7, %v1223_v57, %v1224_v39  ;;  %v1226_v41 = vrot.slane %v1224_v39, 2  ;;  %v2449_v17 = vrot.slane %v2441_v60, %v13073_v7  ;;  %v760_v45 = vcombine.high %v459_v61, %v459_v61 }
  0x7c   : > { %v1650_v54 = vcombine.low %v1642_v59, %v1649_v6  ;;  %v1231_v37 = vsel %vm13110_vm7, %v1229_v38, %v1230_v23  ;;  %v1651_v33 = vcombine.low %v1222_v8, %v1225_v30  ;;  %v2456_v53 = vrot.slane %v2442_v50, %v13073_v7 }
  0x7d   : > { %v1228_v15 = vsel %vm13110_vm7, %v1226_v41, %v1227_v42  ;;  %v13594_v46 = vrot.slane %v459_v61, %v13073_v7  ;;  %v13597_v57 = vrot.slane %v760_v45, %v13073_v7  ;;  %v1232_v39 = vrot.slane %v1230_v23, 2 }
  0x7e   : > { %12381 = vmatprep.mubr.msk.f32.mxu0 %vm1940_vm8, %v1650_v54  ;;  %v1652_v60 = vcombine.low %v1228_v15, %v1231_v37  ;;  %v1659_v59 = vrot.slane %v1651_v33, %v13073_v7  ;;  %v2457_v6 = vcombine.low %v2449_v17, %v2456_v53  ;;  %v776_v38 = vcombine.high %v460_v47, %v460_v47 }
  0x7f   : > { %18951 = vst [vmem:[#allocation27_spill] sm:$0xff] %v13594_v46  ;;  %18952 = vst [vmem:[#allocation28_spill] sm:$0xff] %v13597_v57  ;;  %v13603_v8 = vcombine.high %v13594_v46, %v13594_v46  ;;  %v13607_v42 = vcombine.high %v13597_v57, %v13597_v57  ;;  %v1233_v61 = vrot.slane %v13594_v46, 7  ;;  %v1239_v50 = vrot.slane %v13597_v57, 7 }
  0x80   : > { %v1666_v54 = vrot.slane %v1652_v60, %v13073_v7  ;;  %12429 = vmatmul.mubr.msk.f32.gmra.mxu1 %vm1940_vm8, %v2457_v6  ;;  %v2458_v15 = vcombine.low %v13570_v34, %v13594_v46  ;;  %v783_v33 = vrot.slane %v460_v47, %v13073_v7  ;;  %v13617_v37 = vrot.slane %v776_v38, %v13073_v7  ;;  %v461_v46 = vld [vmem:[%s13079_s20 + $0x88] sm:$0xff] }
  0x81   : > { %18953 = vst [vmem:[#allocation29_spill] sm:$0xff] %v13603_v8  ;;  %18954 = vst [vmem:[#allocation30_spill] sm:$0xff] %v13607_v42  ;;  %v1234_v23 = vsel %vm13110_vm7, %v1232_v39, %v1233_v61  ;;  %v1235_v30 = vrot.slane %v1233_v61, 2  ;;  %v1236_v41 = vrot.slane %v13603_v8, 7  ;;  %v1241_v17 = vrot.slane %v1239_v50, 2 }
  0x82   : > { %18955 = vst [vmem:[#allocation31_spill] sm:$0xff] %v13617_v37  ;;  %v1667_v45 = vcombine.low %v1659_v59, %v1666_v54  ;;  %v1242_v53 = vrot.slane %v13607_v42, 7  ;;  %v2459_v60 = vcombine.low %v13603_v8, %v13597_v57  ;;  %v2466_v6 = vrot.slane %v2458_v15, %v13073_v7 }
  0x83   : > { %v1237_v47 = vsel %vm13110_vm7, %v1235_v30, %v1236_v41  ;;  %v1238_v38 = vrot.slane %v1236_v41, 2  ;;  %v13629_v34 = vcombine.high %v783_v33, %v783_v33  ;;  %v13633_v39 = vcombine.high %v13617_v37, %v13617_v37 }
  0x84   : > { %12382 = vmatmul.mubr.msk.f32.gmra.mxu0 %vm1940_vm8, %v1667_v45  ;;  %v1243_v59 = vsel %vm13110_vm7, %v1241_v17, %v1242_v53  ;;  %v1668_v61 = vcombine.low %v1234_v23, %v1237_v47  ;;  %v2473_v54 = vrot.slane %v2459_v60, %v13073_v7  ;;  %v13640_v15 = vrot.slane %v461_v46, %v13073_v7 }
  0x85   : > { %18956 = vst [vmem:[#allocation32_spill] sm:$0xff] %v13629_v34  ;;  %18957 = vst [vmem:[#allocation33_spill] sm:$0xff] %v13633_v39  ;;  %v1240_v30 = vsel %vm13110_vm7, %v1238_v38, %v1239_v50  ;;  %v11789_v41 = vrot.slane %v783_v33, 9  ;;  %v1246_v57 = vrot.slane %v13629_v34, 7  ;;  %v1249_v42 = vrot.slane %v13617_v37, 7 }
  0x86   : > { %18958 = vst [vmem:[#allocation34_spill] sm:$0xff] %v13640_v15  ;;  %v1669_v8 = vcombine.low %v1240_v30, %v1243_v59  ;;  %v1676_v45 = vrot.slane %v1668_v61, %v13073_v7  ;;  %v2474_v56 = vcombine.low %v2466_v6, %v2473_v54  ;;  %v1252_v17 = vrot.slane %v13633_v39, 7 }
  0x87   : > { %v1247_v23 = vsel %vm13110_vm7, %v11789_v41, %v1246_v57  ;;  %v1248_v53 = vrot.slane %v1246_v57, 2  ;;  %v1251_v60 = vrot.slane %v1249_v42, 2  ;;  %v1255_v47 = vrot.slane %v13640_v15, 7 }
  0x88   : > { %v1683_v50 = vrot.slane %v1669_v8, %v13073_v7  ;;  %12431 = vmatprep.mubr.msk.f32.mxu1 %vm1940_vm8, %v2474_v56  ;;  %v1254_v38 = vrot.slane %v1252_v17, 2  ;;  %v2475_v59 = vcombine.low %v783_v33, %v13629_v34  ;;  %v2476_v6 = vcombine.low %v13617_v37, %v13633_v39  ;;  %v462_v39 = vld [vmem:[%s13079_s20 + $0x90] sm:$0xff] }
  0x89   : > { %v1250_v61 = vsel %vm13110_vm7, %v1248_v53, %v1249_v42  ;;  %v1253_v57 = vsel %vm13110_vm7, %v1251_v60, %v1252_v17  ;;  %v793_v54 = vcombine.high %v461_v46, %v461_v46  ;;  %v13662_v30 = vcombine.high %v13640_v15, %v13640_v15 }
  0x8a   : > { %v1684_v8 = vcombine.low %v1676_v45, %v1683_v50  ;;  %v1256_v56 = vsel %vm13110_vm7, %v1254_v38, %v1255_v47  ;;  %v1685_v41 = vcombine.low %v1247_v23, %v1250_v61  ;;  %v2483_v33 = vrot.slane %v2475_v59, %v13073_v7  ;;  %v463_v61 = vld [vmem:[%s13079_s20 + $0x98] sm:$0xff] }
  0x8b   : > { %18959 = vst [vmem:[#allocation35_spill] sm:$0xff] %v13662_v30  ;;  %v1686_v34 = vcombine.low %v1253_v57, %v1256_v56  ;;  %v2490_v42 = vrot.slane %v2476_v6, %v13073_v7  ;;  %v13670_v53 = vrot.slane %v793_v54, %v13073_v7  ;;  %v13673_v46 = vrot.slane %v462_v39, %v13073_v7 }
  0x8c   : > { %12384 = vmatprep.mubr.msk.f32.mxu0 %vm1940_vm8, %v1684_v8  ;;  %v1693_v45 = vrot.slane %v1685_v41, %v13073_v7  ;;  %v1257_v17 = vrot.slane %v1255_v47, 2  ;;  %v1258_v23 = vrot.slane %v13662_v30, 7  ;;  %v2492_v60 = vcombine.low %v13640_v15, %v13662_v30 }
  0x8d   : > { %18960 = vst [vmem:[#allocation36_spill] sm:$0xff] %v13670_v53  ;;  %18961 = vst [vmem:[#allocation37_spill] sm:$0xff] %v13673_v46  ;;  %v1700_v50 = vrot.slane %v1686_v34, %v13073_v7  ;;  %v2491_v38 = vcombine.low %v2483_v33, %v2490_v42  ;;  %v13683_v59 = vcombine.high %v13670_v53, %v13670_v53  ;;  %v1261_v6 = vrot.slane %v13670_v53, 7 }
  0x8e   : > { %v1259_v57 = vsel %vm13110_vm7, %v1257_v17, %v1258_v23  ;;  %v1260_v54 = vrot.slane %v1258_v23, 2  ;;  %v1267_v47 = vrot.slane %v13673_v46, 7  ;;  %v2500_v8 = vrot.slane %v2492_v60, %v13073_v7 }
  0x8f   : > { %18962 = vst [vmem:[#allocation38_spill] sm:$0xff] %v13683_v59  ;;  %v1701_v56 = vcombine.low %v1693_v45, %v1700_v50  ;;  %12432 = vmatmul.mubr.msk.f32.gmra.mxu1 %vm1940_vm8, %v2491_v38  ;;  %v1263_v34 = vrot.slane %v1261_v6, 2  ;;  %v1264_v41 = vrot.slane %v13683_v59, 7  ;;  %v2493_v33 = vcombine.low %v13670_v53, %v13683_v59 }
  0x90   : > { %v1262_v42 = vsel %vm13110_vm7, %v1260_v54, %v1261_v6  ;;  %v810_v30 = vcombine.high %v462_v39, %v462_v39  ;;  %v13699_v17 = vcombine.high %v13673_v46, %v13673_v46  ;;  %v827_v23 = vcombine.high %v463_v61, %v463_v61 }
  0x91   : > { %12385 = vmatmul.mubr.msk.f32.gmra.mxu0 %vm1940_vm8, %v1701_v56  ;;  %v1265_v45 = vsel %vm13110_vm7, %v1263_v34, %v1264_v41  ;;  %v1266_v60 = vrot.slane %v1264_v41, 2  ;;  %v1702_v50 = vcombine.low %v1259_v57, %v1262_v42  ;;  %v2507_v38 = vrot.slane %v2493_v33, %v13073_v7 }
  0x92   : > { %18963 = vst [vmem:[#allocation39_spill] sm:$0xff] %v13699_v17  ;;  %v13706_v59 = vrot.slane %v810_v30, %v13073_v7  ;;  %v13709_v6 = vrot.slane %v463_v61, %v13073_v7  ;;  %v13712_v39 = vrot.slane %v827_v23, %v13073_v7  ;;  %v1269_v54 = vrot.slane %v1267_v47, 2 }
  0x93   : > { %v1268_v56 = vsel %vm13110_vm7, %v1266_v60, %v1267_v47  ;;  %v1710_v53 = vrot.slane %v1702_v50, %v13073_v7  ;;  %v2508_v34 = vcombine.low %v2500_v8, %v2507_v38  ;;  %v1270_v57 = vrot.slane %v13699_v17, 7 }
  0x94   : > { %18964 = vst [vmem:[#allocation40_spill] sm:$0xff] %v13706_v59  ;;  %18965 = vst [vmem:[#allocation41_spill] sm:$0xff] %v13712_v39  ;;  %v1703_v41 = vcombine.low %v1265_v45, %v1268_v56  ;;  %v13720_v30 = vcombine.high %v13706_v59, %v13706_v59  ;;  %v1273_v61 = vrot.slane %v13706_v59, 7  ;;  %v1279_v33 = vrot.slane %v13709_v6, 7  ;;  %v464_v56 = vld [vmem:[%s13079_s20 + $0xa0] sm:$0xff] }
  0x95   : > { %12434 = vmatprep.mubr.msk.f32.mxu1 %vm1940_vm8, %v2508_v34  ;;  %v1271_v47 = vsel %vm13110_vm7, %v1269_v54, %v1270_v57  ;;  %v1272_v42 = vrot.slane %v1270_v57, 2  ;;  %v2509_v8 = vcombine.low %v13673_v46, %v13699_v17  ;;  %v13731_v23 = vcombine.high %v13709_v6, %v13709_v6 }
  0x96   : > { %18966 = vst [vmem:[#allocation42_spill] sm:$0xff] %v13720_v30  ;;  %v1717_v45 = vrot.slane %v1703_v41, %v13073_v7  ;;  %v1275_v60 = vrot.slane %v1273_v61, 2  ;;  %v1276_v50 = vrot.slane %v13720_v30, 7  ;;  %v2510_v38 = vcombine.low %v13706_v59, %v13720_v30 }
  0x97   : > { %18967 = vst [vmem:[#allocation43_spill] sm:$0xff] %v13731_v23  ;;  %v1274_v54 = vsel %vm13110_vm7, %v1272_v42, %v1273_v61  ;;  %v2517_v34 = vrot.slane %v2509_v8, %v13073_v7  ;;  %v13742_v57 = vrot.slane %v464_v56, %v13073_v7  ;;  %v1049_v17 = vcombine.high %v13712_v39, %v13712_v39 }
  0x98   : > { %v1718_v46 = vcombine.low %v1710_v53, %v1717_v45  ;;  %v1277_v41 = vsel %vm13110_vm7, %v1275_v60, %v1276_v50  ;;  %v1278_v15 = vrot.slane %v1276_v50, 2  ;;  %v1719_v37 = vcombine.low %v1271_v47, %v1274_v54 }
  0x99   : > { %18968 = vst [vmem:[#allocation44_spill] sm:$0xff] %v13742_v57  ;;  %v2524_v30 = vrot.slane %v2510_v38, %v13073_v7  ;;  %v858_v59 = vcombine.high %v13742_v57, %v13742_v57  ;;  %v1281_v61 = vrot.slane %v1279_v33, 2  ;;  %v1282_v42 = vrot.slane %v13731_v23, 7 }
  0x9a   : > { %12387 = vmatprep.mubr.msk.f32.mxu0 %vm1940_vm8, %v1718_v46  ;;  %v1280_v8 = vsel %vm13110_vm7, %v1278_v15, %v1279_v33  ;;  %v1727_v53 = vrot.slane %v1719_v37, %v13073_v7  ;;  %v1285_v45 = vrot.slane %v13712_v39, 7  ;;  %v1288_v60 = vrot.slane %v1049_v17, 7 }
  0x9b   : > { %v1720_v47 = vcombine.low %v1277_v41, %v1280_v8  ;;  %v2525_v50 = vcombine.low %v2517_v34, %v2524_v30  ;;  %v1283_v38 = vsel %vm13110_vm7, %v1281_v61, %v1282_v42  ;;  %v1284_v54 = vrot.slane %v1282_v42, 2  ;;  %v465_v30 = vld [vmem:[%s13079_s20 + $0xa8] sm:$0xff] }
  0x9c   : > { %v1287_v10 = vrot.slane %v1285_v45, 2  ;;  %v11790_v0 = vrot.slane %v13742_v57, 9  ;;  %v1292_v5 = vrot.slane %v858_v59, 7  ;;  %v2526_v46 = vcombine.low %v13709_v6, %v13731_v23 }
  0x9d   : > { %v1734_v15 = vrot.slane %v1720_v47, %v13073_v7  ;;  %12435 = vmatmul.mubr.msk.f32.gmra.mxu1 %vm1940_vm8, %v2525_v50  ;;  %v1286_v37 = vsel %vm13110_vm7, %v1284_v54, %v1285_v45  ;;  %v2527_v17 = vcombine.low %v13712_v39, %v13742_v57  ;;  %v843_v33 = vcombine.high %v464_v56, %v464_v56 }
  0x9e   : > { %v1289_v34 = vsel %vm13110_vm7, %v1287_v10, %v1288_v60  ;;  %v1293_v41 = vsel %vm13110_vm7, %v11790_v0, %v1292_v5  ;;  %v1736_v61 = vcombine.low %v1283_v38, %v1286_v37  ;;  %v2534_v42 = vrot.slane %v2526_v46, %v13073_v7 }
  0x9f   : > { %v1735_v8 = vcombine.low %v1727_v53, %v1734_v15  ;;  %v1737_v47 = vcombine.low %v1289_v34, %v1293_v41  ;;  %v2541_v50 = vrot.slane %v2527_v17, %v13073_v7  ;;  %v13776_v45 = vrot.slane %v843_v33, %v13073_v7 }
  0xa0   : > { %v1744_v54 = vrot.slane %v1736_v61, %v13073_v7  ;;  %v13780_v56 = vrot.slane %v465_v30, %v13073_v7  ;;  %v1294_v57 = vrot.slane %v1292_v5, 2  ;;  %v860_v10 = vcombine.high %v465_v30, %v465_v30 }
  0xa1   : > { %18969 = vst [vmem:[#allocation45_spill] sm:$0xff] %v13776_v45  ;;  %12388 = vmatmul.mubr.msk.f32.gmra.mxu0 %vm1940_vm8, %v1735_v8  ;;  %v1751_v0 = vrot.slane %v1737_v47, %v13073_v7  ;;  %v2542_v60 = vcombine.low %v2534_v42, %v2541_v50  ;;  %v13786_v53 = vcombine.high %v13776_v45, %v13776_v45  ;;  %v1295_v38 = vrot.slane %v13776_v45, 7  ;;  %v466_v8 = vld [vmem:[%s13079_s20 + $0xb0] sm:$0xff] }
  0xa2   : > { %18970 = vst [vmem:[#allocation46_spill] sm:$0xff] %v13780_v56  ;;  %v13791_v46 = vcombine.high %v13780_v56, %v13780_v56  ;;  %v1301_v15 = vrot.slane %v13780_v56, 7  ;;  %v2543_v5 = vcombine.low %v858_v59, %v13776_v45  ;;  %v13796_v37 = vrot.slane %v860_v10, %v13073_v7 }
  0xa3   : > { %18971 = vst [vmem:[#allocation47_spill] sm:$0xff] %v13786_v53  ;;  %v1752_v17 = vcombine.low %v1744_v54, %v1751_v0  ;;  %12437 = vmatprep.mubr.msk.f32.mxu1 %vm1940_vm8, %v2542_v60  ;;  %v1296_v30 = vsel %vm13110_vm7, %v1294_v57, %v1295_v38  ;;  %v1297_v33 = vrot.slane %v1295_v38, 2  ;;  %v1298_v34 = vrot.slane %v13786_v53, 7 }
  0xa4   : > { %18972 = vst [vmem:[#allocation48_spill] sm:$0xff] %v13791_v46  ;;  %18973 = vst [vmem:[#allocation49_spill] sm:$0xff] %v13796_v37  ;;  %v1303_v41 = vrot.slane %v1301_v15, 2  ;;  %v1304_v61 = vrot.slane %v13791_v46, 7  ;;  %v2544_v42 = vcombine.low %v13786_v53, %v13780_v56  ;;  %v2551_v59 = vrot.slane %v2543_v5, %v13073_v7 }
  0xa5   : > { %12390 = vmatprep.mubr.msk.f32.mxu0 %vm1940_vm8, %v1752_v17  ;;  %v1299_v47 = vsel %vm13110_vm7, %v1297_v33, %v1298_v34  ;;  %v1300_v50 = vrot.slane %v1298_v34, 2  ;;  %v13812_v57 = vcombine.high %v13796_v37, %v13796_v37  ;;  %v13815_v54 = vrot.slane %v466_v8, %v13073_v7 }
  0xa6   : > { %v1305_v10 = vsel %vm13110_vm7, %v1303_v41, %v1304_v61  ;;  %v1753_v0 = vcombine.low %v1296_v30, %v1299_v47  ;;  %v2558_v60 = vrot.slane %v2544_v42, %v13073_v7  ;;  %v1306_v38 = vrot.slane %v1304_v61, 2  ;;  %v467_v41 = vld [vmem:[%s13079_s20 + $0xb8] sm:$0xff] }
  0xa7   : > { %18974 = vst [vmem:[#allocation50_spill] sm:$0xff] %v13812_v57  ;;  %18975 = vst [vmem:[#allocation51_spill] sm:$0xff] %v13815_v54  ;;  %v1302_v5 = vsel %vm13110_vm7, %v1300_v50, %v1301_v15  ;;  %v13824_v17 = vcombine.high %v13815_v54, %v13815_v54  ;;  %v1307_v33 = vrot.slane %v13796_v37, 7  ;;  %v1310_v34 = vrot.slane %v13812_v57, 7 }
  0xa8   : > { %v1754_v56 = vcombine.low %v1302_v5, %v1305_v10  ;;  %v1761_v45 = vrot.slane %v1753_v0, %v13073_v7  ;;  %v2559_v53 = vcombine.low %v2551_v59, %v2558_v60  ;;  %v1313_v30 = vrot.slane %v13815_v54, 7 }
  0xa9   : > { %18976 = vst [vmem:[#allocation52_spill] sm:$0xff] %v13824_v17  ;;  %v1308_v61 = vsel %vm13110_vm7, %v1306_v38, %v1307_v33  ;;  %v1309_v42 = vrot.slane %v1307_v33, 2  ;;  %v1312_v15 = vrot.slane %v1310_v34, 2  ;;  %v1316_v47 = vrot.slane %v13824_v17, 7 }
  0xaa   : > { %v1768_v50 = vrot.slane %v1754_v56, %v13073_v7  ;;  %12438 = vmatmul.mubr.msk.f32.gmra.mxu1 %vm1940_vm8, %v2559_v53  ;;  %v1315_v23 = vrot.slane %v1313_v30, 2  ;;  %v2560_v10 = vcombine.low %v13791_v46, %v13796_v37  ;;  %v2561_v59 = vcombine.low %v13812_v57, %v13815_v54 }
  0xab   : > { %v1311_v0 = vsel %vm13110_vm7, %v1309_v42, %v1310_v34  ;;  %v1314_v60 = vsel %vm13110_vm7, %v1312_v15, %v1313_v30  ;;  %v877_v38 = vcombine.high %v466_v8, %v466_v8  ;;  %v13845_v5 = vrot.slane %v467_v41, %v13073_v7 }
  0xac   : > { %v1769_v56 = vcombine.low %v1761_v45, %v1768_v50  ;;  %v1317_v53 = vsel %vm13110_vm7, %v1315_v23, %v1316_v47  ;;  %v1770_v33 = vcombine.low %v1308_v61, %v1311_v0  ;;  %v2568_v37 = vrot.slane %v2560_v10, %v13073_v7 }
  0xad   : > { %18977 = vst [vmem:[#allocation53_spill] sm:$0xff] %v13845_v5  ;;  %v1771_v46 = vcombine.low %v1314_v60, %v1317_v53  ;;  %v2575_v54 = vrot.slane %v2561_v59, %v13073_v7  ;;  %v13852_v34 = vrot.slane %v877_v38, %v13073_v7  ;;  %v13856_v8 = vcombine.high %v13845_v5, %v13845_v5  ;;  %v468_v59 = vld [vmem:[%s13079_s20 + $0xc0] sm:$0xff] }
  0xae   : > { %12391 = vmatmul.mubr.msk.f32.gmra.mxu0 %vm1940_vm8, %v1769_v56  ;;  %v1778_v45 = vrot.slane %v1770_v33, %v13073_v7  ;;  %v1318_v30 = vrot.slane %v1316_v47, 2  ;;  %v1325_v23 = vrot.slane %v13845_v5, 7  ;;  %v894_v61 = vcombine.high %v467_v41, %v467_v41 }
  0xaf   : > { %18978 = vst [vmem:[#allocation54_spill] sm:$0xff] %v13852_v34  ;;  %18979 = vst [vmem:[#allocation55_spill] sm:$0xff] %v13856_v8  ;;  %v1785_v42 = vrot.slane %v1771_v46, %v13073_v7  ;;  %v2576_v15 = vcombine.low %v2568_v37, %v2575_v54  ;;  %v13864_v50 = vcombine.high %v13852_v34, %v13852_v34  ;;  %v1319_v10 = vrot.slane %v13852_v34, 7 }
  0xb0   : > { %v1327_v0 = vrot.slane %v1325_v23, 2  ;;  %v1328_v60 = vrot.slane %v13856_v8, 7  ;;  %v2577_v38 = vcombine.low %v13824_v17, %v13852_v34  ;;  %v13872_v47 = vrot.slane %v894_v61, %v13073_v7 }
  0xb1   : > { %18980 = vst [vmem:[#allocation56_spill] sm:$0xff] %v13864_v50  ;;  %v1786_v41 = vcombine.low %v1778_v45, %v1785_v42  ;;  %12440 = vmatprep.mubr.msk.f32.mxu1 %vm1940_vm8, %v2576_v15  ;;  %v1320_v46 = vsel %vm13110_vm7, %v1318_v30, %v1319_v10  ;;  %v1321_v37 = vrot.slane %v1319_v10, 2  ;;  %v1322_v54 = vrot.slane %v13864_v50, 7 }
  0xb2   : > { %18981 = vst [vmem:[#allocation57_spill] sm:$0xff] %v13872_v47  ;;  %v1329_v56 = vsel %vm13110_vm7, %v1327_v0, %v1328_v60  ;;  %v2578_v53 = vcombine.low %v13864_v50, %v13845_v5  ;;  %v2585_v33 = vrot.slane %v2577_v38, %v13073_v7  ;;  %v910_v34 = vcombine.high %v468_v59, %v468_v59 }
  0xb3   : > { %12393 = vmatprep.mubr.msk.f32.mxu0 %vm1940_vm8, %v1786_v41  ;;  %v1323_v45 = vsel %vm13110_vm7, %v1321_v37, %v1322_v54  ;;  %v1324_v61 = vrot.slane %v1322_v54, 2  ;;  %v917_v30 = vrot.slane %v468_v59, %v13073_v7  ;;  %v13889_v42 = vcombine.high %v13872_v47, %v13872_v47 }
  0xb4   : > { %v1787_v15 = vcombine.low %v1320_v46, %v1323_v45  ;;  %v2592_v10 = vrot.slane %v2578_v53, %v13073_v7  ;;  %v13893_v0 = vrot.slane %v910_v34, %v13073_v7  ;;  %v1330_v38 = vrot.slane %v1328_v60, 2  ;;  %v469_v45 = vld [vmem:[%s13079_s20 + $0xc8] sm:$0xff] }
  0xb5   : > { %18982 = vst [vmem:[#allocation58_spill] sm:$0xff] %v13889_v42  ;;  %v1326_v41 = vsel %vm13110_vm7, %v1324_v61, %v1325_v23  ;;  %v13897_v5 = vcombine.high %v917_v30, %v917_v30  ;;  %v1331_v37 = vrot.slane %v13872_v47, 7  ;;  %v1334_v59 = vrot.slane %v13889_v42, 7 }
  0xb6   : > { %18983 = vst [vmem:[#allocation59_spill] sm:$0xff] %v13893_v0  ;;  %v1788_v54 = vcombine.low %v1326_v41, %v1329_v56  ;;  %v1795_v50 = vrot.slane %v1787_v15, %v13073_v7  ;;  %v2593_v17 = vcombine.low %v2585_v33, %v2592_v10  ;;  %v11791_v46 = vrot.slane %v917_v30, 9 }
  0xb7   : > { %18984 = vst [vmem:[#allocation60_spill] sm:$0xff] %v13897_v5  ;;  %v1332_v34 = vsel %vm13110_vm7, %v1330_v38, %v1331_v37  ;;  %v1333_v53 = vrot.slane %v1331_v37, 2  ;;  %v1338_v60 = vrot.slane %v13897_v5, 7  ;;  %v1341_v23 = vrot.slane %v13893_v0, 7 }
  0xb8   : > { %v1802_v61 = vrot.slane %v1788_v54, %v13073_v7  ;;  %12441 = vmatmul.mubr.msk.f32.gmra.mxu1 %vm1940_vm8, %v2593_v17  ;;  %v2594_v56 = vcombine.low %v13856_v8, %v13872_v47  ;;  %v2595_v15 = vcombine.low %v917_v30, %v13897_v5  ;;  %v13914_v33 = vcombine.high %v13893_v0, %v13893_v0 }
  0xb9   : > { %v1335_v10 = vsel %vm13110_vm7, %v1333_v53, %v1334_v59  ;;  %v1339_v38 = vsel %vm13110_vm7, %v11791_v46, %v1338_v60  ;;  %v1340_v41 = vrot.slane %v1338_v60, 2  ;;  %v927_v37 = vcombine.high %v469_v45, %v469_v45 }
  0xba   : > { %18985 = vst [vmem:[#allocation61_spill] sm:$0xff] %v13914_v33  ;;  %v1803_v54 = vcombine.low %v1795_v50, %v1802_v61  ;;  %v1804_v42 = vcombine.low %v1332_v34, %v1335_v10  ;;  %v2602_v17 = vrot.slane %v2594_v56, %v13073_v7  ;;  %v2609_v47 = vrot.slane %v2595_v15, %v13073_v7 }
  0xbb   : > { %v1342_v30 = vsel %vm13110_vm7, %v1340_v41, %v1341_v23  ;;  %v13925_v5 = vrot.slane %v469_v45, %v13073_v7  ;;  %v13928_v59 = vrot.slane %v927_v37, %v13073_v7  ;;  %v1343_v53 = vrot.slane %v1341_v23, 2  ;;  %v470_v23 = vld [vmem:[%s13079_s20 + $0xd0] sm:$0xff] }
  0xbc   : > { %12394 = vmatmul.mubr.msk.f32.gmra.mxu0 %vm1940_vm8, %v1803_v54  ;;  %v1805_v46 = vcombine.low %v1339_v38, %v1342_v30  ;;  %v1812_v50 = vrot.slane %v1804_v42, %v13073_v7  ;;  %v2610_v34 = vcombine.low %v2602_v17, %v2609_v47  ;;  %v1344_v60 = vrot.slane %v13914_v33, 7 }
  0xbd   : > { %18986 = vst [vmem:[#allocation62_spill] sm:$0xff] %v13925_v5  ;;  %18987 = vst [vmem:[#allocation63_spill] sm:$0xff] %v13928_v59  ;;  %v13935_v61 = vcombine.high %v13925_v5, %v13925_v5  ;;  %v1347_v56 = vrot.slane %v13925_v5, 7  ;;  %v1353_v45 = vrot.slane %v13928_v59, 7  ;;  %v2611_v15 = vcombine.low %v13893_v0, %v13914_v33 }
  0xbe   : > { %v1819_v10 = vrot.slane %v1805_v46, %v13073_v7  ;;  %12443 = vmatprep.mubr.msk.f32.mxu1 %vm1940_vm8, %v2610_v34  ;;  %v1345_v47 = vsel %vm13110_vm7, %v1343_v53, %v1344_v60  ;;  %v1346_v42 = vrot.slane %v1344_v60, 2  ;;  %v13948_v38 = vcombine.high %v13928_v59, %v13928_v59 }
  0xbf   : > { %18988 = vst [vmem:[#allocation64_spill] sm:$0xff] %v13935_v61  ;;  %v1349_v41 = vrot.slane %v1347_v56, 2  ;;  %v1350_v37 = vrot.slane %v13935_v61, 7  ;;  %v2612_v54 = vcombine.low %v13925_v5, %v13935_v61  ;;  %v2619_v17 = vrot.slane %v2611_v15, %v13073_v7 }
  0xc0   : > { %18989 = vst [vmem:[#allocation65_spill] sm:$0xff] %v13948_v38  ;;  %v1820_v30 = vcombine.low %v1812_v50, %v1819_v10  ;;  %v1348_v46 = vsel %vm13110_vm7, %v1346_v42, %v1347_v56  ;;  %v944_v34 = vcombine.high %v470_v23, %v470_v23  ;;  %v13957_v53 = vrot.slane %v470_v23, %v13073_v7 }
  0xc1   : > { %v1351_v60 = vsel %vm13110_vm7, %v1349_v41, %v1350_v37  ;;  %v1352_v33 = vrot.slane %v1350_v37, 2  ;;  %v1821_v0 = vcombine.low %v1345_v47, %v1348_v46  ;;  %v2626_v8 = vrot.slane %v2612_v54, %v13073_v7 }
  0xc2   : > { %18990 = vst [vmem:[#allocation66_spill] sm:$0xff] %v13957_v53  ;;  %12396 = vmatprep.mubr.msk.f32.mxu0 %vm1940_vm8, %v1820_v30  ;;  %v13964_v61 = vrot.slane %v944_v34, %v13073_v7  ;;  %v13968_v50 = vcombine.high %v13957_v53, %v13957_v53  ;;  %v1355_v56 = vrot.slane %v1353_v45, 2  ;;  %v1356_v15 = vrot.slane %v13948_v38, 7 }
  0xc3   : > { %v1354_v23 = vsel %vm13110_vm7, %v1352_v33, %v1353_v45  ;;  %v1829_v10 = vrot.slane %v1821_v0, %v13073_v7  ;;  %v2627_v47 = vcombine.low %v2619_v17, %v2626_v8  ;;  %v1359_v42 = vrot.slane %v13957_v53, 7  ;;  %v471_v0 = vld [vmem:[%s13079_s20 + $0xd8] sm:$0xff] }
  0xc4   : > { %18991 = vst [vmem:[#allocation67_spill] sm:$0xff] %v13964_v61  ;;  %18992 = vst [vmem:[#allocation68_spill] sm:$0xff] %v13968_v50  ;;  %v1822_v41 = vcombine.low %v1351_v60, %v1354_v23  ;;  %v1357_v37 = vsel %vm13110_vm7, %v1355_v56, %v1356_v15  ;;  %v1358_v54 = vrot.slane %v1356_v15, 2  ;;  %v1362_v30 = vrot.slane %v13968_v50, 7 }
  0xc5   : > { %12444 = vmatmul.mubr.msk.f32.gmra.mxu1 %vm1940_vm8, %v2627_v47  ;;  %v1361_v46 = vrot.slane %v1359_v42, 2  ;;  %v1365_v34 = vrot.slane %v13964_v61, 7  ;;  %v2628_v33 = vcombine.low %v13928_v59, %v13948_v38  ;;  %v2629_v8 = vcombine.low %v13957_v53, %v13968_v50 }
  0xc6   : > { %v1836_v45 = vrot.slane %v1822_v41, %v13073_v7  ;;  %v1360_v17 = vsel %vm13110_vm7, %v1358_v54, %v1359_v42  ;;  %v1364_v60 = vrot.slane %v1362_v30, 2  ;;  %v13990_v56 = vcombine.high %v13964_v61, %v13964_v61  ;;  %v472_v54 = vld [vmem:[%s13079_s20 + $0xe0] sm:$0xff] }
  0xc7   : > { %v1363_v15 = vsel %vm13110_vm7, %v1361_v46, %v1362_v30  ;;  %v1838_v23 = vcombine.low %v1357_v37, %v1360_v17  ;;  %v2636_v47 = vrot.slane %v2628_v33, %v13073_v7  ;;  %v2643_v38 = vrot.slane %v2629_v8, %v13073_v7 }
  0xc8   : > { %18993 = vst [vmem:[#allocation69_spill] sm:$0xff] %v13990_v56  ;;  %v1837_v50 = vcombine.low %v1829_v10, %v1836_v45  ;;  %v1366_v41 = vsel %vm13110_vm7, %v1364_v60, %v1365_v34  ;;  %v961_v53 = vcombine.high %v471_v0, %v471_v0  ;;  %v13999_v42 = vrot.slane %v471_v0, %v13073_v7 }
  0xc9   : > { %v1839_v59 = vcombine.low %v1363_v15, %v1366_v41  ;;  %v1846_v5 = vrot.slane %v1838_v23, %v13073_v7  ;;  %v2644_v57 = vcombine.low %v2636_v47, %v2643_v38  ;;  %v1367_v39 = vrot.slane %v1365_v34, 2 }
  0xca   : > { %18994 = vst [vmem:[#allocation70_spill] sm:$0xff] %v13999_v42  ;;  %12397 = vmatmul.mubr.msk.f32.gmra.mxu0 %vm1940_vm8, %v1837_v50  ;;  %v14005_v37 = vrot.slane %v961_v53, %v13073_v7  ;;  %v14009_v10 = vcombine.high %v13999_v42, %v13999_v42  ;;  %v1368_v30 = vrot.slane %v13990_v56, 7  ;;  %v1371_v46 = vrot.slane %v13999_v42, 7 }
  0xcb   : > { %v1853_v33 = vrot.slane %v1839_v59, %v13073_v7  ;;  %12446 = vmatprep.mubr.msk.f32.mxu1 %vm1940_vm8, %v2644_v57  ;;  %v2645_v38 = vcombine.low %v13964_v61, %v13990_v56  ;;  %v977_v34 = vcombine.high %v472_v54, %v472_v54  ;;  %v14018_v50 = vrot.slane %v472_v54, %v13073_v7 }
  0xcc   : > { %v1369_v53 = vsel %vm13110_vm7, %v1367_v39, %v1368_v30  ;;  %v1370_v8 = vrot.slane %v1368_v30, 2  ;;  %v1373_v0 = vrot.slane %v1371_v46, 2  ;;  %v1374_v45 = vrot.slane %v14009_v10, 7 }
  0xcd   : > { %18995 = vst [vmem:[#allocation71_spill] sm:$0xff] %v14018_v50  ;;  %v1854_v17 = vcombine.low %v1846_v5, %v1853_v33  ;;  %v1377_v60 = vrot.slane %v14005_v37, 7  ;;  %v2646_v57 = vcombine.low %v13999_v42, %v14009_v10  ;;  %v2653_v59 = vrot.slane %v2645_v38, %v13073_v7 }
  0xce   : > { %v1372_v15 = vsel %vm13110_vm7, %v1370_v8, %v1371_v46  ;;  %v1375_v23 = vsel %vm13110_vm7, %v1373_v0, %v1374_v45  ;;  %v1376_v39 = vrot.slane %v1374_v45, 2  ;;  %v14032_v47 = vrot.slane %v977_v34, %v13073_v7  ;;  %v473_v8 = vld [vmem:[%s13079_s20 + $0xe8] sm:$0xff] }
  0xcf   : > { %12399 = vmatprep.mubr.msk.f32.mxu0 %vm1940_vm8, %v1854_v17  ;;  %v1855_v5 = vcombine.low %v1369_v53, %v1372_v15  ;;  %v2660_v41 = vrot.slane %v2646_v57, %v13073_v7  ;;  %v992_v54 = vcombine.high %v14018_v50, %v14018_v50  ;;  %v1051_v30 = vcombine.high %v14005_v37, %v14005_v37 }
  0xd0   : > { %18996 = vst [vmem:[#allocation72_spill] sm:$0xff] %v14032_v47  ;;  %v1378_v46 = vsel %vm13110_vm7, %v1376_v39, %v1377_v60  ;;  %v14044_v33 = vcombine.high %v14032_v47, %v14032_v47  ;;  %v1379_v38 = vrot.slane %v1377_v60, 2  ;;  %v11792_v34 = vrot.slane %v14018_v50, 9 }
  0xd1   : > { %v1856_v53 = vcombine.low %v1375_v23, %v1378_v46  ;;  %v1863_v0 = vrot.slane %v1855_v5, %v13073_v7  ;;  %v2661_v45 = vcombine.low %v2653_v59, %v2660_v41  ;;  %v1380_v17 = vrot.slane %v1051_v30, 7 }
  0xd2   : > { %18997 = vst [vmem:[#allocation73_spill] sm:$0xff] %v14044_v33  ;;  %v1384_v57 = vrot.slane %v992_v54, 7  ;;  %v1387_v15 = vrot.slane %v14032_v47, 7  ;;  %v1390_v56 = vrot.slane %v14044_v33, 7  ;;  %v2662_v39 = vcombine.low %v14005_v37, %v14018_v50 }
  0xd3   : > { %v1870_v42 = vrot.slane %v1856_v53, %v13073_v7  ;;  %12447 = vmatmul.mubr.msk.f32.gmra.mxu1 %vm1940_vm8, %v2661_v45  ;;  %v1381_v60 = vsel %vm13110_vm7, %v1379_v38, %v1380_v17  ;;  %v2663_v23 = vcombine.low %v992_v54, %v14032_v47  ;;  %v994_v59 = vcombine.high %v473_v8, %v473_v8 }
  0xd4   : > { %v1385_v5 = vsel %vm13110_vm7, %v11792_v34, %v1384_v57  ;;  %v1386_v41 = vrot.slane %v1384_v57, 2  ;;  %v1389_v30 = vrot.slane %v1387_v15, 2  ;;  %v2670_v46 = vrot.slane %v2662_v39, %v13073_v7  ;;  %v474_v57 = vld [vmem:[%s13079_s20 + $0xf0] sm:$0xff] }
  0xd5   : > { %v1871_v61 = vcombine.low %v1863_v0, %v1870_v42  ;;  %v1872_v50 = vcombine.low %v1381_v60, %v1385_v5  ;;  %v2677_v53 = vrot.slane %v2663_v23, %v13073_v7  ;;  %v14063_v45 = vrot.slane %v473_v8, %v13073_v7 }
  0xd6   : > { %v1388_v38 = vsel %vm13110_vm7, %v1386_v41, %v1387_v15  ;;  %v1391_v54 = vsel %vm13110_vm7, %v1389_v30, %v1390_v56  ;;  %v14070_v17 = vrot.slane %v994_v59, %v13073_v7  ;;  %v1392_v34 = vrot.slane %v1390_v56, 2 }
  0xd7   : > { %18998 = vst [vmem:[#allocation74_spill] sm:$0xff] %v14063_v45  ;;  %12400 = vmatmul.mubr.msk.f32.gmra.mxu0 %vm1940_vm8, %v1871_v61  ;;  %v1873_v42 = vcombine.low %v1388_v38, %v1391_v54  ;;  %v1880_v0 = vrot.slane %v1872_v50, %v13073_v7  ;;  %v2678_v39 = vcombine.low %v2670_v46, %v2677_v53  ;;  %v1393_v60 = vrot.slane %v14063_v45, 7 }
  0xd8   : > { %18999 = vst [vmem:[#allocation75_spill] sm:$0xff] %v14070_v17  ;;  %v14077_v8 = vcombine.high %v14063_v45, %v14063_v45  ;;  %v14081_v15 = vcombine.high %v14070_v17, %v14070_v17  ;;  %v1399_v23 = vrot.slane %v14070_v17, 7  ;;  %v2679_v56 = vcombine.low %v14044_v33, %v14063_v45 }
  0xd9   : > { %v1887_v61 = vrot.slane %v1873_v42, %v13073_v7  ;;  %12449 = vmatprep.mubr.msk.f32.mxu1 %vm1940_vm8, %v2678_v39  ;;  %v1011_v5 = vcombine.high %v474_v57, %v474_v57  ;;  %v1394_v41 = vsel %vm13110_vm7, %v1392_v34, %v1393_v60  ;;  %v1395_v30 = vrot.slane %v1393_v60, 2  ;;  %v475_v60 = vld [vmem:[%s13079_s20 + $0xf8] sm:$0xff]  ;;  %s12872_s20 = scalar_lea.vmem %s11719_s30, 128 }
  0xda   : > { %19000 = vst [vmem:[#allocation76_spill] sm:$0xff] %v14077_v8  ;;  %19001 = vst [vmem:[#allocation77_spill] sm:$0xff] %v14081_v15  ;;  %v1396_v50 = vrot.slane %v14077_v8, 7  ;;  %v2680_v59 = vcombine.low %v14077_v8, %v14070_v17  ;;  %v1401_v46 = vrot.slane %v1399_v23, 2  ;;  %v1402_v53 = vrot.slane %v14081_v15, 7  ;;  %p12873_p11 = scmp.ne.s32.totalorder %s11719_s30, %s12872_s20 }
  0xdb   : > { %v1888_v38 = vcombine.low %v1880_v0, %v1887_v61  ;;  %v2687_v42 = vrot.slane %v2679_v56, %v13073_v7  ;;  %v14102_v8 = vrot.slane %v474_v57, %v13073_v7  ;;  %v14105_v34 = vrot.slane %v1011_v5, %v13073_v7 }
  0xdc   : > { %v1398_v54 = vrot.slane %v1396_v50, 2  ;;  %v2694_v39 = vrot.slane %v2680_v59, %v13073_v7  ;;  %v1397_v45 = vsel %vm13110_vm7, %v1395_v30, %v1396_v50  ;;  %v1403_v17 = vsel %vm13110_vm7, %v1401_v46, %v1402_v53  ;;  %p12874_p12 = pnand %p12873_p11, %p13046_p5 }
  0xdd   : > { %19002 = vst [vmem:[#allocation78_spill] sm:$0xff] %v14102_v8  ;;  %12402 = vmatprep.mubr.msk.f32.mxu0 %vm1940_vm8, %v1888_v38  ;;  %v1889_v56 = vcombine.low %v1394_v41, %v1397_v45  ;;  %v1404_v59 = vrot.slane %v1402_v53, 2  ;;  %v14113_v50 = vcombine.high %v14102_v8, %v14102_v8  ;;  %v14117_v57 = vcombine.high %v14105_v34, %v14105_v34 }
  0xde   : > { %v1400_v0 = vsel %vm13110_vm7, %v1398_v54, %v1399_v23  ;;  %v2695_v61 = vcombine.low %v2687_v42, %v2694_v39  ;;  %v1405_v5 = vrot.slane %v14102_v8, 7  ;;  %v1411_v23 = vrot.slane %v14105_v34, 7  ;;  %p12875_p13 = pneg %p12874_p12 }
  0xdf   : > { %v1890_v47 = vcombine.low %v1400_v0, %v1403_v17  ;;  %v1897_v30 = vrot.slane %v1889_v56, %v13073_v7  ;;  %v2696_v45 = vcombine.low %v14081_v15, %v14102_v8  ;;  %v1028_v17 = vcombine.high %v475_v60, %v475_v60 }
  0xe0   : > { %12450 = vmatmul.mubr.msk.f32.gmra.mxu1 %vm1940_vm8, %v2695_v61  ;;  %v1406_v46 = vsel %vm13110_vm7, %v1404_v59, %v1405_v5  ;;  %v1407_v53 = vrot.slane %v1405_v5, 2  ;;  %v1408_v38 = vrot.slane %v14113_v50, 7  ;;  %v1413_v54 = vrot.slane %v1411_v23, 2 }
  0xe1   : > { %v1904_v41 = vrot.slane %v1890_v47, %v13073_v7  ;;  %v1414_v42 = vrot.slane %v14117_v57, 7  ;;  %v2697_v39 = vcombine.low %v14113_v50, %v14105_v34  ;;  %v2704_v0 = vrot.slane %v2696_v45, %v13073_v7 }
  0xe2   : > { %v1409_v61 = vsel %vm13110_vm7, %v1407_v53, %v1408_v38  ;;  %v1410_v8 = vrot.slane %v1408_v38, 2  ;;  %v14136_v47 = vrot.slane %v475_v60, %v13073_v7  ;;  %v14142_v33 = vrot.slane %v1028_v17, %v13073_v7 }
  0xe3   : > { %v1905_v56 = vcombine.low %v1897_v30, %v1904_v41  ;;  %v1415_v59 = vsel %vm13110_vm7, %v1413_v54, %v1414_v42  ;;  %v1906_v5 = vcombine.low %v1406_v46, %v1409_v61  ;;  %v2711_v15 = vrot.slane %v2697_v39, %v13073_v7 }
  0xe4   : > { %19003 = vst [vmem:[#allocation79_spill] sm:$0xff] %v14142_v33  ;;  %v1412_v30 = vsel %vm13110_vm7, %v1410_v8, %v1411_v23  ;;  %v14149_v45 = vcombine.high %v14136_v47, %v14136_v47  ;;  %v1416_v60 = vrot.slane %v1414_v42, 2  ;;  %v1417_v41 = vrot.slane %v14136_v47, 7 }
  0xe5   : > { %12403 = vmatmul.mubr.msk.f32.gmra.mxu0 %vm1940_vm8, %v1905_v56  ;;  %v1907_v53 = vcombine.low %v1412_v30, %v1415_v59  ;;  %v1914_v46 = vrot.slane %v1906_v5, %v13073_v7  ;;  %v2712_v38 = vcombine.low %v2704_v0, %v2711_v15  ;;  %v14155_v17 = vcombine.high %v14142_v33, %v14142_v33 }
  0xe6   : > { %v1418_v54 = vsel %vm13110_vm7, %v1416_v60, %v1417_v41  ;;  %v1419_v39 = vrot.slane %v1417_v41, 2  ;;  %v1420_v8 = vrot.slane %v14149_v45, 7  ;;  %v1423_v23 = vrot.slane %v14142_v33, 7 }
  0xe7   : > { %19004 = vst [vmem:[#allocation80_spill] sm:$0xff] %v14155_v17  ;;  %v1921_v42 = vrot.slane %v1907_v53, %v13073_v7  ;;  %12452 = vmatprep.mubr.msk.f32.mxu1 %vm1940_vm8, %v2712_v38  ;;  %v1426_v56 = vrot.slane %v14155_v17, 7  ;;  %v2713_v15 = vcombine.low %v14117_v57, %v14136_v47  ;;  %v2714_v0 = vcombine.low %v14149_v45, %v14142_v33 }
  0xe8   : > { %v1421_v61 = vsel %vm13110_vm7, %v1419_v39, %v1420_v8  ;;  %v1422_v59 = vrot.slane %v1420_v8, 2  ;;  %v1425_v5 = vrot.slane %v1423_v23, 2  ;;  %v2220_v30 = vcombine.low %v13085_v12, %v13103_v21 }
  0xe9   : > { %v1922_v60 = vcombine.low %v1914_v46, %v1921_v42  ;;  %v1923_v41 = vcombine.low %v1418_v54, %v1421_v61  ;;  %v2721_v53 = vrot.slane %v2713_v15, %v13073_v7  ;;  %v2728_v38 = vrot.slane %v2714_v0, %v13073_v7 }
  0xea   : > { %v1424_v17 = vsel %vm13110_vm7, %v1422_v59, %v1423_v23  ;;  %v1427_v33 = vsel %vm13110_vm7, %v1425_v5, %v1426_v56  ;;  %v2221_v39 = vcombine.low %v13099_v20, %v13125_v29  ;;  %v2228_v8 = vrot.slane %v2220_v30, %v13073_v7 }
  0xeb   : > { %12405 = vmatprep.mubr.msk.f32.mxu0 %vm1940_vm8, %v1922_v60  ;;  %v1924_v12 = vcombine.low %v1424_v17, %v1427_v33  ;;  %v1931_v46 = vrot.slane %v1923_v41, %v13073_v7  ;;  %v2729_v54 = vcombine.low %v2721_v53, %v2728_v38  ;;  %v2237_v42 = vcombine.low %v13088_v14, %v13117_v26  ;;  %v11901_v60 = vld [vmem:[%s19005_s3 + $0x8] sm:$0xff] }
  0xec   : > { %v2235_v15 = vrot.slane %v2221_v39, %v13073_v7  ;;  %v2238_v23 = vcombine.low %v13106_v22, %v13131_v32  ;;  %v3010_v56 = vcombine.low %v13103_v21, %v13099_v20  ;;  %v3011_v0 = vcombine.low %v13125_v29, %v13088_v14  ;;  %12502 = vmatprep.subr.mxu1 %v11901_v60 }
  0xed   : > { %v1938_v61 = vrot.slane %v1924_v12, %v13073_v7  ;;  %12453 = vmatmul.mubr.msk.f32.gmra.mxu1 %vm1940_vm8, %v2729_v54  ;;  %v2245_v33 = vrot.slane %v2237_v42, %v13073_v7  ;;  %v3027_v17 = vcombine.low %v13117_v26, %v13106_v22  ;;  %v3028_v59 = vcombine.low %v13131_v32, %v13093_v16  ;;  %v19007_v42 = vld [vmem:[#allocation9_spill] sm:$0xff] }
  0xee   : > { %v2236_v5 = vcombine.low %v2228_v8, %v2235_v15  ;;  %v2252_v30 = vrot.slane %v2238_v23, %v13073_v7  ;;  %v3018_v20 = vrot.slane %v3010_v56, %v13073_v7  ;;  %v3025_v21 = vrot.slane %v3011_v0, %v13073_v7  ;;  %12503 = vmatpush3.msra.mxu1 %v11901_v60  ;;  %v19008_v15 = vld [vmem:[#allocation8_spill] sm:$0xff]  ;;  %v19009_v56 = vld [vmem:[#allocation10_spill] sm:$0xff]  ;;  %v19010_v0 = vld [vmem:[#allocation11_spill] sm:$0xff] }
  0xef   : > { %v1939_v14 = vcombine.low %v1931_v46, %v1938_v61  ;;  %v3044_v29 = vcombine.low %v13137_v36, %v13121_v28  ;;  %v3035_v22 = vrot.slane %v3027_v17, %v13073_v7  ;;  %v3042_v26 = vrot.slane %v3028_v59, %v13073_v7  ;;  %v19011_v17 = vld [vmem:[#allocation13_spill] sm:$0xff]  ;;  %v19012_v59 = vld [vmem:[#allocation12_spill] sm:$0xff] }
  0xf0   : > { %v3045_v16 = vcombine.low %v13151_v48, %v13096_v19  ;;  %v3061_v32 = vcombine.low %v13183_v18, %v13160_v55  ;;  %v2253_v41 = vcombine.low %v2245_v33, %v2252_v30  ;;  %v11857_v28 = vcombine.high %v13160_v55, %v13193_v35 }
  0xf1   : > { %12406 = vmatmul.mubr.msk.f32.gmra.mxu0 %vm1940_vm8, %v1939_v14  ;;  %v3078_v36 = vcombine.low %v13228_v1, %v13239_v11  ;;  %v3026_v53 = vcombine.low %v3018_v20, %v3025_v21  ;;  %v3052_v38 = vrot.slane %v3044_v29, %v13073_v7  ;;  %v3079_v48 = vcombine.low %v13218_v58, %v13232_v2  ;;  %v12869_v58 = vld [vmem:[%s18925_s1 + $0x8] sm:$0xf]  ;;  %s18527_s1 = scalar_lea.hbm %s18575_s13, %s12086_s23 }
  0xf2   : > { %12410 = vmatprep.mubr.msk.f32.mxu0 %vm1940_vm8, %v2236_v5  ;;  %v3059_v19 = vrot.slane %v3045_v16, %v13073_v7  ;;  %v3043_v18 = vcombine.low %v3035_v22, %v3042_v26  ;;  %v3069_v39 = vrot.slane %v3061_v32, %v13073_v7  ;;  %v3095_v55 = vcombine.low %v13246_v27, %v13259_v40  ;;  %v19015_v16 = vld [vmem:[#allocation16_spill] sm:$0xff] }
  0xf3   : > { %v3076_v35 = vrot.slane %v11857_v28, %v13073_v7  ;;  %v3086_v1 = vrot.slane %v3078_v36, %v13073_v7  ;;  %v3096_v11 = vcombine.low %v13265_v43, %v13274_v51  ;;  %v3112_v8 = vcombine.low %v13300_v31, %v13313_v44  ;;  %v19017_v28 = vld [vmem:[#allocation17_spill] sm:$0xff] }
  0xf4   : > { %v3060_v2 = vcombine.low %v3052_v38, %v3059_v19  ;;  %v3093_v27 = vrot.slane %v3079_v48, %v13073_v7  ;;  %v3113_v40 = vcombine.low %v13296_v13, %v13304_v25  ;;  %v3129_v43 = vcombine.low %v13321_v4, %v13340_v3  ;;  %v19006_v4 = vld [vmem:[#allocation7_spill] sm:$0xff]  ;;  %v19018_v38 = vld [vmem:[#allocation21_spill] sm:$0xff] }
  0xf5   : > { %12411 = vmatmul.mubr.msk.f32.vlgmr.msra.gmra.mxu0 %vm1940_vm8, %v2253_v41  ;;  %v3130_v51 = vcombine.low %v13343_v9, %v13334_v62  ;;  %v3077_v31 = vcombine.low %v3069_v39, %v3076_v35  ;;  %v3103_v44 = vrot.slane %v3095_v55, %v13073_v7  ;;  %v3110_v12 = vrot.slane %v3096_v11, %v13073_v7  ;;  %v19016_v41 = vld [vmem:[#allocation18_spill] sm:$0xff]  ;;  %v19019_v19 = vld [vmem:[#allocation19_spill] sm:$0xff]  ;;  %v19021_v39 = vld [vmem:[#allocation20_spill] sm:$0xff] }
  0xf6   : > { %12456 = vmatpush3.msk.msra.mxu0 %vm2001_vm0, %v12869_v58  ;;  %12457 = vmatprep.mubr.msk.f32.mxu0 %vm1940_vm8, %v3026_v53  ;;  %v3120_v46 = vrot.slane %v3112_v8, %v13073_v7  ;;  %v3094_v54 = vcombine.low %v3086_v1, %v3093_v27  ;;  %v3127_v13 = vrot.slane %v3113_v40, %v13073_v7  ;;  %v19022_v35 = vld [vmem:[#allocation25_spill] sm:$0xff]  ;;  %v19023_v1 = vld [vmem:[#allocation23_spill] sm:$0xff]  ;;  %v19024_v8 = vld [vmem:[#allocation26_spill] sm:$0xff]  ;;  %vm11623_vm0 = vcmask 523264  }
  0xf7   : > { %v3146_v25 = vcombine.low %v13362_v49, %v13365_v52  ;;  %v3147_v62 = vcombine.low %v19006_v4, %v13374_v63  ;;  %v3137_v3 = vrot.slane %v3129_v43, %v13073_v7  ;;  %v3144_v9 = vrot.slane %v3130_v51, %v13073_v7  ;;  %v19013_v49 = vld [vmem:[#allocation14_spill] sm:$0xff]  ;;  %v19014_v52 = vld [vmem:[#allocation15_spill] sm:$0xff]  ;;  %v19025_v58 = vld [vmem:[#allocation24_spill] sm:$0xff] }
  0xf8   : > { %v3163_v23 = vcombine.low %v19008_v15, %v19007_v42  ;;  %v3164_v61 = vcombine.low %v19010_v0, %v19009_v56  ;;  %v3111_v33 = vcombine.low %v3103_v44, %v3110_v12  ;;  %v3180_v5 = vcombine.low %v19012_v59, %v19011_v17  ;;  %v19026_v27 = vld [vmem:[#allocation29_spill] sm:$0xff]  ;;  %v19027_v40 = vld [vmem:[#allocation27_spill] sm:$0xff]  ;;  %v19028_v51 = vld [vmem:[#allocation30_spill] sm:$0xff] }
  0xf9   : > { %12458 = vmatmul.mubr.msk.f32.vlgmr.msra.gmra.mxu0 %vm1940_vm8, %v3043_v18  ;;  %v3181_v30 = vcombine.low %v19014_v52, %v19013_v49  ;;  %v3128_v63 = vcombine.low %v3120_v46, %v3127_v13  ;;  %v3154_v20 = vrot.slane %v3146_v25, %v13073_v7  ;;  %v3161_v21 = vrot.slane %v3147_v62, %v13073_v7  ;;  %v19020_v18 = vld [vmem:[#allocation22_spill] sm:$0xff]  ;;  %v19030_v12 = vld [vmem:[#allocation31_spill] sm:$0xff]  ;;  %v19031_v46 = vld [vmem:[#allocation32_spill] sm:$0xff] }
  0xfa   : > { %12460 = vmatprep.mubr.msk.f32.mxu0 %vm1940_vm8, %v3060_v2  ;;  %v3145_v14 = vcombine.low %v3137_v3, %v3144_v9  ;;  %v3171_v29 = vrot.slane %v3163_v23, %v13073_v7  ;;  %v3178_v60 = vrot.slane %v3164_v61, %v13073_v7  ;;  %v3188_v22 = vrot.slane %v3180_v5, %v13073_v7  ;;  %v19032_v13 = vld [vmem:[#allocation34_spill] sm:$0xff]  ;;  %v19033_v25 = vld [vmem:[#allocation33_spill] sm:$0xff]  ;;  %v19034_v56 = vld [vmem:[#allocation36_spill] sm:$0xff] }
  0xfb   : > { %v3195_v26 = vrot.slane %v3181_v30, %v13073_v7  ;;  %v11858_v32 = vcombine.high %v19013_v49, %v19015_v16  ;;  %v3198_v36 = vcombine.low %v19017_v28, %v19016_v41  ;;  %v3162_v53 = vcombine.low %v3154_v20, %v3161_v21  ;;  %v19035_v0 = vld [vmem:[#allocation35_spill] sm:$0xff]  ;;  %v19037_v17 = vld [vmem:[#allocation38_spill] sm:$0xff] }
  0xfc   : > { %v3214_v48 = vcombine.low %v19019_v19, %v19018_v38  ;;  %v3215_v55 = vcombine.low %v19021_v39, %v19020_v18  ;;  %v3231_v11 = vcombine.low %v19023_v1, %v19022_v35  ;;  %v3232_v2 = vcombine.low %v19025_v58, %v19024_v8  ;;  %v19041_v38 = vld [vmem:[#allocation41_spill] sm:$0xff]  ;;  %v19042_v19 = vld [vmem:[#allocation43_spill] sm:$0xff]  ;;  %v19043_v18 = vld [vmem:[#allocation44_spill] sm:$0xff] }
  0xfd   : > { %12461 = vmatmul.mubr.msk.f32.gmra.mxu0 %vm1940_vm8, %v3077_v31  ;;  %v3248_v43 = vcombine.low %v19027_v40, %v19026_v27  ;;  %v19029_v31 = vld [vmem:[#allocation28_spill] sm:$0xff]  ;;  %v3266_v4 = vcombine.low %v19033_v25, %v19032_v13  ;;  %v3179_v62 = vcombine.low %v3171_v29, %v3178_v60  ;;  %v3196_v3 = vcombine.low %v3188_v22, %v3195_v26  ;;  %v19039_v29 = vld [vmem:[#allocation39_spill] sm:$0xff]  ;;  %v19040_v22 = vld [vmem:[#allocation42_spill] sm:$0xff] }
  0xfe   : > { %12463 = vmatprep.mubr.msk.f32.mxu0 %vm1940_vm8, %v3094_v54  ;;  %v3249_v44 = vcombine.low %v19029_v31, %v19028_v51  ;;  %v3265_v54 = vcombine.low %v19031_v46, %v19030_v12  ;;  %v3205_v9 = vrot.slane %v11858_v32, %v13073_v7  ;;  %v3212_v42 = vrot.slane %v3198_v36, %v13073_v7  ;;  %v19044_v1 = vld [vmem:[#allocation71_spill] sm:$0xff]  ;;  %v19045_v8 = vld [vmem:[#allocation73_spill] sm:$0xff]  ;;  %v19046_v58 = vld [vmem:[#allocation72_spill] sm:$0xff] }
  0xff   : > { %v3222_v15 = vrot.slane %v3214_v48, %v13073_v7  ;;  %v3229_v23 = vrot.slane %v3215_v55, %v13073_v7  ;;  %v3282_v61 = vcombine.low %v19035_v0, %v19034_v56  ;;  %v3239_v5 = vrot.slane %v3231_v11, %v13073_v7  ;;  %v19047_v40 = vld [vmem:[#allocation47_spill] sm:$0xff]  ;;  %v19049_v31 = vld [vmem:[#allocation48_spill] sm:$0xff]  ;;  %v19053_v25 = vld [vmem:[#allocation50_spill] sm:$0xff] }
 0x100   : > { %v3246_v49 = vrot.slane %v3232_v2, %v13073_v7  ;;  %v3256_v52 = vrot.slane %v3248_v43, %v13073_v7  ;;  %v3263_v30 = vrot.slane %v3249_v44, %v13073_v7  ;;  %v3280_v20 = vrot.slane %v3266_v4, %v13073_v7  ;;  %v19048_v43 = vld [vmem:[#allocation45_spill] sm:$0xff]  ;;  %v19050_v44 = vld [vmem:[#allocation46_spill] sm:$0xff]  ;;  %v19051_v46 = vld [vmem:[#allocation76_spill] sm:$0xff] }
 0x101   : > { %12464 = vmatmul.mubr.msk.f32.gmra.mxu0 %vm1940_vm8, %v3111_v33  ;;  %v19036_v33 = vld [vmem:[#allocation37_spill] sm:$0xff]  ;;  %v3213_v21 = vcombine.low %v3205_v9, %v3212_v42  ;;  %v3300_v26 = vcombine.low %v19040_v22, %v13709_v6  ;;  %v3230_v16 = vcombine.low %v3222_v15, %v3229_v23  ;;  %v3290_v32 = vrot.slane %v3282_v61, %v13073_v7  ;;  %v19056_v15 = vld [vmem:[#allocation75_spill] sm:$0xff]  ;;  %v19057_v56 = vld [vmem:[#allocation52_spill] sm:$0xff] }
 0x102   : > { %12466 = vmatprep.mubr.msk.f32.mxu0 %vm1940_vm8, %v3128_v63  ;;  %v3283_v59 = vcombine.low %v19037_v17, %v19036_v33  ;;  %v3273_v63 = vrot.slane %v3265_v54, %v13073_v7  ;;  %v3247_v28 = vcombine.low %v3239_v5, %v3246_v49  ;;  %v3264_v36 = vcombine.low %v3256_v52, %v3263_v30  ;;  %v19052_v54 = vld [vmem:[#allocation74_spill] sm:$0xff]  ;;  %v19054_v4 = vld [vmem:[#allocation49_spill] sm:$0xff]  ;;  %v19058_v0 = vld [vmem:[#allocation51_spill] sm:$0xff] }
 0x103   : > { %v3316_v48 = vcombine.low %v19042_v19, %v19041_v38  ;;  %v11859_v39 = vcombine.high %v19041_v38, %v19043_v18  ;;  %v3436_v55 = vcombine.low %v14009_v10, %v14005_v37  ;;  %v3314_v35 = vrot.slane %v3300_v26, %v13073_v7  ;;  %v19055_v42 = vld [vmem:[#allocation77_spill] sm:$0xff]  ;;  %v19059_v17 = vld [vmem:[#allocation78_spill] sm:$0xff]  ;;  %v19064_v19 = vld [vmem:[#allocation55_spill] sm:$0xff] }
 0x104   : > { %v3297_v41 = vrot.slane %v3283_v59, %v13073_v7  ;;  %v11860_v11 = vcombine.high %v14005_v37, %v19044_v1  ;;  %v3453_v2 = vcombine.low %v19046_v58, %v19045_v8  ;;  %v3333_v51 = vcombine.low %v19048_v43, %v19047_v40  ;;  %v19067_v1 = vld [vmem:[#allocation57_spill] sm:$0xff]  ;;  %v19068_v8 = vld [vmem:[#allocation59_spill] sm:$0xff]  ;;  %v19069_v58 = vld [vmem:[#allocation60_spill] sm:$0xff]  ;;  %v14424_v37 = vpop.f32.mrf.mxu0 }
 0x105   : > { %12467 = vmatmul.mubr.msk.f32.gmra.mxu0 %vm1940_vm8, %v3145_v14  ;;  %v19038_v14 = vld [vmem:[#allocation40_spill] sm:$0xff]  ;;  %v3334_v12 = vcombine.low %v19050_v44, %v19049_v31  ;;  %v3469_v13 = vcombine.low %v19052_v54, %v19051_v46  ;;  %v3470_v23 = vcombine.low %v19056_v15, %v19055_v42  ;;  %v3351_v61 = vcombine.low %v19058_v0, %v19057_v56  ;;  %v19070_v31 = vld [vmem:[#allocation62_spill] sm:$0xff]  ;;  %v19071_v44 = vld [vmem:[#allocation61_spill] sm:$0xff] }
 0x106   : > { %12469 = vmatprep.mubr.msk.f32.mxu0 %vm1940_vm8, %v3162_v53  ;;  %v3299_v60 = vcombine.low %v19039_v29, %v19038_v14  ;;  %v3281_v53 = vcombine.low %v3273_v63, %v3280_v20  ;;  %v3298_v27 = vcombine.low %v3290_v32, %v3297_v41  ;;  %v14345_v9 = vrot.slane %v3453_v2, %v13073_v7  ;;  %v19060_v63 = vld [vmem:[#allocation80_spill] sm:$0xff]  ;;  %v19061_v20 = vld [vmem:[#allocation79_spill] sm:$0xff]  ;;  %v19063_v32 = vld [vmem:[#allocation54_spill] sm:$0xff]  ;;  %v14426_v10 = vpop.f32.mrf.mxu0 }
 0x107   : > { %v14352_v33 = vrot.slane %v3469_v13, %v13073_v7  ;;  %v3486_v59 = vcombine.low %v19059_v17, %v14113_v50  ;;  %v3487_v5 = vcombine.low %v14105_v34, %v14117_v57  ;;  %v3484_v52 = vrot.slane %v3470_v23, %v13073_v7  ;;  %v19072_v46 = vld [vmem:[#allocation63_spill] sm:$0xff]  ;;  %v19077_v42 = vld [vmem:[#allocation68_spill] sm:$0xff]  ;;  %19080 = vst [vmem:[#allocation7_spill] sm:$0xff] %v14426_v10 }
 0x108   : > { %v3307_v6 = vrot.slane %v3299_v60, %v13073_v7  ;;  %v3503_v30 = vcombine.low %v14136_v47, %v14149_v45  ;;  %v3324_v50 = vrot.slane %v3316_v48, %v13073_v7  ;;  %v3331_v14 = vrot.slane %v11859_v39, %v13073_v7  ;;  %v19065_v48 = vld [vmem:[#allocation53_spill] sm:$0xff] }
 0x109   : > { %12470 = vmatmul.mubr.msk.f32.gmra.mxu0 %vm1940_vm8, %v3179_v62  ;;  %v3350_v62 = vcombine.low %v19054_v4, %v19053_v25  ;;  %v3494_v34 = vrot.slane %v3486_v59, %v13073_v7  ;;  %v3501_v57 = vrot.slane %v3487_v5, %v13073_v7  ;;  %v3485_v60 = vcombine.low %v14352_v33, %v3484_v52  ;;  %v19074_v4 = vld [vmem:[#allocation66_spill] sm:$0xff]  ;;  %v19079_v33 = vld [vmem:[#allocation69_spill] sm:$0xff] }
 0x10a   : > { %12472 = vmatprep.mubr.msk.f32.mxu0 %vm1940_vm8, %v3196_v3  ;;  %v14342_v3 = vrot.slane %v11860_v11, %v13073_v7  ;;  %v3315_v29 = vcombine.low %v3307_v6, %v3314_v35  ;;  %v3511_v22 = vrot.slane %v3503_v30, %v13073_v7  ;;  %v3341_v45 = vrot.slane %v3333_v51, %v13073_v7  ;;  %v19066_v35 = vld [vmem:[#allocation58_spill] sm:$0xff] }
 0x10b   : > { %v3348_v26 = vrot.slane %v3334_v12, %v13073_v7  ;;  %v3365_v38 = vrot.slane %v3351_v61, %v13073_v7  ;;  %v3368_v18 = vcombine.low %v19065_v48, %v19064_v19  ;;  %v3332_v6 = vcombine.low %v3324_v50, %v3331_v14  ;;  %v19078_v61 = vld [vmem:[#allocation70_spill] sm:$0xff] }
 0x10c   : > { %v3468_v49 = vcombine.low %v14342_v3, %v14345_v9  ;;  %v3384_v11 = vcombine.low %v19067_v1, %v19066_v35  ;;  %v3385_v2 = vcombine.low %v19069_v58, %v19068_v8  ;;  %v3401_v12 = vcombine.low %v19071_v44, %v19070_v31  ;;  %v19076_v9 = vld [vmem:[#allocation67_spill] sm:$0xff] }
 0x10d   : > { %12473 = vmatmul.mubr.msk.f32.gmra.mxu0 %vm1940_vm8, %v3213_v21  ;;  %v3504_v21 = vcombine.low %v19061_v20, %v19060_v63  ;;  %v3349_v40 = vcombine.low %v3341_v45, %v3348_v26  ;;  %v3382_v51 = vrot.slane %v3368_v18, %v13073_v7  ;;  %v3419_v15 = vcombine.low %v19077_v42, %v19076_v9  ;;  %v14434_v58 = vld [vmem:[%s19005_s3] sm:$0xff] }
 0x10e   : > { %12475 = vmatprep.mubr.msk.f32.mxu0 %vm1940_vm8, %v3230_v16  ;;  %v19062_v16 = vld [vmem:[#allocation56_spill] sm:$0xff]  ;;  %v3392_v13 = vrot.slane %v3384_v11, %v13073_v7  ;;  %v3399_v25 = vrot.slane %v3385_v2, %v13073_v7  ;;  %v3409_v56 = vrot.slane %v3401_v12, %v13073_v7  ;;  %v3435_v17 = vcombine.low %v19079_v33, %v19078_v61 }
 0x10f   : > { %v3518_v47 = vrot.slane %v3504_v21, %v13073_v7  ;;  %v3367_v41 = vcombine.low %v19063_v32, %v19062_v16  ;;  %v3433_v52 = vrot.slane %v3419_v15, %v13073_v7  ;;  %v3450_v20 = vrot.slane %v3436_v55, %v13073_v7  ;;  %v12368_v55 = vpop.f32.mrf.mxu0  ;;  %19081 = vst [vmem:[#allocation9_spill] sm:$0xff] %v14434_v58 }
 0x110   : > { %v3400_v59 = vcombine.low %v3392_v13, %v3399_v25  ;;  %v3443_v63 = vrot.slane %v3435_v17, %v13073_v7  ;;  %12546 = vmatprep.subr.mxu1 %v14434_v58 }
 0x111   : > { %12476 = vmatmul.mubr.msk.f32.gmra.mxu0 %vm1940_vm8, %v3247_v28  ;;  %v3502_v28 = vcombine.low %v3494_v34, %v3501_v57  ;;  %v3519_v39 = vcombine.low %v3511_v22, %v3518_v47  ;;  %v2081_v14 = vpop.f32.mrf.mxu0  ;;  %v12415_v57 = vpop.f32.mrf.mxu1 }
 0x112   : > { %12478 = vmatprep.mubr.msk.f32.mxu0 %vm1940_vm8, %v3264_v36  ;;  %v3358_v36 = vrot.slane %v3350_v62, %v13073_v7  ;;  %v19075_v62 = vld [vmem:[#allocation65_spill] sm:$0xff]  ;;  %v3451_v50 = vcombine.low %v3443_v63, %v3450_v20  ;;  %v2875_v20 = vadd.f32 %v12415_v57, %v12368_v55 }
 0x113   : > { %v3418_v3 = vcombine.low %v19075_v62, %v19074_v4  ;;  %v12371_v34 = vpop.f32.mrf.mxu0  ;;  %v2869_v22 = vpop.f32.mrf.mxu1 }
 0x114   : > { %v3366_v43 = vcombine.low %v3358_v36, %v3365_v38 }
 0x115   : > { %12479 = vmatmul.mubr.msk.f32.gmra.mxu0 %vm1940_vm8, %v3281_v53  ;;  %v3375_v53 = vrot.slane %v3367_v41, %v13073_v7  ;;  %v3426_v5 = vrot.slane %v3418_v3, %v13073_v7 }
 0x116   : > { %12481 = vmatprep.mubr.msk.f32.mxu0 %vm1940_vm8, %v3298_v27  ;;  %v19073_v27 = vld [vmem:[#allocation64_spill] sm:$0xff] }
 0x117   : > { %v3402_v54 = vcombine.low %v19073_v27, %v19072_v46  ;;  %v3383_v23 = vcombine.low %v3375_v53, %v3382_v51  ;;  %v3434_v21 = vcombine.low %v3426_v5, %v3433_v52 }
 0x119   : > { %12482 = vmatmul.mubr.msk.f32.gmra.mxu0 %vm1940_vm8, %v3315_v29  ;;  %v3416_v0 = vrot.slane %v3402_v54, %v13073_v7  ;;  %v2091_v29 = vpop.f32.mrf.mxu0 }
 0x11a   : > { %12484 = vmatprep.mubr.msk.f32.mxu0 %vm1940_vm8, %v3332_v6 }
 0x11b   : > { %v3417_v30 = vcombine.low %v3409_v56, %v3416_v0 }
 0x11c   : > { %v12374_v47 = vpop.f32.mrf.mxu0 }
 0x11d   : > { %12485 = vmatmul.mubr.msk.f32.gmra.mxu0 %vm1940_vm8, %v3349_v40 }
 0x11e   : > { %12487 = vmatprep.mubr.msk.f32.mxu0 %vm1940_vm8, %v3366_v43  ;;  %v2101_v45 = vpop.f32.mrf.mxu0 }
 0x121   : > { %12488 = vmatmul.mubr.msk.f32.gmra.mxu0 %vm1940_vm8, %v3383_v23 }
 0x122   : > { %12490 = vmatprep.mubr.msk.f32.mxu0 %vm1940_vm8, %v3400_v59 }
 0x125   : > { %12491 = vmatmul.mubr.msk.f32.gmra.mxu0 %vm1940_vm8, %v3417_v30 }
 0x126   : > { %12493 = vmatprep.mubr.msk.f32.mxu0 %vm1940_vm8, %v3434_v21  ;;  %v2870_v21 = vadd.f32 %v2869_v22, %v2081_v14  ;;  %v14451_v14 = vld [vmem:[%s19082_s2] ss:$0 sm:$0xff] }
 0x129   : > { %12494 = vmatmul.mubr.msk.f32.gmra.mxu0 %vm1940_vm8, %v3451_v50 }
 0x12a   : > { %12496 = vmatprep.mubr.msk.f32.mxu0 %vm1940_vm8, %v3468_v49  ;;  %v11958_v49 = vld [vmem:[%s19005_s3 + $0x10] sm:$0xff]  ;;  %v12377_v16 = vpop.f32.mrf.mxu0 }
 0x12b   : > { %12590 = vmatprep.subr.mxu0 %v11958_v49 }
 0x12c   : > { %12591 = vmatpush3.msra.mxu0 %v11958_v49  ;;  %v2111_v41 = vpop.f32.mrf.mxu0 }
 0x12d   : > { %12497 = vmatmul.mubr.msk.f32.gmra.mxu0 %vm1940_vm8, %v3485_v60  ;;  %v12418_v60 = vpop.f32.mrf.mxu1 }
 0x12e   : > { %12499 = vmatprep.mubr.msk.f32.mxu0 %vm1940_vm8, %v3502_v28  ;;  %v14437_v50 = vadd.f32 %v12418_v60, %v12371_v34  ;;  %v19083_v60 = vld [vmem:[#allocation7_spill] sm:$0xff] }
 0x12f   : > { %v2879_v26 = vpop.f32.mrf.mxu1 }
 0x130   : > { %v14440_v24 = vadd.f32 %v2879_v26, %v2091_v29 }
 0x131   : > { %12500 = vmatmul.mubr.msk.f32.gmra.mxu0 %vm1940_vm8, %v3519_v39  ;;  %v12421_v32 = vpop.f32.mrf.mxu1 }
 0x132   : > { %v14442_v7 = vadd.f32 %v12421_v32, %v12374_v47 }
 0x133   : > { %v2889_v28 = vpop.f32.mrf.mxu1 }
 0x134   : > { %v14444_v10 = vadd.f32 %v2889_v28, %v2101_v45 }
 0x135   : > { %v12424_v38 = vpop.f32.mrf.mxu1 }
 0x136   : > { %v12380_v36 = vpop.f32.mrf.mxu0  ;;  %v14446_v55 = vadd.f32 %v12424_v38, %v12377_v16 }
 0x137   : > { %v2899_v48 = vpop.f32.mrf.mxu1 }
 0x138   : > { %v2121_v19 = vpop.f32.mrf.mxu0  ;;  %v14453_v22 = vadd.f32 %v2899_v48, %v2111_v41 }
 0x139   : > { %v12427_v39 = vpop.f32.mrf.mxu1 }
 0x13a   : > { %v14455_v34 = vadd.f32 %v12427_v39, %v12380_v36 }
 0x13b   : > { %v2909_v35 = vpop.f32.mrf.mxu1 }
 0x13c   : > { %v14458_v26 = vadd.f32 %v2909_v35, %v2121_v19 }
 0x140   : > { %v12430_v11 = vpop.f32.mrf.mxu1 }
 0x142   : > { %v2919_v2 = vpop.f32.mrf.mxu1 }
 0x144   : > { %v12383_v18 = vpop.f32.mrf.mxu0 }
 0x145   : > { %v14460_v47 = vadd.f32 %v12430_v11, %v12383_v18 }
 0x146   : > { %v2131_v6 = vpop.f32.mrf.mxu0 }
 0x147   : > { %v14462_v45 = vadd.f32 %v2919_v2, %v2131_v6 }
 0x14f   : > { %v12433_v53 = vpop.f32.mrf.mxu1 }
 0x151   : > { %v12386_v1 = vpop.f32.mrf.mxu0  ;;  %v2929_v51 = vpop.f32.mrf.mxu1 }
 0x152   : > { %v14464_v16 = vadd.f32 %v12433_v53, %v12386_v1 }
 0x153   : > { %v2141_v8 = vpop.f32.mrf.mxu0 }
 0x154   : > { %v14466_v28 = vadd.f32 %v2929_v51, %v2141_v8 }
 0x15d   : > { %v12436_v44 = vpop.f32.mrf.mxu1 }
 0x15f   : > { %v2939_v46 = vpop.f32.mrf.mxu1 }
 0x161   : > { %v12389_v40 = vpop.f32.mrf.mxu0 }
 0x162   : > { %v14468_v38 = vadd.f32 %v12436_v44, %v12389_v40 }
 0x163   : > { %v2151_v43 = vpop.f32.mrf.mxu0 }
 0x164   : > { %v14471_v39 = vadd.f32 %v2939_v46, %v2151_v43 }
 0x16a   : > { %v12439_v54 = vpop.f32.mrf.mxu1 }
 0x16c   : > { %v2949_v25 = vpop.f32.mrf.mxu1 }
 0x16e   : > { %v12392_v31 = vpop.f32.mrf.mxu0 }
 0x170   : > { %v2161_v12 = vpop.f32.mrf.mxu0 }
 0x171   : > { %v14475_v19 = vadd.f32 %v2949_v25, %v2161_v12  ;;  %v19092_v12 = vld [vmem:[#allocation5_spill] sm:$0xff] }
 0x173   : > { %19085 = vst [vmem:[#allocation10_spill] sm:$0xff] %v14475_v19 }
 0x178   : > { %v12442_v62 = vpop.f32.mrf.mxu1 }
 0x17a   : > { %v2959_v9 = vpop.f32.mrf.mxu1 }
 0x17c   : > { %v12395_v27 = vpop.f32.mrf.mxu0 }
 0x17d   : > { %v14477_v18 = vadd.f32 %v12442_v62, %v12395_v27 }
 0x17e   : > { %v2171_v13 = vpop.f32.mrf.mxu0 }
 0x17f   : > { %19086 = vst [vmem:[#allocation11_spill] sm:$0xff] %v14477_v18  ;;  %v14479_v35 = vadd.f32 %v2959_v9, %v2171_v13 }
 0x181   : > { %19087 = vst [vmem:[#allocation13_spill] sm:$0xff] %v14479_v35 }
 0x185   : > { %v12445_v15 = vpop.f32.mrf.mxu1 }
 0x187   : > { %v2969_v56 = vpop.f32.mrf.mxu1 }
 0x18a   : > { %v12398_v4 = vpop.f32.mrf.mxu0 }
 0x18b   : > { %v14482_v2 = vadd.f32 %v12445_v15, %v12398_v4 }
 0x18c   : > { %v2181_v3 = vpop.f32.mrf.mxu0 }
 0x18d   : > { %19088 = vst [vmem:[#allocation12_spill] sm:$0xff] %v14482_v2  ;;  %v14484_v40 = vadd.f32 %v2969_v56, %v2181_v3 }
 0x18f   : > { %19089 = vst [vmem:[#allocation14_spill] sm:$0xff] %v14484_v40 }
 0x193   : > { %v12448_v61 = vpop.f32.mrf.mxu1 }
 0x195   : > { %v2979_v17 = vpop.f32.mrf.mxu1 }
 0x197   : > { %v12401_v42 = vpop.f32.mrf.mxu0 }
 0x198   : > { %v14486_v53 = vadd.f32 %v12448_v61, %v12401_v42 }
 0x199   : > { %v2191_v23 = vpop.f32.mrf.mxu0 }
 0x19a   : > { %19090 = vst [vmem:[#allocation15_spill] sm:$0xff] %v14486_v53  ;;  %v14488_v43 = vadd.f32 %v2979_v17, %v2191_v23 }
 0x19c   : > { %19091 = vst [vmem:[#allocation16_spill] sm:$0xff] %v14488_v43 }
 0x1a0   : > { %v12451_v52 = vpop.f32.mrf.mxu1 }
 0x1a2   : > { %v2989_v49 = vpop.f32.mrf.mxu1 }
 0x1a5   : > { %v12404_v0 = vpop.f32.mrf.mxu0 }
 0x1a6   : > { %v14494_v13 = vadd.f32 %v12451_v52, %v12404_v0 }
 0x1a7   : > { %v2201_v33 = vpop.f32.mrf.mxu0 }
 0x1a8   : > { %19093 = vst [vmem:[#allocation18_spill] sm:$0xff] %v14494_v13  ;;  %v14496_v25 = vadd.f32 %v2989_v49, %v2201_v33 }
 0x1aa   : > { %19094 = vst [vmem:[#allocation17_spill] sm:$0xff] %v14496_v25 }
 0x1ad   : > { %v12454_v41 = vpop.f32.mrf.mxu1 }
 0x1b1   : > { %v12407_v59 = vpop.f32.mrf.mxu0 }
 0x1b2   : > { %v14498_v4 = vadd.f32 %v12454_v41, %v12407_v59 }
 0x1b3   : > { %v2211_v5 = vpop.f32.mrf.mxu0 }
 0x1b4   : > { %19095 = vst [vmem:[#allocation21_spill] sm:$0xff] %v14498_v4 }
 0x1b5   : > { %v12412_v30 = vpop.f32.mrf.mxu0 }
 0x1b6   : > { %v2865_v58 = vadd.f32 %v12412_v30, %v14424_v37 }
 0x1b7   : > { %v2859_v63 = vpop.f32.mrf.mxu0 }
 0x1b8   : > { %v2860_v37 = vadd.f32 %v2859_v63, %v19083_v60 }
 0x1b9   : > { %v12459_v57 = vpop.f32.mrf.mxu0 }
 0x1ba   : > { %v3799_v29 = vadd.f32 %v12459_v57, %v2865_v58  ;;  %v14473_v58 = vadd.f32 %v12439_v54, %v12392_v31  ;;  %v2999_v31 = vpop.f32.mrf.mxu1 }
 0x1bb   : > { %v3649_v32 = vpop.f32.mrf.mxu0  ;;  %v14504_v56 = vadd.f32 %v2999_v31, %v2211_v5 }
 0x1bc   : > { %v3836_v36 = vadd.f32 %v14451_v14, %v3799_v29  ;;  %v3798_v48 = vadd.f32 %v3649_v32, %v2860_v37  ;;  %19084 = vst [vmem:[#allocation8_spill] sm:$0xff] %v14473_v58 }
 0x1bd   : > { %v12462_v6 = vpop.f32.mrf.mxu0  ;;  %19096 = vst [vmem:[#allocation19_spill] sm:$0xff] %v14504_v56 }
 0x1be   : > { %v3866_v1 = vmax.f32 %v3836_v36, 0.0  ;;  %v3835_v11 = vadd.f32 %v14451_v14, %v3798_v48  ;;  %v3801_v8 = vadd.f32 %v12462_v6, %v2875_v20 }
 0x1bf   : > { %v3659_v51 = vpop.f32.mrf.mxu0 }
 0x1c0   : > { %v3942_v44 = vcombine.high %v3866_v1, %v3866_v1  ;;  %v14491_v46 = vrot.slane %v3866_v1, %v19092_v12  ;;  %v3865_v27 = vmax.f32 %v3835_v11, 0.0  ;;  %v3838_v54 = vadd.f32 %v14451_v14, %v3801_v8 }
 0x1c1   : > { %v3800_v62 = vadd.f32 %v3659_v51, %v2870_v21  ;;  %v12465_v3 = vpop.f32.mrf.mxu0 }
 0x1c2   : > { %v3956_v9 = vrot.slane %v3942_v44, %v19092_v12  ;;  %v3957_v42 = vcombine.high %v14491_v46, %v14491_v46  ;;  %v18657_v15 = vrot.slane %v14491_v46, 7  ;;  %v3925_v23 = vcombine.high %v3865_v27, %v3865_v27 }
 0x1c3   : > { %v14507_v61 = vrot.slane %v3865_v27, %v19092_v12  ;;  %v3868_v0 = vmax.f32 %v3838_v54, 0.0  ;;  %v3837_v33 = vadd.f32 %v14451_v14, %v3800_v62  ;;  %v3669_v17 = vpop.f32.mrf.mxu0  ;;  %v3803_v41 = vadd.f32 %v12465_v3, %v14437_v50 }
 0x1c4   : > { %v3958_v59 = vcombine.high %v3956_v9, %v3956_v9  ;;  %v4449_v52 = vrot.slane %v18657_v15, 2  ;;  %v4450_v30 = vrot.slane %v3957_v42, 7  ;;  %v4453_v63 = vrot.slane %v3956_v9, 7 }
 0x1c5   : > { %19097 = vst [vmem:[#allocation22_spill] sm:$0xff] %v14507_v61  ;;  %v5537_v20 = vcombine.low %v14491_v46, %v3957_v42  ;;  %v6276_v21 = vcombine.low %v3957_v42, %v3956_v9  ;;  %v14514_v49 = vrot.slane %v3925_v23, %v19092_v12  ;;  %v14518_v5 = vcombine.high %v14507_v61, %v14507_v61  ;;  %v12468_v57 = vpop.f32.mrf.mxu0 }
 0x1c6   : > { %v14522_v37 = vsel %vm13110_vm7, %v4449_v52, %v4450_v30  ;;  %v4452_v29 = vrot.slane %v4450_v30, 2  ;;  %v4456_v32 = vrot.slane %v3958_v59, 7  ;;  %v4455_v36 = vrot.slane %v4453_v63, 2 }
 0x1c7   : > { %19098 = vst [vmem:[#allocation20_spill] sm:$0xff] %v14514_v49  ;;  %19099 = vst [vmem:[#allocation25_spill] sm:$0xff] %v14518_v5  ;;  %v5538_v48 = vcombine.low %v3956_v9, %v3958_v59  ;;  %v14526_v6 = vrot.slane %v5537_v20, %v19092_v12  ;;  %v14529_v1 = vrot.slane %v6276_v21, %v19092_v12  ;;  %v3679_v11 = vpop.f32.mrf.mxu0  ;;  %v18659_v50 = vrot.slane %v14518_v5, 7 }
 0x1c8   : > { %v14533_v8 = vsel %vm13110_vm7, %v4452_v29, %v4453_v63  ;;  %v4458_v51 = vrot.slane %v4456_v32, 2  ;;  %v14537_v31 = vcombine.high %v14514_v49, %v14514_v49  ;;  %v3976_v9 = vcombine.high %v3868_v0, %v3868_v0 }
 0x1c9   : > { %19101 = vst [vmem:[#allocation23_spill] sm:$0xff] %v14526_v6  ;;  %v14543_v27 = vrot.slane %v5538_v48, %v19092_v12  ;;  %v14550_v42 = vrot.slane %v3868_v0, %v19092_v12  ;;  %v3867_v23 = vmax.f32 %v3837_v33, 0.0  ;;  %v14556_v30 = vrot.slane %v18659_v50, 2  ;;  %v12471_v21 = vpop.f32.mrf.mxu0 }
 0x1ca   : > { %19102 = vst [vmem:[#allocation26_spill] sm:$0xff] %v14537_v31  ;;  %v3840_v63 = vadd.f32 %v14451_v14, %v3803_v41  ;;  %v3802_v20 = vadd.f32 %v3669_v17, %v14440_v24  ;;  %v14561_v29 = vrot.slane %v3976_v9, %v19092_v12  ;;  %v14566_v33 = vsel %vm13110_vm7, %v4455_v36, %v4456_v32 }
 0x1cb   : > { %19103 = vst [vmem:[#allocation24_spill] sm:$0xff] %v14543_v27  ;;  %19104 = vst [vmem:[#allocation29_spill] sm:$0xff] %v14550_v42  ;;  %v18658_v48 = vrot.slane %v14550_v42, 7  ;;  %v3959_v0 = vcombine.high %v3867_v23, %v3867_v23  ;;  %v14570_v52 = vcombine.high %v14550_v42, %v14550_v42  ;;  %v14573_v62 = vrot.slane %v3867_v23, %v19092_v12  ;;  %v3689_v15 = vpop.f32.mrf.mxu0 }
 0x1cc   : > { %v3870_v41 = vmax.f32 %v3840_v63, 0.0  ;;  %v3839_v24 = vadd.f32 %v14451_v14, %v3802_v20  ;;  %v14578_v17 = vcombine.high %v14561_v29, %v14561_v29  ;;  %v3805_v36 = vadd.f32 %v12468_v57, %v14442_v7 }
 0x1cd   : > { %19105 = vst [vmem:[#allocation27_spill] sm:$0xff] %v14570_v52  ;;  %19106 = vst [vmem:[#allocation30_spill] sm:$0xff] %v14573_v62  ;;  %v14582_v9 = vrot.slane %v18658_v48, 2  ;;  %v14585_v32 = vrot.slane %v3959_v0, %v19092_v12  ;;  %v4459_v23 = vrot.slane %v14573_v62, 7  ;;  %v6277_v63 = vcombine.low %v3958_v59, %v14573_v62 }
 0x1ce   : > { %19107 = vst [vmem:[#allocation28_spill] sm:$0xff] %v14578_v17  ;;  %v4010_v20 = vcombine.high %v3870_v41, %v3870_v41  ;;  %v14594_v54 = vcombine.high %v14573_v62, %v14573_v62  ;;  %v14601_v7 = vrot.slane %v3870_v41, %v19092_v12  ;;  %v3869_v27 = vmax.f32 %v3839_v24, 0.0 }
 0x1cf   : > { %19108 = vst [vmem:[#allocation31_spill] sm:$0xff] %v14585_v32  ;;  %v14598_v0 = vcombine.high %v14585_v32, %v14585_v32  ;;  %v14605_v57 = vsel %vm13110_vm7, %v4458_v51, %v4459_v23  ;;  %v14609_v44 = vrot.slane %v6277_v63, %v19092_v12  ;;  %v14614_v48 = vrot.slane %v4459_v23, 2 }
 0x1d0   : > { %19109 = vst [vmem:[#allocation32_spill] sm:$0xff] %v14594_v54  ;;  %19111 = vst [vmem:[#allocation33_spill] sm:$0xff] %v14601_v7  ;;  %v14612_v3 = vrot.slane %v4010_v20, %v19092_v12  ;;  %v14623_v59 = vcombine.high %v14601_v7, %v14601_v7  ;;  %v3842_v23 = vadd.f32 %v14451_v14, %v3805_v36  ;;  %v12474_v20 = vpop.f32.mrf.mxu0  ;;  %v19116_v51 = vrot.slane %v14601_v7, 7 }
 0x1d1   : > { %19110 = vst [vmem:[#allocation34_spill] sm:$0xff] %v14598_v0  ;;  %v3993_v50 = vcombine.high %v3869_v27, %v3869_v27  ;;  %v14632_v41 = vrot.slane %v3869_v27, %v19092_v12  ;;  %v3804_v24 = vadd.f32 %v3679_v11, %v14444_v10  ;;  %v3807_v4 = vadd.f32 %v12471_v21, %v14446_v55 }
 0x1d2   : > { %19112 = vst [vmem:[#allocation36_spill] sm:$0xff] %v14612_v3  ;;  %19113 = vst [vmem:[#allocation35_spill] sm:$0xff] %v14623_v59  ;;  %v14627_v63 = vcombine.high %v14612_v3, %v14612_v3  ;;  %v14637_v62 = vrot.slane %v19116_v51, 2  ;;  %v3872_v56 = vmax.f32 %v3842_v23, 0.0  ;;  %v3806_v25 = vadd.f32 %v3689_v15, %v14453_v22  ;;  %v3699_v40 = vpop.f32.mrf.mxu0 }
 0x1d3   : > { %19115 = vst [vmem:[#allocation38_spill] sm:$0xff] %v14632_v41  ;;  %v14642_v36 = vrot.slane %v3993_v50, %v19092_v12  ;;  %v18663_v6 = vrot.slane %v14632_v41, 7  ;;  %v3841_v13 = vadd.f32 %v14451_v14, %v3804_v24  ;;  %v3809_v27 = vadd.f32 %v12474_v20, %v14455_v34 }
 0x1d4   : > { %19114 = vst [vmem:[#allocation37_spill] sm:$0xff] %v14627_v63  ;;  %19117 = vst [vmem:[#allocation40_spill] sm:$0xff] %v14637_v62  ;;  %v4044_v43 = vcombine.high %v3872_v56, %v3872_v56  ;;  %v14648_v10 = vrot.slane %v3872_v56, %v19092_v12  ;;  %v3844_v11 = vadd.f32 %v14451_v14, %v3807_v4  ;;  %v12477_v19 = vpop.f32.mrf.mxu0  ;;  %v19146_v62 = vrot.slane %v14507_v61, 9 }
 0x1d5   : > { %19118 = vst [vmem:[#allocation39_spill] sm:$0xff] %v14642_v36  ;;  %v3843_v51 = vadd.f32 %v14451_v14, %v3806_v25  ;;  %v14654_v55 = vcombine.high %v14632_v41, %v14632_v41  ;;  %v14658_v22 = vcombine.high %v14642_v36, %v14642_v36  ;;  %v14662_v15 = vrot.slane %v18663_v6, 2 }
 0x1d6   : > { %19119 = vst [vmem:[#allocation42_spill] sm:$0xff] %v14648_v10  ;;  %v3871_v34 = vmax.f32 %v3841_v13, 0.0  ;;  %v14665_v56 = vrot.slane %v4044_v43, %v19092_v12  ;;  %v14669_v4 = vcombine.high %v14648_v10, %v14648_v10  ;;  %v18664_v25 = vrot.slane %v14648_v10, 7 }
 0x1d7   : > { %19120 = vst [vmem:[#allocation41_spill] sm:$0xff] %v14654_v55  ;;  %19121 = vst [vmem:[#allocation43_spill] sm:$0xff] %v14658_v22  ;;  %v3874_v50 = vmax.f32 %v3844_v11, 0.0  ;;  %v3873_v24 = vmax.f32 %v3843_v51, 0.0  ;;  %v3846_v53 = vadd.f32 %v14451_v14, %v3809_v27  ;;  %v3808_v58 = vadd.f32 %v3699_v40, %v14458_v26 }
 0x1d8   : > { %19122 = vst [vmem:[#allocation44_spill] sm:$0xff] %v14665_v56  ;;  %v4027_v23 = vcombine.high %v3871_v34, %v3871_v34  ;;  %v14674_v20 = vrot.slane %v3871_v34, %v19092_v12  ;;  %v14678_v13 = vcombine.high %v14665_v56, %v14665_v56  ;;  %v14682_v43 = vrot.slane %v18664_v25, 2 }
 0x1d9   : > { %v4078_v51 = vcombine.high %v3874_v50, %v3874_v50  ;;  %v14696_v25 = vrot.slane %v3874_v50, %v19092_v12  ;;  %v4061_v35 = vcombine.high %v3873_v24, %v3873_v24  ;;  %v14699_v6 = vrot.slane %v3873_v24, %v19092_v12 }
 0x1da   : > { %19123 = vst [vmem:[#allocation71_spill] sm:$0xff] %v14674_v20  ;;  %19124 = vst [vmem:[#allocation73_spill] sm:$0xff] %v14678_v13  ;;  %v14688_v21 = vrot.slane %v4027_v23, %v19092_v12  ;;  %v18667_v34 = vrot.slane %v14674_v20, 7  ;;  %v14693_v2 = vcombine.high %v14674_v20, %v14674_v20  ;;  %v3876_v50 = vmax.f32 %v3846_v53, 0.0 }
 0x1db   : > { %19125 = vst [vmem:[#allocation72_spill] sm:$0xff] %v14682_v43  ;;  %19128 = vst [vmem:[#allocation48_spill] sm:$0xff] %v14696_v25  ;;  %v14711_v56 = vrot.slane %v4078_v51, %v19092_v12  ;;  %v14716_v24 = vcombine.high %v14696_v25, %v14696_v25  ;;  %v18671_v18 = vrot.slane %v14696_v25, 7  ;;  %v14720_v27 = vrot.slane %v4061_v35, %v19092_v12 }
 0x1dc   : > { %19126 = vst [vmem:[#allocation47_spill] sm:$0xff] %v14688_v21  ;;  %19127 = vst [vmem:[#allocation45_spill] sm:$0xff] %v14693_v2  ;;  %v14704_v23 = vcombine.high %v14688_v21, %v14688_v21  ;;  %v14708_v11 = vrot.slane %v18667_v34, 2  ;;  %v14728_v34 = vcombine.high %v14699_v6, %v14699_v6  ;;  %v14744_v51 = vrot.slane %v3876_v50, %v19092_v12 }
 0x1dd   : > { %19129 = vst [vmem:[#allocation46_spill] sm:$0xff] %v14699_v6  ;;  %19132 = vst [vmem:[#allocation50_spill] sm:$0xff] %v14711_v56  ;;  %v14724_v43 = vcombine.high %v14711_v56, %v14711_v56  ;;  %v14738_v35 = vcombine.high %v14720_v27, %v14720_v27  ;;  %v6260_v53 = vcombine.low %v14537_v31, %v14491_v46 }
 0x1de   : > { %19130 = vst [vmem:[#allocation76_spill] sm:$0xff] %v14704_v23  ;;  %19131 = vst [vmem:[#allocation74_spill] sm:$0xff] %v14708_v11  ;;  %v3811_v56 = vadd.f32 %v12477_v19, %v14460_v47  ;;  %v3845_v26 = vadd.f32 %v14451_v14, %v3808_v58  ;;  %v6294_v19 = vcombine.low %v14598_v0, %v14550_v42 }
 0x1df   : > { %19133 = vst [vmem:[#allocation49_spill] sm:$0xff] %v14716_v24  ;;  %19134 = vst [vmem:[#allocation77_spill] sm:$0xff] %v14720_v27  ;;  %v14733_v24 = vrot.slane %v18671_v18, 2  ;;  %v19140_v18 = vrot.slane %v14699_v6, 7  ;;  %v6274_v27 = vrot.slane %v6260_v53, %v19092_v12 }
 0x1e0   : > { %19135 = vst [vmem:[#allocation75_spill] sm:$0xff] %v14724_v43  ;;  %19136 = vst [vmem:[#allocation52_spill] sm:$0xff] %v14728_v34  ;;  %v6259_v43 = vcombine.low %v14518_v5, %v14514_v49  ;;  %v4112_v34 = vcombine.high %v3876_v50, %v3876_v50  ;;  %v14761_v50 = vcombine.high %v14744_v51, %v14744_v51  ;;  %v3875_v53 = vmax.f32 %v3845_v26, 0.0 }
 0x1e1   : > { %19137 = vst [vmem:[#allocation51_spill] sm:$0xff] %v14733_v24  ;;  %19138 = vst [vmem:[#allocation78_spill] sm:$0xff] %v14738_v35  ;;  %v14750_v24 = vrot.slane %v19140_v18, 2  ;;  %v6293_v35 = vcombine.low %v14594_v54, %v14585_v32  ;;  %v3709_v18 = vpop.f32.mrf.mxu0  ;;  %v3848_v47 = vadd.f32 %v14451_v14, %v3811_v56 }
 0x1e2   : > { %19139 = vst [vmem:[#allocation80_spill] sm:$0xff] %v14744_v51  ;;  %v14757_v11 = vrot.slane %v4112_v34, %v19092_v12  ;;  %19143 = vst [vmem:[#allocation54_spill] sm:$0xff] %v14761_v50  ;;  %v6267_v25 = vrot.slane %v6259_v43, %v19092_v12  ;;  %v3810_v58 = vadd.f32 %v3709_v18, %v14462_v45  ;;  %v19145_v51 = vrot.slane %v14518_v5, 7 }
 0x1e3   : > { %19141 = vst [vmem:[#allocation79_spill] sm:$0xff] %v14750_v24  ;;  %v6301_v43 = vrot.slane %v6293_v35, %v19092_v12  ;;  %v3878_v6 = vmax.f32 %v3848_v47, 0.0  ;;  %v6308_v24 = vrot.slane %v6294_v19, %v19092_v12  ;;  %v4444_v35 = vrot.slane %v14537_v31, 7 }
 0x1e4   : > { %19142 = vst [vmem:[#allocation56_spill] sm:$0xff] %v14757_v11  ;;  %v14772_v40 = vcombine.high %v14757_v11, %v14757_v11  ;;  %v6275_v13 = vcombine.low %v6267_v25, %v6274_v27  ;;  %v4439_v34 = vsel %vm13110_vm7, %v19146_v62, %v19145_v51  ;;  %v19147_v25 = vrot.slane %v14514_v49, 7  ;;  %v19401_v60 = vld [vmem:[#allocation50_spill] sm:$0xff] }
 0x1e5   : > { %v4095_v26 = vcombine.high %v3875_v53, %v3875_v53  ;;  %v14790_v47 = vrot.slane %v3875_v53, %v19092_v12  ;;  %v19149_v45 = vcombine.low %v14529_v1, %v14609_v44  ;;  %v14797_v18 = vrot.slane %v3878_v6, %v19092_v12 }
 0x1e6   : > { %19144 = vst [vmem:[#allocation55_spill] sm:$0xff] %v14772_v40  ;;  %12592 = vmatprep.mubr.msk.f32.mxu0 %vm5258_vm9, %v6275_v13  ;;  %v4443_v27 = vrot.slane %v19147_v25, 2  ;;  %v4146_v13 = vcombine.high %v3878_v6, %v3878_v6  ;;  %v6309_v19 = vcombine.low %v6301_v43, %v6308_v24  ;;  %v3847_v62 = vadd.f32 %v14451_v14, %v3810_v58 }
 0x1e7   : > { %19148 = vst [vmem:[#allocation53_spill] sm:$0xff] %v14790_v47  ;;  %12593 = vmatmul.mubr.msk.f32.vlgmr.msra.gmra.mxu0 %vm5258_vm9, %v19149_v45  ;;  %19150 = vst [vmem:[#allocation58_spill] sm:$0xff] %v14797_v18  ;;  %v19151_v51 = vmov %v19147_v25  ;;  %v4446_v53 = vrot.slane %v4444_v35, 2  ;;  %v14806_v56 = vrot.slane %v4095_v26, %v19092_v12  ;;  %v18685_v1 = vrot.slane %v14790_v47, 7 }
 0x1e8   : > { %v4442_v25 = vsel %vm13110_vm7, %v14556_v30, %v19151_v51  ;;  %v14810_v44 = vrot.slane %v4146_v13, %v19092_v12  ;;  %v4445_v6 = vsel %vm13110_vm7, %v4443_v27, %v4444_v35  ;;  %v14816_v24 = vcombine.high %v14790_v47, %v14790_v47  ;;  %12595 = vmatprep.mubr.msk.f32.mxu0 %vm5258_vm9, %v6309_v19  ;;  %v12480_v19 = vpop.f32.mrf.mxu0 }
 0x1e9   : > { %19152 = vst [vmem:[#allocation57_spill] sm:$0xff] %v14806_v56  ;;  %v18690_v43 = vrot.slane %v14797_v18, 7  ;;  %v3877_v30 = vmax.f32 %v3847_v62, 0.0  ;;  %v19155_v58 = vrot.slane %v14491_v46, 7  ;;  %v14826_v45 = vcombine.high %v14806_v56, %v14806_v56 }
 0x1ea   : > { %19153 = vst [vmem:[#allocation59_spill] sm:$0xff] %v14810_v44  ;;  %19154 = vst [vmem:[#allocation60_spill] sm:$0xff] %v14816_v24  ;;  %v14830_v27 = vrot.slane %v18685_v1, 2  ;;  %v14835_v13 = vcombine.high %v14797_v18, %v14797_v18  ;;  %v14839_v46 = vcombine.high %v14810_v44, %v14810_v44  ;;  %v4782_v35 = vcombine.low %v4439_v34, %v4442_v25  ;;  %v3719_v25 = vpop.f32.mrf.mxu0 }
 0x1eb   : > { %v4448_v26 = vsel %vm13110_vm7, %v4446_v53, %v19155_v58  ;;  %19156 = vst [vmem:[#allocation62_spill] sm:$0xff] %v14826_v45  ;;  %v14843_v62 = vrot.slane %v18690_v43, 2  ;;  %v4129_v51 = vcombine.high %v3877_v30, %v3877_v30  ;;  %v14846_v53 = vrot.slane %v3877_v30, %v19092_v12 }
 0x1ec   : > { %19157 = vst [vmem:[#allocation61_spill] sm:$0xff] %v14835_v13  ;;  %19158 = vst [vmem:[#allocation63_spill] sm:$0xff] %v14839_v46  ;;  %v4783_v1 = vcombine.low %v4445_v6, %v4448_v26  ;;  %v19161_v5 = vcombine.low %v14566_v33, %v14605_v57  ;;  %v19163_v43 = vcombine.low %v14522_v37, %v14533_v8  ;;  %v4462_v46 = vrot.slane %v14594_v54, 7 }
 0x1ed   : > { %19159 = vst [vmem:[#allocation64_spill] sm:$0xff] %v14843_v62  ;;  %19160 = vst [vmem:[#allocation66_spill] sm:$0xff] %v14846_v53  ;;  %v14854_v49 = vrot.slane %v4129_v51, %v19092_v12  ;;  %v18694_v31 = vrot.slane %v14846_v53, 7  ;;  %v6310_v58 = vcombine.low %v14570_v52, %v14561_v29  ;;  %v14865_v34 = vcombine.high %v14846_v53, %v14846_v53 }
 0x1ee   : > { %v4814_v61 = vrot.slane %v19161_v5, %v19092_v12  ;;  %v4807_v30 = vrot.slane %v19163_v43, %v19092_v12  ;;  %v4790_v33 = vrot.slane %v4782_v35, %v19092_v12  ;;  %v4797_v5 = vrot.slane %v4783_v1, %v19092_v12 }
 0x1ef   : > { %19162 = vst [vmem:[#allocation65_spill] sm:$0xff] %v14854_v49  ;;  %19164 = vst [vmem:[#allocation67_spill] sm:$0xff] %v14865_v34  ;;  %v6311_v57 = vcombine.low %v14632_v41, %v14654_v55  ;;  %v14873_v6 = vcombine.high %v14854_v49, %v14854_v49  ;;  %v14877_v37 = vrot.slane %v18694_v31, 2  ;;  %v6318_v43 = vrot.slane %v6310_v58, %v19092_v12 }
 0x1f0   : > { %v4815_v8 = vcombine.low %v4807_v30, %v4814_v61  ;;  %v4798_v26 = vcombine.low %v4790_v33, %v4797_v5  ;;  %v3813_v1 = vadd.f32 %v12480_v19, %v14464_v16  ;;  %v6327_v51 = vcombine.low %v14642_v36, %v14658_v22 }
 0x1f1   : > { %19165 = vst [vmem:[#allocation68_spill] sm:$0xff] %v14873_v6  ;;  %v6325_v35 = vrot.slane %v6311_v57, %v19092_v12  ;;  %v6328_v62 = vcombine.low %v14601_v7, %v14623_v59  ;;  %v3812_v44 = vadd.f32 %v3719_v25, %v14466_v28  ;;  %v19166_v31 = vrot.slane %v14585_v32, 7 }
 0x1f2   : > { %12504 = vmatprep.mubr.msk.f32.mxu1 %vm5258_vm9, %v4798_v26  ;;  %v3850_v30 = vadd.f32 %v14451_v14, %v3813_v1  ;;  %v6335_v16 = vrot.slane %v6327_v51, %v19092_v12  ;;  %v4468_v19 = vrot.slane %v14598_v0, 7  ;;  %v4464_v57 = vrot.slane %v4462_v46, 2  ;;  %v19167_v26 = vld [vmem:[#allocation9_spill] sm:$0xff] }
 0x1f3   : > { %v4467_v61 = vrot.slane %v19166_v31, 2  ;;  %v6326_v58 = vcombine.low %v6318_v43, %v6325_v35  ;;  %12505 = vmatmul.mubr.msk.f32.vlgmr.msra.gmra.mxu1 %vm5258_vm9, %v4815_v8  ;;  %v6342_v28 = vrot.slane %v6328_v62, %v19092_v12  ;;  %v3849_v5 = vadd.f32 %v14451_v14, %v3812_v44 }
 0x1f4   : > { %v3880_v31 = vmax.f32 %v3850_v30, 0.0  ;;  %v4463_v25 = vsel %vm13110_vm7, %v14614_v48, %v4462_v46  ;;  %v4470_v43 = vrot.slane %v4468_v19, 2  ;;  %12547 = vmatpush3.msra.mxu1 %v19167_v26  ;;  %v4474_v35 = vrot.slane %v14570_v52, 7 }
 0x1f5   : > { %12596 = vmatmul.mubr.msk.f32.gmra.mxu0 %vm5258_vm9, %v6326_v58  ;;  %v6343_v1 = vcombine.low %v6335_v16, %v6342_v28  ;;  %v3879_v51 = vmax.f32 %v3849_v5, 0.0  ;;  %v19168_v8 = vrot.slane %v14585_v32, 7  ;;  %v4469_v62 = vsel %vm13110_vm7, %v4467_v61, %v4468_v19 }
 0x1f6   : > { %v4180_v58 = vcombine.high %v3880_v31, %v3880_v31  ;;  %v14911_v30 = vrot.slane %v3880_v31, %v19092_v12  ;;  %v19170_v48 = vrot.slane %v14550_v42, 7  ;;  %v19173_v61 = vrot.slane %v14578_v17, 9 }
 0x1f7   : > { %v4466_v44 = vsel %vm13110_vm7, %v4464_v57, %v19168_v8  ;;  %12598 = vmatprep.mubr.msk.f32.mxu0 %vm5258_vm9, %v6343_v1  ;;  %v4163_v16 = vcombine.high %v3879_v51, %v3879_v51  ;;  %v14919_v28 = vrot.slane %v3879_v51, %v19092_v12  ;;  %v19172_v57 = vrot.slane %v14632_v41, 7 }
 0x1f8   : > { %19169 = vst [vmem:[#allocation70_spill] sm:$0xff] %v14911_v30  ;;  %v4472_v46 = vsel %vm13110_vm7, %v4470_v43, %v19170_v48  ;;  %v4816_v26 = vcombine.low %v4463_v25, %v4466_v44  ;;  %v14928_v31 = vrot.slane %v4180_v58, %v19092_v12  ;;  %v14932_v25 = vcombine.high %v14911_v30, %v14911_v30  ;;  %v12483_v58 = vpop.f32.mrf.mxu0 }
 0x1f9   : > { %19171 = vst [vmem:[#allocation69_spill] sm:$0xff] %v14919_v28  ;;  %v4817_v5 = vcombine.low %v4469_v62, %v4472_v46  ;;  %v4482_v19 = vsel %vm13110_vm7, %v19173_v61, %v19172_v57  ;;  %v4475_v1 = vsel %vm13110_vm7, %v14582_v9, %v4474_v35  ;;  %v14939_v51 = vrot.slane %v4163_v16, %v19092_v12 }
 0x1fa   : > { %19174 = vst [vmem:[#allocation7_spill] sm:$0xff] %v14928_v31  ;;  %19175 = vst [vmem:[#allocation9_spill] sm:$0xff] %v14932_v25  ;;  %v18696_v8 = vrot.slane %v14919_v28, 7  ;;  %v4824_v44 = vrot.slane %v4816_v26, %v19092_v12  ;;  %v14946_v48 = vcombine.high %v14928_v31, %v14928_v31  ;;  %v18697_v46 = vrot.slane %v14932_v25, 7  ;;  %v3729_v26 = vpop.f32.mrf.mxu0 }
 0x1fb   : > { %19176 = vst [vmem:[#allocation81_spill] sm:$0xff] %v14939_v51  ;;  %v4831_v62 = vrot.slane %v4817_v5, %v19092_v12  ;;  %v14952_v9 = vcombine.high %v14919_v28, %v14919_v28  ;;  %v4476_v61 = vrot.slane %v4474_v35, 2  ;;  %v4484_v33 = vrot.slane %v14654_v55, 7 }
 0x1fc   : > { %19177 = vst [vmem:[#allocation82_spill] sm:$0xff] %v14946_v48  ;;  %v14956_v16 = vrot.slane %v18696_v8, 2  ;;  %v14961_v43 = vrot.slane %v18697_v46, 2  ;;  %v6344_v57 = vcombine.low %v14612_v3, %v14627_v63  ;;  %v6345_v42 = vcombine.low %v14674_v20, %v14693_v2 }
 0x1fd   : > { %19178 = vst [vmem:[#allocation83_spill] sm:$0xff] %v14952_v9  ;;  %v4832_v5 = vcombine.low %v4824_v44, %v4831_v62  ;;  %v19179_v8 = vrot.slane %v14561_v29, 7  ;;  %v3815_v35 = vadd.f32 %v12483_v58, %v14468_v38  ;;  %v6361_v62 = vcombine.low %v14688_v21, %v14704_v23 }
 0x1fe   : > { %v6362_v46 = vcombine.low %v14648_v10, %v14669_v4  ;;  %v4485_v55 = vsel %vm13110_vm7, %v14662_v15, %v4484_v33  ;;  %v6359_v29 = vrot.slane %v6345_v42, %v19092_v12  ;;  %v3814_v54 = vadd.f32 %v3729_v26, %v14471_v39 }
 0x1ff   : > { %12507 = vmatprep.mubr.msk.f32.mxu1 %vm5258_vm9, %v4832_v5  ;;  %v4478_v44 = vsel %vm13110_vm7, %v4476_v61, %v19179_v8  ;;  %v6352_v5 = vrot.slane %v6344_v57, %v19092_v12  ;;  %v4834_v17 = vcombine.low %v4482_v19, %v4485_v55  ;;  %v3852_v8 = vadd.f32 %v14451_v14, %v3815_v35 }
 0x200   : > { %v4833_v52 = vcombine.low %v4475_v1, %v4478_v44  ;;  %v6369_v38 = vrot.slane %v6361_v62, %v19092_v12  ;;  %v6376_v58 = vrot.slane %v6362_v46, %v19092_v12  ;;  %v4486_v32 = vrot.slane %v4484_v33, 2 }
 0x201   : > { %v6360_v41 = vcombine.low %v6352_v5, %v6359_v29  ;;  %v4848_v15 = vrot.slane %v4834_v17, %v19092_v12  ;;  %v3882_v1 = vmax.f32 %v3852_v8, 0.0  ;;  %v19180_v57 = vrot.slane %v14642_v36, 7 }
 0x202   : > { %v4841_v61 = vrot.slane %v4833_v52, %v19092_v12  ;;  %v6377_v44 = vcombine.low %v6369_v38, %v6376_v58  ;;  %v3851_v55 = vadd.f32 %v14451_v14, %v3814_v54  ;;  %v4490_v46 = vrot.slane %v14658_v22, 7  ;;  %v19199_v22 = vld [vmem:[#allocation77_spill] sm:$0xff] }
 0x203   : > { %v4489_v42 = vrot.slane %v19180_v57, 2  ;;  %12599 = vmatmul.mubr.msk.f32.gmra.mxu0 %vm5258_vm9, %v6360_v41  ;;  %v19181_v19 = vmov %v19180_v57  ;;  %v4496_v39 = vrot.slane %v14623_v59, 7  ;;  %v4214_v17 = vcombine.high %v3882_v1, %v3882_v1 }
 0x204   : > { %v4488_v52 = vsel %vm13110_vm7, %v4486_v32, %v19181_v19  ;;  %v4849_v33 = vcombine.low %v4841_v61, %v4848_v15  ;;  %v15000_v26 = vrot.slane %v3882_v1, %v19092_v12  ;;  %12601 = vmatprep.mubr.msk.f32.mxu0 %vm5258_vm9, %v6377_v44  ;;  %v19183_v41 = vrot.slane %v14612_v3, 7  ;;  %v19184_v32 = vld [vmem:[#allocation40_spill] sm:$0xff] }
 0x205   : > { %v3881_v54 = vmax.f32 %v3851_v55, 0.0  ;;  %v4491_v62 = vsel %vm13110_vm7, %v4489_v42, %v4490_v46  ;;  %v4492_v5 = vrot.slane %v4490_v46, 2  ;;  %v4497_v29 = vsel %vm13110_vm7, %v19184_v32, %v4496_v39  ;;  %v12486_v55 = vpop.f32.mrf.mxu0 }
 0x206   : > { %19182 = vst [vmem:[#allocation84_spill] sm:$0xff] %v15000_v26  ;;  %v4501_v35 = vrot.slane %v19183_v41, 2  ;;  %12508 = vmatmul.mubr.msk.f32.gmra.mxu1 %vm5258_vm9, %v4849_v33  ;;  %v15012_v8 = vrot.slane %v4214_v17, %v19092_v12  ;;  %v15016_v38 = vcombine.high %v15000_v26, %v15000_v26  ;;  %v18704_v58 = vrot.slane %v15000_v26, 7 }
 0x207   : > { %v4850_v61 = vcombine.low %v4488_v52, %v4491_v62  ;;  %v4197_v15 = vcombine.high %v3881_v54, %v3881_v54  ;;  %v15020_v1 = vrot.slane %v3881_v54, %v19092_v12  ;;  %v19188_v44 = vrot.slane %v14601_v7, 7  ;;  %v19197_v52 = vld [vmem:[#allocation73_spill] sm:$0xff]  ;;  %v3739_v59 = vpop.f32.mrf.mxu0  ;;  %v19200_v7 = vld [vmem:[#allocation52_spill] sm:$0xff] }
 0x208   : > { %19185 = vst [vmem:[#allocation40_spill] sm:$0xff] %v15012_v8  ;;  %19186 = vst [vmem:[#allocation85_spill] sm:$0xff] %v15016_v38  ;;  %v4498_v42 = vrot.slane %v4496_v39, 2  ;;  %v15028_v19 = vcombine.high %v15012_v8, %v15012_v8  ;;  %v15032_v46 = vrot.slane %v18704_v58, 2 }
 0x209   : > { %19187 = vst [vmem:[#allocation86_spill] sm:$0xff] %v15020_v1  ;;  %v4494_v57 = vsel %vm13110_vm7, %v4492_v5, %v19188_v44  ;;  %v15036_v17 = vrot.slane %v4197_v15, %v19092_v12  ;;  %v15040_v41 = vcombine.high %v15020_v1, %v15020_v1  ;;  %v18712_v39 = vrot.slane %v15020_v1, 7 }
 0x20a   : > { %19189 = vst [vmem:[#allocation87_spill] sm:$0xff] %v15028_v19  ;;  %19190 = vst [vmem:[#allocation88_spill] sm:$0xff] %v15032_v46  ;;  %v4851_v33 = vcombine.low %v4494_v57, %v4497_v29  ;;  %v4858_v54 = vrot.slane %v4850_v61, %v19092_v12  ;;  %v19193_v5 = vrot.slane %v14612_v3, 7  ;;  %v4502_v29 = vrot.slane %v14627_v63, 7  ;;  %v19201_v61 = vld [vmem:[#allocation8_spill] sm:$0xff]  ;;  %v19205_v19 = vld [vmem:[#allocation50_spill] sm:$0xff] }
 0x20b   : > { %19191 = vst [vmem:[#allocation89_spill] sm:$0xff] %v15036_v17  ;;  %19192 = vst [vmem:[#allocation90_spill] sm:$0xff] %v15040_v41  ;;  %v4508_v15 = vrot.slane %v14693_v2, 7  ;;  %v15053_v44 = vcombine.high %v15036_v17, %v15036_v17  ;;  %v15057_v57 = vrot.slane %v18712_v39, 2  ;;  %v19198_v2 = vld [vmem:[#allocation74_spill] sm:$0xff]  ;;  %v6379_v39 = vcombine.low %v19200_v7, %v19199_v22 }
 0x20c   : > { %v4865_v62 = vrot.slane %v4851_v33, %v19092_v12  ;;  %v4500_v32 = vsel %vm13110_vm7, %v4498_v42, %v19193_v5  ;;  %v19196_v33 = vld [vmem:[#allocation46_spill] sm:$0xff]  ;;  %v4503_v42 = vsel %vm13110_vm7, %v4501_v35, %v4502_v29  ;;  %v4504_v5 = vrot.slane %v4502_v29, 2 }
 0x20d   : > { %19194 = vst [vmem:[#allocation91_spill] sm:$0xff] %v15053_v44  ;;  %19195 = vst [vmem:[#allocation92_spill] sm:$0xff] %v15057_v57  ;;  %v6378_v58 = vcombine.low %v19197_v52, %v19196_v33  ;;  %v4509_v63 = vsel %vm13110_vm7, %v19198_v2, %v4508_v15  ;;  %v4867_v36 = vcombine.low %v4500_v32, %v4503_v42  ;;  %v19204_v29 = vld [vmem:[#allocation78_spill] sm:$0xff]  ;;  %v19206_v2 = vld [vmem:[#allocation49_spill] sm:$0xff] }
 0x20e   : > { %v4866_v3 = vcombine.low %v4858_v54, %v4865_v62  ;;  %v3817_v46 = vadd.f32 %v12486_v55, %v19201_v61  ;;  %v19202_v54 = vrot.slane %v14674_v20, 7  ;;  %v19203_v62 = vld [vmem:[#allocation48_spill] sm:$0xff]  ;;  %v6396_v32 = vcombine.low %v19206_v2, %v19205_v19  ;;  %v19207_v42 = vld [vmem:[#allocation10_spill] sm:$0xff] }
 0x20f   : > { %v6386_v0 = vrot.slane %v6378_v58, %v19092_v12  ;;  %v6395_v57 = vcombine.low %v19204_v29, %v19203_v62  ;;  %v3816_v38 = vadd.f32 %v3739_v59, %v19207_v42  ;;  %v4875_v58 = vrot.slane %v4867_v36, %v19092_v12 }
 0x210   : > { %12510 = vmatprep.mubr.msk.f32.mxu1 %vm5258_vm9, %v4866_v3  ;;  %v4506_v35 = vsel %vm13110_vm7, %v4504_v5, %v19202_v54  ;;  %v6393_v55 = vrot.slane %v6379_v39, %v19092_v12  ;;  %v3854_v3 = vadd.f32 %v14451_v14, %v3817_v46  ;;  %v6410_v20 = vrot.slane %v6396_v32, %v19092_v12 }
 0x211   : > { %v4868_v8 = vcombine.low %v4506_v35, %v4509_v63  ;;  %v6403_v61 = vrot.slane %v6395_v57, %v19092_v12  ;;  %v3853_v5 = vadd.f32 %v14451_v14, %v3816_v38  ;;  %v4510_v54 = vrot.slane %v4508_v15, 2  ;;  %v19211_v15 = vld [vmem:[#allocation72_spill] sm:$0xff] }
 0x212   : > { %v6394_v26 = vcombine.low %v6386_v0, %v6393_v55  ;;  %v3884_v41 = vmax.f32 %v3854_v3, 0.0  ;;  %v19208_v59 = vrot.slane %v14688_v21, 7  ;;  %v4514_v57 = vrot.slane %v14704_v23, 7 }
 0x213   : > { %v4882_v44 = vrot.slane %v4868_v8, %v19092_v12  ;;  %v6411_v35 = vcombine.low %v6403_v61, %v6410_v20  ;;  %v3883_v36 = vmax.f32 %v3853_v5, 0.0  ;;  %v19210_v0 = vrot.slane %v14669_v4, 7 }
 0x214   : > { %v4513_v63 = vrot.slane %v19208_v59, 2  ;;  %v19209_v39 = vmov %v19208_v59  ;;  %12602 = vmatmul.mubr.msk.f32.gmra.mxu0 %vm5258_vm9, %v6394_v26  ;;  %v4248_v38 = vcombine.high %v3884_v41, %v3884_v41  ;;  %v15097_v8 = vrot.slane %v3884_v41, %v19092_v12 }
 0x215   : > { %v4512_v46 = vsel %vm13110_vm7, %v4510_v54, %v19209_v39  ;;  %v4883_v32 = vcombine.low %v4875_v58, %v4882_v44  ;;  %v4521_v20 = vsel %vm13110_vm7, %v19211_v15, %v19210_v0  ;;  %12604 = vmatprep.mubr.msk.f32.mxu0 %vm5258_vm9, %v6411_v35  ;;  %v4231_v42 = vcombine.high %v3883_v36, %v3883_v36  ;;  %v12489_v35 = vpop.f32.mrf.mxu0 }
 0x216   : > { %v15106_v55 = vrot.slane %v3883_v36, %v19092_v12  ;;  %v4515_v44 = vsel %vm13110_vm7, %v4513_v63, %v4514_v57  ;;  %v4516_v26 = vrot.slane %v4514_v57, 2  ;;  %v15112_v41 = vrot.slane %v4248_v38, %v19092_v12 }
 0x217   : > { %12511 = vmatmul.mubr.msk.f32.gmra.mxu1 %vm5258_vm9, %v4883_v32  ;;  %v15116_v4 = vcombine.high %v15097_v8, %v15097_v8  ;;  %v18723_v58 = vrot.slane %v15097_v8, 7  ;;  %v4884_v3 = vcombine.low %v4512_v46, %v4515_v44  ;;  %v15120_v61 = vrot.slane %v4231_v42, %v19092_v12  ;;  %v19217_v44 = vld [vmem:[#allocation75_spill] sm:$0xff] }
 0x218   : > { %v15124_v5 = vcombine.high %v15106_v55, %v15106_v55  ;;  %v18724_v54 = vrot.slane %v15106_v55, 7  ;;  %v19213_v59 = vrot.slane %v14648_v10, 7  ;;  %v15133_v36 = vcombine.high %v15112_v41, %v15112_v41 }
 0x219   : > { %v15137_v39 = vrot.slane %v18723_v58, 2  ;;  %v15142_v32 = vcombine.high %v15120_v61, %v15120_v61  ;;  %v4892_v15 = vrot.slane %v4884_v3, %v19092_v12  ;;  %v19219_v58 = vrot.slane %v19197_v52, 7 }
 0x21a   : > { %19212 = vst [vmem:[#allocation74_spill] sm:$0xff] %v15124_v5  ;;  %v4518_v63 = vsel %vm13110_vm7, %v4516_v26, %v19213_v59  ;;  %v15146_v38 = vrot.slane %v18724_v54, 2  ;;  %v6412_v26 = vcombine.low %v19217_v44, %v14790_v47  ;;  %v19218_v59 = vld [vmem:[#allocation11_spill] sm:$0xff]  ;;  %v19220_v54 = vld [vmem:[#allocation44_spill] sm:$0xff]  ;;  %v4530_v23 = vrot.slane %v19200_v7, 7 }
 0x21b   : > { %19214 = vst [vmem:[#allocation8_spill] sm:$0xff] %v15137_v39  ;;  %v4885_v57 = vcombine.low %v4518_v63, %v4521_v20  ;;  %19215 = vst [vmem:[#allocation10_spill] sm:$0xff] %v15142_v32  ;;  %v6413_v20 = vcombine.low %v14816_v24, %v14806_v56  ;;  %v3819_v63 = vadd.f32 %v12489_v35, %v19218_v59  ;;  %v19221_v21 = vrot.slane %v19220_v54, 9  ;;  %v3749_v59 = vpop.f32.mrf.mxu0  ;;  %v19224_v32 = vld [vmem:[#allocation79_spill] sm:$0xff] }
 0x21c   : > { %19216 = vst [vmem:[#allocation72_spill] sm:$0xff] %v15146_v38  ;;  %v19222_v3 = vmov %v19219_v58  ;;  %v6420_v39 = vrot.slane %v6412_v26, %v19092_v12  ;;  %v19223_v46 = vrot.slane %v19196_v33, 7  ;;  %v19226_v52 = vrot.slane %v19199_v22, 7 }
 0x21d   : > { %v4899_v42 = vrot.slane %v4885_v57, %v19092_v12  ;;  %v4525_v0 = vsel %vm13110_vm7, %v19221_v21, %v19219_v58  ;;  %v4526_v57 = vrot.slane %v19222_v3, 2  ;;  %v6427_v38 = vrot.slane %v6413_v20, %v19092_v12  ;;  %v19225_v3 = vld [vmem:[#allocation80_spill] sm:$0xff] }
 0x21e   : > { %v3856_v35 = vadd.f32 %v14451_v14, %v3819_v63  ;;  %v4531_v21 = vsel %vm13110_vm7, %v19224_v32, %v4530_v23  ;;  %v4532_v58 = vrot.slane %v4530_v23, 2  ;;  %v6430_v63 = vcombine.low %v14757_v11, %v14772_v40  ;;  %v19227_v32 = vld [vmem:[#allocation13_spill] sm:$0xff] }
 0x21f   : > { %v4900_v10 = vcombine.low %v4892_v15, %v4899_v42  ;;  %v4528_v54 = vsel %vm13110_vm7, %v4526_v57, %v19223_v46  ;;  %v6429_v15 = vcombine.low %v14826_v45, %v19225_v3  ;;  %v6428_v42 = vcombine.low %v6420_v39, %v6427_v38 }
 0x220   : > { %v3886_v26 = vmax.f32 %v3856_v35, 0.0  ;;  %v4901_v20 = vcombine.low %v4525_v0, %v4528_v54  ;;  %v4534_v46 = vsel %vm13110_vm7, %v4532_v58, %v19226_v52  ;;  %v3818_v23 = vadd.f32 %v3749_v59, %v19227_v32 }
 0x221   : > { %12513 = vmatprep.mubr.msk.f32.mxu1 %vm5258_vm9, %v4900_v10  ;;  %v6437_v57 = vrot.slane %v6429_v15, %v19092_v12  ;;  %v19228_v33 = vmov %v19226_v52  ;;  %12605 = vmatmul.mubr.msk.f32.gmra.mxu0 %vm5258_vm9, %v6428_v42  ;;  %v4902_v39 = vcombine.low %v4531_v21, %v4534_v46  ;;  %v6444_v0 = vrot.slane %v6430_v63, %v19092_v12  ;;  %v12492_v46 = vpop.f32.mrf.mxu0 }
 0x222   : > { %v4535_v7 = vrot.slane %v19228_v33, 2  ;;  %v4282_v10 = vcombine.high %v3886_v26, %v3886_v26  ;;  %v15191_v54 = vrot.slane %v3886_v26, %v19092_v12  ;;  %v4909_v38 = vrot.slane %v4901_v20, %v19092_v12 }
 0x223   : > { %v3855_v52 = vadd.f32 %v14451_v14, %v3818_v23  ;;  %v4536_v35 = vrot.slane %v19204_v29, 7  ;;  %v4542_v59 = vrot.slane %v19206_v2, 7  ;;  %v4916_v21 = vrot.slane %v4902_v39, %v19092_v12 }
 0x224   : > { %v15199_v58 = vrot.slane %v4282_v10, %v19092_v12  ;;  %v15203_v33 = vcombine.high %v15191_v54, %v15191_v54  ;;  %v18734_v15 = vrot.slane %v15191_v54, 7  ;;  %v6445_v42 = vcombine.low %v6437_v57, %v6444_v0 }
 0x225   : > { %v3885_v26 = vmax.f32 %v3855_v52, 0.0  ;;  %v4537_v20 = vsel %vm13110_vm7, %v4535_v7, %v4536_v35  ;;  %v4538_v63 = vrot.slane %v4536_v35, 2  ;;  %v4917_v2 = vcombine.low %v4909_v38, %v4916_v21  ;;  %v19232_v52 = vld [vmem:[#allocation51_spill] sm:$0xff]  ;;  %v19233_v38 = vld [vmem:[#allocation12_spill] sm:$0xff] }
 0x226   : > { %19229 = vst [vmem:[#allocation11_spill] sm:$0xff] %v15203_v33  ;;  %v15211_v32 = vcombine.high %v15199_v58, %v15199_v58  ;;  %v15215_v23 = vrot.slane %v18734_v15, 2  ;;  %12607 = vmatprep.mubr.msk.f32.mxu0 %vm5258_vm9, %v6445_v42  ;;  %v19231_v7 = vrot.slane %v19203_v62, 7  ;;  %v4543_v35 = vsel %vm13110_vm7, %v19232_v52, %v4542_v59 }
 0x227   : > { %v4265_v57 = vcombine.high %v3885_v26, %v3885_v26  ;;  %v15220_v39 = vrot.slane %v3885_v26, %v19092_v12  ;;  %12514 = vmatmul.mubr.msk.f32.gmra.mxu1 %vm5258_vm9, %v4917_v2  ;;  %v4544_v15 = vrot.slane %v4542_v59, 2  ;;  %v3821_v21 = vadd.f32 %v12492_v46, %v19233_v38 }
 0x228   : > { %19230 = vst [vmem:[#allocation79_spill] sm:$0xff] %v15215_v23  ;;  %v4540_v0 = vsel %vm13110_vm7, %v4538_v63, %v19231_v7  ;;  %v19234_v42 = vrot.slane %v19205_v19, 7  ;;  %v4548_v7 = vrot.slane %v19217_v44, 7  ;;  %v3759_v19 = vpop.f32.mrf.mxu0  ;;  %v6447_v38 = vcombine.low %v14854_v49, %v14873_v6 }
 0x229   : > { %v4918_v10 = vcombine.low %v4537_v20, %v4540_v0  ;;  %v15234_v26 = vrot.slane %v4265_v57, %v19092_v12  ;;  %v15238_v62 = vcombine.high %v15220_v39, %v15220_v39  ;;  %v18739_v63 = vrot.slane %v15220_v39, 7 }
 0x22a   : > { %v4547_v22 = vrot.slane %v19234_v42, 2  ;;  %v19235_v2 = vmov %v19234_v42  ;;  %v3858_v46 = vadd.f32 %v14451_v14, %v3821_v21  ;;  %v4554_v57 = vrot.slane %v14816_v24, 7 }
 0x22b   : > { %v4546_v59 = vsel %vm13110_vm7, %v4544_v15, %v19235_v2  ;;  %v4926_v20 = vrot.slane %v4918_v10, %v19092_v12  ;;  %v15251_v0 = vcombine.high %v15234_v26, %v15234_v26  ;;  %v15255_v52 = vrot.slane %v18739_v63, 2 }
 0x22c   : > { %v4919_v42 = vcombine.low %v4543_v35, %v4546_v59  ;;  %v3888_v44 = vmax.f32 %v3858_v46, 0.0  ;;  %v4549_v15 = vsel %vm13110_vm7, %v4547_v22, %v4548_v7  ;;  %v4550_v10 = vrot.slane %v4548_v7, 2  ;;  %v19239_v46 = vld [vmem:[#allocation14_spill] sm:$0xff] }
 0x22d   : > { %19236 = vst [vmem:[#allocation80_spill] sm:$0xff] %v15255_v52  ;;  %v4555_v14 = vsel %vm13110_vm7, %v14830_v27, %v4554_v57  ;;  %v4556_v2 = vrot.slane %v4554_v57, 2  ;;  %v6446_v63 = vcombine.low %v14846_v53, %v14865_v34  ;;  %v19238_v22 = vrot.slane %v14790_v47, 7 }
 0x22e   : > { %v4933_v21 = vrot.slane %v4919_v42, %v19092_v12  ;;  %v4316_v35 = vcombine.high %v3888_v44, %v3888_v44  ;;  %v15269_v59 = vrot.slane %v3888_v44, %v19092_v12  ;;  %v3820_v27 = vadd.f32 %v3759_v19, %v19239_v46 }
 0x22f   : > { %v4552_v7 = vsel %vm13110_vm7, %v4550_v10, %v19238_v22  ;;  %v19240_v57 = vrot.slane %v14806_v56, 7  ;;  %v6454_v23 = vrot.slane %v6446_v63, %v19092_v12  ;;  %v15295_v63 = vld [vmem:[%s19082_s2] ss:$0 sm:$0xff]  ;;  %v4560_v46 = vrot.slane %v14826_v45, 7  ;;  %s12937_s2 = smov [#allocation2]  }
 0x230   : > { %19237 = vst [vmem:[#allocation13_spill] sm:$0xff] %v15269_v59  ;;  %v4934_v24 = vcombine.low %v4926_v20, %v4933_v21  ;;  %v4935_v29 = vcombine.low %v4549_v15, %v4552_v7  ;;  %v15282_v52 = vrot.slane %v4316_v35, %v19092_v12  ;;  %v15286_v44 = vcombine.high %v15269_v59, %v15269_v59  ;;  %s12876_s3 = sshll.u32 %s12937_s2, 4  ;;  %s12877_s3 = int_to_ptr.vmem [resolvable:$false] %s12876_s3 }
 0x231   : > { %v4558_v42 = vsel %vm13110_vm7, %v4556_v2, %v19240_v57  ;;  %v18743_v10 = vrot.slane %v15269_v59, 7  ;;  %v6461_v20 = vrot.slane %v6447_v38, %v19092_v12  ;;  %v3857_v15 = vadd.f32 %v15295_v63, %v3820_v27  ;;  %s12878_s29 = scalar_lea.vmem %s12877_s3, 256  ;;  %p12879_p0 = scmp.lt.s32.totalorder %s11719_s30, %s12877_s3 }
 0x232   : > { %19241 = vst [vmem:[#allocation51_spill] sm:$0xff] %v15286_v44  ;;  %v4936_v22 = vcombine.low %v4555_v14, %v4558_v42  ;;  %12516 = vmatprep.mubr.msk.f32.mxu1 %vm5258_vm9, %v4934_v24  ;;  %v4943_v19 = vrot.slane %v4935_v29, %v19092_v12  ;;  %v19242_v21 = vmov %v19240_v57  ;;  %v15302_v35 = vcombine.high %v15282_v52, %v15282_v52  ;;  %p12880_p1 = scmp.lt.s32.totalorder %s12878_s29, %s12872_s20 }
 0x233   : > { %v4559_v2 = vrot.slane %v19242_v21, 2  ;;  %v15306_v24 = vrot.slane %v18743_v10, 2  ;;  %v6462_v14 = vcombine.low %v6454_v23, %v6461_v20  ;;  %v3887_v7 = vmax.f32 %v3857_v15, 0.0  ;;  %v12495_v21 = vpop.f32.mrf.mxu0 }
 0x234   : > { %19243 = vst [vmem:[#allocation12_spill] sm:$0xff] %v15302_v35  ;;  %v4950_v38 = vrot.slane %v4936_v22, %v19092_v12  ;;  %v19245_v27 = vrot.slane %v14757_v11, 7  ;;  %v19246_v57 = vrot.slane %v14761_v50, 9  ;;  %v4570_v29 = vrot.slane %v14772_v40, 7  ;;  %v19250_v50 = vld [vmem:[#allocation15_spill] sm:$0xff]  ;;  %p12881_p2 = por %p12880_p1, %p12879_p0 }
 0x235   : > { %19244 = vst [vmem:[#allocation14_spill] sm:$0xff] %v15306_v24  ;;  %v6463_v23 = vcombine.low %v14797_v18, %v14835_v13  ;;  %12608 = vmatmul.mubr.msk.f32.gmra.mxu0 %vm5258_vm9, %v6462_v14  ;;  %v4299_v22 = vcombine.high %v3887_v7, %v3887_v7  ;;  %v15324_v20 = vrot.slane %v3887_v7, %v19092_v12 }
 0x236   : > { %v4568_v42 = vsel %vm13110_vm7, %v19246_v57, %v19245_v27  ;;  %v4951_v56 = vcombine.low %v4943_v19, %v4950_v38  ;;  %v19247_v10 = vmov %v19245_v27  ;;  %v4561_v15 = vsel %vm13110_vm7, %v4559_v2, %v4560_v46  ;;  %v19248_v19 = vld [vmem:[#allocation63_spill] sm:$0xff]  ;;  %p12882_p3 = pnand %p12881_p2, %p12875_p13 }
 0x237   : > { %v4569_v47 = vrot.slane %v19247_v10, 2  ;;  %v4562_v27 = vrot.slane %v4560_v46, 2  ;;  %v19249_v38 = vld [vmem:[#allocation59_spill] sm:$0xff]  ;;  %v6471_v40 = vrot.slane %v6463_v23, %v19092_v12  ;;  %v3823_v14 = vadd.f32 %v12495_v21, %v19250_v50 }
 0x238   : > { %12517 = vmatmul.mubr.msk.f32.gmra.mxu1 %vm5258_vm9, %v4951_v56  ;;  %v6464_v57 = vcombine.low %v19249_v38, %v19248_v19  ;;  %v15336_v11 = vrot.slane %v4299_v22, %v19092_v12  ;;  %v15340_v7 = vcombine.high %v15324_v20, %v15324_v20  ;;  %v18750_v2 = vrot.slane %v15324_v20, 7 }
 0x239   : > { %v4571_v10 = vsel %vm13110_vm7, %v4569_v47, %v4570_v29  ;;  %v19252_v56 = vrot.slane %v19225_v3, 7  ;;  %v3860_v50 = vadd.f32 %v15295_v63, %v3823_v14  ;;  %v4572_v14 = vrot.slane %v4570_v29, 2 }
 0x23a   : > { %19251 = vst [vmem:[#allocation15_spill] sm:$0xff] %v15336_v11  ;;  %v4953_v45 = vcombine.low %v4568_v42, %v4571_v10  ;;  %v6478_v23 = vrot.slane %v6464_v57, %v19092_v12  ;;  %v15351_v21 = vcombine.high %v15336_v11, %v15336_v11  ;;  %v15355_v22 = vrot.slane %v18750_v2, 2 }
 0x23b   : > { %v4564_v47 = vsel %vm13110_vm7, %v4562_v27, %v19252_v56  ;;  %v3890_v10 = vmax.f32 %v3860_v50, 0.0  ;;  %v4576_v56 = vrot.slane %v14865_v34, 7  ;;  %v15379_v50 = vcombine.high %v14939_v51, %v14939_v51 }
 0x23c   : > { %v4952_v46 = vcombine.low %v4561_v15, %v4564_v47  ;;  %19253 = vst [vmem:[#allocation93_spill] sm:$0xff] %v15351_v21  ;;  %v4967_v42 = vrot.slane %v4953_v45, %v19092_v12  ;;  %v6479_v15 = vcombine.low %v6471_v40, %v6478_v23  ;;  %v19254_v47 = vrot.slane %v14854_v49, 7 }
 0x23d   : > { %v4350_v24 = vcombine.high %v3890_v10, %v3890_v10  ;;  %v15367_v3 = vrot.slane %v3890_v10, %v19092_v12  ;;  %v19255_v40 = vrot.slane %v14846_v53, 7  ;;  %v4577_v29 = vsel %vm13110_vm7, %v14877_v37, %v4576_v56  ;;  %v3769_v37 = vpop.f32.mrf.mxu0 }
 0x23e   : > { %v4960_v27 = vrot.slane %v4952_v46, %v19092_v12  ;;  %v4581_v35 = vrot.slane %v19254_v47, 2  ;;  %12610 = vmatprep.mubr.msk.f32.mxu0 %vm5258_vm9, %v6479_v15  ;;  %v4582_v46 = vrot.slane %v14873_v6, 7  ;;  %v4578_v23 = vrot.slane %v4576_v56, 2 }
 0x23f   : > { %v4574_v45 = vsel %vm13110_vm7, %v4572_v14, %v19255_v40  ;;  %v18754_v15 = vrot.slane %v15367_v3, 7  ;;  %v19257_v14 = vmov %v19254_v47  ;;  %v19260_v49 = vrot.slane %v19249_v38, 7 }
 0x240   : > { %v4968_v2 = vcombine.low %v4960_v27, %v4967_v42  ;;  %v15383_v27 = vrot.slane %v4350_v24, %v19092_v12  ;;  %v15387_v42 = vcombine.high %v15367_v3, %v15367_v3  ;;  %v4583_v10 = vsel %vm13110_vm7, %v4581_v35, %v4582_v46 }
 0x241   : > { %v4580_v56 = vsel %vm13110_vm7, %v4578_v23, %v19257_v14  ;;  %v4969_v47 = vcombine.low %v4574_v45, %v4577_v29  ;;  %v6480_v24 = vcombine.low %v14919_v28, %v14952_v9  ;;  %v15401_v40 = vrot.slane %v18754_v15, 2  ;;  %v19259_v45 = vld [vmem:[#allocation16_spill] sm:$0xff] }
 0x242   : > { %12519 = vmatprep.mubr.msk.f32.mxu1 %vm5258_vm9, %v4968_v2  ;;  %19256 = vst [vmem:[#allocation94_spill] sm:$0xff] %v15383_v27  ;;  %v4970_v6 = vcombine.low %v4580_v56, %v4583_v10  ;;  %v6481_v35 = vcombine.low %v14939_v51, %v15379_v50  ;;  %v3822_v29 = vadd.f32 %v3769_v37, %v19259_v45  ;;  %v4584_v14 = vrot.slane %v4582_v46, 2  ;;  %v19262_v45 = vld [vmem:[#allocation64_spill] sm:$0xff] }
 0x243   : > { %19258 = vst [vmem:[#allocation95_spill] sm:$0xff] %v15401_v40  ;;  %v4977_v53 = vrot.slane %v4969_v47, %v19092_v12  ;;  %v6488_v23 = vrot.slane %v6480_v24, %v19092_v12  ;;  %v4588_v15 = vrot.slane %v14835_v13, 7  ;;  %v4593_v57 = vrot.slane %v19260_v49, 2 }
 0x244   : > { %v4984_v2 = vrot.slane %v4970_v6, %v19092_v12  ;;  %v6495_v34 = vrot.slane %v6481_v35, %v19092_v12  ;;  %v3859_v10 = vadd.f32 %v15295_v63, %v3822_v29  ;;  %v19261_v56 = vrot.slane %v14797_v18, 7  ;;  %v12498_v6 = vpop.f32.mrf.mxu0 }
 0x245   : > { %v4594_v24 = vrot.slane %v19248_v19, 7  ;;  %v6497_v46 = vcombine.low %v14932_v25, %v14928_v31  ;;  %v4589_v13 = vsel %vm13110_vm7, %v19262_v45, %v4588_v15  ;;  %v4590_v49 = vrot.slane %v4588_v15, 2  ;;  %v19264_v15 = vld [vmem:[#allocation18_spill] sm:$0xff]  ;;  %v19282_v19 = vld [vmem:[#allocation17_spill] sm:$0xff] }
 0x246   : > { %v4586_v47 = vsel %vm13110_vm7, %v4584_v14, %v19261_v56  ;;  %v4985_v37 = vcombine.low %v4977_v53, %v4984_v2  ;;  %v6496_v35 = vcombine.low %v6488_v23, %v6495_v34  ;;  %v3889_v40 = vmax.f32 %v3859_v10, 0.0 }
 0x247   : > { %v4595_v29 = vsel %vm13110_vm7, %v4593_v57, %v4594_v24  ;;  %v4986_v18 = vcombine.low %v4586_v47, %v4589_v13  ;;  %v6498_v14 = vcombine.low %v14946_v48, %v15020_v1  ;;  %v19263_v53 = vrot.slane %v19249_v38, 7  ;;  %v19287_v38 = vld [vmem:[#allocation87_spill] sm:$0xff] }
 0x248   : > { %12520 = vmatmul.mubr.msk.f32.gmra.mxu1 %vm5258_vm9, %v4985_v37  ;;  %12611 = vmatmul.mubr.msk.f32.gmra.mxu0 %vm5258_vm9, %v6496_v35  ;;  %v6505_v2 = vrot.slane %v6497_v46, %v19092_v12  ;;  %v3825_v23 = vadd.f32 %v12498_v6, %v19264_v15  ;;  %v4596_v10 = vrot.slane %v4594_v24, 2  ;;  %v4333_v56 = vcombine.high %v3889_v40, %v3889_v40 }
 0x249   : > { %v4592_v34 = vsel %vm13110_vm7, %v4590_v49, %v19263_v53  ;;  %v15438_v13 = vrot.slane %v3889_v40, %v19092_v12  ;;  %v4994_v47 = vrot.slane %v4986_v18, %v19092_v12  ;;  %v6512_v37 = vrot.slane %v6498_v14, %v19092_v12 }
 0x24a   : > { %v4987_v57 = vcombine.low %v4592_v34, %v4595_v29  ;;  %v3862_v35 = vadd.f32 %v15295_v63, %v3825_v23  ;;  %v19265_v45 = vrot.slane %v14919_v28, 7  ;;  %v4600_v46 = vrot.slane %v14952_v9, 7 }
 0x24b   : > { %v15449_v24 = vrot.slane %v4333_v56, %v19092_v12  ;;  %v15453_v40 = vcombine.high %v15438_v13, %v15438_v13  ;;  %v18758_v18 = vrot.slane %v15438_v13, 7  ;;  %v6513_v29 = vcombine.low %v6505_v2, %v6512_v37 }
 0x24c   : > { %v4598_v49 = vsel %vm13110_vm7, %v4596_v10, %v19265_v45  ;;  %v5001_v6 = vrot.slane %v4987_v57, %v19092_v12  ;;  %v3892_v14 = vmax.f32 %v3862_v35, 0.0  ;;  %v4601_v53 = vsel %vm13110_vm7, %v14956_v16, %v4600_v46 }
 0x24d   : > { %v4602_v34 = vrot.slane %v4600_v46, 2  ;;  %v15462_v15 = vcombine.high %v15449_v24, %v15449_v24  ;;  %v15466_v23 = vrot.slane %v18758_v18, 2  ;;  %12613 = vmatprep.mubr.msk.f32.mxu0 %vm5258_vm9, %v6513_v29  ;;  %v19268_v16 = vrot.slane %v14939_v51, 7  ;;  %v3779_v46 = vpop.f32.mrf.mxu0 }
 0x24e   : > { %v5002_v56 = vcombine.low %v4994_v47, %v5001_v6  ;;  %v4384_v2 = vcombine.high %v3892_v14, %v3892_v14  ;;  %v15471_v57 = vrot.slane %v3892_v14, %v19092_v12  ;;  %v5003_v18 = vcombine.low %v4598_v49, %v4601_v53 }
 0x24f   : > { %19266 = vst [vmem:[#allocation16_spill] sm:$0xff] %v15466_v23  ;;  %v4604_v37 = vsel %vm13110_vm7, %v4602_v34, %v19268_v16  ;;  %v19269_v35 = vmov %v19268_v16  ;;  %v19270_v47 = vrot.slane %v14932_v25, 7  ;;  %v19271_v6 = vrot.slane %v14911_v30, 9  ;;  %v19286_v25 = vld [vmem:[#allocation85_spill] sm:$0xff] }
 0x250   : > { %19267 = vst [vmem:[#allocation64_spill] sm:$0xff] %v15471_v57  ;;  %v4605_v45 = vrot.slane %v19269_v35, 2  ;;  %12522 = vmatprep.mubr.msk.f32.mxu1 %vm5258_vm9, %v5002_v56  ;;  %v19272_v14 = vrot.slane %v14928_v31, 7  ;;  %v15494_v10 = vrot.slane %v4384_v2, %v19092_v12  ;;  %v15498_v49 = vcombine.high %v15471_v57, %v15471_v57 }
 0x251   : > { %v4611_v29 = vsel %vm13110_vm7, %v19271_v6, %v19270_v47  ;;  %v18763_v53 = vrot.slane %v15471_v57, 7  ;;  %v19276_v56 = vrot.slane %v15379_v50, 7  ;;  %v19279_v50 = vld [vmem:[#allocation90_spill] sm:$0xff]  ;;  %v3824_v28 = vadd.f32 %v3779_v46, %v19282_v19  ;;  %v19288_v46 = vld [vmem:[#allocation21_spill] sm:$0xff] }
 0x252   : > { %v4614_v34 = vsel %vm13110_vm7, %v14961_v43, %v19272_v14  ;;  %v19273_v16 = vmov %v19272_v14  ;;  %19274 = vst [vmem:[#allocation18_spill] sm:$0xff] %v15494_v10  ;;  %19275 = vst [vmem:[#allocation96_spill] sm:$0xff] %v15498_v49  ;;  %v5011_v43 = vrot.slane %v5003_v18, %v19092_v12  ;;  %v4616_v14 = vrot.slane %v14946_v48, 7 }
 0x253   : > { %v4615_v35 = vrot.slane %v19273_v16, 2  ;;  %v4607_v47 = vsel %vm13110_vm7, %v4605_v45, %v19276_v56  ;;  %v5020_v16 = vcombine.low %v4611_v29, %v4614_v34  ;;  %v15509_v2 = vcombine.high %v15494_v10, %v15494_v10  ;;  %v12501_v45 = vpop.f32.mrf.mxu0  ;;  %v19280_v56 = vld [vmem:[#allocation84_spill] sm:$0xff] }
 0x254   : > { %v5004_v6 = vcombine.low %v4604_v37, %v4607_v47  ;;  %v15513_v31 = vrot.slane %v18763_v53, 2  ;;  %v6514_v51 = vcombine.low %v19279_v50, %v15036_v17  ;;  %v4618_v29 = vrot.slane %v4616_v14, 2  ;;  %v19281_v47 = vld [vmem:[#allocation91_spill] sm:$0xff] }
 0x255   : > { %19277 = vst [vmem:[#allocation97_spill] sm:$0xff] %v15509_v2  ;;  %v4617_v18 = vsel %vm13110_vm7, %v4615_v35, %v4616_v14  ;;  %v5028_v34 = vrot.slane %v5020_v16, %v19092_v12  ;;  %v6515_v48 = vcombine.low %v19281_v47, %v19280_v56  ;;  %v15528_v9 = vcombine.high %v15383_v27, %v15383_v27  ;;  %v19285_v14 = vld [vmem:[#allocation40_spill] sm:$0xff]  ;;  %v3789_v57 = vpop.f32.mrf.mxu0 }
 0x256   : > { %19278 = vst [vmem:[#allocation98_spill] sm:$0xff] %v15513_v31  ;;  %v5018_v37 = vrot.slane %v5004_v6, %v19092_v12  ;;  %v6522_v53 = vrot.slane %v6514_v51, %v19092_v12  ;;  %v19284_v6 = vrot.slane %v15020_v1, 7  ;;  %v6531_v16 = vcombine.low %v19286_v25, %v19285_v14 }
 0x257   : > { %19283 = vst [vmem:[#allocation17_spill] sm:$0xff] %v15528_v9  ;;  %v6532_v31 = vcombine.low %v19287_v38, %v15106_v55  ;;  %v6529_v51 = vrot.slane %v6515_v48, %v19092_v12  ;;  %v3861_v19 = vadd.f32 %v15295_v63, %v3824_v28  ;;  %v3827_v2 = vadd.f32 %v12501_v45, %v19288_v46 }
 0x258   : > { %v5019_v30 = vcombine.low %v5011_v43, %v5018_v37  ;;  %v4620_v35 = vsel %vm13110_vm7, %v4618_v29, %v19284_v6  ;;  %v6539_v43 = vrot.slane %v6531_v16, %v19092_v12  ;;  %v6548_v29 = vcombine.low %v15124_v5, %v15120_v61  ;;  %v19289_v16 = vld [vmem:[#allocation19_spill] sm:$0xff] }
 0x259   : > { %v5021_v10 = vcombine.low %v4617_v18, %v4620_v35  ;;  %v6546_v37 = vrot.slane %v6532_v31, %v19092_v12  ;;  %v6549_v6 = vcombine.low %v15097_v8, %v15116_v4  ;;  %v6530_v48 = vcombine.low %v6522_v53, %v6529_v51 }
 0x25a   : > { %12523 = vmatmul.mubr.msk.f32.gmra.mxu1 %vm5258_vm9, %v5019_v30  ;;  %v3891_v35 = vmax.f32 %v3861_v19, 0.0  ;;  %v3864_v28 = vadd.f32 %v15295_v63, %v3827_v2  ;;  %v6556_v46 = vrot.slane %v6548_v29, %v19092_v12  ;;  %v3826_v1 = vadd.f32 %v3789_v57, %v19289_v16 }
 0x25b   : > { %v5035_v18 = vrot.slane %v5021_v10, %v19092_v12  ;;  %v6547_v45 = vcombine.low %v6539_v43, %v6546_v37  ;;  %v6563_v30 = vrot.slane %v6549_v6, %v19092_v12  ;;  %12614 = vmatmul.mubr.msk.f32.gmra.mxu0 %vm5258_vm9, %v6530_v48  ;;  %v4622_v2 = vrot.slane %v19279_v50, 7  ;;  %v19292_v6 = vld [vmem:[#allocation92_spill] sm:$0xff] }
 0x25c   : > { %v4367_v49 = vcombine.high %v3891_v35, %v3891_v35  ;;  %v15555_v23 = vrot.slane %v3891_v35, %v19092_v12  ;;  %v3894_v11 = vmax.f32 %v3864_v28, 0.0  ;;  %v3863_v53 = vadd.f32 %v15295_v63, %v3826_v1  ;;  %v19295_v35 = vld [vmem:[#allocation88_spill] sm:$0xff] }
 0x25d   : > { %v5036_v31 = vcombine.low %v5028_v34, %v5035_v18  ;;  %12616 = vmatprep.mubr.msk.f32.mxu0 %vm5258_vm9, %v6547_v45  ;;  %v6564_v10 = vcombine.low %v6556_v46, %v6563_v30  ;;  %v19290_v51 = vrot.slane %v15036_v17, 7  ;;  %v4623_v18 = vsel %vm13110_vm7, %v19292_v6, %v4622_v2 }
 0x25e   : > { %v15564_v57 = vrot.slane %v4367_v49, %v19092_v12  ;;  %v15568_v34 = vcombine.high %v15555_v23, %v15555_v23  ;;  %v4418_v1 = vcombine.high %v3894_v11, %v3894_v11  ;;  %v15574_v63 = vrot.slane %v3894_v11, %v19092_v12 }
 0x25f   : > { %v4627_v19 = vrot.slane %v19290_v51, 2  ;;  %12525 = vmatprep.mubr.msk.f32.mxu1 %vm5258_vm9, %v5036_v31  ;;  %v3893_v29 = vmax.f32 %v3863_v53, 0.0  ;;  %12617 = vmatmul.mubr.msk.f32.gmra.mxu0 %vm5258_vm9, %v6564_v10  ;;  %v4624_v28 = vrot.slane %v4622_v2, 2  ;;  %v19293_v31 = vmov %v19290_v51 }
 0x260   : > { %19291 = vst [vmem:[#allocation21_spill] sm:$0xff] %v15574_v63  ;;  %v15581_v49 = vcombine.high %v15564_v57, %v15564_v57  ;;  %v15587_v45 = vrot.slane %v4418_v1, %v19092_v12  ;;  %v15591_v11 = vcombine.high %v15574_v63, %v15574_v63  ;;  %v18778_v46 = vrot.slane %v15574_v63, 7  ;;  %v19301_v63 = vld [vmem:[#allocation72_spill] sm:$0xff] }
 0x261   : > { %v4401_v30 = vcombine.high %v3893_v29, %v3893_v29  ;;  %v15595_v16 = vrot.slane %v3893_v29, %v19092_v12  ;;  %v4626_v53 = vsel %vm13110_vm7, %v4624_v28, %v19293_v31  ;;  %v4628_v10 = vrot.slane %v19281_v47, 7 }
 0x262   : > { %v4634_v2 = vrot.slane %v19286_v25, 7  ;;  %v15605_v51 = vrot.slane %v18778_v46, 2  ;;  %v5037_v29 = vcombine.low %v4623_v18, %v4626_v53  ;;  %v19297_v37 = vrot.slane %v19280_v56, 7 }
 0x263   : > { %v15609_v6 = vrot.slane %v4401_v30, %v19092_v12  ;;  %v15613_v43 = vcombine.high %v15595_v16, %v15595_v16  ;;  %v18782_v28 = vrot.slane %v15595_v16, 7  ;;  %v4629_v31 = vsel %vm13110_vm7, %v4627_v19, %v4628_v10 }
 0x264   : > { %19294 = vst [vmem:[#allocation19_spill] sm:$0xff] %v15605_v51  ;;  %v4630_v48 = vrot.slane %v4628_v10, 2  ;;  %v5045_v30 = vrot.slane %v5037_v29, %v19092_v12  ;;  %v4635_v18 = vsel %vm13110_vm7, %v19295_v35, %v4634_v2  ;;  %v4636_v10 = vrot.slane %v4634_v2, 2 }
 0x265   : > { %v15620_v46 = vcombine.high %v15609_v6, %v15609_v6  ;;  %v15629_v53 = vrot.slane %v18782_v28, 2  ;;  %v19298_v25 = vrot.slane %v19285_v14, 7  ;;  %v4640_v29 = vrot.slane %v19287_v38, 7 }
 0x266   : > { %v4632_v19 = vsel %vm13110_vm7, %v4630_v48, %v19297_v37  ;;  %v6565_v17 = vcombine.low %v15112_v41, %v15133_v36  ;;  %v6566_v35 = vcombine.low %v15220_v39, %v15238_v62  ;;  %v6582_v37 = vcombine.low %v15234_v26, %v15251_v0 }
 0x267   : > { %19296 = vst [vmem:[#allocation92_spill] sm:$0xff] %v15629_v53  ;;  %v4639_v50 = vrot.slane %v19298_v25, 2  ;;  %v5038_v1 = vcombine.low %v4629_v31, %v4632_v19  ;;  %v19299_v28 = vmov %v19298_v25  ;;  %v6583_v25 = vcombine.low %v15191_v54, %v15203_v33 }
 0x268   : > { %v4638_v56 = vsel %vm13110_vm7, %v4636_v10, %v19299_v28  ;;  %v4646_v48 = vrot.slane %v15124_v5, 7  ;;  %v4642_v19 = vrot.slane %v4640_v29, 2  ;;  %v6573_v14 = vrot.slane %v6565_v17, %v19092_v12 }
 0x269   : > { %v5052_v2 = vrot.slane %v5038_v1, %v19092_v12  ;;  %v4641_v31 = vsel %vm13110_vm7, %v4639_v50, %v4640_v29  ;;  %v5054_v38 = vcombine.low %v4635_v18, %v4638_v56  ;;  %v6580_v47 = vrot.slane %v6566_v35, %v19092_v12 }
 0x26a   : > { %v6590_v28 = vrot.slane %v6582_v37, %v19092_v12  ;;  %v6597_v10 = vrot.slane %v6583_v25, %v19092_v12  ;;  %v19300_v53 = vrot.slane %v15106_v55, 7  ;;  %v4647_v50 = vsel %vm13110_vm7, %v19301_v63, %v4646_v48 }
 0x26b   : > { %v5053_v51 = vcombine.low %v5045_v30, %v5052_v2  ;;  %v5062_v1 = vrot.slane %v5054_v38, %v19092_v12  ;;  %v6581_v17 = vcombine.low %v6573_v14, %v6580_v47  ;;  %v4648_v29 = vrot.slane %v4646_v48, 2  ;;  %v19303_v30 = vld [vmem:[#allocation10_spill] sm:$0xff] }
 0x26c   : > { %v4644_v5 = vsel %vm13110_vm7, %v4642_v19, %v19300_v53  ;;  %v6598_v18 = vcombine.low %v6590_v28, %v6597_v10  ;;  %v19302_v35 = vrot.slane %v15097_v8, 7  ;;  %v19304_v37 = vrot.slane %v19303_v30, 9 }
 0x26d   : > { %v5055_v56 = vcombine.low %v4641_v31, %v4644_v5  ;;  %12526 = vmatmul.mubr.msk.f32.gmra.mxu1 %vm5258_vm9, %v5053_v51  ;;  %v4656_v53 = vrot.slane %v15116_v4, 7  ;;  %v19305_v38 = vrot.slane %v15112_v41, 7  ;;  %v4662_v63 = vrot.slane %v15133_v36, 7  ;;  %12619 = vmatprep.mubr.msk.f32.mxu0 %vm5258_vm9, %v6581_v17  ;;  %v19307_v31 = vld [vmem:[#allocation8_spill] sm:$0xff] }
 0x26e   : > { %v4654_v25 = vsel %vm13110_vm7, %v19304_v37, %v19302_v35  ;;  %v19306_v47 = vrot.slane %v15120_v61, 7  ;;  %v4668_v51 = vrot.slane %v15238_v62, 7  ;;  %v6599_v48 = vcombine.low %v15199_v58, %v15211_v32  ;;  %12620 = vmatmul.mubr.msk.f32.gmra.mxu0 %vm5258_vm9, %v6598_v18 }
 0x26f   : > { %v4661_v2 = vrot.slane %v19305_v38, 2  ;;  %v5069_v5 = vrot.slane %v5055_v56, %v19092_v12  ;;  %v4657_v19 = vsel %vm13110_vm7, %v19307_v31, %v4656_v53  ;;  %v4658_v10 = vrot.slane %v4656_v53, 2 }
 0x270   : > { %v4650_v14 = vsel %vm13110_vm7, %v4648_v29, %v19306_v47  ;;  %v5072_v17 = vcombine.low %v4654_v25, %v4657_v19  ;;  %v4664_v35 = vrot.slane %v4662_v63, 2  ;;  %v19308_v29 = vld [vmem:[#allocation80_spill] sm:$0xff]  ;;  %v19309_v18 = vrot.slane %v15112_v41, 7 }
 0x271   : > { %v5071_v28 = vcombine.low %v4647_v50, %v4650_v14  ;;  %v4663_v56 = vsel %vm13110_vm7, %v4661_v2, %v4662_v63  ;;  %v5070_v61 = vcombine.low %v5062_v1, %v5069_v5  ;;  %v4669_v37 = vsel %vm13110_vm7, %v19308_v29, %v4668_v51 }
 0x272   : > { %v4660_v47 = vsel %vm13110_vm7, %v4658_v10, %v19309_v18  ;;  %v6600_v50 = vcombine.low %v15324_v20, %v15340_v7  ;;  %v6607_v53 = vrot.slane %v6599_v48, %v19092_v12  ;;  %v5086_v1 = vrot.slane %v5072_v17, %v19092_v12 }
 0x273   : > { %v5079_v38 = vrot.slane %v5071_v28, %v19092_v12  ;;  %12528 = vmatprep.mubr.msk.f32.mxu1 %vm5258_vm9, %v5070_v61  ;;  %v19310_v25 = vrot.slane %v15220_v39, 7  ;;  %v5088_v63 = vcombine.low %v4660_v47, %v4663_v56  ;;  %v6616_v5 = vcombine.low %v15351_v21, %v15269_v59 }
 0x274   : > { %v6614_v31 = vrot.slane %v6600_v50, %v19092_v12  ;;  %v6617_v19 = vcombine.low %v15286_v44, %v15282_v52  ;;  %v4670_v48 = vrot.slane %v4668_v51, 2  ;;  %v19311_v17 = vrot.slane %v15234_v26, 7 }
 0x275   : > { %v4666_v2 = vsel %vm13110_vm7, %v4664_v35, %v19310_v25  ;;  %v5087_v28 = vcombine.low %v5079_v38, %v5086_v1  ;;  %v5096_v10 = vrot.slane %v5088_v63, %v19092_v12  ;;  %v6624_v61 = vrot.slane %v6616_v5, %v19092_v12 }
 0x276   : > { %v5089_v14 = vcombine.low %v4666_v2, %v4669_v37  ;;  %v4673_v29 = vrot.slane %v19311_v17, 2  ;;  %v6615_v35 = vcombine.low %v6607_v53, %v6614_v31  ;;  %v6631_v18 = vrot.slane %v6617_v19, %v19092_v12 }
 0x277   : > { %v19312_v37 = vmov %v19311_v17  ;;  %12529 = vmatmul.mubr.msk.f32.gmra.mxu1 %vm5258_vm9, %v5087_v28  ;;  %v4674_v51 = vrot.slane %v15251_v0, 7  ;;  %v4680_v38 = vrot.slane %v15203_v33, 7  ;;  %v19313_v50 = vrot.slane %v15199_v58, 7  ;;  %v19316_v28 = vld [vmem:[#allocation79_spill] sm:$0xff] }
 0x278   : > { %v5103_v56 = vrot.slane %v5089_v14, %v19092_v12  ;;  %v4672_v47 = vsel %vm13110_vm7, %v4670_v48, %v19312_v37  ;;  %v4686_v25 = vrot.slane %v15211_v32, 7  ;;  %12622 = vmatprep.mubr.msk.f32.mxu0 %vm5258_vm9, %v6615_v35  ;;  %v6632_v53 = vcombine.low %v6624_v61, %v6631_v18  ;;  %v19315_v14 = vld [vmem:[#allocation12_spill] sm:$0xff] }
 0x279   : > { %v4685_v1 = vrot.slane %v19313_v50, 2  ;;  %v19314_v63 = vrot.slane %v15340_v7, 7  ;;  %v6633_v31 = vcombine.low %v19315_v14, %v15438_v13  ;;  %v4675_v19 = vsel %vm13110_vm7, %v4673_v29, %v4674_v51 }
 0x27a   : > { %v5104_v2 = vcombine.low %v5096_v10, %v5103_v56  ;;  %v4676_v48 = vrot.slane %v4674_v51, 2  ;;  %v4681_v10 = vsel %vm13110_vm7, %v19316_v28, %v4680_v38  ;;  %v4682_v17 = vrot.slane %v4680_v38, 2  ;;  %12623 = vmatmul.mubr.msk.f32.gmra.mxu0 %vm5258_vm9, %v6632_v53 }
 0x27b   : > { %v4693_v5 = vsel %vm13110_vm7, %v15355_v22, %v19314_v63  ;;  %v5105_v7 = vcombine.low %v4672_v47, %v4675_v19  ;;  %v4687_v22 = vsel %vm13110_vm7, %v4685_v1, %v4686_v25  ;;  %v4688_v61 = vrot.slane %v4686_v25, 2 }
 0x27c   : > { %12531 = vmatprep.mubr.msk.f32.mxu1 %vm5258_vm9, %v5104_v2  ;;  %v6634_v56 = vcombine.low %v15453_v40, %v15449_v24  ;;  %v19317_v29 = vrot.slane %v15191_v54, 7  ;;  %v19318_v18 = vmov %v19313_v50  ;;  %v6641_v51 = vrot.slane %v6633_v31, %v19092_v12 }
 0x27d   : > { %v4684_v37 = vsel %vm13110_vm7, %v4682_v17, %v19318_v18  ;;  %v6650_v47 = vcombine.low %v15462_v15, %v15367_v3  ;;  %v5113_v50 = vrot.slane %v5105_v7, %v19092_v12  ;;  %v19319_v1 = vrot.slane %v15324_v20, 7  ;;  %v19321_v17 = vld [vmem:[#allocation15_spill] sm:$0xff] }
 0x27e   : > { %v4678_v35 = vsel %vm13110_vm7, %v4676_v48, %v19317_v29  ;;  %v5122_v2 = vcombine.low %v4684_v37, %v4687_v22  ;;  %v6648_v63 = vrot.slane %v6634_v56, %v19092_v12  ;;  %v6651_v19 = vcombine.low %v15387_v42, %v15383_v27 }
 0x27f   : > { %v5106_v38 = vcombine.low %v4678_v35, %v4681_v10  ;;  %v4690_v25 = vsel %vm13110_vm7, %v4688_v61, %v19319_v1  ;;  %v6658_v31 = vrot.slane %v6650_v47, %v19092_v12  ;;  %v19320_v10 = vrot.slane %v15351_v21, 7 }
 0x280   : > { %v5123_v53 = vcombine.low %v4690_v25, %v4693_v5  ;;  %v5130_v28 = vrot.slane %v5122_v2, %v19092_v12  ;;  %v19322_v7 = vrot.slane %v19321_v17, 9  ;;  %v6649_v29 = vcombine.low %v6641_v51, %v6648_v63  ;;  %v19326_v51 = vld [vmem:[#allocation14_spill] sm:$0xff] }
 0x281   : > { %v5120_v48 = vrot.slane %v5106_v38, %v19092_v12  ;;  %v19323_v5 = vmov %v19320_v10  ;;  %v6665_v35 = vrot.slane %v6651_v19, %v19092_v12  ;;  %v4702_v18 = vrot.slane %v15286_v44, 7  ;;  %v19337_v44 = vld [vmem:[#allocation95_spill] sm:$0xff] }
 0x282   : > { %v4697_v61 = vsel %vm13110_vm7, %v19322_v7, %v19320_v10  ;;  %v4698_v22 = vrot.slane %v19323_v5, 2  ;;  %v5137_v56 = vrot.slane %v5123_v53, %v19092_v12  ;;  %v19324_v47 = vrot.slane %v15269_v59, 7  ;;  %12625 = vmatprep.mubr.msk.f32.mxu0 %vm5258_vm9, %v6649_v29 }
 0x283   : > { %v5121_v37 = vcombine.low %v5113_v50, %v5120_v48  ;;  %v19325_v1 = vrot.slane %v15282_v52, 7  ;;  %v4708_v2 = vrot.slane %v19315_v14, 7  ;;  %v6666_v53 = vcombine.low %v6658_v31, %v6665_v35 }
 0x284   : > { %v4700_v38 = vsel %vm13110_vm7, %v4698_v22, %v19324_v47  ;;  %v5138_v10 = vcombine.low %v5130_v28, %v5137_v56  ;;  %v4703_v63 = vsel %vm13110_vm7, %v19326_v51, %v4702_v18  ;;  %v4704_v19 = vrot.slane %v4702_v18, 2 }
 0x285   : > { %v4707_v25 = vrot.slane %v19325_v1, 2  ;;  %12532 = vmatmul.mubr.msk.f32.gmra.mxu1 %vm5258_vm9, %v5121_v37  ;;  %v5139_v50 = vcombine.low %v4697_v61, %v4700_v38  ;;  %v4710_v7 = vrot.slane %v4708_v2, 2  ;;  %v4714_v5 = vrot.slane %v15453_v40, 7  ;;  %12626 = vmatmul.mubr.msk.f32.gmra.mxu0 %vm5258_vm9, %v6666_v53 }
 0x286   : > { %12534 = vmatprep.mubr.msk.f32.mxu1 %vm5258_vm9, %v5138_v10  ;;  %v19327_v31 = vmov %v19325_v1  ;;  %v6668_v22 = vcombine.low %v15564_v57, %v15581_v49  ;;  %v19328_v61 = vcombine.low %v15528_v9, %v15555_v23  ;;  %v19329_v29 = vrot.slane %v15449_v24, 7  ;;  %v19331_v1 = vld [vmem:[#allocation16_spill] sm:$0xff] }
 0x287   : > { %v4709_v48 = vsel %vm13110_vm7, %v4707_v25, %v4708_v2  ;;  %v4706_v28 = vsel %vm13110_vm7, %v4704_v19, %v19327_v31  ;;  %v5147_v37 = vrot.slane %v5139_v50, %v19092_v12  ;;  %v19330_v47 = vrot.slane %v15438_v13, 7  ;;  %v19332_v50 = vld [vmem:[#allocation96_spill] sm:$0xff] }
 0x288   : > { %v6675_v56 = vrot.slane %v19328_v61, %v19092_v12  ;;  %v4719_v35 = vrot.slane %v19329_v29, 2  ;;  %v5140_v18 = vcombine.low %v4703_v63, %v4706_v28  ;;  %v4715_v25 = vsel %vm13110_vm7, %v19331_v1, %v4714_v5  ;;  %v19333_v31 = vld [vmem:[#allocation64_spill] sm:$0xff]  ;;  %v19334_v61 = vld [vmem:[#allocation97_spill] sm:$0xff]  ;;  %v19335_v29 = vld [vmem:[#allocation18_spill] sm:$0xff] }
 0x289   : > { %v4712_v38 = vsel %vm13110_vm7, %v4710_v7, %v19330_v47  ;;  %v4716_v2 = vrot.slane %v4714_v5, 2  ;;  %v6682_v53 = vrot.slane %v6668_v22, %v19092_v12  ;;  %v4720_v51 = vrot.slane %v15462_v15, 7 }
 0x28a   : > { %v5156_v10 = vcombine.low %v4709_v48, %v4712_v38  ;;  %v5154_v19 = vrot.slane %v5140_v18, %v19092_v12  ;;  %v4726_v63 = vrot.slane %v15387_v42, 7  ;;  %v6684_v28 = vcombine.low %v19333_v31, %v19332_v50 }
 0x28b   : > { %v6685_v7 = vcombine.low %v19335_v29, %v19334_v61  ;;  %v19336_v47 = vrot.slane %v15449_v24, 7  ;;  %v6683_v22 = vcombine.low %v6675_v56, %v6682_v53  ;;  %v4721_v38 = vsel %vm13110_vm7, %v4719_v35, %v4720_v51 }
 0x28c   : > { %v5164_v48 = vrot.slane %v5156_v10, %v19092_v12  ;;  %v5155_v18 = vcombine.low %v5147_v37, %v5154_v19  ;;  %v4722_v59 = vrot.slane %v4720_v51, 2  ;;  %v4727_v17 = vsel %vm13110_vm7, %v19337_v44, %v4726_v63 }
 0x28d   : > { %v4718_v5 = vsel %vm13110_vm7, %v4716_v2, %v19336_v47  ;;  %12628 = vmatprep.mubr.msk.f32.mxu0 %vm5258_vm9, %v6683_v22  ;;  %v4728_v21 = vrot.slane %v4726_v63, 2  ;;  %v6692_v33 = vrot.slane %v6684_v28, %v19092_v12  ;;  %v6699_v2 = vrot.slane %v6685_v7, %v19092_v12 }
 0x28e   : > { %v5157_v1 = vcombine.low %v4715_v25, %v4718_v5  ;;  %v19338_v10 = vrot.slane %v15383_v27, 7  ;;  %12535 = vmatmul.mubr.msk.f32.gmra.mxu1 %vm5258_vm9, %v5155_v18  ;;  %v19339_v37 = vrot.slane %v15367_v3, 7  ;;  %v4732_v44 = vrot.slane %v15528_v9, 7 }
 0x28f   : > { %v19340_v53 = vrot.slane %v15564_v57, 7  ;;  %v19341_v51 = vrot.slane %v15568_v34, 9  ;;  %v6700_v47 = vcombine.low %v6692_v33, %v6699_v2  ;;  %v6702_v33 = vcombine.low %v15609_v6, %v15620_v46 }
 0x290   : > { %v4731_v56 = vrot.slane %v19338_v10, 2  ;;  %v5171_v35 = vrot.slane %v5157_v1, %v19092_v12  ;;  %v4724_v25 = vsel %vm13110_vm7, %v4722_v59, %v19339_v37  ;;  %v19342_v63 = vmov %v19338_v10 }
 0x291   : > { %v4740_v19 = vsel %vm13110_vm7, %v19341_v51, %v19340_v53  ;;  %v4730_v28 = vsel %vm13110_vm7, %v4728_v21, %v19342_v63  ;;  %v5173_v7 = vcombine.low %v4721_v38, %v4724_v25  ;;  %v19343_v5 = vmov %v19340_v53  ;;  %12629 = vmatmul.mubr.msk.f32.gmra.mxu0 %vm5258_vm9, %v6700_v47 }
 0x292   : > { %v4741_v22 = vrot.slane %v19343_v5, 2  ;;  %v5172_v59 = vcombine.low %v5164_v48, %v5171_v35  ;;  %v5174_v18 = vcombine.low %v4727_v17, %v4730_v28  ;;  %v4733_v1 = vsel %vm13110_vm7, %v4731_v56, %v4732_v44 }
 0x293   : > { %v4734_v10 = vrot.slane %v4732_v44, 2  ;;  %v5181_v37 = vrot.slane %v5173_v7, %v19092_v12  ;;  %v4742_v53 = vrot.slane %v15581_v49, 7  ;;  %v6701_v21 = vcombine.low %v15595_v16, %v15613_v43 }
 0x294   : > { %12537 = vmatprep.mubr.msk.f32.mxu1 %vm5258_vm9, %v5172_v59  ;;  %v5188_v17 = vrot.slane %v5174_v18, %v19092_v12  ;;  %v19344_v48 = vrot.slane %v15555_v23, 7  ;;  %v4748_v2 = vrot.slane %v19332_v50, 7  ;;  %v19345_v56 = vrot.slane %v19335_v29, 7  ;;  %v19346_v23 = vld [vmem:[#allocation98_spill] sm:$0xff] }
 0x295   : > { %v4743_v25 = vsel %vm13110_vm7, %v4741_v22, %v4742_v53  ;;  %v6709_v51 = vrot.slane %v6701_v21, %v19092_v12  ;;  %v6716_v63 = vrot.slane %v6702_v33, %v19092_v12  ;;  %v4744_v47 = vrot.slane %v4742_v53, 2  ;;  %v19348_v53 = vld [vmem:[#allocation21_spill] sm:$0xff] }
 0x296   : > { %v4736_v38 = vsel %vm13110_vm7, %v4734_v10, %v19344_v48  ;;  %v4753_v35 = vrot.slane %v19345_v56, 2  ;;  %v5189_v28 = vcombine.low %v5181_v37, %v5188_v17  ;;  %v5191_v7 = vcombine.low %v4740_v19, %v4743_v25 }
 0x297   : > { %v5190_v44 = vcombine.low %v4733_v1, %v4736_v38  ;;  %v4749_v5 = vsel %vm13110_vm7, %v19346_v23, %v4748_v2  ;;  %v6717_v18 = vcombine.low %v6709_v51, %v6716_v63  ;;  %v4750_v10 = vrot.slane %v4748_v2, 2 }
 0x298   : > { %v4754_v48 = vrot.slane %v19334_v61, 7  ;;  %12538 = vmatmul.mubr.msk.f32.gmra.mxu1 %vm5258_vm9, %v5189_v28  ;;  %v5205_v22 = vrot.slane %v5191_v7, %v19092_v12  ;;  %v19347_v1 = vrot.slane %v19333_v31, 7  ;;  %v4434_v37 = vcombine.high %v15587_v45, %v15587_v45 }
 0x299   : > { %v5198_v59 = vrot.slane %v5190_v44, %v19092_v12  ;;  %v6718_v21 = vcombine.low %v19348_v53, %v15591_v11  ;;  %12631 = vmatprep.mubr.msk.f32.mxu0 %vm5258_vm9, %v6717_v18  ;;  %v19349_v33 = vmov %v19345_v56  ;;  %v4760_v18 = vrot.slane %v15613_v43, 7 }
 0x29a   : > { %v4746_v19 = vsel %vm13110_vm7, %v4744_v47, %v19347_v1  ;;  %v4752_v17 = vsel %vm13110_vm7, %v4750_v10, %v19349_v33  ;;  %v4755_v38 = vsel %vm13110_vm7, %v4753_v35, %v4754_v48  ;;  %v4756_v56 = vrot.slane %v4754_v48, 2 }
 0x29b   : > { %v5207_v2 = vcombine.low %v4746_v19, %v4749_v5  ;;  %v5206_v25 = vcombine.low %v5198_v59, %v5205_v22  ;;  %v5208_v44 = vcombine.low %v4752_v17, %v4755_v38  ;;  %v4778_v51 = vrot.slane %v4434_v37, 7  ;;  %v19352_v22 = vld [vmem:[#allocation92_spill] sm:$0xff] }
 0x29c   : > { %v6719_v63 = vcombine.low %v15587_v45, %v4434_v37  ;;  %v6726_v7 = vrot.slane %v6718_v21, %v19092_v12  ;;  %v19350_v47 = vrot.slane %v15595_v16, 7  ;;  %v19351_v59 = vrot.slane %v15609_v6, 7 }
 0x29d   : > { %v5215_v28 = vrot.slane %v5207_v2, %v19092_v12  ;;  %12540 = vmatprep.mubr.msk.f32.mxu1 %vm5258_vm9, %v5206_v25  ;;  %v5222_v35 = vrot.slane %v5208_v44, %v19092_v12  ;;  %v4766_v48 = vrot.slane %v15620_v46, 7  ;;  %v4761_v1 = vsel %vm13110_vm7, %v19352_v22, %v4760_v18  ;;  %v19359_v22 = vld [vmem:[#allocation20_spill] sm:$0xff] }
 0x29e   : > { %v4758_v23 = vsel %vm13110_vm7, %v4756_v56, %v19350_v47  ;;  %v6733_v5 = vrot.slane %v6719_v63, %v19092_v12  ;;  %v4765_v10 = vrot.slane %v19351_v59, 2  ;;  %v4762_v19 = vrot.slane %v4760_v18, 2 }
 0x29f   : > { %v4772_v37 = vrot.slane %v15591_v11, 7  ;;  %v19353_v21 = vrot.slane %v15587_v45, 7  ;;  %v5223_v17 = vcombine.low %v5215_v28, %v5222_v35  ;;  %v5224_v56 = vcombine.low %v4758_v23, %v4761_v1  ;;  %v19356_v35 = vld [vmem:[#allocation19_spill] sm:$0xff] }
 0x2a0   : > { %v6734_v38 = vcombine.low %v6726_v7, %v6733_v5  ;;  %v4767_v2 = vsel %vm13110_vm7, %v4765_v10, %v4766_v48  ;;  %v19354_v25 = vmov %v19351_v59  ;;  %v4768_v63 = vrot.slane %v4766_v48, 2  ;;  %v19358_v48 = vld [vmem:[#allocation26_spill] sm:$0xff] }
 0x2a1   : > { %v4777_v33 = vrot.slane %v19353_v21, 2  ;;  %v4764_v44 = vsel %vm13110_vm7, %v4762_v19, %v19354_v25  ;;  %v4774_v47 = vrot.slane %v4772_v37, 2  ;;  %12541 = vmatmul.mubr.msk.f32.gmra.mxu1 %vm5258_vm9, %v5223_v17  ;;  %v19355_v7 = vrot.slane %v19348_v53, 7 }
 0x2a2   : > { %12632 = vmatmul.mubr.msk.f32.gmra.mxu0 %vm5258_vm9, %v6734_v38  ;;  %v5225_v18 = vcombine.low %v4764_v44, %v4767_v2  ;;  %v4773_v5 = vsel %vm13110_vm7, %v19356_v35, %v4772_v37  ;;  %v19357_v59 = vmov %v19353_v21  ;;  %v5521_v1 = vcombine.low %v19359_v22, %v19358_v48  ;;  %v19360_v38 = vld [vmem:[#allocation34_spill] sm:$0xff]  ;;  %v19361_v2 = vld [vmem:[#allocation31_spill] sm:$0xff] }
 0x2a3   : > { %v4779_v28 = vsel %vm13110_vm7, %v4777_v33, %v4778_v51  ;;  %v4770_v23 = vsel %vm13110_vm7, %v4768_v63, %v19355_v7  ;;  %v4776_v10 = vsel %vm13110_vm7, %v4774_v47, %v19357_v59  ;;  %v5232_v19 = vrot.slane %v5224_v56, %v19092_v12  ;;  %v19362_v47 = vld [vmem:[#allocation22_spill] sm:$0xff]  ;;  %v19363_v7 = vld [vmem:[#allocation25_spill] sm:$0xff]  ;;  %v19365_v56 = vld [vmem:[#allocation32_spill] sm:$0xff] }
 0x2a4   : > { %v5239_v51 = vrot.slane %v5225_v18, %v19092_v12  ;;  %v5241_v21 = vcombine.low %v4770_v23, %v4773_v5  ;;  %v5242_v33 = vcombine.low %v4776_v10, %v4779_v28  ;;  %v5535_v17 = vrot.slane %v5521_v1, %v19092_v12  ;;  %v19366_v48 = vld [vmem:[#allocation30_spill] sm:$0xff]  ;;  %v19368_v5 = vld [vmem:[#allocation28_spill] sm:$0xff] }
 0x2a5   : > { %v5555_v25 = vcombine.low %v19361_v2, %v19360_v38  ;;  %v19364_v35 = vcombine.low %v19362_v47, %v19363_v7  ;;  %v5554_v18 = vcombine.low %v19366_v48, %v19365_v56  ;;  %v19367_v23 = vld [vmem:[#allocation38_spill] sm:$0xff]  ;;  %v19372_v38 = vld [vmem:[#allocation29_spill] sm:$0xff] }
 0x2a6   : > { %v5240_v37 = vcombine.low %v5232_v19, %v5239_v51  ;;  %v5249_v44 = vrot.slane %v5241_v21, %v19092_v12  ;;  %v5256_v63 = vrot.slane %v5242_v33, %v19092_v12  ;;  %v5572_v10 = vcombine.low %v19368_v5, %v19367_v23  ;;  %v19369_v19 = vld [vmem:[#allocation33_spill] sm:$0xff]  ;;  %v19370_v51 = vld [vmem:[#allocation43_spill] sm:$0xff]  ;;  %v19377_v48 = vld [vmem:[#allocation42_spill] sm:$0xff] }
 0x2a7   : > { %v5528_v59 = vrot.slane %v19364_v35, %v19092_v12  ;;  %v5569_v1 = vrot.slane %v5555_v25, %v19092_v12  ;;  %v5589_v21 = vcombine.low %v19370_v51, %v19369_v19  ;;  %v19371_v33 = vld [vmem:[#allocation27_spill] sm:$0xff]  ;;  %v5562_v47 = vrot.slane %v5554_v18, %v19092_v12  ;;  %v19376_v35 = vld [vmem:[#allocation37_spill] sm:$0xff]  ;;  %v19380_v19 = vld [vmem:[#allocation24_spill] sm:$0xff] }
 0x2a8   : > { %12543 = vmatprep.mubr.msk.f32.mxu1 %vm5258_vm9, %v5240_v37  ;;  %v5257_v28 = vcombine.low %v5249_v44, %v5256_v63  ;;  %v5571_v2 = vcombine.low %v19372_v38, %v19371_v33  ;;  %v19373_v37 = vld [vmem:[#allocation39_spill] sm:$0xff]  ;;  %v19374_v44 = vld [vmem:[#allocation41_spill] sm:$0xff]  ;;  %v5586_v7 = vrot.slane %v5572_v10, %v19092_v12 }
 0x2a9   : > { %v5536_v22 = vcombine.low %v5528_v59, %v5535_v17  ;;  %v5588_v63 = vcombine.low %v19374_v44, %v19373_v37  ;;  %v19375_v17 = vld [vmem:[#allocation71_spill] sm:$0xff]  ;;  %v5570_v59 = vcombine.low %v5562_v47, %v5569_v1  ;;  %v5603_v56 = vrot.slane %v5589_v21, %v19092_v12  ;;  %v19385_v47 = vld [vmem:[#allocation45_spill] sm:$0xff]  ;;  %v19386_v37 = vld [vmem:[#allocation52_spill] sm:$0xff] }
 0x2aa   : > { %12544 = vmatmul.mubr.msk.f32.gmra.mxu1 %vm5258_vm9, %v5257_v28  ;;  %v5606_v25 = vcombine.low %v19376_v35, %v19375_v17  ;;  %v19378_v28 = vld [vmem:[#allocation76_spill] sm:$0xff]  ;;  %v19379_v5 = vld [vmem:[#allocation23_spill] sm:$0xff]  ;;  %v5579_v18 = vrot.slane %v5571_v2, %v19092_v12  ;;  %v19387_v44 = vld [vmem:[#allocation46_spill] sm:$0xff] }
 0x2ab   : > { %12548 = vmatprep.mubr.msk.f32.mxu1 %vm5258_vm9, %v5536_v22  ;;  %v5623_v23 = vcombine.low %v19378_v28, %v19377_v48  ;;  %v19381_v51 = vcombine.low %v19379_v5, %v19380_v19  ;;  %v19382_v22 = vld [vmem:[#allocation36_spill] sm:$0xff]  ;;  %v19383_v33 = vld [vmem:[#allocation35_spill] sm:$0xff]  ;;  %v5596_v10 = vrot.slane %v5588_v63, %v19092_v12  ;;  %v5640_v17 = vcombine.low %v19387_v44, %v19386_v37  ;;  %v19388_v2 = vld [vmem:[#allocation73_spill] sm:$0xff] }
 0x2ac   : > { %v5605_v38 = vcombine.low %v19383_v33, %v19382_v22  ;;  %v19384_v1 = vld [vmem:[#allocation47_spill] sm:$0xff]  ;;  %v5587_v35 = vcombine.low %v5579_v18, %v5586_v7  ;;  %v5620_v48 = vrot.slane %v5606_v25, %v19092_v12  ;;  %v19389_v19 = vld [vmem:[#allocation44_spill] sm:$0xff]  ;;  %v19390_v22 = vld [vmem:[#allocation78_spill] sm:$0xff] }
 0x2ad   : > { %v5622_v21 = vcombine.low %v19385_v47, %v19384_v1  ;;  %v5604_v28 = vcombine.low %v5596_v10, %v5603_v56  ;;  %v5637_v5 = vrot.slane %v5623_v23, %v19092_v12  ;;  %v19391_v33 = vld [vmem:[#allocation77_spill] sm:$0xff]  ;;  %v5654_v7 = vrot.slane %v5640_v17, %v19092_v12  ;;  %v19393_v56 = vld [vmem:[#allocation48_spill] sm:$0xff]  ;;  %v19396_v44 = vld [vmem:[#allocation62_spill] sm:$0xff] }
 0x2ae   : > { %12549 = vmatmul.mubr.msk.f32.vlgmr.msra.gmra.mxu1 %vm5258_vm9, %v19381_v51  ;;  %v5639_v51 = vcombine.low %v19389_v19, %v19388_v2  ;;  %v5613_v63 = vrot.slane %v5605_v38, %v19092_v12  ;;  %v19392_v25 = vld [vmem:[#allocation49_spill] sm:$0xff]  ;;  %v19394_v10 = vld [vmem:[#allocation60_spill] sm:$0xff]  ;;  %v19400_v17 = vld [vmem:[#allocation75_spill] sm:$0xff] }
 0x2af   : > { %12551 = vmatprep.mubr.msk.f32.mxu1 %vm5258_vm9, %v5570_v59  ;;  %v5656_v59 = vcombine.low %v19391_v33, %v19390_v22  ;;  %v5630_v1 = vrot.slane %v5622_v21, %v19092_v12  ;;  %v5657_v18 = vcombine.low %v19393_v56, %v19392_v25  ;;  %v19395_v47 = vld [vmem:[#allocation53_spill] sm:$0xff]  ;;  %v5673_v25 = vcombine.low %v19401_v60, %v19400_v17 }
 0x2b0   : > { %v5621_v23 = vcombine.low %v5613_v63, %v5620_v48  ;;  %v5674_v37 = vcombine.low %v19395_v47, %v19394_v10  ;;  %v19397_v2 = vld [vmem:[#allocation57_spill] sm:$0xff]  ;;  %v19402_v48 = vld [vmem:[#allocation56_spill] sm:$0xff]  ;;  %v19403_v63 = vld [vmem:[#allocation54_spill] sm:$0xff] }
 0x2b1   : > { %v5690_v19 = vcombine.low %v19397_v2, %v19396_v44  ;;  %v19398_v22 = vld [vmem:[#allocation65_spill] sm:$0xff]  ;;  %v5638_v38 = vcombine.low %v5630_v1, %v5637_v5  ;;  %v5664_v21 = vrot.slane %v5656_v59, %v19092_v12  ;;  %v5691_v56 = vcombine.low %v19403_v63, %v19402_v48  ;;  %v19404_v10 = vld [vmem:[#allocation66_spill] sm:$0xff]  ;;  %v19405_v47 = vld [vmem:[#allocation55_spill] sm:$0xff] }
 0x2b2   : > { %12552 = vmatmul.mubr.msk.f32.gmra.mxu1 %vm5258_vm9, %v5587_v35  ;;  %v19399_v35 = vld [vmem:[#allocation67_spill] sm:$0xff]  ;;  %v5707_v27 = vcombine.low %v19405_v47, %v19404_v10  ;;  %v19406_v44 = vld [vmem:[#allocation58_spill] sm:$0xff]  ;;  %v19407_v2 = vld [vmem:[#allocation68_spill] sm:$0xff]  ;;  %v5688_v59 = vrot.slane %v5674_v37, %v19092_v12 }
 0x2b3   : > { %12554 = vmatprep.mubr.msk.f32.mxu1 %vm5258_vm9, %v5604_v28  ;;  %v5708_v33 = vcombine.low %v19399_v35, %v19398_v22  ;;  %v5647_v28 = vrot.slane %v5639_v51, %v19092_v12  ;;  %v5724_v9 = vcombine.low %v19407_v2, %v19406_v44  ;;  %v5671_v51 = vrot.slane %v5657_v18, %v19092_v12  ;;  %v19409_v22 = vld [vmem:[#allocation61_spill] sm:$0xff]  ;;  %v19411_v48 = vld [vmem:[#allocation70_spill] sm:$0xff]  ;;  %v19413_v44 = vld [vmem:[#allocation63_spill] sm:$0xff] }
 0x2b4   : > { %v5698_v1 = vrot.slane %v5690_v19, %v19092_v12  ;;  %v19410_v17 = vld [vmem:[#allocation9_spill] sm:$0xff]  ;;  %v5681_v18 = vrot.slane %v5673_v25, %v19092_v12  ;;  %v5705_v37 = vrot.slane %v5691_v56, %v19092_v12  ;;  %v5715_v19 = vrot.slane %v5707_v27, %v19092_v12 }
 0x2b5   : > { %v5655_v5 = vcombine.low %v5647_v28, %v5654_v7  ;;  %v5722_v60 = vrot.slane %v5708_v33, %v19092_v12  ;;  %v5758_v63 = vcombine.low %v19411_v48, %v19410_v17  ;;  %v5672_v10 = vcombine.low %v5664_v21, %v5671_v51  ;;  %v19412_v47 = vld [vmem:[#allocation69_spill] sm:$0xff]  ;;  %v19415_v7 = vld [vmem:[#allocation83_spill] sm:$0xff] }
 0x2b6   : > { %12555 = vmatmul.mubr.msk.f32.gmra.mxu1 %vm5258_vm9, %v5621_v23  ;;  %v19408_v23 = vld [vmem:[#allocation59_spill] sm:$0xff]  ;;  %v5741_v2 = vcombine.low %v19413_v44, %v19412_v47  ;;  %v5732_v33 = vrot.slane %v5724_v9, %v19092_v12  ;;  %v5706_v17 = vcombine.low %v5698_v1, %v5705_v37  ;;  %v5894_v27 = vcombine.low %v15282_v52, %v19315_v14  ;;  %v19419_v44 = vld [vmem:[#allocation89_spill] sm:$0xff]  ;;  %v19423_v14 = vld [vmem:[#allocation84_spill] sm:$0xff] }
 0x2b7   : > { %12557 = vmatprep.mubr.msk.f32.mxu1 %vm5258_vm9, %v5638_v38  ;;  %v5725_v35 = vcombine.low %v19409_v22, %v19408_v23  ;;  %v19414_v38 = vld [vmem:[#allocation81_spill] sm:$0xff]  ;;  %v19416_v23 = vld [vmem:[#allocation82_spill] sm:$0xff]  ;;  %v19417_v21 = vld [vmem:[#allocation7_spill] sm:$0xff]  ;;  %v5689_v22 = vcombine.low %v5681_v18, %v5688_v59  ;;  %v5723_v48 = vcombine.low %v5715_v19, %v5722_v60  ;;  %v5766_v56 = vrot.slane %v5758_v63, %v19092_v12 }
 0x2b8   : > { %v5742_v28 = vcombine.low %v19415_v7, %v19414_v38  ;;  %v5759_v51 = vcombine.low %v19417_v21, %v19416_v23  ;;  %v5895_v59 = vcombine.low %v15438_v13, %v15453_v40  ;;  %v5911_v1 = vcombine.low %v15449_v24, %v15462_v15  ;;  %v19421_v63 = vld [vmem:[#allocation86_spill] sm:$0xff]  ;;  %v19422_v52 = vld [vmem:[#allocation85_spill] sm:$0xff]  ;;  %v19424_v18 = vld [vmem:[#allocation87_spill] sm:$0xff] }
 0x2b9   : > { %v5739_v47 = vrot.slane %v5725_v35, %v19092_v12  ;;  %v19420_v35 = vld [vmem:[#allocation90_spill] sm:$0xff]  ;;  %v5792_v7 = vcombine.low %v19423_v14, %v19422_v52  ;;  %v19425_v37 = vld [vmem:[#allocation40_spill] sm:$0xff]  ;;  %v16068_v13 = vrot.slane %v5894_v27, %v19092_v12  ;;  %v5945_v23 = vcombine.low %v15581_v49, %v19333_v31 }
 0x2ba   : > { %12558 = vmatmul.mubr.msk.f32.gmra.mxu1 %vm5258_vm9, %v5655_v5  ;;  %v5749_v5 = vrot.slane %v5741_v2, %v19092_v12  ;;  %v5756_v25 = vrot.slane %v5742_v28, %v19092_v12  ;;  %v5773_v60 = vrot.slane %v5759_v51, %v19092_v12  ;;  %v5775_v2 = vcombine.low %v19421_v63, %v19420_v35  ;;  %v19429_v35 = vld [vmem:[#allocation15_spill] sm:$0xff] }
 0x2bb   : > { %12560 = vmatprep.mubr.msk.f32.mxu1 %vm5258_vm9, %v5672_v10  ;;  %v5740_v9 = vcombine.low %v5732_v33, %v5739_v47  ;;  %v19418_v10 = vld [vmem:[#allocation91_spill] sm:$0xff]  ;;  %v5912_v28 = vcombine.low %v15367_v3, %v15387_v42  ;;  %v5793_v19 = vcombine.low %v19425_v37, %v19424_v18  ;;  %v16071_v24 = vrot.slane %v5895_v59, %v19092_v12 }
 0x2bc   : > { %v5776_v38 = vcombine.low %v19419_v44, %v19418_v10  ;;  %v16074_v40 = vrot.slane %v5911_v1, %v19092_v12  ;;  %v5757_v15 = vcombine.low %v5749_v5, %v5756_v25  ;;  %v5946_v3 = vcombine.low %v19332_v50, %v19335_v29 }
 0x2bd   : > { %v16077_v33 = vrot.slane %v5912_v28, %v19092_v12  ;;  %v5810_v21 = vcombine.low %v19303_v30, %v15097_v8  ;;  %v5910_v51 = vcombine.low %v16068_v13, %v16071_v24  ;;  %v5953_v50 = vrot.slane %v5945_v23, %v19092_v12  ;;  %v19433_v13 = vld [vmem:[#allocation94_spill] sm:$0xff] }
 0x2be   : > { %12561 = vmatmul.mubr.msk.f32.gmra.mxu1 %vm5258_vm9, %v5689_v22  ;;  %v5790_v42 = vrot.slane %v5776_v38, %v19092_v12  ;;  %v5962_v22 = vcombine.low %v19334_v61, %v15595_v16  ;;  %v5960_v31 = vrot.slane %v5946_v3, %v19092_v12  ;;  %v5963_v29 = vcombine.low %v15613_v43, %v15609_v6  ;;  %v19426_v6 = vld [vmem:[#allocation74_spill] sm:$0xff] }
 0x2bf   : > { %12563 = vmatprep.mubr.msk.f32.mxu1 %vm5258_vm9, %v5706_v17  ;;  %v5927_v49 = vcombine.low %v16074_v40, %v16077_v33  ;;  %v5774_v17 = vcombine.low %v5766_v56, %v5773_v60  ;;  %v5807_v8 = vrot.slane %v5793_v19, %v19092_v12  ;;  %v5979_v30 = vcombine.low %v15620_v46, %v19348_v53  ;;  %v19428_v60 = vld [vmem:[#allocation93_spill] sm:$0xff] }
 0x2c0   : > { %v5980_v16 = vcombine.low %v15591_v11, %v15587_v45  ;;  %v5827_v61 = vcombine.low %v15133_v36, %v15220_v39  ;;  %v5970_v47 = vrot.slane %v5962_v22, %v19092_v12  ;;  %v5977_v5 = vrot.slane %v5963_v29, %v19092_v12  ;;  %v19432_v19 = vld [vmem:[#allocation17_spill] sm:$0xff] }
 0x2c1   : > { %v5783_v43 = vrot.slane %v5775_v2, %v19092_v12  ;;  %v5809_v25 = vcombine.low %v15106_v55, %v19426_v6  ;;  %v5987_v46 = vrot.slane %v5979_v30, %v19092_v12  ;;  %v5800_v36 = vrot.slane %v5792_v7, %v19092_v12  ;;  %v19431_v2 = vld [vmem:[#allocation13_spill] sm:$0xff] }
 0x2c2   : > { %12564 = vmatmul.mubr.msk.f32.gmra.mxu1 %vm5258_vm9, %v5723_v48  ;;  %v5961_v48 = vcombine.low %v5953_v50, %v5960_v31  ;;  %v5994_v53 = vrot.slane %v5980_v16, %v19092_v12  ;;  %v5826_v39 = vcombine.low %v15116_v4, %v15112_v41  ;;  %v5978_v45 = vcombine.low %v5970_v47, %v5977_v5 }
 0x2c3   : > { %12566 = vmatprep.mubr.msk.f32.mxu1 %vm5258_vm9, %v5740_v9  ;;  %v5791_v11 = vcombine.low %v5783_v43, %v5790_v42  ;;  %v5824_v56 = vrot.slane %v5810_v21, %v19092_v12  ;;  %v5844_v27 = vcombine.low %v15251_v0, %v15191_v54  ;;  %v5808_v55 = vcombine.low %v5800_v36, %v5807_v8  ;;  %v19427_v54 = vld [vmem:[#allocation11_spill] sm:$0xff] }
 0x2c4   : > { %v5995_v9 = vcombine.low %v5987_v46, %v5994_v53  ;;  %v5841_v10 = vrot.slane %v5827_v61, %v19092_v12  ;;  %v5861_v44 = vcombine.low %v15211_v32, %v15324_v20  ;;  %v5817_v38 = vrot.slane %v5809_v25, %v19092_v12 }
 0x2c5   : > { %v5843_v41 = vcombine.low %v15238_v62, %v15234_v26  ;;  %v5834_v4 = vrot.slane %v5826_v39, %v19092_v12  ;;  %v5860_v0 = vcombine.low %v19427_v54, %v15199_v58  ;;  %v5858_v1 = vrot.slane %v5844_v27, %v19092_v12  ;;  %v19430_v26 = vld [vmem:[#allocation51_spill] sm:$0xff]  ;;  %v12594_v27 = vpop.f32.mrf.mxu0 }
 0x2c6   : > { %12567 = vmatmul.mubr.msk.f32.gmra.mxu1 %vm5258_vm9, %v5757_v15  ;;  %v5825_v59 = vcombine.low %v5817_v38, %v5824_v56  ;;  %v5877_v32 = vcombine.low %v19429_v35, %v19428_v60  ;;  %v5875_v63 = vrot.slane %v5861_v44, %v19092_v12  ;;  %v5878_v52 = vcombine.low %v19431_v2, %v19430_v26  ;;  %v16215_v38 = vld [vmem:[%s18566_s4] ss:$0 sm:$0xff] }
 0x2c7   : > { %12569 = vmatprep.mubr.msk.f32.mxu1 %vm5258_vm9, %v5774_v17  ;;  %v5842_v20 = vcombine.low %v5834_v4, %v5841_v10  ;;  %v5851_v62 = vrot.slane %v5843_v41, %v19092_v12  ;;  %v5868_v58 = vrot.slane %v5860_v0, %v19092_v12  ;;  %v5929_v18 = vcombine.low %v15568_v34, %v15564_v57  ;;  %v12506_v57 = vpop.f32.mrf.mxu1  ;;  %v6857_v44 = vpop.f32.mrf.mxu0 }
 0x2c8   : > { %v5885_v7 = vrot.slane %v5877_v32, %v19092_v12  ;;  %v5892_v37 = vrot.slane %v5878_v52, %v19092_v12  ;;  %v5928_v24 = vcombine.low %v19433_v13, %v19432_v19 }
 0x2c9   : > { %v5859_v14 = vcombine.low %v5851_v62, %v5858_v1  ;;  %v5876_v28 = vcombine.low %v5868_v58, %v5875_v63  ;;  %v5943_v15 = vrot.slane %v5929_v18, %v19092_v12  ;;  %v5381_v34 = vpop.f32.mrf.mxu1  ;;  %v12597_v35 = vpop.f32.mrf.mxu0 }
 0x2ca   : > { %12570 = vmatmul.mubr.msk.f32.gmra.mxu1 %vm5258_vm9, %v5791_v11  ;;  %v5893_v40 = vcombine.low %v5885_v7, %v5892_v37  ;;  %v5936_v33 = vrot.slane %v5928_v24, %v19092_v12 }
 0x2cb   : > { %12572 = vmatprep.mubr.msk.f32.mxu1 %vm5258_vm9, %v5808_v55  ;;  %v12509_v3 = vpop.f32.mrf.mxu1 }
 0x2cc   : > { %v5944_v23 = vcombine.low %v5936_v33, %v5943_v15 }
 0x2cd   : > { %v5391_v42 = vpop.f32.mrf.mxu1 }
 0x2ce   : > { %12573 = vmatmul.mubr.msk.f32.gmra.mxu1 %vm5258_vm9, %v5825_v59 }
 0x2cf   : > { %12575 = vmatprep.mubr.msk.f32.mxu1 %vm5258_vm9, %v5842_v20 }
 0x2d2   : > { %12576 = vmatmul.mubr.msk.f32.gmra.mxu1 %vm5258_vm9, %v5859_v14 }
 0x2d3   : > { %12578 = vmatprep.mubr.msk.f32.mxu1 %vm5258_vm9, %v5876_v28  ;;  %v6867_v28 = vpop.f32.mrf.mxu0 }
 0x2d6   : > { %12579 = vmatmul.mubr.msk.f32.gmra.mxu1 %vm5258_vm9, %v5893_v40 }
 0x2d7   : > { %12581 = vmatprep.mubr.msk.f32.mxu1 %vm5258_vm9, %v5910_v51  ;;  %v16158_v21 = vpop.f32.mrf.mxu1 }
 0x2d9   : > { %v16160_v51 = vpop.f32.mrf.mxu1 }
 0x2da   : > { %12582 = vmatmul.mubr.msk.f32.gmra.mxu1 %vm5258_vm9, %v5927_v49  ;;  %v11988_v49 = vld [vmem:[%s18567_s5 + $0x8] sm:$0xff] }
 0x2db   : > { %12584 = vmatprep.mubr.msk.f32.mxu1 %vm5258_vm9, %v5944_v23  ;;  %12634 = vmatprep.subr.mxu1 %v11988_v49 }
 0x2dc   : > { %12635 = vmatpush3.msra.mxu1 %v11988_v49 }
 0x2de   : > { %12585 = vmatmul.mubr.msk.f32.gmra.mxu1 %vm5258_vm9, %v5961_v48 }
 0x2df   : > { %12587 = vmatprep.mubr.msk.f32.mxu1 %vm5258_vm9, %v5978_v45  ;;  %v8488_v45 = vld [vmem:[%s18567_s5] sm:$0xff] }
 0x2e0   : > { %12654 = vmatprep.subr.mxu0 %v8488_v45 }
 0x2e1   : > { %12655 = vmatpush3.msra.mxu0 %v8488_v45 }
 0x2e2   : > { %12588 = vmatmul.mubr.msk.f32.gmra.mxu1 %vm5258_vm9, %v5995_v9 }
 0x2e7   : > { %v16162_v22 = vpop.f32.mrf.mxu1 }
 0x2e9   : > { %v16164_v50 = vpop.f32.mrf.mxu1 }
 0x2f8   : > { %v16169_v31 = vpop.f32.mrf.mxu1 }
 0x2fa   : > { %v16171_v29 = vpop.f32.mrf.mxu1 }
 0x308   : > { %v16173_v17 = vpop.f32.mrf.mxu1 }
 0x30a   : > { %v16175_v8 = vpop.f32.mrf.mxu1 }
 0x31a   : > { %v16177_v30 = vpop.f32.mrf.mxu1 }
 0x31c   : > { %v16179_v16 = vpop.f32.mrf.mxu1 }
 0x32d   : > { %v16181_v61 = vpop.f32.mrf.mxu1 }
 0x32f   : > { %v16183_v48 = vpop.f32.mrf.mxu1 }
 0x337   : > { %v16185_v47 = vpop.f32.mrf.mxu1 }
 0x339   : > { %v16187_v5 = vpop.f32.mrf.mxu1 }
 0x345   : > { %v16189_v43 = vpop.f32.mrf.mxu1 }
 0x347   : > { %v16191_v6 = vpop.f32.mrf.mxu1 }
 0x34e   : > { %v16193_v25 = vpop.f32.mrf.mxu1 }
 0x350   : > { %v16195_v46 = vpop.f32.mrf.mxu1 }
 0x351   : > { %19434 = vst [vmem:[#allocation88_spill] sm:$0xff] %v16195_v46 }
 0x358   : > { %v16197_v53 = vpop.f32.mrf.mxu1 }
 0x359   : > { %19435 = vst [vmem:[#allocation72_spill] sm:$0xff] %v16197_v53 }
 0x35a   : > { %v16199_v36 = vpop.f32.mrf.mxu1 }
 0x35b   : > { %19436 = vst [vmem:[#allocation10_spill] sm:$0xff] %v16199_v36 }
 0x361   : > { %v16201_v39 = vpop.f32.mrf.mxu1 }
 0x362   : > { %19437 = vst [vmem:[#allocation8_spill] sm:$0xff] %v16201_v39 }
 0x363   : > { %v16206_v11 = vpop.f32.mrf.mxu1 }
 0x364   : > { %19438 = vst [vmem:[#allocation80_spill] sm:$0xff] %v16206_v11 }
 0x36a   : > { %v16208_v56 = vpop.f32.mrf.mxu1 }
 0x36b   : > { %19439 = vst [vmem:[#allocation12_spill] sm:$0xff] %v16208_v56 }
 0x36c   : > { %v16210_v9 = vpop.f32.mrf.mxu1 }
 0x36d   : > { %19440 = vst [vmem:[#allocation79_spill] sm:$0xff] %v16210_v9 }
 0x36e   : > { %v12550_v55 = vpop.f32.mrf.mxu1 }
 0x36f   : > { %v6124_v10 = vadd.f32 %v12550_v55, %v12506_v57 }
 0x370   : > { %v6118_v41 = vpop.f32.mrf.mxu1 }
 0x371   : > { %v6997_v4 = vadd.f32 %v12594_v27, %v6124_v10  ;;  %v6119_v54 = vadd.f32 %v6118_v41, %v5381_v34 }
 0x372   : > { %v12553_v0 = vpop.f32.mrf.mxu1 }
 0x373   : > { %v7032_v59 = vadd.f32 %v16215_v38, %v6997_v4  ;;  %v6996_v1 = vadd.f32 %v6857_v44, %v6119_v54  ;;  %v6134_v60 = vadd.f32 %v12553_v0, %v12509_v3 }
 0x374   : > { %v6128_v32 = vpop.f32.mrf.mxu1 }
 0x375   : > { %v7060_v20 = vmax.f32 %v7032_v59, 0.0  ;;  %v7031_v63 = vadd.f32 %v16215_v38, %v6996_v1  ;;  %v6999_v62 = vadd.f32 %v12597_v35, %v6134_v60  ;;  %v6129_v26 = vadd.f32 %v6128_v32, %v5391_v42 }
 0x376   : > { %v12556_v7 = vpop.f32.mrf.mxu1 }
 0x377   : > { %v7132_v2 = vcombine.high %v7060_v20, %v7060_v20  ;;  %v7139_v52 = vrot.slane %v7060_v20, %v19092_v12  ;;  %v7059_v58 = vmax.f32 %v7031_v63, 0.0  ;;  %v7034_v14 = vadd.f32 %v16215_v38, %v6999_v62 }
 0x378   : > { %v6998_v33 = vadd.f32 %v6867_v28, %v6129_v26  ;;  %v16231_v3 = vadd.f32 %v12556_v7, %v16158_v21 }
 0x379   : > { %v16222_v18 = vrot.slane %v7132_v2, %v19092_v12  ;;  %v7147_v37 = vcombine.high %v7139_v52, %v7139_v52  ;;  %v7732_v19 = vsel %vm7703_vm10, %v7139_v52, -inf  ;;  %v7115_v13 = vcombine.high %v7059_v58, %v7059_v58 }
 0x37a   : > { %v7733_v24 = vrot.slane %v7732_v19, 4  ;;  %v7122_v40 = vrot.slane %v7059_v58, %v19092_v12  ;;  %v7062_v15 = vmax.f32 %v7034_v14, 0.0  ;;  %v7033_v62 = vadd.f32 %v16215_v38, %v6998_v33 }
 0x37b   : > { %v7739_v23 = vsel %vm7703_vm10, %v7147_v37, -inf  ;;  %v7746_v57 = vsel %vm7703_vm10, %v16222_v18, -inf  ;;  %v7129_v34 = vrot.slane %v7115_v13, %v19092_v12 }
 0x37c   : > { %v7734_v42 = vmax.f32 %v7732_v19, %v7733_v24  ;;  %v7740_v49 = vrot.slane %v7739_v23, 4  ;;  %v7747_v45 = vrot.slane %v7746_v57, 4  ;;  %v7130_v27 = vcombine.high %v7122_v40, %v7122_v40 }
 0x37d   : > { %v7131_v55 = vcombine.high %v7129_v34, %v7129_v34  ;;  %v7704_v10 = vsel %vm7703_vm10, %v7122_v40, -inf  ;;  %v7718_v44 = vsel %vm7703_vm10, %v7129_v34, -inf  ;;  %v7166_v41 = vcombine.high %v7062_v15, %v7062_v15 }
 0x37e   : > { %v7735_v4 = vrot.slane %v7734_v42, 2  ;;  %v7741_v54 = vmax.f32 %v7739_v23, %v7740_v49  ;;  %v16235_v0 = vmax.f32 %v7746_v57, %v7747_v45  ;;  %v7705_v59 = vrot.slane %v7704_v10, 4 }
 0x37f   : > { %v7711_v1 = vsel %vm7703_vm10, %v7130_v27, -inf  ;;  %v7719_v60 = vrot.slane %v7718_v44, 4  ;;  %v7725_v21 = vsel %vm7703_vm10, %v7131_v55, -inf  ;;  %v7173_v35 = vrot.slane %v7062_v15, %v19092_v12 }
 0x380   : > { %v7736_v20 = vmax.f32 %v7734_v42, %v7735_v4  ;;  %v7706_v63 = vmax.f32 %v7704_v10, %v7705_v59  ;;  %v7712_v26 = vrot.slane %v7711_v1, 4  ;;  %v7726_v52 = vrot.slane %v7725_v21, 4 }
 0x381   : > { %v7720_v2 = vmax.f32 %v7718_v44, %v7719_v60  ;;  %v7180_v58 = vrot.slane %v7166_v41, %v19092_v12  ;;  %v7742_v14 = vrot.slane %v7741_v54, 2  ;;  %v7181_v37 = vcombine.high %v7173_v35, %v7173_v35 }
 0x382   : > { %v7707_v28 = vrot.slane %v7706_v63, 2  ;;  %v7713_v19 = vmax.f32 %v7711_v1, %v7712_v26  ;;  %v7727_v24 = vmax.f32 %v7725_v21, %v7726_v52  ;;  %v7737_v15 = vrot.slane %v7736_v20, 1  ;;  %v6138_v26 = vpop.f32.mrf.mxu1 }
 0x383   : > { %v7721_v13 = vrot.slane %v7720_v2, 2  ;;  %v7182_v40 = vcombine.high %v7180_v58, %v7180_v58  ;;  %v7788_v57 = vsel %vm7703_vm10, %v7173_v35, -inf  ;;  %v7795_v33 = vsel %vm7703_vm10, %v7181_v37, -inf }
 0x384   : > { %v7708_v23 = vmax.f32 %v7706_v63, %v7707_v28  ;;  %v7714_v34 = vrot.slane %v7713_v19, 2  ;;  %v7728_v49 = vrot.slane %v7727_v24, 2  ;;  %v7789_v45 = vrot.slane %v7788_v57, 4 }
 0x385   : > { %v7722_v42 = vmax.f32 %v7720_v2, %v7721_v13  ;;  %v7796_v55 = vrot.slane %v7795_v33, 4  ;;  %v7802_v10 = vsel %vm7703_vm10, %v7180_v58, -inf  ;;  %v7809_v44 = vsel %vm7703_vm10, %v7182_v40, -inf  ;;  %v12600_v58 = vpop.f32.mrf.mxu0 }
 0x386   : > { %v7709_v27 = vrot.slane %v7708_v23, 1  ;;  %v16249_v41 = vmax.f32 %v7741_v54, %v7742_v14  ;;  %v7715_v4 = vmax.f32 %v7713_v19, %v7714_v34  ;;  %v7790_v1 = vmax.f32 %v7788_v57, %v7789_v45 }
 0x387   : > { %v7723_v59 = vrot.slane %v7722_v42, 1  ;;  %v16251_v60 = vmax.f32 %v7736_v20, %v7737_v15  ;;  %v7797_v21 = vmax.f32 %v7795_v33, %v7796_v55  ;;  %v7803_v35 = vrot.slane %v7802_v10, 4 }
 0x388   : > { %v7810_v63 = vrot.slane %v7809_v44, 4  ;;  %v16253_v2 = vmax.f32 %v7708_v23, %v7709_v27  ;;  %v7716_v52 = vrot.slane %v7715_v4, 1  ;;  %v16255_v28 = vmax.f32 %v7727_v24, %v7728_v49 }
 0x389   : > { %19441 = vst [vmem:[#allocation14_spill] sm:$0xff] %v16251_v60  ;;  %v7791_v37 = vrot.slane %v7790_v1, 2  ;;  %v7798_v13 = vrot.slane %v7797_v21, 2  ;;  %v7804_v40 = vmax.f32 %v7802_v10, %v7803_v35  ;;  %v7061_v14 = vmax.f32 %v7033_v62, 0.0  ;;  %v6877_v10 = vpop.f32.mrf.mxu0 }
 0x38a   : > { %v7811_v54 = vmax.f32 %v7809_v44, %v7810_v63  ;;  %v16257_v19 = vmax.f32 %v7722_v42, %v7723_v59  ;;  %v7001_v20 = vadd.f32 %v12600_v58, %v16231_v3  ;;  %v6139_v15 = vadd.f32 %v6138_v26, %v16160_v51 }
 0x38b   : > { %v7792_v57 = vmax.f32 %v7790_v1, %v7791_v37  ;;  %v7799_v33 = vmax.f32 %v7797_v21, %v7798_v13  ;;  %v7805_v34 = vrot.slane %v7804_v40, 2  ;;  %v7149_v45 = vcombine.high %v7061_v14, %v7061_v14 }
 0x38c   : > { %19442 = vst [vmem:[#allocation16_spill] sm:$0xff] %v16257_v19  ;;  %v7812_v23 = vrot.slane %v7811_v54, 2  ;;  %v7156_v27 = vrot.slane %v7061_v14, %v19092_v12  ;;  %v7036_v55 = vadd.f32 %v16215_v38, %v7001_v20  ;;  %v16267_v59 = vmax.f32 %v7715_v4, %v7716_v52 }
 0x38d   : > { %v7793_v49 = vrot.slane %v7792_v57, 1  ;;  %v7800_v62 = vrot.slane %v7799_v33, 1  ;;  %v7806_v42 = vmax.f32 %v7804_v40, %v7805_v34  ;;  %v7163_v3 = vrot.slane %v7149_v45, %v19092_v12 }
 0x38e   : > { %v16264_v44 = vmax.f32 %v7811_v54, %v7812_v23  ;;  %v7164_v51 = vcombine.high %v7156_v27, %v7156_v27  ;;  %v7064_v1 = vmax.f32 %v7036_v55, 0.0  ;;  %v7000_v21 = vadd.f32 %v6877_v10, %v6139_v15 }
 0x38f   : > { %v16269_v35 = vmax.f32 %v7792_v57, %v7793_v49  ;;  %v7807_v63 = vrot.slane %v7806_v42, 1  ;;  %v7165_v26 = vcombine.high %v7163_v3, %v7163_v3  ;;  %v7760_v37 = vsel %vm7703_vm10, %v7156_v27, -inf }
 0x390   : > { %v16272_v58 = vmax.f32 %v7799_v33, %v7800_v62  ;;  %v7767_v13 = vsel %vm7703_vm10, %v7164_v51, -inf  ;;  %v7774_v40 = vsel %vm7703_vm10, %v7163_v3, -inf  ;;  %v7200_v54 = vcombine.high %v7064_v1, %v7064_v1  ;;  %v12559_v51 = vpop.f32.mrf.mxu1 }
 0x391   : > { %19443 = vst [vmem:[#allocation96_spill] sm:$0xff] %v16269_v35  ;;  %v7768_v4 = vrot.slane %v7767_v13, 4  ;;  %v7775_v52 = vrot.slane %v7774_v40, 4  ;;  %v7781_v20 = vsel %vm7703_vm10, %v7165_v26, -inf  ;;  %v7761_v15 = vrot.slane %v7760_v37, 4 }
 0x392   : > { %19444 = vst [vmem:[#allocation64_spill] sm:$0xff] %v16272_v58  ;;  %v7782_v57 = vrot.slane %v7781_v20, 4  ;;  %v7207_v34 = vrot.slane %v7064_v1, %v19092_v12  ;;  %v7214_v23 = vrot.slane %v7200_v54, %v19092_v12  ;;  %v16280_v45 = vmax.f32 %v7806_v42, %v7807_v63  ;;  %v6148_v58 = vpop.f32.mrf.mxu1 }
 0x393   : > { %v7769_v33 = vmax.f32 %v7767_v13, %v7768_v4  ;;  %v7776_v49 = vmax.f32 %v7774_v40, %v7775_v52  ;;  %v7035_v27 = vadd.f32 %v16215_v38, %v7000_v21  ;;  %v12603_v52 = vpop.f32.mrf.mxu0 }
 0x394   : > { %v7783_v55 = vmax.f32 %v7781_v20, %v7782_v57  ;;  %v7215_v10 = vcombine.high %v7207_v34, %v7207_v34  ;;  %v7216_v62 = vcombine.high %v7214_v23, %v7214_v23  ;;  %v7844_v3 = vsel %vm7703_vm10, %v7207_v34, -inf }
 0x395   : > { %v7770_v14 = vrot.slane %v7769_v33, 2  ;;  %v7777_v26 = vrot.slane %v7776_v49, 2  ;;  %v7845_v32 = vrot.slane %v7844_v3, 4  ;;  %v7858_v1 = vsel %vm7703_vm10, %v7214_v23, -inf }
 0x396   : > { %v7784_v24 = vrot.slane %v7783_v55, 2  ;;  %v7851_v42 = vsel %vm7703_vm10, %v7215_v10, -inf  ;;  %v7859_v63 = vrot.slane %v7858_v1, 4  ;;  %v7865_v13 = vsel %vm7703_vm10, %v7216_v62, -inf }
 0x397   : > { %v7771_v40 = vmax.f32 %v7769_v33, %v7770_v14  ;;  %v7778_v21 = vmax.f32 %v7776_v49, %v7777_v26  ;;  %v7846_v54 = vmax.f32 %v7844_v3, %v7845_v32  ;;  %v7852_v4 = vrot.slane %v7851_v42, 4  ;;  %v6887_v49 = vpop.f32.mrf.mxu0  ;;  %v12562_v3 = vpop.f32.mrf.mxu1 }
 0x398   : > { %v7785_v20 = vmax.f32 %v7783_v55, %v7784_v24  ;;  %v7860_v57 = vmax.f32 %v7858_v1, %v7859_v63  ;;  %v7866_v34 = vrot.slane %v7865_v13, 4  ;;  %v7063_v7 = vmax.f32 %v7035_v27, 0.0 }
 0x399   : > { %v7772_v9 = vrot.slane %v7771_v40, 1  ;;  %v7779_v56 = vrot.slane %v7778_v21, 1  ;;  %v7847_v11 = vrot.slane %v7846_v54, 2  ;;  %v7853_v23 = vmax.f32 %v7851_v42, %v7852_v4  ;;  %v6158_v4 = vpop.f32.mrf.mxu1 }
 0x39a   : > { %v7786_v39 = vrot.slane %v7785_v20, 1  ;;  %v7861_v36 = vrot.slane %v7860_v57, 2  ;;  %v7867_v10 = vmax.f32 %v7865_v13, %v7866_v34  ;;  %v7183_v53 = vcombine.high %v7063_v7, %v7063_v7 }
 0x39b   : > { %v16287_v46 = vmax.f32 %v7771_v40, %v7772_v9  ;;  %v16289_v14 = vmax.f32 %v7778_v21, %v7779_v56  ;;  %v7848_v32 = vmax.f32 %v7846_v54, %v7847_v11  ;;  %v7854_v33 = vrot.slane %v7853_v23, 2 }
 0x39c   : > { %v16291_v24 = vmax.f32 %v7785_v20, %v7786_v39  ;;  %v7862_v55 = vmax.f32 %v7860_v57, %v7861_v36  ;;  %v7868_v27 = vrot.slane %v7867_v10, 2  ;;  %v7190_v62 = vrot.slane %v7063_v7, %v19092_v12 }
 0x39d   : > { %19445 = vst [vmem:[#allocation97_spill] sm:$0xff] %v16287_v46  ;;  %v16294_v26 = vmax.f32 %v7760_v37, %v7761_v15  ;;  %v7849_v1 = vrot.slane %v7848_v32, 1  ;;  %v7855_v42 = vmax.f32 %v7853_v23, %v7854_v33  ;;  %v7197_v63 = vrot.slane %v7183_v53, %v19092_v12  ;;  %v12606_v53 = vpop.f32.mrf.mxu0 }
 0x39e   : > { %v16300_v56 = vsel %vm8587_vm11, %v16289_v14, %v16287_v46  ;;  %v16305_v39 = vsel %vm8587_vm11, %v16291_v24, %v16289_v14  ;;  %v7198_v36 = vcombine.high %v7190_v62, %v7190_v62  ;;  %v6154_v11 = vadd.f32 %v12559_v51, %v16162_v22 }
 0x39f   : > { %19446 = vst [vmem:[#allocation18_spill] sm:$0xff] %v16300_v56  ;;  %19447 = vst [vmem:[#allocation95_spill] sm:$0xff] %v16305_v39  ;;  %v7863_v9 = vrot.slane %v7862_v55, 1  ;;  %v16308_v7 = vmax.f32 %v7867_v10, %v7868_v27  ;;  %v7199_v37 = vcombine.high %v7197_v63, %v7197_v63  ;;  %v7816_v15 = vsel %vm7703_vm10, %v7190_v62, -inf }
 0x3a0   : > { %v16311_v13 = vmax.f32 %v7848_v32, %v7849_v1  ;;  %v7817_v40 = vrot.slane %v7816_v15, 4  ;;  %v7823_v21 = vsel %vm7703_vm10, %v7198_v36, -inf  ;;  %v7830_v54 = vsel %vm7703_vm10, %v7197_v63, -inf  ;;  %v6897_v36 = vpop.f32.mrf.mxu0 }
 0x3a1   : > { %19448 = vst [vmem:[#allocation98_spill] sm:$0xff] %v16308_v7  ;;  %v7856_v20 = vrot.slane %v7855_v42, 1  ;;  %v7824_v57 = vrot.slane %v7823_v21, 4  ;;  %v7831_v34 = vrot.slane %v7830_v54, 4  ;;  %v7837_v22 = vsel %vm7703_vm10, %v7199_v37, -inf }
 0x3a2   : > { %19449 = vst [vmem:[#allocation21_spill] sm:$0xff] %v16311_v13  ;;  %v7818_v51 = vmax.f32 %v7816_v15, %v7817_v40  ;;  %v7838_v23 = vrot.slane %v7837_v22, 4  ;;  %v7003_v10 = vadd.f32 %v12603_v52, %v6154_v11  ;;  %v6149_v33 = vadd.f32 %v6148_v58, %v16164_v50 }
 0x3a3   : > { %v7825_v27 = vmax.f32 %v7823_v21, %v7824_v57  ;;  %v7832_v62 = vmax.f32 %v7830_v54, %v7831_v34  ;;  %v6164_v32 = vadd.f32 %v12562_v3, %v16169_v31  ;;  %v6159_v1 = vadd.f32 %v6158_v4, %v16171_v29  ;;  %v12565_v21 = vpop.f32.mrf.mxu1 }
 0x3a4   : > { %v7819_v39 = vrot.slane %v7818_v51, 2  ;;  %v7839_v63 = vmax.f32 %v7837_v22, %v7838_v23  ;;  %v7038_v13 = vadd.f32 %v16215_v38, %v7003_v10  ;;  %v7002_v7 = vadd.f32 %v6887_v49, %v6149_v33 }
 0x3a5   : > { %v7826_v35 = vrot.slane %v7825_v27, 2  ;;  %v7833_v56 = vrot.slane %v7832_v62, 2  ;;  %v7005_v37 = vadd.f32 %v12606_v53, %v6164_v32  ;;  %v7004_v15 = vadd.f32 %v6897_v36, %v6159_v1 }
 0x3a6   : > { %v7820_v40 = vmax.f32 %v7818_v51, %v7819_v39  ;;  %v7840_v52 = vrot.slane %v7839_v63, 2  ;;  %v7066_v11 = vmax.f32 %v7038_v13, 0.0  ;;  %v7037_v50 = vadd.f32 %v16215_v38, %v7002_v7 }
 0x3a7   : > { %v16321_v58 = vmax.f32 %v7855_v42, %v7856_v20  ;;  %v16323_v31 = vmax.f32 %v7862_v55, %v7863_v9  ;;  %v7040_v29 = vadd.f32 %v16215_v38, %v7005_v37  ;;  %v7039_v3 = vadd.f32 %v16215_v38, %v7004_v15 }
 0x3a8   : > { %v7821_v54 = vrot.slane %v7820_v40, 1  ;;  %v7841_v49 = vmax.f32 %v7839_v63, %v7840_v52  ;;  %v7234_v4 = vcombine.high %v7066_v11, %v7066_v11  ;;  %v7241_v53 = vrot.slane %v7066_v11, %v19092_v12 }
 0x3a9   : > { %19450 = vst [vmem:[#allocation92_spill] sm:$0xff] %v16321_v58  ;;  %19451 = vst [vmem:[#allocation19_spill] sm:$0xff] %v16323_v31  ;;  %v16328_v57 = vmax.f32 %v7825_v27, %v7826_v35  ;;  %v16330_v39 = vmax.f32 %v7832_v62, %v7833_v56  ;;  %v7065_v13 = vmax.f32 %v7037_v50, 0.0  ;;  %v7068_v7 = vmax.f32 %v7040_v29, 0.0 }
 0x3aa   : > { %v7248_v42 = vrot.slane %v7234_v4, %v19092_v12  ;;  %v7249_v55 = vcombine.high %v7241_v53, %v7241_v53  ;;  %v16333_v9 = vmax.f32 %v7039_v3, 0.0  ;;  %v16336_v20 = vadd.f32 %v12565_v21, %v16173_v17 }
 0x3ab   : > { %v16338_v34 = vmax.f32 %v7820_v40, %v7821_v54  ;;  %v7900_v22 = vsel %vm7703_vm10, %v7241_v53, -inf  ;;  %v7217_v51 = vcombine.high %v7065_v13, %v7065_v13  ;;  %v7224_v35 = vrot.slane %v7065_v13, %v19092_v12 }
 0x3ac   : > { %v7842_v23 = vrot.slane %v7841_v49, 1  ;;  %v7250_v56 = vcombine.high %v7248_v42, %v7248_v42  ;;  %v7901_v10 = vrot.slane %v7900_v22, 4  ;;  %v7907_v33 = vsel %vm7703_vm10, %v7249_v55, -inf }
 0x3ad   : > { %19452 = vst [vmem:[#allocation26_spill] sm:$0xff] %v16338_v34  ;;  %v7908_v27 = vrot.slane %v7907_v33, 4  ;;  %v7914_v62 = vsel %vm7703_vm10, %v7248_v42, -inf  ;;  %v16345_v32 = vrot.slane %v7217_v51, %v19092_v12  ;;  %v7232_v17 = vcombine.high %v7224_v35, %v7224_v35 }
 0x3ae   : > { %v7902_v1 = vmax.f32 %v7900_v22, %v7901_v10  ;;  %v7915_v36 = vrot.slane %v7914_v62, 4  ;;  %v7921_v63 = vsel %vm7703_vm10, %v7250_v56, -inf  ;;  %v7872_v37 = vsel %vm7703_vm10, %v7224_v35, -inf }
 0x3af   : > { %19453 = vst [vmem:[#allocation20_spill] sm:$0xff] %v16345_v32  ;;  %v7909_v15 = vmax.f32 %v7907_v33, %v7908_v27  ;;  %v7922_v40 = vrot.slane %v7921_v63, 4  ;;  %v7873_v52 = vrot.slane %v7872_v37, 4  ;;  %v7268_v11 = vcombine.high %v7068_v7, %v7068_v7 }
 0x3b0   : > { %v16349_v50 = vmax.f32 %v7841_v49, %v7842_v23  ;;  %v7903_v29 = vrot.slane %v7902_v1, 2  ;;  %v7916_v3 = vmax.f32 %v7914_v62, %v7915_v36  ;;  %v7879_v21 = vsel %vm7703_vm10, %v7232_v17, -inf  ;;  %v6168_v17 = vpop.f32.mrf.mxu1 }
 0x3b1   : > { %v7910_v54 = vrot.slane %v7909_v15, 2  ;;  %v7923_v4 = vmax.f32 %v7921_v63, %v7922_v40  ;;  %v7874_v53 = vmax.f32 %v7872_v37, %v7873_v52  ;;  %v7880_v13 = vrot.slane %v7879_v21, 4 }
 0x3b2   : > { %19454 = vst [vmem:[#allocation34_spill] sm:$0xff] %v16349_v50  ;;  %v7904_v42 = vmax.f32 %v7902_v1, %v7903_v29  ;;  %v7917_v55 = vrot.slane %v7916_v3, 2  ;;  %v16354_v22 = vsel %vm7703_vm10, %v16345_v32, -inf  ;;  %v7275_v51 = vrot.slane %v7068_v7, %v19092_v12  ;;  %v12609_v29 = vpop.f32.mrf.mxu0 }
 0x3b3   : > { %19455 = vst [vmem:[#allocation31_spill] sm:$0xff] %v16354_v22  ;;  %v7911_v35 = vmax.f32 %v7909_v15, %v7910_v54  ;;  %v7924_v56 = vrot.slane %v7923_v4, 2  ;;  %v7875_v49 = vrot.slane %v7874_v53, 2  ;;  %v16357_v23 = vmax.f32 %v7879_v21, %v7880_v13 }
 0x3b4   : > { %v7905_v10 = vrot.slane %v7904_v42, 1  ;;  %v7918_v33 = vmax.f32 %v7916_v3, %v7917_v55  ;;  %v7282_v27 = vrot.slane %v7268_v11, %v19092_v12  ;;  %v7283_v62 = vcombine.high %v7275_v51, %v7275_v51 }
 0x3b5   : > { %v7912_v36 = vrot.slane %v7911_v35, 1  ;;  %v16360_v1 = vmax.f32 %v7923_v4, %v7924_v56  ;;  %v16364_v37 = vmax.f32 %v7874_v53, %v7875_v49  ;;  %v7956_v52 = vsel %vm7703_vm10, %v7275_v51, -inf  ;;  %v12568_v56 = vpop.f32.mrf.mxu1  ;;  %v6907_v4 = vpop.f32.mrf.mxu0 }
 0x3b6   : > { %v7919_v7 = vrot.slane %v7918_v33, 1  ;;  %v7284_v40 = vcombine.high %v7282_v27, %v7282_v27  ;;  %v16368_v3 = vmax.f32 %v7904_v42, %v7905_v10  ;;  %v7957_v54 = vrot.slane %v7956_v52, 4 }
 0x3b7   : > { %19456 = vst [vmem:[#allocation22_spill] sm:$0xff] %v16360_v1  ;;  %v16370_v11 = vmax.f32 %v7911_v35, %v7912_v36  ;;  %v7963_v13 = vsel %vm7703_vm10, %v7283_v62, -inf  ;;  %v7970_v53 = vsel %vm7703_vm10, %v7282_v27, -inf  ;;  %v7251_v35 = vcombine.high %v16333_v9, %v16333_v9 }
 0x3b8   : > { %19457 = vst [vmem:[#allocation25_spill] sm:$0xff] %v16368_v3  ;;  %v7977_v55 = vsel %vm7703_vm10, %v7284_v40, -inf  ;;  %v7964_v51 = vrot.slane %v7963_v13, 4  ;;  %v7971_v63 = vrot.slane %v7970_v53, 4  ;;  %v16378_v10 = vmax.f32 %v7918_v33, %v7919_v7 }
 0x3b9   : > { %19458 = vst [vmem:[#allocation32_spill] sm:$0xff] %v16370_v11  ;;  %v7978_v42 = vrot.slane %v7977_v55, 4  ;;  %v7258_v36 = vrot.slane %v16333_v9, %v19092_v12  ;;  %v7007_v62 = vadd.f32 %v12609_v29, %v16336_v20  ;;  %v16385_v27 = vmax.f32 %v7956_v52, %v7957_v54  ;;  %v12612_v54 = vpop.f32.mrf.mxu0 }
 0x3ba   : > { %19459 = vst [vmem:[#allocation30_spill] sm:$0xff] %v16378_v10  ;;  %v7965_v40 = vmax.f32 %v7963_v13, %v7964_v51  ;;  %v7972_v15 = vmax.f32 %v7970_v53, %v7971_v63  ;;  %v16388_v49 = vrot.slane %v7251_v35, %v19092_v12  ;;  %v6178_v10 = vpop.f32.mrf.mxu1  ;;  %v6169_v29 = vadd.f32 %v6168_v17, %v16175_v8 }
 0x3bb   : > { %19460 = vst [vmem:[#allocation38_spill] sm:$0xff] %v16385_v27  ;;  %v7979_v21 = vmax.f32 %v7977_v55, %v7978_v42  ;;  %v7266_v32 = vcombine.high %v7258_v36, %v7258_v36  ;;  %v7928_v33 = vsel %vm7703_vm10, %v7258_v36, -inf  ;;  %v7042_v7 = vadd.f32 %v16215_v38, %v7007_v62 }
 0x3bc   : > { %v7966_v11 = vrot.slane %v7965_v40, 2  ;;  %v7973_v3 = vrot.slane %v7972_v15, 2  ;;  %v7929_v1 = vrot.slane %v7928_v33, 4  ;;  %v7942_v52 = vsel %vm7703_vm10, %v16388_v49, -inf  ;;  %v12571_v27 = vpop.f32.mrf.mxu1 }
 0x3bd   : > { %v7980_v9 = vrot.slane %v7979_v21, 2  ;;  %v7935_v20 = vsel %vm7703_vm10, %v7266_v32, -inf  ;;  %v7070_v63 = vmax.f32 %v7042_v7, 0.0  ;;  %v7943_v35 = vrot.slane %v7942_v52, 4 }
 0x3be   : > { %v7967_v13 = vmax.f32 %v7965_v40, %v7966_v11  ;;  %v7974_v53 = vmax.f32 %v7972_v15, %v7973_v3  ;;  %v7930_v51 = vmax.f32 %v7928_v33, %v7929_v1  ;;  %v7936_v42 = vrot.slane %v7935_v20, 4  ;;  %v6917_v15 = vpop.f32.mrf.mxu0 }
 0x3bf   : > { %v16396_v55 = vmax.f32 %v7979_v21, %v7980_v9  ;;  %v7302_v36 = vcombine.high %v7070_v63, %v7070_v63  ;;  %v7309_v62 = vrot.slane %v7070_v63, %v19092_v12  ;;  %v6184_v50 = vadd.f32 %v12568_v56, %v16177_v30  ;;  %v6188_v56 = vpop.f32.mrf.mxu1 }
 0x3c0   : > { %v7968_v31 = vrot.slane %v7967_v13, 1  ;;  %v7975_v32 = vrot.slane %v7974_v53, 1  ;;  %v7931_v58 = vrot.slane %v7930_v51, 2  ;;  %v7937_v7 = vmax.f32 %v7935_v20, %v7936_v42 }
 0x3c1   : > { %v16400_v22 = vmax.f32 %v7942_v52, %v7943_v35  ;;  %v7316_v8 = vrot.slane %v7302_v36, %v19092_v12  ;;  %v7317_v17 = vcombine.high %v7309_v62, %v7309_v62  ;;  %v8012_v21 = vsel %vm7703_vm10, %v7309_v62, -inf }
 0x3c2   : > { %v7932_v11 = vmax.f32 %v7930_v51, %v7931_v58  ;;  %v16407_v40 = vmax.f32 %v7967_v13, %v7968_v31  ;;  %v7938_v33 = vrot.slane %v7937_v7, 2  ;;  %v8013_v30 = vrot.slane %v8012_v21, 4  ;;  %v12615_v31 = vpop.f32.mrf.mxu0 }
 0x3c3   : > { %v7318_v9 = vcombine.high %v7316_v8, %v7316_v8  ;;  %v16409_v20 = vmax.f32 %v7974_v53, %v7975_v32  ;;  %v16413_v63 = vsel %vm7703_vm10, %v7317_v17, -inf  ;;  %v7006_v42 = vadd.f32 %v6907_v4, %v6169_v29  ;;  %v12574_v29 = vpop.f32.mrf.mxu1 }
 0x3c4   : > { %19461 = vst [vmem:[#allocation28_spill] sm:$0xff] %v16407_v40  ;;  %19463 = vst [vmem:[#allocation43_spill] sm:$0xff] %v16413_v63  ;;  %v7933_v35 = vrot.slane %v7932_v11, 1  ;;  %v16415_v36 = vmax.f32 %v7937_v7, %v7938_v33  ;;  %v8014_v58 = vmax.f32 %v8012_v21, %v8013_v30  ;;  %v16418_v51 = vsel %vm7703_vm10, %v7316_v8, -inf }
 0x3c5   : > { %19462 = vst [vmem:[#allocation33_spill] sm:$0xff] %v16409_v20  ;;  %19464 = vst [vmem:[#allocation27_spill] sm:$0xff] %v16418_v51  ;;  %v8033_v62 = vsel %vm7703_vm10, %v7318_v9, -inf  ;;  %v7041_v53 = vadd.f32 %v16215_v38, %v7006_v42  ;;  %v7009_v32 = vadd.f32 %v12612_v54, %v6184_v50  ;;  %v6179_v17 = vadd.f32 %v6178_v10, %v16179_v16  ;;  %v6927_v50 = vpop.f32.mrf.mxu0 }
 0x3c6   : > { %v8015_v1 = vrot.slane %v8014_v58, 2  ;;  %v8034_v3 = vrot.slane %v8033_v62, 4  ;;  %v6194_v4 = vadd.f32 %v12571_v27, %v16181_v61  ;;  %v6189_v33 = vadd.f32 %v6188_v56, %v16183_v48 }
 0x3c7   : > { %v7069_v21 = vmax.f32 %v7041_v53, 0.0  ;;  %v7044_v8 = vadd.f32 %v16215_v38, %v7009_v32  ;;  %v16428_v30 = vmax.f32 %v7932_v11, %v7933_v35  ;;  %v7008_v13 = vadd.f32 %v6917_v15, %v6179_v17  ;;  %v12618_v17 = vpop.f32.mrf.mxu0 }
 0x3c8   : > { %v8035_v9 = vmax.f32 %v8033_v62, %v8034_v3  ;;  %v7011_v42 = vadd.f32 %v12615_v31, %v6194_v4  ;;  %v6204_v61 = vadd.f32 %v12574_v29, %v16185_v47  ;;  %v16432_v10 = vmax.f32 %v8014_v58, %v8015_v1 }
 0x3c9   : > { %19465 = vst [vmem:[#allocation29_spill] sm:$0xff] %v16428_v30  ;;  %v7285_v54 = vcombine.high %v7069_v21, %v7069_v21  ;;  %v7292_v52 = vrot.slane %v7069_v21, %v19092_v12  ;;  %v7072_v16 = vmax.f32 %v7044_v8, 0.0  ;;  %v7043_v53 = vadd.f32 %v16215_v38, %v7008_v13 }
 0x3ca   : > { %19466 = vst [vmem:[#allocation39_spill] sm:$0xff] %v16432_v10  ;;  %v8036_v27 = vrot.slane %v8035_v9, 2  ;;  %v7010_v32 = vadd.f32 %v6927_v50, %v6189_v33  ;;  %v7046_v62 = vadd.f32 %v16215_v38, %v7011_v42 }
 0x3cb   : > { %v7299_v48 = vrot.slane %v7285_v54, %v19092_v12  ;;  %v7300_v11 = vcombine.high %v7292_v52, %v7292_v52  ;;  %v7984_v3 = vsel %vm7703_vm10, %v7292_v52, -inf  ;;  %v7336_v15 = vcombine.high %v7072_v16, %v7072_v16 }
 0x3cc   : > { %v7985_v56 = vrot.slane %v7984_v3, 4  ;;  %v7343_v35 = vrot.slane %v7072_v16, %v19092_v12  ;;  %v7071_v31 = vmax.f32 %v7043_v53, 0.0  ;;  %v7013_v52 = vadd.f32 %v12618_v17, %v6204_v61 }
 0x3cd   : > { %v7301_v47 = vcombine.high %v7299_v48, %v7299_v48  ;;  %v7991_v1 = vsel %vm7703_vm10, %v7300_v11, -inf  ;;  %v7998_v58 = vsel %vm7703_vm10, %v7299_v48, -inf  ;;  %v16442_v13 = vrot.slane %v7336_v15, %v19092_v12 }
 0x3ce   : > { %v7986_v4 = vmax.f32 %v7984_v3, %v7985_v56  ;;  %v7992_v29 = vrot.slane %v7991_v1, 4  ;;  %v7999_v21 = vrot.slane %v7998_v58, 4  ;;  %v16444_v8 = vmax.f32 %v8035_v9, %v8036_v27 }
 0x3cf   : > { %19467 = vst [vmem:[#allocation41_spill] sm:$0xff] %v16442_v13  ;;  %v8005_v33 = vsel %vm7703_vm10, %v7301_v47, -inf  ;;  %v7351_v50 = vcombine.high %v7343_v35, %v7343_v35  ;;  %v8068_v42 = vsel %vm7703_vm10, %v7343_v35, -inf  ;;  %v16453_v3 = vsel %vm7703_vm10, %v16442_v13, -inf }
 0x3d0   : > { %19468 = vst [vmem:[#allocation71_spill] sm:$0xff] %v16444_v8  ;;  %v7987_v54 = vrot.slane %v7986_v4, 2  ;;  %v7993_v16 = vmax.f32 %v7991_v1, %v7992_v29  ;;  %v8000_v53 = vmax.f32 %v7998_v58, %v7999_v21  ;;  %v8006_v11 = vrot.slane %v8005_v33, 4  ;;  %19470 = vst [vmem:[#allocation42_spill] sm:$0xff] %v16453_v3 }
 0x3d1   : > { %v8069_v7 = vrot.slane %v8068_v42, 4  ;;  %v16449_v48 = vsel %vm7703_vm10, %v7351_v50, -inf  ;;  %v7319_v61 = vcombine.high %v7071_v31, %v7071_v31  ;;  %v7326_v1 = vrot.slane %v7071_v31, %v19092_v12 }
 0x3d2   : > { %19469 = vst [vmem:[#allocation37_spill] sm:$0xff] %v16449_v48  ;;  %v7988_v9 = vmax.f32 %v7986_v4, %v7987_v54  ;;  %v7994_v27 = vrot.slane %v7993_v16, 2  ;;  %v8001_v15 = vrot.slane %v8000_v53, 2  ;;  %v16455_v56 = vmax.f32 %v8005_v33, %v8006_v11 }
 0x3d3   : > { %v8070_v47 = vmax.f32 %v8068_v42, %v8069_v7  ;;  %v7333_v54 = vrot.slane %v7319_v61, %v19092_v12  ;;  %v7334_v33 = vcombine.high %v7326_v1, %v7326_v1  ;;  %v8040_v11 = vsel %vm7703_vm10, %v7326_v1, -inf }
 0x3d4   : > { %19471 = vst [vmem:[#allocation76_spill] sm:$0xff] %v16455_v56  ;;  %v7989_v58 = vrot.slane %v7988_v9, 1  ;;  %v7995_v29 = vmax.f32 %v7993_v16, %v7994_v27  ;;  %v16461_v21 = vmax.f32 %v8000_v53, %v8001_v15  ;;  %v8041_v42 = vrot.slane %v8040_v11, 4 }
 0x3d5   : > { %v8071_v7 = vrot.slane %v8070_v47, 2  ;;  %v7335_v13 = vcombine.high %v7333_v54, %v7333_v54  ;;  %v8047_v16 = vsel %vm7703_vm10, %v7334_v33, -inf  ;;  %v8054_v53 = vsel %vm7703_vm10, %v7333_v54, -inf }
 0x3d6   : > { %19472 = vst [vmem:[#allocation23_spill] sm:$0xff] %v16461_v21  ;;  %v16467_v35 = vmax.f32 %v7988_v9, %v7989_v58  ;;  %v7996_v31 = vrot.slane %v7995_v29, 1  ;;  %v8042_v15 = vmax.f32 %v8040_v11, %v8041_v42  ;;  %v8048_v4 = vrot.slane %v8047_v16, 4  ;;  %v6198_v21 = vpop.f32.mrf.mxu1 }
 0x3d7   : > { %v8055_v61 = vrot.slane %v8054_v53, 4  ;;  %v8061_v50 = vsel %vm7703_vm10, %v7335_v13, -inf  ;;  %v7074_v1 = vmax.f32 %v7046_v62, 0.0  ;;  %v7045_v9 = vadd.f32 %v16215_v38, %v7010_v32 }
 0x3d8   : > { %19473 = vst [vmem:[#allocation24_spill] sm:$0xff] %v16467_v35  ;;  %v7048_v58 = vadd.f32 %v16215_v38, %v7013_v52  ;;  %v8043_v17 = vrot.slane %v8042_v15, 2  ;;  %v8049_v3 = vmax.f32 %v8047_v16, %v8048_v4  ;;  %v8062_v35 = vrot.slane %v8061_v50, 4 }
 0x3d9   : > { %v8056_v48 = vmax.f32 %v8054_v53, %v8055_v61  ;;  %v16476_v8 = vmax.f32 %v8070_v47, %v8071_v7  ;;  %v7370_v33 = vcombine.high %v7074_v1, %v7074_v1  ;;  %v7377_v54 = vrot.slane %v7074_v1, %v19092_v12 }
 0x3da   : > { %v7073_v27 = vmax.f32 %v7045_v9, 0.0  ;;  %v8044_v11 = vmax.f32 %v8042_v15, %v8043_v17  ;;  %v8050_v42 = vrot.slane %v8049_v3, 2  ;;  %v16479_v20 = vmax.f32 %v8061_v50, %v8062_v35 }
 0x3db   : > { %19474 = vst [vmem:[#allocation36_spill] sm:$0xff] %v16476_v8  ;;  %v8057_v51 = vrot.slane %v8056_v48, 2  ;;  %v16482_v62 = vrot.slane %v7370_v33, %v19092_v12  ;;  %v7385_v32 = vcombine.high %v7377_v54, %v7377_v54  ;;  %v8124_v38 = vsel %vm7703_vm10, %v7377_v54, -inf }
 0x3dc   : > { %19475 = vst [vmem:[#allocation35_spill] sm:$0xff] %v16479_v20  ;;  %v7353_v13 = vcombine.high %v7073_v27, %v7073_v27  ;;  %v16485_v52 = vmax.f32 %v7995_v29, %v7996_v31  ;;  %v8045_v47 = vrot.slane %v8044_v11, 1  ;;  %v8051_v4 = vmax.f32 %v8049_v3, %v8050_v42 }
 0x3dd   : > { %19476 = vst [vmem:[#allocation47_spill] sm:$0xff] %v16482_v62  ;;  %v7076_v7 = vmax.f32 %v7048_v58, 0.0  ;;  %v16487_v16 = vmax.f32 %v8056_v48, %v8057_v51  ;;  %v8125_v53 = vrot.slane %v8124_v38, 4  ;;  %v8131_v17 = vsel %vm7703_vm10, %v7385_v32, -inf }
 0x3de   : > { %19477 = vst [vmem:[#allocation45_spill] sm:$0xff] %v16485_v52  ;;  %v8138_v35 = vsel %vm7703_vm10, %v16482_v62, -inf  ;;  %v8052_v50 = vrot.slane %v8051_v4, 1  ;;  %v8132_v1 = vrot.slane %v8131_v17, 4  ;;  %v7360_v3 = vrot.slane %v7073_v27, %v19092_v12 }
 0x3df   : > { %19478 = vst [vmem:[#allocation52_spill] sm:$0xff] %v16487_v16  ;;  %v8126_v29 = vmax.f32 %v8124_v38, %v8125_v53  ;;  %v8139_v31 = vrot.slane %v8138_v35, 4  ;;  %v7367_v51 = vrot.slane %v7353_v13, %v19092_v12  ;;  %v16497_v48 = vmax.f32 %v8044_v11, %v8045_v47 }
 0x3e0   : > { %v8133_v9 = vmax.f32 %v8131_v17, %v8132_v1  ;;  %v7404_v58 = vcombine.high %v7076_v7, %v7076_v7  ;;  %v7411_v33 = vrot.slane %v7076_v7, %v19092_v12  ;;  %v7368_v32 = vcombine.high %v7360_v3, %v7360_v3 }
 0x3e1   : > { %19479 = vst [vmem:[#allocation46_spill] sm:$0xff] %v16497_v48  ;;  %v8127_v54 = vrot.slane %v8126_v29, 2  ;;  %v16500_v42 = vmax.f32 %v8138_v35, %v8139_v31  ;;  %v7369_v15 = vcombine.high %v7367_v51, %v7367_v51  ;;  %v8096_v38 = vsel %vm7703_vm10, %v7360_v3, -inf }
 0x3e2   : > { %v8110_v53 = vsel %vm7703_vm10, %v7367_v51, -inf  ;;  %v7418_v27 = vrot.slane %v7404_v58, %v19092_v12  ;;  %v16506_v13 = vmax.f32 %v8051_v4, %v8052_v50  ;;  %v8097_v47 = vrot.slane %v8096_v38, 4 }
 0x3e3   : > { %19480 = vst [vmem:[#allocation73_spill] sm:$0xff] %v16500_v42  ;;  %v8128_v11 = vmax.f32 %v8126_v29, %v8127_v54  ;;  %v8103_v17 = vsel %vm7703_vm10, %v7368_v32, -inf  ;;  %v8134_v7 = vrot.slane %v8133_v9, 2  ;;  %v8111_v35 = vrot.slane %v8110_v53, 4 }
 0x3e4   : > { %19481 = vst [vmem:[#allocation44_spill] sm:$0xff] %v16506_v13  ;;  %v8104_v1 = vrot.slane %v8103_v17, 4  ;;  %v8117_v31 = vsel %vm7703_vm10, %v7369_v15, -inf  ;;  %v8098_v61 = vmax.f32 %v8096_v38, %v8097_v47  ;;  %v7419_v3 = vcombine.high %v7411_v33, %v7411_v33 }
 0x3e5   : > { %v8118_v62 = vrot.slane %v8117_v31, 4  ;;  %v8112_v51 = vmax.f32 %v8110_v53, %v8111_v35  ;;  %v7420_v8 = vcombine.high %v7418_v27, %v7418_v27  ;;  %v8180_v4 = vsel %vm7703_vm10, %v7411_v33, -inf }
 0x3e6   : > { %v8105_v48 = vmax.f32 %v8103_v17, %v8104_v1  ;;  %v8129_v50 = vrot.slane %v8128_v11, 1  ;;  %v8099_v29 = vrot.slane %v8098_v61, 2  ;;  %v8181_v54 = vrot.slane %v8180_v4, 4 }
 0x3e7   : > { %v8119_v58 = vmax.f32 %v8117_v31, %v8118_v62  ;;  %v8113_v13 = vrot.slane %v8112_v51, 2  ;;  %v8187_v20 = vsel %vm7703_vm10, %v7419_v3, -inf  ;;  %v8194_v15 = vsel %vm7703_vm10, %v7418_v27, -inf }
 0x3e8   : > { %v8106_v32 = vrot.slane %v8105_v48, 2  ;;  %v8100_v16 = vmax.f32 %v8098_v61, %v8099_v29  ;;  %v8182_v38 = vmax.f32 %v8180_v4, %v8181_v54  ;;  %v8188_v47 = vrot.slane %v8187_v20, 4 }
 0x3e9   : > { %v8120_v52 = vrot.slane %v8119_v58, 2  ;;  %v8114_v17 = vmax.f32 %v8112_v51, %v8113_v13  ;;  %v8195_v53 = vrot.slane %v8194_v15, 4  ;;  %v8201_v1 = vsel %vm7703_vm10, %v7420_v8, -inf }
 0x3ea   : > { %v8107_v42 = vmax.f32 %v8105_v48, %v8106_v32  ;;  %v8101_v33 = vrot.slane %v8100_v16, 1  ;;  %v8183_v62 = vrot.slane %v8182_v38, 2  ;;  %v8189_v31 = vmax.f32 %v8187_v20, %v8188_v47 }
 0x3eb   : > { %v16515_v35 = vmax.f32 %v8119_v58, %v8120_v52  ;;  %v8115_v10 = vrot.slane %v8114_v17, 1  ;;  %v8196_v56 = vmax.f32 %v8194_v15, %v8195_v53  ;;  %v8202_v3 = vrot.slane %v8201_v1, 4 }
 0x3ec   : > { %v8108_v63 = vrot.slane %v8107_v42, 1  ;;  %v16517_v27 = vmax.f32 %v8128_v11, %v8129_v50  ;;  %v16519_v61 = vmax.f32 %v8133_v9, %v8134_v7  ;;  %v8184_v4 = vmax.f32 %v8182_v38, %v8183_v62  ;;  %v6937_v11 = vpop.f32.mrf.mxu0 }
 0x3ed   : > { %v8190_v48 = vrot.slane %v8189_v31, 2  ;;  %v16521_v13 = vmax.f32 %v8100_v16, %v8101_v33  ;;  %v8197_v51 = vrot.slane %v8196_v56, 2  ;;  %v16524_v52 = vmax.f32 %v8201_v1, %v8202_v3  ;;  %v16556_v1 = vld [vmem:[%s18566_s4] ss:$0 sm:$0xff] }
 0x3ee   : > { %v16526_v29 = vmax.f32 %v8107_v42, %v8108_v63  ;;  %v8185_v20 = vrot.slane %v8184_v4, 1  ;;  %v6199_v54 = vadd.f32 %v6198_v21, %v16187_v5  ;;  %v16531_v50 = vmax.f32 %v8114_v17, %v8115_v10 }
 0x3ef   : > { %v16528_v58 = vmax.f32 %v8189_v31, %v8190_v48  ;;  %v16533_v9 = vmax.f32 %v8196_v56, %v8197_v51  ;;  %v7744_v16 = vrot.slane %v16249_v41, 1  ;;  %v19482_v7 = vrot.slane %v16235_v0, 2 }
 0x3f0   : > { %v7012_v63 = vadd.f32 %v6937_v11, %v6199_v54  ;;  %v19483_v42 = vrot.slane %v16255_v28, 1  ;;  %v19485_v5 = vcombine.high %v16222_v18, %v16222_v18  ;;  %v16549_v56 = vmax.f32 %v8184_v4, %v8185_v20  ;;  %v12621_v20 = vpop.f32.mrf.mxu0 }
 0x3f1   : > { %v7750_v32 = vmax.f32 %v16235_v0, %v19482_v7  ;;  %v8192_v21 = vrot.slane %v16528_v58, 1  ;;  %v12577_v0 = vpop.f32.mrf.mxu1  ;;  %v16560_v18 = vmax.f32 %v16249_v41, %v7744_v16  ;;  %v8832_v31 = vsel %vm8587_vm11, %v16267_v59, %v16253_v2 }
 0x3f2   : > { %v16543_v38 = vmax.f32 %v16255_v28, %v19483_v42  ;;  %v7753_v10 = vsel %vm7703_vm10, %v19485_v5, -inf  ;;  %v7047_v28 = vadd.f32 %v16556_v1, %v7012_v63  ;;  %v8833_v4 = vsel %vm1054_vm2, %v16257_v19, %v8832_v31 }
 0x3f3   : > { %v7751_v47 = vrot.slane %v7750_v32, 1  ;;  %v7754_v17 = vrot.slane %v7753_v10, 4  ;;  %19486 = vst [vmem:[#allocation77_spill] sm:$0xff] %v16560_v18  ;;  %v6214_v48 = vadd.f32 %v12577_v0, %v16189_v43  ;;  %v7763_v51 = vrot.slane %v16294_v26, 2  ;;  %v6208_v16 = vpop.f32.mrf.mxu1 }
 0x3f4   : > { %19484 = vst [vmem:[#allocation78_spill] sm:$0xff] %v16543_v38  ;;  %v7075_v3 = vmax.f32 %v7047_v28, 0.0  ;;  %v8834_v54 = vsel %vm8590_vm12, %v16543_v38, %v8833_v4  ;;  %v8588_v11 = vsel %vm8587_vm11, %v16257_v19, %v16267_v59  ;;  %v6209_v0 = vadd.f32 %v6208_v16, %v16191_v6  ;;  %v16590_v28 = vld [vmem:[%s18567_s5 + $0x10] sm:$0xff] }
 0x3f5   : > { %v16562_v33 = vmax.f32 %v7750_v32, %v7751_v47  ;;  %v7755_v62 = vmax.f32 %v7753_v10, %v7754_v17  ;;  %v8835_v32 = vsel %vm1056_vm4, %v16251_v60, %v8834_v54  ;;  %v7015_v43 = vadd.f32 %v12621_v20, %v6214_v48  ;;  %12674 = vmatprep.subr.mxu1 %v16590_v28  ;;  %v12580_v8 = vpop.f32.mrf.mxu1 }
 0x3f6   : > { %v7387_v2 = vcombine.high %v7075_v3, %v7075_v3  ;;  %v7394_v7 = vrot.slane %v7075_v3, %v19092_v12  ;;  %v8836_v42 = vsel %vm8593_vm13, %v16560_v18, %v8835_v32  ;;  %v7764_v5 = vmax.f32 %v16294_v26, %v7763_v51 }
 0x3f7   : > { %19487 = vst [vmem:[#allocation49_spill] sm:$0xff] %v16562_v33  ;;  %v7756_v41 = vrot.slane %v7755_v62, 2  ;;  %v8589_v10 = vsel %vm1054_vm2, %v16543_v38, %v8588_v11  ;;  %v8837_v31 = vsel %vm1058_vm5, %v16562_v33, %v8836_v42  ;;  %v7050_v26 = vadd.f32 %v16556_v1, %v7015_v43 }
 0x3f8   : > { %v7401_v47 = vrot.slane %v7387_v2, %v19092_v12  ;;  %v7402_v59 = vcombine.high %v7394_v7, %v7394_v7  ;;  %v8152_v17 = vsel %vm7703_vm10, %v7394_v7, -inf  ;;  %v7765_v3 = vrot.slane %v7764_v5, 1 }
 0x3f9   : > { %v7757_v63 = vmax.f32 %v7755_v62, %v7756_v41  ;;  %v8591_v6 = vsel %vm8590_vm12, %v16251_v60, %v8589_v10  ;;  %v8153_v20 = vrot.slane %v8152_v17, 4  ;;  %v7078_v2 = vmax.f32 %v7050_v26, 0.0 }
 0x3fa   : > { %v7403_v4 = vcombine.high %v7401_v47, %v7401_v47  ;;  %v8159_v48 = vsel %vm7703_vm10, %v7402_v59, -inf  ;;  %v8166_v51 = vsel %vm7703_vm10, %v7401_v47, -inf  ;;  %v16603_v7 = vmax.f32 %v7764_v5, %v7765_v3 }
 0x3fb   : > { %v7758_v62 = vrot.slane %v7757_v63, 1  ;;  %v8160_v41 = vrot.slane %v8159_v48, 4  ;;  %v8167_v54 = vrot.slane %v8166_v51, 4  ;;  %v8592_v32 = vsel %vm1056_vm4, %v16560_v18, %v8591_v6 }
 0x3fc   : > { %v8173_v16 = vsel %vm7703_vm10, %v7403_v4, -inf  ;;  %19489 = vst [vmem:[#allocation60_spill] sm:$0xff] %v16603_v7  ;;  %v7438_v10 = vcombine.high %v7078_v2, %v7078_v2  ;;  %v8839_v5 = vsel %vm8587_vm11, %v16287_v46, %v16603_v7 }
 0x3fd   : > { %v16600_v11 = vmax.f32 %v7757_v63, %v7758_v62  ;;  %v8161_v43 = vmax.f32 %v8159_v48, %v8160_v41  ;;  %v8168_v42 = vmax.f32 %v8166_v51, %v8167_v54  ;;  %v8174_v59 = vrot.slane %v8173_v16, 4 }
 0x3fe   : > { %v7445_v63 = vrot.slane %v7078_v2, %v19092_v12  ;;  %v8594_v62 = vsel %vm8593_vm13, %v16562_v33, %v8592_v32 }
 0x3ff   : > { %19488 = vst [vmem:[#allocation48_spill] sm:$0xff] %v16600_v11  ;;  %v8838_v47 = vsel %vm8596_vm14, %v16600_v11, %v8837_v31  ;;  %v8162_v26 = vrot.slane %v8161_v43, 2  ;;  %v8169_v3 = vrot.slane %v8168_v42, 2  ;;  %v8175_v4 = vmax.f32 %v8173_v16, %v8174_v59 }
 0x400   : > { %12656 = vmatprep.mubr.msk.f32.mxu0 %vm5258_vm9, %v8838_v47  ;;  %v8595_v48 = vsel %vm1058_vm5, %v16600_v11, %v8594_v62  ;;  %v7452_v31 = vrot.slane %v7438_v10, %v19092_v12  ;;  %v7453_v51 = vcombine.high %v7445_v63, %v7445_v63  ;;  %v8236_v6 = vsel %vm7703_vm10, %v7445_v63, -inf }
 0x401   : > { %v8597_v41 = vsel %vm8596_vm14, %v16603_v7, %v8595_v48  ;;  %v8163_v54 = vmax.f32 %v8161_v43, %v8162_v26  ;;  %v8170_v2 = vmax.f32 %v8168_v42, %v8169_v3  ;;  %v8176_v32 = vrot.slane %v8175_v4, 2 }
 0x402   : > { %v8237_v47 = vrot.slane %v8236_v6, 4  ;;  %12636 = vmatprep.mubr.msk.f32.mxu1 %vm5258_vm9, %v8597_v41  ;;  %v7454_v15 = vcombine.high %v7452_v31, %v7452_v31  ;;  %v8243_v16 = vsel %vm7703_vm10, %v7453_v51, -inf  ;;  %v8250_v59 = vsel %vm7703_vm10, %v7452_v31, -inf  ;;  %v6947_v31 = vpop.f32.mrf.mxu0 }
 0x403   : > { %v8840_v10 = vsel %vm1054_vm2, %v16289_v14, %v8839_v5  ;;  %v16630_v63 = vmax.f32 %v16528_v58, %v8192_v21  ;;  %v16632_v62 = vmax.f32 %v8152_v17, %v8153_v20  ;;  %v8164_v43 = vrot.slane %v8163_v54, 1 }
 0x404   : > { %v8238_v42 = vmax.f32 %v8236_v6, %v8237_v47  ;;  %v8244_v26 = vrot.slane %v8243_v16, 4  ;;  %v8251_v3 = vrot.slane %v8250_v59, 4  ;;  %v8257_v48 = vsel %vm7703_vm10, %v7454_v15, -inf }
 0x405   : > { %19490 = vst [vmem:[#allocation53_spill] sm:$0xff] %v16630_v63  ;;  %v8841_v51 = vsel %vm8590_vm12, %v16291_v24, %v8840_v10  ;;  %v16637_v41 = vmax.f32 %v8163_v54, %v8164_v43  ;;  %v8171_v14 = vrot.slane %v8170_v2, 1  ;;  %v16639_v5 = vmax.f32 %v8175_v4, %v8176_v32 }
 0x406   : > { %v8239_v53 = vrot.slane %v8238_v42, 2  ;;  %v8245_v58 = vmax.f32 %v8243_v16, %v8244_v26  ;;  %v8252_v21 = vmax.f32 %v8250_v59, %v8251_v3  ;;  %v8258_v17 = vrot.slane %v8257_v48, 4 }
 0x407   : > { %v7014_v20 = vadd.f32 %v6947_v31, %v6209_v0  ;;  %v19491_v47 = vrot.slane %v16264_v44, 1  ;;  %v7828_v63 = vrot.slane %v16328_v57, 1  ;;  %v8842_v54 = vsel %vm1056_vm4, %v16280_v45, %v8841_v51 }
 0x408   : > { %v8240_v6 = vmax.f32 %v8238_v42, %v8239_v53  ;;  %v8246_v10 = vrot.slane %v8245_v58, 2  ;;  %v8253_v43 = vrot.slane %v8252_v21, 2  ;;  %v8259_v4 = vmax.f32 %v8257_v48, %v8258_v17  ;;  %v12624_v42 = vpop.f32.mrf.mxu0 }
 0x409   : > { %v7815_v15 = vmax.f32 %v16264_v44, %v19491_v47  ;;  %v7049_v32 = vadd.f32 %v16556_v1, %v7014_v20  ;;  %v16648_v16 = vmax.f32 %v8170_v2, %v8171_v14  ;;  %v6224_v53 = vadd.f32 %v12580_v8, %v16193_v25 }
 0x40a   : > { %v8241_v59 = vrot.slane %v8240_v6, 1  ;;  %v8247_v26 = vmax.f32 %v8245_v58, %v8246_v10  ;;  %v8254_v44 = vmax.f32 %v8252_v21, %v8253_v43  ;;  %v8260_v3 = vrot.slane %v8259_v4, 2 }
 0x40b   : > { %v8843_v0 = vsel %vm8593_vm13, %v7815_v15, %v8842_v54  ;;  %v7077_v31 = vmax.f32 %v7049_v32, 0.0  ;;  %v16653_v47 = vmax.f32 %v16328_v57, %v7828_v63  ;;  %v7017_v48 = vadd.f32 %v12624_v42, %v6224_v53 }
 0x40c   : > { %v8844_v45 = vsel %vm1058_vm5, %v16338_v34, %v8843_v0  ;;  %v7835_v2 = vrot.slane %v16330_v39, 1  ;;  %v16659_v14 = vmax.f32 %v8240_v6, %v8241_v59  ;;  %v8248_v17 = vrot.slane %v8247_v26, 1  ;;  %v19494_v6 = vld [vmem:[#allocation18_spill] sm:$0xff]  ;;  %v19495_v0 = vld [vmem:[#allocation96_spill] sm:$0xff] }
 0x40d   : > { %19492 = vst [vmem:[#allocation62_spill] sm:$0xff] %v16653_v47  ;;  %v7421_v25 = vcombine.high %v7077_v31, %v7077_v31  ;;  %v8255_v8 = vrot.slane %v8254_v44, 1  ;;  %v7428_v58 = vrot.slane %v7077_v31, %v19092_v12  ;;  %v8845_v21 = vsel %vm8596_vm14, %v16653_v47, %v8844_v45 }
 0x40e   : > { %v7052_v57 = vadd.f32 %v16556_v1, %v7017_v48  ;;  %v16665_v63 = vmax.f32 %v8259_v4, %v8260_v3  ;;  %12657 = vmatmul.mubr.msk.f32.vlgmr.msra.gmra.mxu0 %vm5258_vm9, %v8845_v21  ;;  %v16670_v54 = vmax.f32 %v16330_v39, %v7835_v2  ;;  %v8599_v10 = vsel %vm1054_vm2, %v16291_v24, %v19494_v6  ;;  %v6218_v2 = vpop.f32.mrf.mxu1 }
 0x40f   : > { %v7435_v20 = vrot.slane %v7421_v25, %v19092_v12  ;;  %v7436_v43 = vcombine.high %v7428_v58, %v7428_v58  ;;  %v8208_v32 = vsel %vm7703_vm10, %v7428_v58, -inf  ;;  %v8600_v53 = vsel %vm8590_vm12, %v19495_v0, %v8599_v10  ;;  %v19497_v10 = vld [vmem:[#allocation88_spill] sm:$0xff]  ;;  %v19499_v0 = vld [vmem:[#allocation98_spill] sm:$0xff] }
 0x410   : > { %19493 = vst [vmem:[#allocation57_spill] sm:$0xff] %v16670_v54  ;;  %v7080_v59 = vmax.f32 %v7052_v57, 0.0  ;;  %v16678_v4 = vmax.f32 %v8247_v26, %v8248_v17  ;;  %v8209_v3 = vrot.slane %v8208_v32, 4  ;;  %v8601_v31 = vsel %vm1056_vm4, %v7815_v15, %v8600_v53 }
 0x411   : > { %v7437_v42 = vcombine.high %v7435_v20, %v7435_v20  ;;  %v16681_v45 = vmax.f32 %v8254_v44, %v8255_v8  ;;  %v16684_v39 = vsel %vm7703_vm10, %v7435_v20, -inf  ;;  %v16688_v58 = vsel %vm7703_vm10, %v7436_v43, -inf }
 0x412   : > { %v7472_v48 = vcombine.high %v7080_v59, %v7080_v59  ;;  %v7479_v24 = vrot.slane %v7080_v59, %v19092_v12  ;;  %v8210_v25 = vmax.f32 %v8208_v32, %v8209_v3  ;;  %v8602_v17 = vsel %vm8593_vm13, %v16338_v34, %v8601_v31  ;;  %v6957_v3 = vpop.f32.mrf.mxu0 }
 0x413   : > { %19496 = vst [vmem:[#allocation65_spill] sm:$0xff] %v16681_v45  ;;  %v8229_v26 = vsel %vm7703_vm10, %v7437_v42, -inf  ;;  %v8603_v6 = vsel %vm1058_vm5, %v16653_v47, %v8602_v17  ;;  %v6219_v43 = vadd.f32 %v6218_v2, %v19497_v10  ;;  %v7870_v7 = vrot.slane %v19499_v0, 1 }
 0x414   : > { %v8230_v21 = vrot.slane %v8229_v26, 4  ;;  %v7486_v15 = vrot.slane %v7472_v48, %v19092_v12  ;;  %v7487_v44 = vcombine.high %v7479_v24, %v7479_v24  ;;  %v8292_v8 = vsel %vm7703_vm10, %v7479_v24, -inf  ;;  %v12583_v24 = vpop.f32.mrf.mxu1 }
 0x415   : > { %v8293_v20 = vrot.slane %v8292_v8, 4  ;;  %v8211_v31 = vrot.slane %v8210_v25, 2  ;;  %v8604_v17 = vsel %vm8596_vm14, %v16670_v54, %v8603_v6  ;;  %v7016_v47 = vadd.f32 %v6957_v3, %v6219_v43 }
 0x416   : > { %v8231_v32 = vmax.f32 %v8229_v26, %v8230_v21  ;;  %v7488_v59 = vcombine.high %v7486_v15, %v7486_v15  ;;  %v8299_v53 = vsel %vm7703_vm10, %v7487_v44, -inf  ;;  %v8306_v42 = vsel %vm7703_vm10, %v7486_v15, -inf  ;;  %12637 = vmatmul.mubr.msk.f32.vlgmr.msra.gmra.mxu1 %vm5258_vm9, %v8604_v17 }
 0x417   : > { %v8294_v48 = vmax.f32 %v8292_v8, %v8293_v20  ;;  %v8300_v51 = vrot.slane %v8299_v53, 4  ;;  %v8307_v34 = vrot.slane %v8306_v42, 4  ;;  %v7051_v44 = vadd.f32 %v16556_v1, %v7016_v47  ;;  %v19498_v8 = vld [vmem:[#allocation72_spill] sm:$0xff]  ;;  %12675 = vmatpush3.msra.mxu1 %v16590_v28 }
 0x418   : > { %v8232_v46 = vrot.slane %v8231_v32, 2  ;;  %v8313_v57 = vsel %vm7703_vm10, %v7488_v59, -inf  ;;  %v6234_v20 = vadd.f32 %v12583_v24, %v19498_v8  ;;  %v12627_v59 = vpop.f32.mrf.mxu0 }
 0x419   : > { %v8295_v2 = vrot.slane %v8294_v48, 2  ;;  %v8301_v26 = vmax.f32 %v8299_v53, %v8300_v51  ;;  %v8308_v21 = vmax.f32 %v8306_v42, %v8307_v34  ;;  %v8314_v10 = vrot.slane %v8313_v57, 4  ;;  %v19511_v34 = vld [vmem:[#allocation21_spill] sm:$0xff] }
 0x41a   : > { %v16705_v15 = vmax.f32 %v8231_v32, %v8232_v46  ;;  %v16711_v51 = vmax.f32 %v8210_v25, %v8211_v31  ;;  %v7079_v53 = vmax.f32 %v7051_v44, 0.0  ;;  %v7019_v46 = vadd.f32 %v12627_v59, %v6234_v20 }
 0x41b   : > { %v8296_v11 = vmax.f32 %v8294_v48, %v8295_v2  ;;  %v8302_v6 = vrot.slane %v8301_v26, 2  ;;  %v8309_v43 = vrot.slane %v8308_v21, 2  ;;  %v8315_v3 = vmax.f32 %v8313_v57, %v8314_v10 }
 0x41c   : > { %v7455_v8 = vcombine.high %v7079_v53, %v7079_v53  ;;  %v7462_v28 = vrot.slane %v7079_v53, %v19092_v12  ;;  %v7054_v48 = vadd.f32 %v16556_v1, %v7019_v46  ;;  %v16720_v25 = vmax.f32 %v19499_v0, %v7870_v7 }
 0x41d   : > { %v8297_v32 = vrot.slane %v8296_v11, 1  ;;  %v8303_v42 = vmax.f32 %v8301_v26, %v8302_v6  ;;  %v8310_v47 = vmax.f32 %v8308_v21, %v8309_v43  ;;  %v8316_v17 = vrot.slane %v8315_v3, 2 }
 0x41e   : > { %19500 = vst [vmem:[#allocation67_spill] sm:$0xff] %v16720_v25  ;;  %v16723_v31 = vrot.slane %v7455_v8, %v19092_v12  ;;  %v7470_v26 = vcombine.high %v7462_v28, %v7462_v28  ;;  %v8264_v21 = vsel %vm7703_vm10, %v7462_v28, -inf  ;;  %v7082_v10 = vmax.f32 %v7054_v48, 0.0  ;;  %v19508_v8 = vld [vmem:[#allocation31_spill] sm:$0xff] }
 0x41f   : > { %v8304_v2 = vrot.slane %v8303_v42, 1  ;;  %v8311_v33 = vrot.slane %v8310_v47, 1  ;;  %v16717_v57 = vmax.f32 %v8315_v3, %v8316_v17  ;;  %v16726_v44 = vmax.f32 %v8296_v11, %v8297_v32 }
 0x420   : > { %19501 = vst [vmem:[#allocation75_spill] sm:$0xff] %v16723_v31  ;;  %v8265_v59 = vrot.slane %v8264_v21, 4  ;;  %v19504_v6 = vrot.slane %v16364_v37, 1  ;;  %v8271_v0 = vsel %vm7703_vm10, %v7470_v26, -inf  ;;  %v7506_v53 = vcombine.high %v7082_v10, %v7082_v10 }
 0x421   : > { %19502 = vst [vmem:[#allocation50_spill] sm:$0xff] %v16726_v44  ;;  %v16728_v20 = vmax.f32 %v8303_v42, %v8304_v2  ;;  %v16735_v3 = vmax.f32 %v8310_v47, %v8311_v33  ;;  %v8272_v17 = vrot.slane %v8271_v0, 4  ;;  %v16741_v11 = vsel %vm7703_vm10, %v16723_v31, -inf }
 0x422   : > { %v16733_v43 = vmax.f32 %v16364_v37, %v19504_v6  ;;  %v8266_v46 = vmax.f32 %v8264_v21, %v8265_v59  ;;  %v7513_v32 = vrot.slane %v7082_v10, %v19092_v12  ;;  %v7520_v37 = vrot.slane %v7506_v53, %v19092_v12 }
 0x423   : > { %19503 = vst [vmem:[#allocation56_spill] sm:$0xff] %v16728_v20  ;;  %19506 = vst [vmem:[#allocation66_spill] sm:$0xff] %v16735_v3  ;;  %v19507_v33 = vrot.slane %v16357_v23, 2  ;;  %v19509_v28 = vrot.slane %v19508_v8, 4  ;;  %v16753_v26 = vmax.f32 %v8271_v0, %v8272_v17  ;;  %v6967_v20 = vpop.f32.mrf.mxu0 }
 0x424   : > { %19505 = vst [vmem:[#allocation54_spill] sm:$0xff] %v16733_v43  ;;  %v8267_v2 = vrot.slane %v8266_v46, 2  ;;  %v7521_v21 = vcombine.high %v7513_v32, %v7513_v32  ;;  %v8348_v59 = vsel %vm7703_vm10, %v7513_v32, -inf  ;;  %v7522_v6 = vcombine.high %v7520_v37, %v7520_v37 }
 0x425   : > { %v7883_v47 = vmax.f32 %v16357_v23, %v19507_v33  ;;  %v7888_v48 = vmax.f32 %v19508_v8, %v19509_v28  ;;  %v8362_v42 = vsel %vm7703_vm10, %v7520_v37, -inf  ;;  %v8349_v7 = vrot.slane %v8348_v59, 4  ;;  %v19510_v33 = vld [vmem:[#allocation34_spill] sm:$0xff]  ;;  %v6228_v28 = vpop.f32.mrf.mxu1 }
 0x426   : > { %v8355_v24 = vsel %vm7703_vm10, %v7521_v21, -inf  ;;  %v8363_v23 = vrot.slane %v8362_v42, 4  ;;  %v8605_v8 = vsel %vm8587_vm11, %v19511_v34, %v19510_v33  ;;  %v16762_v0 = vmax.f32 %v8266_v46, %v8267_v2  ;;  %v19513_v21 = vld [vmem:[#allocation92_spill] sm:$0xff]  ;;  %v19514_v46 = vld [vmem:[#allocation10_spill] sm:$0xff] }
 0x427   : > { %v7884_v53 = vrot.slane %v7883_v47, 1  ;;  %v8356_v32 = vrot.slane %v8355_v24, 4  ;;  %v8369_v10 = vsel %vm7703_vm10, %v7522_v6, -inf  ;;  %v7889_v60 = vrot.slane %v7888_v48, 2  ;;  %v19515_v6 = vld [vmem:[#allocation19_spill] sm:$0xff] }
 0x428   : > { %v8364_v31 = vmax.f32 %v8362_v42, %v8363_v23  ;;  %v8370_v18 = vrot.slane %v8369_v10, 4  ;;  %v8606_v19 = vsel %vm1054_vm2, %v19513_v21, %v8605_v8  ;;  %v8846_v3 = vsel %vm8587_vm11, %v19510_v33, %v16670_v54 }
 0x429   : > { %v16766_v37 = vmax.f32 %v7883_v47, %v7884_v53  ;;  %v8357_v38 = vmax.f32 %v8355_v24, %v8356_v32  ;;  %v6229_v2 = vadd.f32 %v6228_v28, %v19514_v46  ;;  %v7890_v45 = vmax.f32 %v7888_v48, %v7889_v60 }
 0x42a   : > { %v8365_v17 = vrot.slane %v8364_v31, 2  ;;  %v8371_v44 = vmax.f32 %v8369_v10, %v8370_v18  ;;  %v8607_v42 = vsel %vm8590_vm12, %v19515_v6, %v8606_v19  ;;  %v8847_v53 = vsel %vm1054_vm2, %v19511_v34, %v8846_v3 }
 0x42b   : > { %19512 = vst [vmem:[#allocation55_spill] sm:$0xff] %v16766_v37  ;;  %v8358_v47 = vrot.slane %v8357_v38, 2  ;;  %v8608_v24 = vsel %vm1056_vm4, %v16720_v25, %v8607_v42  ;;  %v7018_v23 = vadd.f32 %v6967_v20, %v6229_v2  ;;  %v7891_v33 = vrot.slane %v7890_v45, 1 }
 0x42c   : > { %v8366_v8 = vmax.f32 %v8364_v31, %v8365_v17  ;;  %v8372_v32 = vrot.slane %v8371_v44, 2  ;;  %v8609_v28 = vsel %vm8593_vm13, %v16733_v43, %v8608_v24  ;;  %v8848_v19 = vsel %vm8590_vm12, %v19513_v21, %v8847_v53 }
 0x42d   : > { %v8359_v46 = vmax.f32 %v8357_v38, %v8358_v47  ;;  %v8610_v60 = vsel %vm1058_vm5, %v16766_v37, %v8609_v28  ;;  %v7053_v18 = vadd.f32 %v16556_v1, %v7018_v23  ;;  %v16787_v48 = vmax.f32 %v8348_v59, %v8349_v7 }
 0x42e   : > { %v8367_v10 = vrot.slane %v8366_v8, 1  ;;  %v16789_v3 = vmax.f32 %v7890_v45, %v7891_v33  ;;  %v8849_v31 = vsel %vm1056_vm4, %v19515_v6, %v8848_v19  ;;  %v16794_v17 = vmax.f32 %v8371_v44, %v8372_v32  ;;  %v19518_v45 = vld [vmem:[#allocation22_spill] sm:$0xff] }
 0x42f   : > { %v8850_v38 = vsel %vm8593_vm13, %v16720_v25, %v8849_v31  ;;  %v7081_v2 = vmax.f32 %v7053_v18, 0.0  ;;  %v8360_v42 = vrot.slane %v8359_v46, 1  ;;  %v19519_v59 = vrot.slane %v19518_v45, 1  ;;  %v19524_v18 = vld [vmem:[#allocation25_spill] sm:$0xff] }
 0x430   : > { %19516 = vst [vmem:[#allocation58_spill] sm:$0xff] %v16789_v3  ;;  %19517 = vst [vmem:[#allocation68_spill] sm:$0xff] %v16794_v17  ;;  %v8611_v47 = vsel %vm8596_vm14, %v16789_v3, %v8610_v60  ;;  %v8851_v7 = vsel %vm1058_vm5, %v16733_v43, %v8850_v38  ;;  %v16807_v24 = vmax.f32 %v8366_v8, %v8367_v10  ;;  %v7940_v32 = vrot.slane %v16415_v36, 1  ;;  %v19525_v10 = vld [vmem:[#allocation32_spill] sm:$0xff] }
 0x431   : > { %v16805_v33 = vmax.f32 %v19518_v45, %v19519_v59  ;;  %12639 = vmatprep.mubr.msk.f32.mxu1 %vm5258_vm9, %v8611_v47  ;;  %v8852_v44 = vsel %vm8596_vm14, %v16766_v37, %v8851_v7  ;;  %v7489_v53 = vcombine.high %v7081_v2, %v7081_v2  ;;  %v7496_v23 = vrot.slane %v7081_v2, %v19092_v12  ;;  %v12586_v45 = vpop.f32.mrf.mxu1  ;;  %v12630_v59 = vpop.f32.mrf.mxu0 }
 0x432   : > { %19521 = vst [vmem:[#allocation61_spill] sm:$0xff] %v16807_v24  ;;  %12659 = vmatprep.mubr.msk.f32.mxu0 %vm5258_vm9, %v8852_v44  ;;  %v19522_v28 = vrot.slane %v16400_v22, 2  ;;  %v19523_v8 = vcombine.high %v16388_v49, %v16388_v49  ;;  %v8853_v31 = vsel %vm8587_vm11, %v19525_v10, %v19524_v18 }
 0x433   : > { %19520 = vst [vmem:[#allocation59_spill] sm:$0xff] %v16805_v33  ;;  %v16826_v38 = vrot.slane %v7489_v53, %v19092_v12  ;;  %v7504_v2 = vcombine.high %v7496_v23, %v7496_v23  ;;  %v8320_v47 = vsel %vm7703_vm10, %v7496_v23, -inf  ;;  %v16836_v53 = vmax.f32 %v16415_v36, %v7940_v32  ;;  %v6238_v34 = vpop.f32.mrf.mxu1 }
 0x434   : > { %v7946_v60 = vmax.f32 %v16400_v22, %v19522_v28  ;;  %v7949_v19 = vsel %vm7703_vm10, %v19523_v8, -inf  ;;  %v8321_v22 = vrot.slane %v8320_v47, 4  ;;  %v19526_v28 = vld [vmem:[#allocation30_spill] sm:$0xff] }
 0x435   : > { %v7950_v7 = vrot.slane %v7949_v19, 4  ;;  %v8854_v49 = vsel %vm1054_vm2, %v19526_v28, %v8853_v31  ;;  %v8327_v8 = vsel %vm7703_vm10, %v7504_v2, -inf  ;;  %v8334_v18 = vsel %vm7703_vm10, %v16826_v38, -inf  ;;  %19527 = vst [vmem:[#allocation9_spill] sm:$0xff] %v16836_v53  ;;  %v19529_v31 = vld [vmem:[#allocation8_spill] sm:$0xff]  ;;  %v19530_v2 = vld [vmem:[#allocation38_spill] sm:$0xff] }
 0x436   : > { %v7947_v44 = vrot.slane %v7946_v60, 1  ;;  %v8322_v3 = vmax.f32 %v8320_v47, %v8321_v22  ;;  %v8328_v23 = vrot.slane %v8327_v8, 4  ;;  %v8335_v37 = vrot.slane %v8334_v18, 4 }
 0x437   : > { %v7951_v20 = vmax.f32 %v7949_v19, %v7950_v7  ;;  %v8855_v54 = vsel %vm8590_vm12, %v16805_v33, %v8854_v49  ;;  %v6244_v6 = vadd.f32 %v12586_v45, %v19529_v31  ;;  %v7959_v21 = vrot.slane %v19530_v2, 2 }
 0x438   : > { %v16838_v43 = vmax.f32 %v7946_v60, %v7947_v44  ;;  %v8323_v24 = vrot.slane %v8322_v3, 2  ;;  %v8329_v17 = vmax.f32 %v8327_v8, %v8328_v23  ;;  %v16844_v36 = vmax.f32 %v8334_v18, %v8335_v37  ;;  %v6977_v8 = vpop.f32.mrf.mxu0 }
 0x439   : > { %v7952_v25 = vrot.slane %v7951_v20, 2  ;;  %v8856_v32 = vsel %vm1056_vm4, %v16428_v30, %v8855_v54  ;;  %v7021_v47 = vadd.f32 %v12630_v59, %v6244_v6  ;;  %v7960_v7 = vmax.f32 %v19530_v2, %v7959_v21 }
 0x43a   : > { %19528 = vst [vmem:[#allocation70_spill] sm:$0xff] %v16838_v43  ;;  %v8857_v60 = vsel %vm8593_vm13, %v16836_v53, %v8856_v32  ;;  %v16851_v22 = vmax.f32 %v8359_v46, %v8360_v42  ;;  %v8324_v44 = vmax.f32 %v8322_v3, %v8323_v24  ;;  %v8330_v49 = vrot.slane %v8329_v17, 2  ;;  %v19532_v3 = vld [vmem:[#allocation80_spill] sm:$0xff]  ;;  %v12633_v45 = vpop.f32.mrf.mxu0 }
 0x43b   : > { %v7953_v19 = vmax.f32 %v7951_v20, %v7952_v25  ;;  %v7056_v18 = vadd.f32 %v16556_v1, %v7021_v47  ;;  %v7961_v23 = vrot.slane %v7960_v7, 1  ;;  %v8612_v54 = vsel %vm8587_vm11, %v19526_v28, %v19525_v10  ;;  %v12589_v25 = vpop.f32.mrf.mxu1  ;;  %v19535_v47 = vld [vmem:[#allocation12_spill] sm:$0xff] }
 0x43c   : > { %19531 = vst [vmem:[#allocation69_spill] sm:$0xff] %v16851_v22  ;;  %v8858_v21 = vsel %vm1058_vm5, %v16838_v43, %v8857_v60  ;;  %v8613_v46 = vsel %vm1054_vm2, %v16805_v33, %v8612_v54  ;;  %v6239_v20 = vadd.f32 %v6238_v34, %v19532_v3  ;;  %v8325_v42 = vrot.slane %v8324_v44, 1 }
 0x43d   : > { %v7954_v37 = vrot.slane %v7953_v19, 1  ;;  %v7084_v59 = vmax.f32 %v7056_v18, 0.0  ;;  %v8614_v31 = vsel %vm8590_vm12, %v16428_v30, %v8613_v46  ;;  %v16869_v2 = vmax.f32 %v7960_v7, %v7961_v23 }
 0x43e   : > { %v8615_v10 = vsel %vm1056_vm4, %v16836_v53, %v8614_v31  ;;  %v7020_v32 = vadd.f32 %v6977_v8, %v6239_v20  ;;  %v6254_v60 = vadd.f32 %v12589_v25, %v19535_v47  ;;  %v16879_v18 = vmax.f32 %v8329_v17, %v8330_v49 }
 0x43f   : > { %v16865_v24 = vmax.f32 %v7953_v19, %v7954_v37  ;;  %19534 = vst [vmem:[#allocation81_spill] sm:$0xff] %v16869_v2  ;;  %v7540_v34 = vcombine.high %v7084_v59, %v7084_v59  ;;  %v7547_v19 = vrot.slane %v7084_v59, %v19092_v12  ;;  %v8616_v37 = vsel %vm8593_vm13, %v16838_v43, %v8615_v10 }
 0x440   : > { %v7055_v8 = vadd.f32 %v16556_v1, %v7020_v32  ;;  %v7023_v23 = vadd.f32 %v12633_v45, %v6254_v60  ;;  %v16889_v20 = vmax.f32 %v8324_v44, %v8325_v42  ;;  %v8860_v32 = vsel %vm8587_vm11, %v16407_v40, %v16869_v2 }
 0x441   : > { %19533 = vst [vmem:[#allocation63_spill] sm:$0xff] %v16865_v24  ;;  %v8859_v54 = vsel %vm8596_vm14, %v16865_v24, %v8858_v21  ;;  %v8617_v7 = vsel %vm1058_vm5, %v16865_v24, %v8616_v37  ;;  %v7554_v25 = vrot.slane %v7540_v34, %v19092_v12  ;;  %v7555_v46 = vcombine.high %v7547_v19, %v7547_v19 }
 0x442   : > { %12660 = vmatmul.mubr.msk.f32.gmra.mxu0 %vm5258_vm9, %v8859_v54  ;;  %v8404_v21 = vsel %vm7703_vm10, %v7547_v19, -inf  ;;  %v8618_v3 = vsel %vm8596_vm14, %v16869_v2, %v8617_v7  ;;  %v7083_v49 = vmax.f32 %v7055_v8, 0.0  ;;  %v7058_v59 = vadd.f32 %v16556_v1, %v7023_v23  ;;  %v19540_v54 = vld [vmem:[#allocation23_spill] sm:$0xff] }
 0x443   : > { %v8405_v17 = vrot.slane %v8404_v21, 4  ;;  %12640 = vmatmul.mubr.msk.f32.gmra.mxu1 %vm5258_vm9, %v8618_v3  ;;  %v7556_v31 = vcombine.high %v7554_v25, %v7554_v25  ;;  %v16894_v10 = vsel %vm7703_vm10, %v7555_v46, -inf  ;;  %v16897_v45 = vsel %vm7703_vm10, %v7554_v25, -inf  ;;  %v19542_v3 = vld [vmem:[#allocation76_spill] sm:$0xff] }
 0x444   : > { %19536 = vst [vmem:[#allocation83_spill] sm:$0xff] %v16894_v10  ;;  %19537 = vst [vmem:[#allocation82_spill] sm:$0xff] %v16897_v45  ;;  %v7523_v44 = vcombine.high %v7083_v49, %v7083_v49  ;;  %v19538_v42 = vrot.slane %v16396_v55, 1  ;;  %v19541_v34 = vrot.slane %v19540_v54, 1  ;;  %v7530_v8 = vrot.slane %v7083_v49, %v19092_v12 }
 0x445   : > { %v8406_v47 = vmax.f32 %v8404_v21, %v8405_v17  ;;  %v8425_v7 = vsel %vm7703_vm10, %v7556_v31, -inf  ;;  %v7086_v23 = vmax.f32 %v7058_v59, 0.0 }
 0x446   : > { %v16905_v60 = vmax.f32 %v16396_v55, %v19538_v42  ;;  %v16910_v19 = vmax.f32 %v19540_v54, %v19541_v34  ;;  %v8426_v46 = vrot.slane %v8425_v7, 4  ;;  %v7537_v21 = vrot.slane %v7523_v44, %v19092_v12 }
 0x447   : > { %v19543_v55 = vrot.slane %v19542_v3, 2  ;;  %v7538_v42 = vcombine.high %v7530_v8, %v7530_v8  ;;  %v8376_v54 = vsel %vm7703_vm10, %v7530_v8, -inf  ;;  %v7574_v34 = vcombine.high %v7086_v23, %v7086_v23 }
 0x448   : > { %19539 = vst [vmem:[#allocation7_spill] sm:$0xff] %v16905_v60  ;;  %v7581_v37 = vrot.slane %v7086_v23, %v19092_v12  ;;  %v8407_v6 = vrot.slane %v8406_v47, 2  ;;  %v8427_v31 = vmax.f32 %v8425_v7, %v8426_v46  ;;  %v7539_v2 = vcombine.high %v7537_v21, %v7537_v21  ;;  %v19546_v46 = vld [vmem:[#allocation39_spill] sm:$0xff] }
 0x449   : > { %v8009_v17 = vmax.f32 %v19542_v3, %v19543_v55  ;;  %v8377_v49 = vrot.slane %v8376_v54, 4  ;;  %v8383_v59 = vsel %vm7703_vm10, %v7538_v42, -inf  ;;  %v8390_v25 = vsel %vm7703_vm10, %v7537_v21, -inf }
 0x44a   : > { %v16925_v44 = vrot.slane %v7574_v34, %v19092_v12  ;;  %v7589_v24 = vcombine.high %v7581_v37, %v7581_v37  ;;  %v8428_v43 = vrot.slane %v8427_v31, 2  ;;  %v8384_v55 = vrot.slane %v8383_v59, 4 }
 0x44b   : > { %v8378_v3 = vmax.f32 %v8376_v54, %v8377_v49  ;;  %v8391_v53 = vrot.slane %v8390_v25, 4  ;;  %v8397_v8 = vsel %vm7703_vm10, %v7539_v2, -inf  ;;  %v8460_v23 = vsel %vm7703_vm10, %v7581_v37, -inf }
 0x44c   : > { %19544 = vst [vmem:[#allocation91_spill] sm:$0xff] %v16925_v44  ;;  %v16930_v7 = vsel %vm7703_vm10, %v7589_v24, -inf  ;;  %v8017_v30 = vrot.slane %v19546_v46, 1  ;;  %v16933_v42 = vmax.f32 %v8427_v31, %v8428_v43  ;;  %v8385_v33 = vmax.f32 %v8383_v59, %v8384_v55  ;;  %v6248_v55 = vpop.f32.mrf.mxu1  ;;  %v19550_v24 = vld [vmem:[#allocation43_spill] sm:$0xff] }
 0x44d   : > { %19545 = vst [vmem:[#allocation89_spill] sm:$0xff] %v16930_v7  ;;  %v8379_v21 = vrot.slane %v8378_v3, 2  ;;  %v8392_v34 = vmax.f32 %v8390_v25, %v8391_v53  ;;  %v16935_v28 = vmax.f32 %v8406_v47, %v8407_v6  ;;  %v8398_v22 = vrot.slane %v8397_v8, 4 }
 0x44e   : > { %v8461_v54 = vrot.slane %v8460_v23, 4  ;;  %v16939_v49 = vsel %vm7703_vm10, %v16925_v44, -inf  ;;  %v8386_v37 = vrot.slane %v8385_v33, 2  ;;  %v8010_v59 = vrot.slane %v8009_v17, 1 }
 0x44f   : > { %19547 = vst [vmem:[#allocation90_spill] sm:$0xff] %v16939_v49  ;;  %v8380_v2 = vmax.f32 %v8378_v3, %v8379_v21  ;;  %v8393_v45 = vrot.slane %v8392_v34, 2  ;;  %v16943_v43 = vmax.f32 %v8397_v8, %v8398_v22  ;;  %v16951_v21 = vmax.f32 %v19546_v46, %v8017_v30 }
 0x450   : > { %v8462_v31 = vmax.f32 %v8460_v23, %v8461_v54  ;;  %v16945_v6 = vmax.f32 %v8385_v33, %v8386_v37  ;;  %v8011_v3 = vmax.f32 %v8009_v17, %v8010_v59  ;;  %v19551_v7 = vrot.slane %v19550_v24, 4  ;;  %v19553_v17 = vld [vmem:[#allocation79_spill] sm:$0xff]  ;;  %v6987_v59 = vpop.f32.mrf.mxu0 }
 0x451   : > { %v8381_v53 = vrot.slane %v8380_v2, 1  ;;  %v16947_v47 = vmax.f32 %v8392_v34, %v8393_v45  ;;  %19549 = vst [vmem:[#allocation85_spill] sm:$0xff] %v16951_v21  ;;  %v19552_v45 = vld [vmem:[#allocation33_spill] sm:$0xff]  ;;  %v6249_v46 = vadd.f32 %v6248_v55, %v19553_v17  ;;  %v19556_v23 = vld [vmem:[#allocation71_spill] sm:$0xff] }
 0x452   : > { %19548 = vst [vmem:[#allocation86_spill] sm:$0xff] %v16945_v6  ;;  %v8463_v44 = vrot.slane %v8462_v31, 2  ;;  %v8021_v22 = vmax.f32 %v19550_v24, %v19551_v7  ;;  %v8861_v34 = vsel %vm1054_vm2, %v19552_v45, %v8860_v32  ;;  %v19557_v32 = vrot.slane %v19556_v23, 1  ;;  %v19564_v6 = vld [vmem:[#allocation36_spill] sm:$0xff] }
 0x453   : > { %v16956_v8 = vmax.f32 %v8380_v2, %v8381_v53  ;;  %v8862_v30 = vsel %vm8590_vm12, %v16905_v60, %v8861_v34  ;;  %v19554_v2 = vld [vmem:[#allocation27_spill] sm:$0xff]  ;;  %v7022_v54 = vadd.f32 %v6987_v59, %v6249_v46  ;;  %v19561_v46 = vld [vmem:[#allocation24_spill] sm:$0xff] }
 0x454   : > { %v8022_v37 = vrot.slane %v8021_v22, 2  ;;  %v16966_v25 = vmax.f32 %v8462_v31, %v8463_v44  ;;  %v8863_v7 = vsel %vm1056_vm4, %v16910_v19, %v8862_v30  ;;  %v19555_v24 = vrot.slane %v19554_v2, 4  ;;  %v19559_v30 = vld [vmem:[#allocation52_spill] sm:$0xff] }
 0x455   : > { %v16976_v10 = vmax.f32 %v19556_v23, %v19557_v32  ;;  %v8864_v34 = vsel %vm8593_vm13, %v8011_v3, %v8863_v7  ;;  %v8619_v44 = vsel %vm8587_vm11, %v19552_v45, %v16407_v40  ;;  %v19560_v17 = vrot.slane %v19559_v30, 1  ;;  %v19562_v7 = vld [vmem:[#allocation35_spill] sm:$0xff]  ;;  %v19565_v40 = vld [vmem:[#allocation37_spill] sm:$0xff] }
 0x456   : > { %v8028_v53 = vmax.f32 %v19554_v2, %v19555_v24  ;;  %v8023_v33 = vmax.f32 %v8021_v22, %v8022_v37  ;;  %v8865_v19 = vsel %vm1058_vm5, %v16951_v21, %v8864_v34  ;;  %v8620_v55 = vsel %vm1054_vm2, %v16905_v60, %v8619_v44 }
 0x457   : > { %19558 = vst [vmem:[#allocation84_spill] sm:$0xff] %v16976_v10  ;;  %v16989_v23 = vmax.f32 %v19559_v30, %v19560_v17  ;;  %v7057_v37 = vadd.f32 %v16556_v1, %v7022_v54  ;;  %v8621_v59 = vsel %vm8590_vm12, %v19561_v46, %v8620_v55  ;;  %v19563_v2 = vrot.slane %v19562_v7, 2 }
 0x458   : > { %v8029_v31 = vrot.slane %v8028_v53, 2  ;;  %v8024_v22 = vrot.slane %v8023_v33, 1  ;;  %v8622_v34 = vsel %vm1056_vm4, %v8011_v3, %v8621_v59  ;;  %v8073_v44 = vrot.slane %v19564_v6, 1 }
 0x459   : > { %v8065_v24 = vmax.f32 %v19562_v7, %v19563_v2  ;;  %v19566_v60 = vrot.slane %v19565_v40, 4  ;;  %v7085_v45 = vmax.f32 %v7057_v37, 0.0  ;;  %v8623_v1 = vsel %vm8593_vm13, %v16951_v21, %v8622_v34 }
 0x45a   : > { %v8030_v32 = vmax.f32 %v8028_v53, %v8029_v31  ;;  %v17002_v17 = vmax.f32 %v8023_v33, %v8024_v22  ;;  %v17007_v46 = vmax.f32 %v19564_v6, %v8073_v44  ;;  %v19568_v31 = vld [vmem:[#allocation42_spill] sm:$0xff] }
 0x45b   : > { %v8077_v30 = vmax.f32 %v19565_v40, %v19566_v60  ;;  %v8066_v54 = vrot.slane %v8065_v24, 1  ;;  %v19569_v3 = vrot.slane %v19568_v31, 4  ;;  %v7557_v40 = vcombine.high %v7085_v45, %v7085_v45 }
 0x45c   : > { %19567 = vst [vmem:[#allocation87_spill] sm:$0xff] %v17002_v17  ;;  %v8031_v55 = vrot.slane %v8030_v32, 1  ;;  %v8866_v7 = vsel %vm8596_vm14, %v17002_v17, %v8865_v19  ;;  %v7564_v60 = vrot.slane %v7085_v45, %v19092_v12  ;;  %v8624_v33 = vsel %vm1058_vm5, %v17002_v17, %v8623_v1  ;;  %v19571_v19 = vld [vmem:[#allocation46_spill] sm:$0xff]  ;;  %v19572_v17 = vld [vmem:[#allocation44_spill] sm:$0xff] }
 0x45d   : > { %v8078_v53 = vrot.slane %v8077_v30, 2  ;;  %v8084_v59 = vmax.f32 %v19568_v31, %v19569_v3  ;;  %12662 = vmatprep.mubr.msk.f32.mxu0 %vm5258_vm9, %v8866_v7  ;;  %v17020_v6 = vmax.f32 %v8065_v24, %v8066_v54  ;;  %v7571_v34 = vrot.slane %v7557_v40, %v19092_v12 }
 0x45e   : > { %v17018_v22 = vmax.f32 %v8030_v32, %v8031_v55  ;;  %v7572_v44 = vcombine.high %v7564_v60, %v7564_v60  ;;  %v8432_v31 = vsel %vm7703_vm10, %v7564_v60, -inf  ;;  %v8626_v45 = vsel %vm8587_vm11, %v19571_v19, %v16976_v10 }
 0x45f   : > { %v8079_v37 = vmax.f32 %v8077_v30, %v8078_v53  ;;  %v8085_v2 = vrot.slane %v8084_v59, 2  ;;  %v8433_v3 = vrot.slane %v8432_v31, 4  ;;  %v7573_v30 = vcombine.high %v7571_v34, %v7571_v34 }
 0x460   : > { %19570 = vst [vmem:[#allocation40_spill] sm:$0xff] %v17018_v22  ;;  %v8625_v1 = vsel %vm8596_vm14, %v17018_v22, %v8624_v33  ;;  %v8867_v24 = vsel %vm8587_vm11, %v16976_v10, %v17018_v22  ;;  %v8439_v54 = vsel %vm7703_vm10, %v7572_v44, -inf  ;;  %v8446_v55 = vsel %vm7703_vm10, %v7571_v34, -inf }
 0x461   : > { %v8080_v32 = vrot.slane %v8079_v37, 1  ;;  %12642 = vmatprep.mubr.msk.f32.mxu1 %vm5258_vm9, %v8625_v1  ;;  %v8868_v53 = vsel %vm1054_vm2, %v19571_v19, %v8867_v24  ;;  %v8434_v7 = vmax.f32 %v8432_v31, %v8433_v3  ;;  %v8440_v40 = vrot.slane %v8439_v54, 4 }
 0x462   : > { %v8447_v60 = vrot.slane %v8446_v55, 4  ;;  %v8453_v33 = vsel %vm7703_vm10, %v7573_v30, -inf  ;;  %v8869_v10 = vsel %vm8590_vm12, %v19572_v17, %v8868_v53  ;;  %v8086_v22 = vmax.f32 %v8084_v59, %v8085_v2 }
 0x463   : > { %v17037_v12 = vmax.f32 %v8079_v37, %v8080_v32  ;;  %v8627_v44 = vsel %vm1054_vm2, %v19572_v17, %v8626_v45  ;;  %v8435_v34 = vrot.slane %v8434_v7, 2  ;;  %v8441_v21 = vmax.f32 %v8439_v54, %v8440_v40 }
 0x464   : > { %v8448_v1 = vmax.f32 %v8446_v55, %v8447_v60  ;;  %v8454_v49 = vrot.slane %v8453_v33, 4  ;;  %v8870_v31 = vsel %vm1056_vm4, %v16989_v23, %v8869_v10  ;;  %v8087_v3 = vrot.slane %v8086_v22, 1 }
 0x465   : > { %v8628_v37 = vsel %vm8590_vm12, %v16989_v23, %v8627_v44  ;;  %v19573_v24 = vrot.slane %v16515_v35, 1  ;;  %v8436_v59 = vmax.f32 %v8434_v7, %v8435_v34  ;;  %v8442_v2 = vrot.slane %v8441_v21, 2 }
 0x466   : > { %v8449_v30 = vrot.slane %v8448_v1, 2  ;;  %v17053_v45 = vmax.f32 %v8453_v33, %v8454_v49  ;;  %v8871_v54 = vsel %vm8593_vm13, %v17020_v6, %v8870_v31  ;;  %v17057_v55 = vmax.f32 %v8086_v22, %v8087_v3  ;;  %v19574_v33 = vld [vmem:[#allocation73_spill] sm:$0xff] }
 0x467   : > { %v17051_v32 = vmax.f32 %v16515_v35, %v19573_v24  ;;  %v8629_v10 = vsel %vm1056_vm4, %v17020_v6, %v8628_v37  ;;  %v8136_v53 = vrot.slane %v16519_v61, 1  ;;  %v8437_v40 = vrot.slane %v8436_v59, 1  ;;  %v19602_v35 = vld [vmem:[#allocation82_spill] sm:$0xff] }
 0x468   : > { %v8443_v60 = vmax.f32 %v8441_v21, %v8442_v2  ;;  %v17062_v44 = vmax.f32 %v8448_v1, %v8449_v30  ;;  %v8872_v49 = vsel %vm1058_vm5, %v17007_v46, %v8871_v54  ;;  %v8630_v7 = vsel %vm8593_vm13, %v17007_v46, %v8629_v10 }
 0x469   : > { %v17070_v22 = vmax.f32 %v16519_v61, %v8136_v53  ;;  %v19575_v34 = vrot.slane %v19574_v33, 2  ;;  %v17075_v3 = vmax.f32 %v8436_v59, %v8437_v40  ;;  %v8873_v37 = vsel %vm8596_vm14, %v17037_v12, %v8872_v49  ;;  %v19576_v61 = vld [vmem:[#allocation47_spill] sm:$0xff] }
 0x46a   : > { %v8444_v21 = vrot.slane %v8443_v60, 1  ;;  %12663 = vmatmul.mubr.msk.f32.gmra.mxu0 %vm5258_vm9, %v8873_v37  ;;  %v8631_v24 = vsel %vm1058_vm5, %v17037_v12, %v8630_v7  ;;  %v19577_v30 = vcombine.high %v19576_v61, %v19576_v61  ;;  %v8874_v59 = vsel %vm8587_vm11, %v16526_v29, %v16521_v13 }
 0x46b   : > { %v8142_v31 = vmax.f32 %v19574_v33, %v19575_v34  ;;  %v8632_v53 = vsel %vm8596_vm14, %v17057_v55, %v8631_v24  ;;  %v8875_v49 = vsel %vm1054_vm2, %v16531_v50, %v8874_v59  ;;  %v8155_v34 = vrot.slane %v16632_v62, 2 }
 0x46c   : > { %v8145_v54 = vsel %vm7703_vm10, %v19577_v30, -inf  ;;  %v17090_v10 = vmax.f32 %v8443_v60, %v8444_v21  ;;  %12643 = vmatmul.mubr.msk.f32.gmra.mxu1 %vm5258_vm9, %v8632_v53  ;;  %v8876_v33 = vsel %vm8590_vm12, %v17051_v32, %v8875_v49  ;;  %v8633_v13 = vsel %vm8587_vm11, %v16531_v50, %v16526_v29 }
 0x46d   : > { %v8143_v2 = vrot.slane %v8142_v31, 1  ;;  %v8146_v40 = vrot.slane %v8145_v54, 4  ;;  %v8877_v21 = vsel %vm1056_vm4, %v16517_v27, %v8876_v33  ;;  %v8634_v37 = vsel %vm1054_vm2, %v17051_v32, %v8633_v13 }
 0x46e   : > { %v19578_v24 = vrot.slane %v16639_v5, 1  ;;  %v8156_v61 = vmax.f32 %v16632_v62, %v8155_v34  ;;  %v8635_v29 = vsel %vm8590_vm12, %v16517_v27, %v8634_v37  ;;  %v19579_v30 = vrot.slane %v16533_v9, 1 }
 0x46f   : > { %v17097_v7 = vmax.f32 %v8142_v31, %v8143_v2  ;;  %v8147_v60 = vmax.f32 %v8145_v54, %v8146_v40  ;;  %v8878_v2 = vsel %vm8593_vm13, %v17070_v22, %v8877_v21  ;;  %v19580_v40 = vrot.slane %v16524_v52, 2 }
 0x470   : > { %v17112_v31 = vmax.f32 %v16639_v5, %v19578_v24  ;;  %v8200_v54 = vmax.f32 %v16533_v9, %v19579_v30  ;;  %v8636_v5 = vsel %vm1056_vm4, %v17070_v22, %v8635_v29  ;;  %v8157_v33 = vrot.slane %v8156_v61, 1 }
 0x471   : > { %v8148_v59 = vrot.slane %v8147_v60, 2  ;;  %v8879_v53 = vsel %vm1058_vm5, %v17097_v7, %v8878_v2  ;;  %v8205_v49 = vmax.f32 %v16524_v52, %v19580_v40  ;;  %v8637_v62 = vsel %vm8593_vm13, %v17097_v7, %v8636_v5 }
 0x472   : > { %v8213_v34 = vrot.slane %v16711_v51, 1  ;;  %v19581_v13 = vrot.slane %v16688_v58, 4  ;;  %v19582_v24 = vrot.slane %v16684_v39, 4  ;;  %v19583_v29 = vrot.slane %v16705_v15, 1 }
 0x473   : > { %v8149_v21 = vmax.f32 %v8147_v60, %v8148_v59  ;;  %v8206_v37 = vrot.slane %v8205_v49, 1  ;;  %v17143_v30 = vmax.f32 %v8156_v61, %v8157_v33  ;;  %v8262_v33 = vrot.slane %v16665_v63, 1 }
 0x474   : > { %v8217_v9 = vmax.f32 %v16688_v58, %v19581_v13  ;;  %v8224_v2 = vmax.f32 %v16684_v39, %v19582_v24  ;;  %v17141_v52 = vmax.f32 %v16705_v15, %v19583_v29  ;;  %v17146_v5 = vmax.f32 %v16711_v51, %v8213_v34 }
 0x475   : > { %v8640_v58 = vsel %vm8587_vm11, %v16648_v16, %v16637_v41  ;;  %v8150_v60 = vrot.slane %v8149_v21, 1  ;;  %v8207_v59 = vmax.f32 %v8205_v49, %v8206_v37  ;;  %v8881_v15 = vsel %vm8587_vm11, %v16637_v41, %v17143_v30 }
 0x476   : > { %19584 = vst [vmem:[#allocation74_spill] sm:$0xff] %v17141_v52  ;;  %v8218_v40 = vrot.slane %v8217_v9, 2  ;;  %v8225_v13 = vrot.slane %v8224_v2, 2  ;;  %v8641_v39 = vsel %vm1054_vm2, %v17112_v31, %v8640_v58  ;;  %v8882_v24 = vsel %vm1054_vm2, %v16648_v16, %v8881_v15 }
 0x477   : > { %v8642_v51 = vsel %vm8590_vm12, %v16549_v56, %v8641_v39  ;;  %v17159_v34 = vmax.f32 %v8149_v21, %v8150_v60  ;;  %v8883_v58 = vsel %vm8590_vm12, %v17112_v31, %v8882_v24  ;;  %v19603_v1 = vrot.slane %v19602_v35, 4 }
 0x478   : > { %v8219_v61 = vmax.f32 %v8217_v9, %v8218_v40  ;;  %v8226_v49 = vmax.f32 %v8224_v2, %v8225_v13  ;;  %v8643_v37 = vsel %vm1056_vm4, %v8207_v59, %v8642_v51  ;;  %v17169_v40 = vmax.f32 %v16665_v63, %v8262_v33 }
 0x479   : > { %v8644_v9 = vsel %vm8593_vm13, %v17146_v5, %v8643_v37  ;;  %v8880_v21 = vsel %vm8596_vm14, %v17159_v34, %v8879_v53  ;;  %v8638_v60 = vsel %vm1058_vm5, %v17159_v34, %v8637_v62  ;;  %v8884_v2 = vsel %vm1056_vm4, %v8200_v54, %v8883_v58 }
 0x47a   : > { %v8220_v29 = vrot.slane %v8219_v61, 1  ;;  %v8227_v13 = vrot.slane %v8226_v49, 1  ;;  %12665 = vmatprep.mubr.msk.f32.mxu0 %vm5258_vm9, %v8880_v21  ;;  %v8639_v39 = vsel %vm8596_vm14, %v17143_v30, %v8638_v60  ;;  %v8885_v51 = vsel %vm8593_vm13, %v8207_v59, %v8884_v2 }
 0x47b   : > { %v19585_v63 = vrot.slane %v16762_v0, 1  ;;  %12645 = vmatprep.mubr.msk.f32.mxu1 %vm5258_vm9, %v8639_v39  ;;  %v8886_v54 = vsel %vm1058_vm5, %v17146_v5, %v8885_v51  ;;  %v19586_v62 = vrot.slane %v16753_v26, 2  ;;  %v8332_v2 = vrot.slane %v16879_v18, 1 }
 0x47c   : > { %v17179_v15 = vmax.f32 %v8219_v61, %v8220_v29  ;;  %v17190_v53 = vmax.f32 %v8226_v49, %v8227_v13  ;;  %v19587_v61 = vrot.slane %v16741_v11, 4  ;;  %v8647_v29 = vsel %vm8587_vm11, %v16659_v14, %v17141_v52 }
 0x47d   : > { %v17185_v33 = vmax.f32 %v16762_v0, %v19585_v63  ;;  %v8275_v24 = vmax.f32 %v16753_v26, %v19586_v62  ;;  %v19588_v49 = vrot.slane %v16717_v57, 1  ;;  %v8648_v60 = vsel %vm1054_vm2, %v16678_v4, %v8647_v29 }
 0x47e   : > { %v8280_v59 = vmax.f32 %v16741_v11, %v19587_v61  ;;  %v8887_v37 = vsel %vm8596_vm14, %v17179_v15, %v8886_v54  ;;  %v8645_v0 = vsel %vm1058_vm5, %v17179_v15, %v8644_v9  ;;  %v8888_v26 = vsel %vm8587_vm11, %v17141_v52, %v17190_v53  ;;  %v19590_v54 = vld [vmem:[#allocation65_spill] sm:$0xff] }
 0x47f   : > { %v17208_v58 = vmax.f32 %v16717_v57, %v19588_v49  ;;  %12666 = vmatmul.mubr.msk.f32.gmra.mxu0 %vm5258_vm9, %v8887_v37  ;;  %v8646_v11 = vsel %vm8596_vm14, %v17190_v53, %v8645_v0  ;;  %v8276_v21 = vrot.slane %v8275_v24, 1  ;;  %v8889_v57 = vsel %vm1054_vm2, %v16659_v14, %v8888_v26 }
 0x480   : > { %v8281_v9 = vrot.slane %v8280_v59, 2  ;;  %12646 = vmatmul.mubr.msk.f32.gmra.mxu1 %vm5258_vm9, %v8646_v11  ;;  %v19589_v13 = vrot.slane %v16844_v36, 2  ;;  %v8649_v62 = vsel %vm8590_vm12, %v19590_v54, %v8648_v60  ;;  %v8890_v61 = vsel %vm8590_vm12, %v16678_v4, %v8889_v57 }
 0x481   : > { %v17225_v51 = vmax.f32 %v8275_v24, %v8276_v21  ;;  %v8650_v37 = vsel %vm1056_vm4, %v17169_v40, %v8649_v62  ;;  %v8891_v0 = vsel %vm1056_vm4, %v19590_v54, %v8890_v61  ;;  %v17236_v29 = vmax.f32 %v16879_v18, %v8332_v2  ;;  %v19594_v62 = vld [vmem:[#allocation56_spill] sm:$0xff] }
 0x482   : > { %v8338_v39 = vmax.f32 %v16844_v36, %v19589_v13  ;;  %v8282_v63 = vmax.f32 %v8280_v59, %v8281_v9  ;;  %v8651_v24 = vsel %vm8593_vm13, %v17185_v33, %v8650_v37  ;;  %v8892_v59 = vsel %vm8593_vm13, %v17169_v40, %v8891_v0  ;;  %v19593_v13 = vld [vmem:[#allocation50_spill] sm:$0xff] }
 0x483   : > { %v19591_v11 = vcombine.high %v16826_v38, %v16826_v38  ;;  %v8652_v21 = vsel %vm1058_vm5, %v17225_v51, %v8651_v24  ;;  %v8893_v18 = vsel %vm1058_vm5, %v17185_v33, %v8892_v59  ;;  %v8895_v38 = vsel %vm8587_vm11, %v19594_v62, %v19593_v13  ;;  %v19595_v0 = vld [vmem:[#allocation66_spill] sm:$0xff] }
 0x484   : > { %v8339_v49 = vrot.slane %v8338_v39, 1  ;;  %v8283_v36 = vrot.slane %v8282_v63, 1  ;;  %v8894_v2 = vsel %vm8596_vm14, %v17225_v51, %v8893_v18  ;;  %v8351_v61 = vrot.slane %v16787_v48, 2 }
 0x485   : > { %v8341_v26 = vsel %vm7703_vm10, %v19591_v11, -inf  ;;  %12668 = vmatprep.mubr.msk.f32.mxu0 %vm5258_vm9, %v8894_v2  ;;  %v8896_v24 = vsel %vm1054_vm2, %v19595_v0, %v8895_v38 }
 0x486   : > { %v17250_v9 = vmax.f32 %v8338_v39, %v8339_v49  ;;  %v8342_v60 = vrot.slane %v8341_v26, 4  ;;  %v17252_v57 = vmax.f32 %v8282_v63, %v8283_v36  ;;  %v8654_v39 = vsel %vm8587_vm11, %v19595_v0, %v19594_v62  ;;  %v19596_v63 = vld [vmem:[#allocation68_spill] sm:$0xff] }
 0x487   : > { %v19597_v49 = vrot.slane %v19596_v63, 1  ;;  %v8897_v11 = vsel %vm8590_vm12, %v17208_v58, %v8896_v24  ;;  %v8655_v18 = vsel %vm1054_vm2, %v17208_v58, %v8654_v39  ;;  %v19598_v62 = vrot.slane %v16947_v47, 1 }
 0x488   : > { %19592 = vst [vmem:[#allocation11_spill] sm:$0xff] %v17252_v57  ;;  %v8343_v37 = vmax.f32 %v8341_v26, %v8342_v60  ;;  %v8653_v59 = vsel %vm8596_vm14, %v17252_v57, %v8652_v21  ;;  %v8352_v26 = vmax.f32 %v16787_v48, %v8351_v61  ;;  %v8898_v2 = vsel %vm1056_vm4, %v16889_v20, %v8897_v11 }
 0x489   : > { %v17269_v36 = vmax.f32 %v19596_v63, %v19597_v49  ;;  %12648 = vmatprep.mubr.msk.f32.mxu1 %vm5258_vm9, %v8653_v59  ;;  %v8656_v13 = vsel %vm8590_vm12, %v16889_v20, %v8655_v18  ;;  %v8396_v21 = vmax.f32 %v16947_v47, %v19598_v62  ;;  %v8899_v38 = vsel %vm8593_vm13, %v17236_v29, %v8898_v2  ;;  %v19600_v2 = vld [vmem:[#allocation83_spill] sm:$0xff] }
 0x48a   : > { %v8344_v60 = vrot.slane %v8343_v37, 2  ;;  %v8353_v48 = vrot.slane %v8352_v26, 1  ;;  %v8657_v61 = vsel %vm1056_vm4, %v17236_v29, %v8656_v13  ;;  %v19599_v24 = vrot.slane %v16943_v43, 2 }
 0x48b   : > { %v8900_v49 = vsel %vm1058_vm5, %v17250_v9, %v8899_v38  ;;  %v8658_v59 = vsel %vm8593_vm13, %v17250_v9, %v8657_v61  ;;  %v8409_v47 = vrot.slane %v16935_v28, 1  ;;  %v19601_v62 = vrot.slane %v19600_v2, 4 }
 0x48c   : > { %v8401_v39 = vmax.f32 %v16943_v43, %v19599_v24  ;;  %v8345_v63 = vmax.f32 %v8343_v37, %v8344_v60  ;;  %v17298_v11 = vmax.f32 %v8352_v26, %v8353_v48  ;;  %v8420_v43 = vmax.f32 %v19602_v35, %v19603_v1  ;;  %v19606_v26 = vld [vmem:[#allocation69_spill] sm:$0xff] }
 0x48d   : > { %v8413_v13 = vmax.f32 %v19600_v2, %v19601_v62  ;;  %v17307_v60 = vmax.f32 %v16935_v28, %v8409_v47  ;;  %v19604_v38 = vrot.slane %v16933_v42, 1  ;;  %v19607_v48 = vld [vmem:[#allocation61_spill] sm:$0xff]  ;;  %v19608_v47 = vrot.slane %v17062_v44, 1 }
 0x48e   : > { %v8402_v18 = vrot.slane %v8401_v39, 1  ;;  %v8346_v37 = vrot.slane %v8345_v63, 1  ;;  %v8661_v24 = vsel %vm8587_vm11, %v19607_v48, %v19606_v26  ;;  %v8902_v2 = vsel %vm8587_vm11, %v19606_v26, %v17298_v11 }
 0x48f   : > { %v17312_v61 = vmax.f32 %v16933_v42, %v19604_v38  ;;  %v8414_v57 = vrot.slane %v8413_v13, 2  ;;  %v8421_v35 = vrot.slane %v8420_v43, 2  ;;  %v8903_v28 = vsel %vm1054_vm2, %v19607_v48, %v8902_v2 }
 0x490   : > { %v8403_v62 = vmax.f32 %v8401_v39, %v8402_v18  ;;  %v17320_v1 = vmax.f32 %v8345_v63, %v8346_v37  ;;  %v8662_v42 = vsel %vm1054_vm2, %v17269_v36, %v8661_v24  ;;  %v17329_v38 = vmax.f32 %v17062_v44, %v19608_v47 }
 0x491   : > { %19605 = vst [vmem:[#allocation93_spill] sm:$0xff] %v17312_v61  ;;  %v8415_v52 = vmax.f32 %v8413_v13, %v8414_v57  ;;  %v8904_v26 = vsel %vm8590_vm12, %v17269_v36, %v8903_v28  ;;  %v8422_v39 = vmax.f32 %v8420_v43, %v8421_v35  ;;  %v8663_v63 = vsel %vm8590_vm12, %v16956_v8, %v8662_v42 }
 0x492   : > { %v8901_v18 = vsel %vm8596_vm14, %v17320_v1, %v8900_v49  ;;  %v8659_v37 = vsel %vm1058_vm5, %v17320_v1, %v8658_v59  ;;  %v8905_v24 = vsel %vm1056_vm4, %v8396_v21, %v8904_v26  ;;  %v8664_v2 = vsel %vm1056_vm4, %v8403_v62, %v8663_v63 }
 0x493   : > { %12669 = vmatmul.mubr.msk.f32.gmra.mxu0 %vm5258_vm9, %v8901_v18  ;;  %v8660_v44 = vsel %vm8596_vm14, %v17298_v11, %v8659_v37  ;;  %v8416_v57 = vrot.slane %v8415_v52, 1  ;;  %v8906_v13 = vsel %vm8593_vm13, %v8403_v62, %v8905_v24  ;;  %v8423_v43 = vrot.slane %v8422_v39, 1  ;;  %v19611_v62 = vld [vmem:[#allocation89_spill] sm:$0xff]  ;;  %v19613_v18 = vld [vmem:[#allocation90_spill] sm:$0xff] }
 0x494   : > { %12649 = vmatmul.mubr.msk.f32.gmra.mxu1 %vm5258_vm9, %v8660_v44  ;;  %v8907_v49 = vsel %vm1058_vm5, %v17307_v60, %v8906_v13  ;;  %v8665_v59 = vsel %vm8593_vm13, %v17307_v60, %v8664_v2  ;;  %v19609_v21 = vrot.slane %v17053_v45, 2  ;;  %v8465_v35 = vrot.slane %v16966_v25, 1 }
 0x495   : > { %v17354_v28 = vmax.f32 %v8415_v52, %v8416_v57  ;;  %v17356_v42 = vmax.f32 %v8422_v39, %v8423_v43  ;;  %v19612_v47 = vrot.slane %v19611_v62, 4  ;;  %v19614_v37 = vrot.slane %v19613_v18, 4  ;;  %v19616_v52 = vld [vmem:[#allocation16_spill] sm:$0xff]  ;;  %v19617_v57 = vld [vmem:[#allocation78_spill] sm:$0xff] }
 0x496   : > { %v8457_v26 = vmax.f32 %v17053_v45, %v19609_v21  ;;  %v17365_v2 = vmax.f32 %v16966_v25, %v8465_v35  ;;  %v8668_v45 = vsel %vm8587_vm11, %v17075_v3, %v17312_v61  ;;  %v9075_v39 = vsel %vm8587_vm11, %v19617_v57, %v19616_v52  ;;  %v19618_v52 = vld [vmem:[#allocation14_spill] sm:$0xff] }
 0x497   : > { %19610 = vst [vmem:[#allocation15_spill] sm:$0xff] %v17356_v42  ;;  %v8469_v63 = vmax.f32 %v19611_v62, %v19612_v47  ;;  %v8476_v24 = vmax.f32 %v19613_v18, %v19614_v37  ;;  %v8908_v13 = vsel %vm8596_vm14, %v17354_v28, %v8907_v49  ;;  %v8666_v43 = vsel %vm1058_vm5, %v17354_v28, %v8665_v59 }
 0x498   : > { %v8458_v44 = vrot.slane %v8457_v26, 1  ;;  %19615 = vst [vmem:[#allocation51_spill] sm:$0xff] %v17365_v2  ;;  %v8909_v21 = vsel %vm8587_vm11, %v17312_v61, %v17356_v42  ;;  %12671 = vmatprep.mubr.msk.f32.mxu0 %vm5258_vm9, %v8908_v13  ;;  %v8667_v35 = vsel %vm8596_vm14, %v17356_v42, %v8666_v43  ;;  %v8669_v37 = vsel %vm1054_vm2, %v17090_v10, %v8668_v45  ;;  %v19619_v43 = vld [vmem:[#allocation77_spill] sm:$0xff] }
 0x499   : > { %v8470_v25 = vrot.slane %v8469_v63, 2  ;;  %v8910_v47 = vsel %vm1054_vm2, %v17075_v3, %v8909_v21  ;;  %v8477_v18 = vrot.slane %v8476_v24, 2  ;;  %12651 = vmatprep.mubr.msk.f32.mxu1 %vm5258_vm9, %v8667_v35  ;;  %v9076_v57 = vsel %vm1054_vm2, %v19618_v52, %v9075_v39  ;;  %v19620_v35 = vld [vmem:[#allocation49_spill] sm:$0xff] }
 0x49a   : > { %v17383_v62 = vmax.f32 %v8457_v26, %v8458_v44  ;;  %v8911_v59 = vsel %vm8590_vm12, %v17090_v10, %v8910_v47  ;;  %v8670_v13 = vsel %vm8590_vm12, %v17329_v38, %v8669_v37  ;;  %v9077_v21 = vsel %vm8590_vm12, %v19619_v43, %v9076_v57  ;;  %v19623_v57 = vld [vmem:[#allocation60_spill] sm:$0xff]  ;;  %v19624_v43 = vld [vmem:[#allocation95_spill] sm:$0xff] }
 0x49b   : > { %v8471_v49 = vmax.f32 %v8469_v63, %v8470_v25  ;;  %v8912_v26 = vsel %vm1056_vm4, %v17329_v38, %v8911_v59  ;;  %v8478_v44 = vmax.f32 %v8476_v24, %v8477_v18  ;;  %v9078_v39 = vsel %vm1056_vm4, %v19620_v35, %v9077_v21  ;;  %v19621_v59 = vld [vmem:[#allocation48_spill] sm:$0xff] }
 0x49c   : > { %v8913_v25 = vsel %vm8593_vm13, %v17383_v62, %v8912_v26  ;;  %v8671_v45 = vsel %vm1056_vm4, %v17383_v62, %v8670_v13  ;;  %v9079_v37 = vsel %vm8593_vm13, %v19621_v59, %v9078_v39  ;;  %v19625_v13 = vld [vmem:[#allocation96_spill] sm:$0xff] }
 0x49d   : > { %v8472_v63 = vrot.slane %v8471_v49, 1  ;;  %v8914_v47 = vsel %vm1058_vm5, %v17365_v2, %v8913_v25  ;;  %v8479_v24 = vrot.slane %v8478_v44, 1  ;;  %v8672_v18 = vsel %vm8593_vm13, %v17365_v2, %v8671_v45  ;;  %v19626_v21 = vld [vmem:[#allocation20_spill] sm:$0xff]  ;;  %v19629_v45 = vld [vmem:[#allocation97_spill] sm:$0xff] }
 0x49e   : > { %v9080_v26 = vsel %vm1058_vm5, %v19623_v57, %v9079_v37  ;;  %v9083_v61 = vsel %vm1054_vm2, %v19625_v13, %v19624_v43  ;;  %v19627_v35 = vcombine.high %v19626_v21, %v19626_v21  ;;  %v19630_v39 = vld [vmem:[#allocation64_spill] sm:$0xff]  ;;  %v19631_v57 = vld [vmem:[#allocation26_spill] sm:$0xff]  ;;  %v19632_v13 = vld [vmem:[#allocation21_spill] sm:$0xff] }
 0x49f   : > { %v17412_v52 = vmax.f32 %v8471_v49, %v8472_v63  ;;  %v17423_v42 = vmax.f32 %v8478_v44, %v8479_v24  ;;  %v9081_v2 = vsel %vm8596_vm14, %v19629_v45, %v9080_v26  ;;  %v9084_v49 = vsel %vm8590_vm12, %v19630_v39, %v9083_v61  ;;  %v19633_v21 = vld [vmem:[#allocation92_spill] sm:$0xff]  ;;  %v19634_v61 = vld [vmem:[#allocation62_spill] sm:$0xff] }
 0x4a0   : > { %v7893_v25 = vsel %vm7703_vm10, %v19627_v35, -inf  ;;  %v9085_v43 = vsel %vm1056_vm4, %v19631_v57, %v9084_v49  ;;  %v9089_v44 = vsel %vm8587_vm11, %v19633_v21, %v19632_v13  ;;  %v19637_v49 = vld [vmem:[#allocation67_spill] sm:$0xff]  ;;  %v19638_v13 = vld [vmem:[#allocation30_spill] sm:$0xff] }
 0x4a1   : > { %19622 = vst [vmem:[#allocation13_spill] sm:$0xff] %v17412_v52  ;;  %19628 = vst [vmem:[#allocation17_spill] sm:$0xff] %v17423_v42  ;;  %v7894_v63 = vrot.slane %v7893_v25, 4  ;;  %v8915_v59 = vsel %vm8596_vm14, %v17412_v52, %v8914_v47  ;;  %v8673_v37 = vsel %vm1058_vm5, %v17412_v52, %v8672_v18  ;;  %v9086_v26 = vsel %vm8593_vm13, %v19634_v61, %v9085_v43  ;;  %v19635_v47 = vld [vmem:[#allocation19_spill] sm:$0xff]  ;;  %v19636_v18 = vld [vmem:[#allocation57_spill] sm:$0xff] }
 0x4a2   : > { %12672 = vmatmul.mubr.msk.f32.gmra.mxu0 %vm5258_vm9, %v8915_v59  ;;  %v8674_v24 = vsel %vm8596_vm14, %v17423_v42, %v8673_v37  ;;  %v9090_v45 = vsel %vm1054_vm2, %v19635_v47, %v9089_v44  ;;  %v9087_v39 = vsel %vm1058_vm5, %v19636_v18, %v9086_v26  ;;  %v19639_v59 = vld [vmem:[#allocation59_spill] sm:$0xff]  ;;  %v19640_v37 = vld [vmem:[#allocation33_spill] sm:$0xff]  ;;  %v19650_v52 = vld [vmem:[#allocation58_spill] sm:$0xff] }
 0x4a3   : > { %v7895_v35 = vmax.f32 %v7893_v25, %v7894_v63  ;;  %12652 = vmatmul.mubr.msk.f32.gmra.mxu1 %vm5258_vm9, %v8674_v24  ;;  %v9091_v57 = vsel %vm8590_vm12, %v19637_v49, %v9090_v45  ;;  %v9096_v21 = vsel %vm8587_vm11, %v19639_v59, %v19638_v13  ;;  %v19641_v42 = vld [vmem:[#allocation7_spill] sm:$0xff]  ;;  %v19642_v25 = vld [vmem:[#allocation34_spill] sm:$0xff]  ;;  %v19644_v26 = vld [vmem:[#allocation29_spill] sm:$0xff] }
 0x4a4   : > { %v9103_v43 = vsel %vm8587_vm11, %v19641_v42, %v19640_v37  ;;  %12676 = vmatprep.mubr.msk.f32.mxu1 %vm5258_vm9, %v9081_v2  ;;  %v9088_v63 = vsel %vm8596_vm14, %v19642_v25, %v9087_v39  ;;  %v19643_v24 = vld [vmem:[#allocation54_spill] sm:$0xff]  ;;  %v9097_v47 = vsel %vm1054_vm2, %v19644_v26, %v9096_v21  ;;  %v19645_v45 = vld [vmem:[#allocation55_spill] sm:$0xff]  ;;  %v19646_v49 = vld [vmem:[#allocation9_spill] sm:$0xff] }
 0x4a5   : > { %v7896_v44 = vrot.slane %v7895_v35, 2  ;;  %v9092_v61 = vsel %vm1056_vm4, %v19643_v24, %v9091_v57  ;;  %v9098_v13 = vsel %vm8590_vm12, %v19646_v49, %v9097_v47  ;;  %v19647_v59 = vld [vmem:[#allocation24_spill] sm:$0xff]  ;;  %v19648_v2 = vld [vmem:[#allocation41_spill] sm:$0xff]  ;;  %v19651_v24 = vld [vmem:[#allocation70_spill] sm:$0xff] }
 0x4a6   : > { %v9093_v18 = vsel %vm8593_vm13, %v19645_v45, %v9092_v61  ;;  %v9104_v42 = vsel %vm1054_vm2, %v19647_v59, %v9103_v43  ;;  %v19649_v37 = vcombine.high %v19648_v2, %v19648_v2  ;;  %v9099_v21 = vsel %vm1056_vm4, %v19651_v24, %v9098_v13  ;;  %v19652_v26 = vld [vmem:[#allocation45_spill] sm:$0xff]  ;;  %v19653_v47 = vld [vmem:[#allocation63_spill] sm:$0xff]  ;;  %v19657_v2 = vld [vmem:[#allocation28_spill] sm:$0xff] }
 0x4a7   : > { %v7897_v25 = vmax.f32 %v7895_v35, %v7896_v44  ;;  %v9094_v57 = vsel %vm1058_vm5, %v19650_v52, %v9093_v18  ;;  %v9105_v61 = vsel %vm8590_vm12, %v19652_v26, %v9104_v42  ;;  %12677 = vmatmul.mubr.msk.f32.vlgmr.msra.gmra.mxu1 %vm5258_vm9, %v9088_v63  ;;  %v9100_v43 = vsel %vm8593_vm13, %v19653_v47, %v9099_v21  ;;  %v19654_v45 = vld [vmem:[#allocation85_spill] sm:$0xff]  ;;  %v19656_v13 = vld [vmem:[#allocation87_spill] sm:$0xff]  ;;  %v19658_v24 = vld [vmem:[#allocation40_spill] sm:$0xff] }
 0x4a8   : > { %v8089_v39 = vsel %vm7703_vm10, %v19649_v37, -inf  ;;  %v9106_v49 = vsel %vm1056_vm4, %v19654_v45, %v9105_v61  ;;  %v9110_v35 = vsel %vm8587_vm11, %v19572_v17, %v19571_v19  ;;  %v19655_v44 = vld [vmem:[#allocation81_spill] sm:$0xff]  ;;  %v19659_v61 = vld [vmem:[#allocation84_spill] sm:$0xff] }
 0x4a9   : > { %v8090_v59 = vrot.slane %v8089_v39, 4  ;;  %v7898_v52 = vrot.slane %v7897_v25, 1  ;;  %v9101_v18 = vsel %vm1058_vm5, %v19655_v44, %v9100_v43  ;;  %v9107_v42 = vsel %vm8593_vm13, %v19656_v13, %v9106_v49  ;;  %v19663_v13 = vld [vmem:[#allocation86_spill] sm:$0xff] }
 0x4aa   : > { %v9111_v63 = vsel %vm1054_vm2, %v16989_v23, %v9110_v35  ;;  %v9102_v37 = vsel %vm8596_vm14, %v19657_v2, %v9101_v18  ;;  %v9108_v21 = vsel %vm1058_vm5, %v19658_v24, %v9107_v42  ;;  %v9117_v23 = vsel %vm8587_vm11, %v17051_v32, %v16531_v50  ;;  %v19660_v32 = vld [vmem:[#allocation53_spill] sm:$0xff] }
 0x4ab   : > { %v8091_v26 = vmax.f32 %v8089_v39, %v8090_v59  ;;  %v9112_v17 = vsel %vm8590_vm12, %v17020_v6, %v9111_v63  ;;  %v7899_v19 = vmax.f32 %v7897_v25, %v7898_v52  ;;  %v9109_v47 = vsel %vm8596_vm14, %v19659_v61, %v9108_v21  ;;  %v19665_v63 = vld [vmem:[#allocation91_spill] sm:$0xff] }
 0x4ac   : > { %v9113_v43 = vsel %vm1056_vm4, %v17007_v46, %v9112_v17  ;;  %v9118_v39 = vsel %vm1054_vm2, %v16517_v27, %v9117_v23  ;;  %v9124_v6 = vsel %vm8587_vm11, %v17112_v31, %v16648_v16  ;;  %v19661_v31 = vld [vmem:[#allocation75_spill] sm:$0xff]  ;;  %v19664_v42 = vrot.slane %v19663_v13, 1 }
 0x4ad   : > { %v8092_v45 = vrot.slane %v8091_v26, 2  ;;  %v9114_v49 = vsel %vm8593_vm13, %v17037_v12, %v9113_v43  ;;  %v9095_v25 = vsel %vm8596_vm14, %v7899_v19, %v9094_v57  ;;  %v9119_v59 = vsel %vm8590_vm12, %v17070_v22, %v9118_v39  ;;  %v19667_v23 = vld [vmem:[#allocation11_spill] sm:$0xff] }
 0x4ae   : > { %v9115_v46 = vsel %vm1058_vm5, %v17057_v55, %v9114_v49  ;;  %v9125_v50 = vsel %vm1054_vm2, %v16549_v56, %v9124_v6  ;;  %12679 = vmatprep.mubr.msk.f32.mxu1 %vm5258_vm9, %v9095_v25  ;;  %v9120_v27 = vsel %vm1056_vm4, %v17097_v7, %v9119_v59  ;;  %v19662_v57 = vcombine.high %v19661_v31, %v19661_v31 }
 0x4af   : > { %v8093_v12 = vmax.f32 %v8091_v26, %v8092_v45  ;;  %v9126_v16 = vsel %vm8590_vm12, %v19660_v32, %v9125_v50  ;;  %12680 = vmatmul.mubr.msk.f32.gmra.mxu1 %vm5258_vm9, %v9102_v37  ;;  %v9121_v22 = vsel %vm8593_vm13, %v17159_v34, %v9120_v27  ;;  %v9131_v7 = vsel %vm8587_vm11, %v16678_v4, %v16659_v14  ;;  %v19671_v50 = vld [vmem:[#allocation13_spill] sm:$0xff] }
 0x4b0   : > { %v8285_v55 = vsel %vm7703_vm10, %v19662_v57, -inf  ;;  %v9127_v56 = vsel %vm1056_vm4, %v17146_v5, %v9126_v16  ;;  %12682 = vmatprep.mubr.msk.f32.mxu1 %vm5258_vm9, %v9109_v47  ;;  %v9122_v44 = vsel %vm1058_vm5, %v17143_v30, %v9121_v22  ;;  %v9132_v34 = vsel %vm1054_vm2, %v19590_v54, %v9131_v7  ;;  %v19666_v47 = vld [vmem:[#allocation74_spill] sm:$0xff]  ;;  %v19673_v16 = vld [vmem:[#allocation17_spill] sm:$0xff]  ;;  %v12035_v22 = vld [vmem:[%s18569_s7 + $0x8] sm:$0xff] }
 0x4b1   : > { %v8286_v35 = vrot.slane %v8285_v55, 4  ;;  %v8094_v52 = vrot.slane %v8093_v12, 1  ;;  %v9128_v18 = vsel %vm8593_vm13, %v17179_v15, %v9127_v56  ;;  %v8389_v5 = vmax.f32 %v19663_v13, %v19664_v42  ;;  %12694 = vmatprep.subr.mxu0 %v12035_v22  ;;  %v12056_v56 = vld [vmem:[%s18569_s7 + $0x10] sm:$0xff] }
 0x4b2   : > { %v7590_v2 = vcombine.high %v19665_v63, %v19665_v63  ;;  %v9133_v4 = vsel %vm8590_vm12, %v17169_v40, %v9132_v34  ;;  %v9123_v30 = vsel %vm8596_vm14, %v16637_v41, %v9122_v44  ;;  %v9138_v54 = vsel %vm8587_vm11, %v17208_v58, %v19595_v0  ;;  %12695 = vmatpush3.msra.mxu0 %v12035_v22 }
 0x4b3   : > { %v8287_v14 = vmax.f32 %v8285_v55, %v8286_v35  ;;  %v8095_v37 = vmax.f32 %v8093_v12, %v8094_v52  ;;  %v9134_v15 = vsel %vm1056_vm4, %v17185_v33, %v9133_v4  ;;  %v9129_v24 = vsel %vm1058_vm5, %v17190_v53, %v9128_v18  ;;  %12728 = vmatprep.subr.mxu1 %v12056_v56  ;;  %v17625_v35 = vld [vmem:[%s18569_s7] sm:$0xff] }
 0x4b4   : > { %v9139_v26 = vsel %vm1054_vm2, %v16889_v20, %v9138_v54  ;;  %v9145_v40 = vsel %vm8587_vm11, %v17269_v36, %v19607_v48  ;;  %v9135_v33 = vsel %vm8593_vm13, %v17225_v51, %v9134_v15  ;;  %v8481_v36 = vsel %vm7703_vm10, %v7590_v2, -inf  ;;  %12729 = vmatpush3.msra.mxu1 %v12056_v56  ;;  %12711 = vmatprep.subr.mxu0 %v17625_v35 }
 0x4b5   : > { %v8288_v21 = vrot.slane %v8287_v14, 2  ;;  %v9116_v41 = vsel %vm8596_vm14, %v8095_v37, %v9115_v46  ;;  %v9140_v17 = vsel %vm8590_vm12, %v17236_v29, %v9139_v26  ;;  %v9146_v58 = vsel %vm1054_vm2, %v16956_v8, %v9145_v40  ;;  %v19670_v46 = vld [vmem:[#allocation69_spill] sm:$0xff] }
 0x4b6   : > { %12683 = vmatmul.mubr.msk.f32.gmra.mxu1 %vm5258_vm9, %v9116_v41  ;;  %v9141_v20 = vsel %vm1056_vm4, %v17250_v9, %v9140_v17  ;;  %v9147_v0 = vsel %vm8590_vm12, %v8389_v5, %v9146_v58  ;;  %v8482_v48 = vrot.slane %v8481_v36, 4  ;;  %v9152_v8 = vsel %vm8587_vm11, %v17090_v10, %v17075_v3 }
 0x4b7   : > { %v8289_v53 = vmax.f32 %v8287_v14, %v8288_v21  ;;  %12685 = vmatprep.mubr.msk.f32.mxu1 %vm5258_vm9, %v9123_v30  ;;  %v9142_v51 = vsel %vm8593_vm13, %v17320_v1, %v9141_v20  ;;  %v9148_v29 = vsel %vm1056_vm4, %v17307_v60, %v9147_v0  ;;  %v9153_v61 = vsel %vm1054_vm2, %v17329_v38, %v9152_v8  ;;  %v19669_v38 = vld [vmem:[#allocation15_spill] sm:$0xff] }
 0x4b8   : > { %v9149_v9 = vsel %vm8593_vm13, %v17354_v28, %v9148_v29  ;;  %v9130_v43 = vsel %vm8596_vm14, %v19666_v47, %v9129_v24  ;;  %v9136_v1 = vsel %vm1058_vm5, %v19667_v23, %v9135_v33  ;;  %v8483_v45 = vmax.f32 %v8481_v36, %v8482_v48  ;;  %v19668_v28 = vld [vmem:[#allocation51_spill] sm:$0xff] }
 0x4b9   : > { %v8290_v19 = vrot.slane %v8289_v53, 1  ;;  %v9154_v60 = vsel %vm8590_vm12, %v17383_v62, %v9153_v61  ;;  %v9143_v10 = vsel %vm1058_vm5, %v17298_v11, %v9142_v51  ;;  %v9150_v39 = vsel %vm1058_vm5, %v19669_v38, %v9149_v9  ;;  %v19672_v11 = vld [vmem:[#allocation93_spill] sm:$0xff]  ;;  %v17631_v33 = vld [vmem:[%s18568_s6] ss:$0 sm:$0xff] }
 0x4ba   : > { %12686 = vmatmul.mubr.msk.f32.gmra.mxu1 %vm5258_vm9, %v9130_v43  ;;  %v9155_v49 = vsel %vm1056_vm4, %v19668_v28, %v9154_v60  ;;  %v8484_v6 = vrot.slane %v8483_v45, 2  ;;  %v9144_v62 = vsel %vm8596_vm14, %v19670_v46, %v9143_v10  ;;  %v9151_v27 = vsel %vm8596_vm14, %v19672_v11, %v9150_v39 }
 0x4bb   : > { %v8291_v3 = vmax.f32 %v8289_v53, %v8290_v19  ;;  %v9156_v12 = vsel %vm8593_vm13, %v19671_v50, %v9155_v49 }
 0x4bc   : > { %v8485_v59 = vmax.f32 %v8483_v45, %v8484_v6  ;;  %v9157_v31 = vsel %vm1058_vm5, %v19673_v16, %v9156_v12  ;;  %v19674_v45 = vld [vmem:[#allocation5_spill] sm:$0xff] }
 0x4bd   : > { %v9137_v25 = vsel %vm8596_vm14, %v8291_v3, %v9136_v1 }
 0x4be   : > { %12688 = vmatprep.mubr.msk.f32.mxu1 %vm5258_vm9, %v9137_v25  ;;  %v8486_v32 = vrot.slane %v8485_v59, 1 }
 0x4bf   : > { %12689 = vmatmul.mubr.msk.f32.gmra.mxu1 %vm5258_vm9, %v9144_v62 }
 0x4c0   : > { %12691 = vmatprep.mubr.msk.f32.mxu1 %vm5258_vm9, %v9151_v27  ;;  %v8487_v57 = vmax.f32 %v8485_v59, %v8486_v32 }
 0x4c2   : > { %v9158_v55 = vsel %vm8596_vm14, %v8487_v57, %v9157_v31 }
 0x4c3   : > { %12692 = vmatmul.mubr.msk.f32.gmra.mxu1 %vm5258_vm9, %v9158_v55 }
 0x4ce   : > { %v12658_v13 = vpop.f32.mrf.mxu0 }
 0x4d0   : > { %v9006_v5 = vpop.f32.mrf.mxu0 }
 0x4d6   : > { %v12638_v7 = vpop.f32.mrf.mxu1 }
 0x4d7   : > { %v9012_v40 = vadd.f32 %v12658_v13, %v12638_v7 }
 0x4d8   : > { %v8765_v52 = vpop.f32.mrf.mxu1 }
 0x4d9   : > { %v9007_v17 = vadd.f32 %v9006_v5, %v8765_v52 }
 0x502   : > { %v12661_v2 = vpop.f32.mrf.mxu0 }
 0x503   : > { %v12641_v44 = vpop.f32.mrf.mxu1 }
 0x504   : > { %v9016_v4 = vpop.f32.mrf.mxu0  ;;  %v9022_v8 = vadd.f32 %v12661_v2, %v12641_v44 }
 0x505   : > { %v8775_v18 = vpop.f32.mrf.mxu1 }
 0x506   : > { %v9017_v43 = vadd.f32 %v9016_v4, %v8775_v18 }
 0x52a   : > { %v12664_v30 = vpop.f32.mrf.mxu0 }
 0x52c   : > { %v12644_v34 = vpop.f32.mrf.mxu1  ;;  %v9026_v54 = vpop.f32.mrf.mxu0 }
 0x52d   : > { %v9032_v39 = vadd.f32 %v12664_v30, %v12644_v34 }
 0x52e   : > { %v8785_v42 = vpop.f32.mrf.mxu1 }
 0x52f   : > { %v9027_v46 = vadd.f32 %v9026_v54, %v8785_v42 }
 0x53f   : > { %v12667_v21 = vpop.f32.mrf.mxu0 }
 0x540   : > { %v12647_v63 = vpop.f32.mrf.mxu1 }
 0x541   : > { %v9036_v58 = vpop.f32.mrf.mxu0  ;;  %v9042_v62 = vadd.f32 %v12667_v21, %v12647_v63 }
 0x542   : > { %v8795_v14 = vpop.f32.mrf.mxu1 }
 0x543   : > { %v9037_v27 = vadd.f32 %v9036_v58, %v8795_v14 }
 0x553   : > { %v12670_v0 = vpop.f32.mrf.mxu0 }
 0x554   : > { %v12650_v37 = vpop.f32.mrf.mxu1 }
 0x555   : > { %v9046_v19 = vpop.f32.mrf.mxu0  ;;  %v9052_v32 = vadd.f32 %v12670_v0, %v12650_v37 }
 0x556   : > { %v8805_v15 = vpop.f32.mrf.mxu1 }
 0x557   : > { %v9047_v16 = vadd.f32 %v9046_v19, %v8805_v15 }
 0x562   : > { %v12673_v1 = vpop.f32.mrf.mxu0 }
 0x563   : > { %v12653_v24 = vpop.f32.mrf.mxu1 }
 0x564   : > { %v9056_v59 = vpop.f32.mrf.mxu0  ;;  %v17654_v57 = vadd.f32 %v12673_v1, %v12653_v24 }
 0x565   : > { %v8815_v26 = vpop.f32.mrf.mxu1 }
 0x566   : > { %v17661_v52 = vadd.f32 %v9056_v59, %v8815_v26 }
 0x567   : > { %v12678_v41 = vpop.f32.mrf.mxu1 }
 0x568   : > { %v9309_v53 = vadd.f32 %v12678_v41, %v9012_v40 }
 0x569   : > { %v9249_v20 = vpop.f32.mrf.mxu1 }
 0x56a   : > { %v9328_v36 = vadd.f32 %v17631_v33, %v9309_v53  ;;  %v9308_v51 = vadd.f32 %v9249_v20, %v9007_v17 }
 0x56c   : > { %v9340_v29 = vmax.f32 %v9328_v36, 0.0  ;;  %v9327_v48 = vadd.f32 %v17631_v33, %v9308_v51 }
 0x56e   : > { %v9364_v9 = vcombine.high %v9340_v29, %v9340_v29  ;;  %v9339_v61 = vmax.f32 %v9327_v48, 0.0  ;;  %v17643_v38 = vrot.slane %v9340_v29, %v19674_v45 }
 0x56f   : > { %v12681_v47 = vpop.f32.mrf.mxu1 }
 0x570   : > { %v9311_v23 = vadd.f32 %v12681_v47, %v9022_v8  ;;  %v17636_v60 = vrot.slane %v9339_v61, %v19674_v45  ;;  %v17639_v10 = vrot.slane %v9364_v9, %v19674_v45  ;;  %v9363_v6 = vcombine.high %v9339_v61, %v9339_v61 }
 0x571   : > { %v9259_v3 = vpop.f32.mrf.mxu1  ;;  %v9560_v55 = vcombine.high %v17643_v38, %v17643_v38 }
 0x572   : > { %19675 = vst [vmem:[#allocation94_spill] sm:$0xff] %v17636_v60  ;;  %19676 = vst [vmem:[#allocation18_spill] sm:$0xff] %v17639_v10  ;;  %v9330_v28 = vadd.f32 %v17631_v33, %v9311_v23  ;;  %v9310_v49 = vadd.f32 %v9259_v3, %v9017_v43  ;;  %v17647_v50 = vcombine.high %v17636_v60, %v17636_v60  ;;  %v12028_v54 = vrot.slane %v17639_v10, 9 }
 0x573   : > { %v17652_v31 = vcombine.high %v17639_v10, %v17639_v10  ;;  %v12057_v44 = vcombine.high %v17643_v38, %v17639_v10  ;;  %v17666_v18 = vrot.slane %v9363_v6, %v19674_v45  ;;  %v17679_v15 = vrot.slane %v9560_v55, 7 }
 0x574   : > { %v9342_v25 = vmax.f32 %v9330_v28, 0.0  ;;  %19677 = vst [vmem:[#allocation88_spill] sm:$0xff] %v17647_v50  ;;  %v9329_v12 = vadd.f32 %v17631_v33, %v9310_v49  ;;  %v18909_v13 = vrot.slane %v17647_v50, 7 }
 0x575   : > { %19678 = vst [vmem:[#allocation72_spill] sm:$0xff] %v17652_v31  ;;  %v9586_v37 = vrot.slane %v17652_v31, 7  ;;  %v17684_v40 = vrot.slane %v12057_v44, %v19674_v45  ;;  %v17688_v41 = vcombine.high %v17666_v18, %v17666_v18  ;;  %v10310_v19 = vcombine.low %v17647_v50, %v17666_v18 }
 0x576   : > { %v12684_v11 = vpop.f32.mrf.mxu1  ;;  %v17659_v22 = vrot.slane %v9342_v25, %v19674_v45  ;;  %v9341_v56 = vmax.f32 %v9329_v12, 0.0  ;;  %v9366_v42 = vcombine.high %v9342_v25, %v9342_v25  ;;  %v17702_v29 = vrot.slane %v18909_v13, 2 }
 0x577   : > { %v9313_v34 = vadd.f32 %v12684_v11, %v9032_v39  ;;  %v9588_v8 = vrot.slane %v9586_v37, 2  ;;  %v17720_v25 = vsel %vm13110_vm7, %v12028_v54, %v9586_v37 }
 0x578   : > { %19679 = vst [vmem:[#allocation98_spill] sm:$0xff] %v17659_v22  ;;  %v9269_v7 = vpop.f32.mrf.mxu1  ;;  %v17672_v14 = vcombine.high %v17659_v22, %v17659_v22  ;;  %v17675_v4 = vrot.slane %v9341_v56, %v19674_v45  ;;  %v9365_v21 = vcombine.high %v9341_v56, %v9341_v56  ;;  %v17697_v20 = vrot.slane %v9366_v42, %v19674_v45 }
 0x579   : > { %v9312_v5 = vadd.f32 %v9269_v7, %v9027_v46  ;;  %v9332_v30 = vadd.f32 %v17631_v33, %v9313_v34 }
 0x57a   : > { %v12687_v63 = vpop.f32.mrf.mxu1  ;;  %19680 = vst [vmem:[#allocation31_spill] sm:$0xff] %v17672_v14  ;;  %19681 = vst [vmem:[#allocation10_spill] sm:$0xff] %v17675_v4  ;;  %v17692_v17 = vcombine.high %v17675_v4, %v17675_v4  ;;  %v9589_v58 = vrot.slane %v17675_v4, 7  ;;  %v18905_v48 = vrot.slane %v17672_v14, 7  ;;  %v17708_v9 = vrot.slane %v9365_v21, %v19674_v45 }
 0x57b   : > { %v9344_v0 = vmax.f32 %v9332_v30, 0.0  ;;  %v9331_v36 = vadd.f32 %v17631_v33, %v9312_v5  ;;  %v9315_v3 = vadd.f32 %v12687_v63, %v9042_v62  ;;  %v17715_v49 = vcombine.high %v17697_v20, %v17697_v20 }
 0x57c   : > { %v9279_v26 = vpop.f32.mrf.mxu1  ;;  %v9591_v61 = vrot.slane %v9589_v58, 2  ;;  %v18906_v47 = vrot.slane %v17692_v17, 7  ;;  %v10328_v43 = vcombine.low %v17675_v4, %v17692_v17  ;;  %v17727_v12 = vrot.slane %v18905_v48, 2 }
 0x57d   : > { %v9368_v23 = vcombine.high %v9344_v0, %v9344_v0  ;;  %v9343_v1 = vmax.f32 %v9331_v36, 0.0  ;;  %v9314_v28 = vadd.f32 %v9279_v26, %v9037_v27  ;;  %v17723_v46 = vrot.slane %v9344_v0, %v19674_v45 }
 0x57e   : > { %v17732_v11 = vsel %vm13110_vm7, %v9588_v8, %v9589_v58  ;;  %v17738_v55 = vsel %vm13110_vm7, %v9591_v61, %v18906_v47  ;;  %v9334_v56 = vadd.f32 %v17631_v33, %v9315_v3  ;;  %v17744_v42 = vrot.slane %v10328_v43, %v19674_v45 }
 0x57f   : > { %v12690_v51 = vpop.f32.mrf.mxu1  ;;  %v9367_v27 = vcombine.high %v9343_v1, %v9343_v1  ;;  %v9333_v7 = vadd.f32 %v17631_v33, %v9314_v28  ;;  %v17747_v5 = vrot.slane %v9368_v23, %v19674_v45  ;;  %v18904_v37 = vrot.slane %v17723_v46, 7 }
 0x580   : > { %v9317_v44 = vadd.f32 %v12690_v51, %v9052_v32  ;;  %v9346_v30 = vmax.f32 %v9334_v56, 0.0  ;;  %v17755_v32 = vcombine.high %v17723_v46, %v17723_v46  ;;  %v9561_v53 = vcombine.high %v17708_v9, %v17708_v9 }
 0x581   : > { %v9289_v59 = vpop.f32.mrf.mxu1  ;;  %v9345_v54 = vmax.f32 %v9333_v7, 0.0  ;;  %v17758_v0 = vrot.slane %v9367_v27, %v19674_v45 }
 0x582   : > { %v9316_v63 = vadd.f32 %v9289_v59, %v9047_v16  ;;  %v9336_v21 = vadd.f32 %v17631_v33, %v9317_v44  ;;  %v17762_v16 = vrot.slane %v9343_v1, %v19674_v45  ;;  %v9370_v51 = vcombine.high %v9346_v30, %v9346_v30 }
 0x583   : > { %v12693_v26 = vpop.f32.mrf.mxu1  ;;  %v9369_v8 = vcombine.high %v9345_v54, %v9345_v54  ;;  %v17765_v61 = vrot.slane %v9345_v54, %v19674_v45  ;;  %v17772_v59 = vrot.slane %v18904_v37, 2  ;;  %v17784_v7 = vcombine.high %v17758_v0, %v17758_v0 }
 0x584   : > { %v9335_v36 = vadd.f32 %v17631_v33, %v9316_v63  ;;  %v9348_v23 = vmax.f32 %v9336_v21, 0.0  ;;  %v9319_v28 = vadd.f32 %v12693_v26, %v17654_v57  ;;  %v17776_v1 = vrot.slane %v9370_v51, %v19674_v45 }
 0x585   : > { %v17780_v56 = vcombine.high %v17765_v61, %v17765_v61  ;;  %v17787_v44 = vrot.slane %v9369_v8, %v19674_v45  ;;  %v17798_v51 = vrot.slane %v9346_v30, %v19674_v45  ;;  %v10344_v31 = vcombine.low %v17708_v9, %v9561_v53 }
 0x586   : > { %v9347_v3 = vmax.f32 %v9335_v36, 0.0  ;;  %v9372_v57 = vcombine.high %v9348_v23, %v9348_v23  ;;  %v17790_v63 = vrot.slane %v9348_v23, %v19674_v45  ;;  %v9338_v8 = vadd.f32 %v17631_v33, %v9319_v28 }
 0x587   : > { %v18907_v21 = vrot.slane %v17780_v56, 7  ;;  %v10311_v23 = vcombine.low %v17688_v41, %v17643_v38  ;;  %v17809_v27 = vcombine.high %v17776_v1, %v17776_v1  ;;  %v17818_v62 = vcombine.high %v17787_v44, %v17787_v44 }
 0x588   : > { %v9371_v26 = vcombine.high %v9347_v3, %v9347_v3  ;;  %v17795_v36 = vrot.slane %v9347_v3, %v19674_v45  ;;  %v17802_v37 = vcombine.high %v17790_v63, %v17790_v63  ;;  %v17814_v30 = vrot.slane %v9372_v57, %v19674_v45 }
 0x589   : > { %v17826_v34 = vrot.slane %v18907_v21, 2  ;;  %v9350_v58 = vmax.f32 %v9338_v8, 0.0  ;;  %v9299_v21 = vpop.f32.mrf.mxu1  ;;  %v10318_v8 = vrot.slane %v10310_v19, %v19674_v45 }
 0x58a   : > { %v18908_v48 = vrot.slane %v17802_v37, 7  ;;  %v17831_v57 = vcombine.high %v17795_v36, %v17795_v36  ;;  %v17834_v3 = vrot.slane %v9371_v26, %v19674_v45  ;;  %v17838_v28 = vcombine.high %v17814_v30, %v17814_v30 }
 0x58b   : > { %v18911_v47 = vrot.slane %v17795_v36, 7  ;;  %v9374_v24 = vcombine.high %v9350_v58, %v9350_v58  ;;  %v17854_v39 = vrot.slane %v9350_v58, %v19674_v45  ;;  %v9318_v13 = vadd.f32 %v9299_v21, %v17661_v52 }
 0x58c   : > { %v17844_v54 = vrot.slane %v18908_v48, 2  ;;  %v17850_v26 = vcombine.high %v17834_v3, %v17834_v3  ;;  %v10325_v48 = vrot.slane %v10311_v23, %v19674_v45  ;;  %v10345_v58 = vcombine.low %v17672_v14, %v17697_v20 }
 0x58d   : > { %v17863_v2 = vrot.slane %v18911_v47, 2  ;;  %v17872_v43 = vcombine.high %v17854_v39, %v17854_v39  ;;  %v17875_v19 = vrot.slane %v9374_v24, %v19674_v45  ;;  %v18914_v23 = vrot.slane %v17854_v39, 7 }
 0x58e   : > { %19683 = vst [vmem:[#allocation22_spill] sm:$0xff] %v17844_v54  ;;  %v10326_v10 = vcombine.low %v10318_v8, %v10325_v48  ;;  %v9337_v52 = vadd.f32 %v17631_v33, %v9318_v13  ;;  %v9598_v21 = vrot.slane %v9561_v53, 7  ;;  %v10359_v48 = vrot.slane %v10345_v58, %v19674_v45 }
 0x58f   : > { %v17884_v4 = vcombine.high %v17875_v19, %v17875_v19  ;;  %v17888_v54 = vrot.slane %v18914_v23, 2  ;;  %v19685_v53 = vcombine.low %v17684_v40, %v17744_v42  ;;  %v10352_v8 = vrot.slane %v10344_v31, %v19674_v45 }
 0x590   : > { %12730 = vmatprep.mubr.msk.f32.mxu1 %vm5258_vm9, %v10326_v10  ;;  %v9349_v13 = vmax.f32 %v9337_v52, 0.0  ;;  %v19686_v23 = vrot.slane %v17647_v50, 7  ;;  %v19687_v47 = vrot.slane %v17636_v60, 9  ;;  %v19688_v24 = vrot.slane %v17666_v18, 7 }
 0x591   : > { %19684 = vst [vmem:[#allocation25_spill] sm:$0xff] %v17888_v54  ;;  %12731 = vmatmul.mubr.msk.f32.vlgmr.msra.gmra.mxu1 %vm5258_vm9, %v19685_v53  ;;  %v9576_v31 = vrot.slane %v17688_v41, 7  ;;  %v10360_v60 = vcombine.low %v10352_v8, %v10359_v48  ;;  %v12058_v8 = vcombine.high %v17762_v16, %v17758_v0 }
 0x592   : > { %v9571_v10 = vsel %vm13110_vm7, %v19687_v47, %v19686_v23  ;;  %v9574_v40 = vsel %vm13110_vm7, %v17702_v29, %v19688_v24  ;;  %v19689_v42 = vmov %v19688_v24  ;;  %v9373_v53 = vcombine.high %v9349_v13, %v9349_v13 }
 0x593   : > { %v9575_v52 = vrot.slane %v19689_v42, 2  ;;  %v17917_v33 = vrot.slane %v9349_v13, %v19674_v45  ;;  %v19690_v47 = vrot.slane %v17643_v38, 7  ;;  %v9578_v50 = vrot.slane %v9576_v31, 2  ;;  %12733 = vmatprep.mubr.msk.f32.mxu1 %vm5258_vm9, %v10360_v60 }
 0x594   : > { %v9698_v54 = vcombine.low %v9571_v10, %v9574_v40  ;;  %v19691_v29 = vcombine.low %v17732_v11, %v17738_v55  ;;  %v17928_v42 = vrot.slane %v9373_v53, %v19674_v45  ;;  %v10361_v13 = vcombine.low %v17715_v49, %v17762_v16 }
 0x595   : > { %v9581_v23 = vrot.slane %v19690_v47, 2  ;;  %v9577_v58 = vsel %vm13110_vm7, %v9575_v52, %v9576_v31  ;;  %v19692_v10 = vmov %v19690_v47  ;;  %v19693_v60 = vrot.slane %v17692_v17, 7 }
 0x596   : > { %v9730_v24 = vrot.slane %v19691_v29, %v19674_v45  ;;  %v9580_v11 = vsel %vm13110_vm7, %v9578_v50, %v19692_v10  ;;  %v9706_v55 = vrot.slane %v9698_v54, %v19674_v45  ;;  %v10369_v47 = vrot.slane %v10361_v13, %v19674_v45 }
 0x597   : > { %v9583_v48 = vsel %vm13110_vm7, %v9581_v23, %v17679_v15  ;;  %v9594_v52 = vrot.slane %v19693_v60, 2  ;;  %v17948_v15 = vcombine.high %v17928_v42, %v17928_v42  ;;  %v9699_v53 = vcombine.low %v9577_v58, %v9580_v11 }
 0x598   : > { %v9715_v40 = vcombine.low %v9583_v48, %v17720_v25  ;;  %v10376_v50 = vrot.slane %v12058_v8, %v19674_v45  ;;  %v19694_v54 = vrot.slane %v17708_v9, 7  ;;  %v19696_v60 = vrot.slane %v17672_v14, 7 }
 0x599   : > { %v9713_v10 = vrot.slane %v9699_v53, %v19674_v45  ;;  %v19697_v58 = vrot.slane %v17659_v22, 9  ;;  %v19698_v11 = vrot.slane %v17697_v20, 7 }
 0x59a   : > { %v9723_v23 = vrot.slane %v9715_v40, %v19674_v45  ;;  %v9596_v25 = vsel %vm13110_vm7, %v9594_v52, %v19694_v54  ;;  %v19695_v29 = vmov %v19694_v54  ;;  %v9563_v40 = vcombine.high %v17747_v5, %v17747_v5 }
 0x59b   : > { %v9597_v48 = vrot.slane %v19695_v29, 2  ;;  %v9603_v13 = vsel %vm13110_vm7, %v19697_v58, %v19696_v60  ;;  %v9606_v8 = vsel %vm13110_vm7, %v17727_v12, %v19698_v11  ;;  %v10377_v54 = vcombine.low %v10369_v47, %v10376_v50 }
 0x59c   : > { %v9731_v52 = vcombine.low %v9723_v23, %v9730_v24  ;;  %v9733_v29 = vcombine.low %v9603_v13, %v9606_v8  ;;  %v9714_v31 = vcombine.low %v9706_v55, %v9713_v10  ;;  %v9630_v14 = vrot.slane %v9563_v40, 7 }
 0x59d   : > { %v9599_v53 = vsel %vm13110_vm7, %v9597_v48, %v9598_v21  ;;  %v10378_v60 = vcombine.low %v17723_v46, %v17755_v32  ;;  %12734 = vmatmul.mubr.msk.f32.gmra.mxu1 %vm5258_vm9, %v10377_v54  ;;  %v10379_v12 = vcombine.low %v17747_v5, %v9563_v40  ;;  %v9562_v24 = vcombine.high %v17762_v16, %v17762_v16 }
 0x59e   : > { %v9732_v22 = vcombine.low %v9596_v25, %v9599_v53  ;;  %v9747_v58 = vrot.slane %v9733_v29, %v19674_v45  ;;  %v19699_v47 = vmov %v19698_v11  ;;  %12696 = vmatprep.mubr.msk.f32.mxu0 %vm5258_vm9, %v9714_v31  ;;  %v9608_v50 = vrot.slane %v17715_v49, 7 }
 0x59f   : > { %v9607_v23 = vrot.slane %v19699_v47, 2  ;;  %v10386_v55 = vrot.slane %v10378_v60, %v19674_v45  ;;  %v9611_v25 = vrot.slane %v17762_v16, 7  ;;  %12697 = vmatmul.mubr.msk.f32.vlgmr.msra.gmra.mxu0 %vm5258_vm9, %v9731_v52  ;;  %v10393_v48 = vrot.slane %v10379_v12, %v19674_v45 }
 0x5a0   : > { %v9740_v21 = vrot.slane %v9732_v22, %v19674_v45  ;;  %v9614_v10 = vrot.slane %v9562_v24, 7  ;;  %v9618_v13 = vrot.slane %v17784_v7, 7  ;;  %v10396_v11 = vcombine.low %v17818_v62, %v17798_v51  ;;  %12712 = vmatpush3.msra.mxu0 %v17625_v35 }
 0x5a1   : > { %v9609_v22 = vsel %vm13110_vm7, %v9607_v23, %v9608_v50  ;;  %v9610_v31 = vrot.slane %v9608_v50, 2  ;;  %v9613_v40 = vrot.slane %v9611_v25, 2  ;;  %v10394_v54 = vcombine.low %v10386_v55, %v10393_v48 }
 0x5a2   : > { %v9748_v8 = vcombine.low %v9740_v21, %v9747_v58  ;;  %v19700_v53 = vrot.slane %v17758_v0, 9  ;;  %v19701_v29 = vcombine.low %v17780_v56, %v17787_v44  ;;  %v10410_v58 = vrot.slane %v10396_v11, %v19674_v45 }
 0x5a3   : > { %v9612_v35 = vsel %vm13110_vm7, %v9610_v31, %v9611_v25  ;;  %v9615_v12 = vsel %vm13110_vm7, %v9613_v40, %v9614_v10  ;;  %v9620_v24 = vrot.slane %v9618_v13, 2  ;;  %v9624_v47 = vrot.slane %v17755_v32, 7  ;;  %12736 = vmatprep.mubr.msk.f32.mxu1 %vm5258_vm9, %v10394_v54 }
 0x5a4   : > { %v9619_v52 = vsel %vm13110_vm7, %v19700_v53, %v9618_v13  ;;  %v10403_v60 = vrot.slane %v19701_v29, %v19674_v45  ;;  %12699 = vmatprep.mubr.msk.f32.mxu0 %vm5258_vm9, %v9748_v8  ;;  %v9749_v23 = vcombine.low %v9609_v22, %v9612_v35  ;;  %v19702_v50 = vrot.slane %v17747_v5, 7 }
 0x5a5   : > { %v9750_v21 = vcombine.low %v9615_v12, %v9619_v52  ;;  %v19703_v11 = vrot.slane %v17723_v46, 7  ;;  %v9625_v25 = vsel %vm13110_vm7, %v17772_v59, %v9624_v47  ;;  %v9626_v10 = vrot.slane %v9624_v47, 2 }
 0x5a6   : > { %v10411_v55 = vcombine.low %v10403_v60, %v10410_v58  ;;  %v9629_v48 = vrot.slane %v19702_v50, 2  ;;  %v12059_v13 = vcombine.high %v17798_v51, %v17776_v1  ;;  %v9757_v22 = vrot.slane %v9749_v23, %v19674_v45 }
 0x5a7   : > { %v9622_v8 = vsel %vm13110_vm7, %v9620_v24, %v19703_v11  ;;  %v9764_v31 = vrot.slane %v9750_v21, %v19674_v45  ;;  %v19704_v53 = vmov %v19702_v50  ;;  %v10413_v59 = vcombine.low %v17795_v36, %v17831_v57 }
 0x5a8   : > { %12737 = vmatmul.mubr.msk.f32.gmra.mxu1 %vm5258_vm9, %v10411_v55  ;;  %v9631_v40 = vsel %vm13110_vm7, %v9629_v48, %v9630_v14  ;;  %v9766_v54 = vcombine.low %v9622_v8, %v9625_v25  ;;  %v9628_v52 = vsel %vm13110_vm7, %v9626_v10, %v19704_v53  ;;  %v10420_v29 = vrot.slane %v12059_v13, %v19674_v45 }
 0x5a9   : > { %v19705_v60 = vcombine.low %v17834_v3, %v17850_v26  ;;  %v9765_v35 = vcombine.low %v9757_v22, %v9764_v31  ;;  %v9767_v12 = vcombine.low %v9628_v52, %v9631_v40  ;;  %v19706_v24 = vcombine.low %v17802_v37, %v17814_v30 }
 0x5aa   : > { %v9774_v14 = vrot.slane %v9766_v54, %v19674_v45  ;;  %v10427_v23 = vrot.slane %v10413_v59, %v19674_v45  ;;  %v19707_v21 = vrot.slane %v17780_v56, 7  ;;  %v19708_v55 = vrot.slane %v17765_v61, 9 }
 0x5ab   : > { %v10437_v58 = vrot.slane %v19705_v60, %v19674_v45  ;;  %v10444_v47 = vrot.slane %v19706_v24, %v19674_v45  ;;  %v19709_v48 = vrot.slane %v17787_v44, 7  ;;  %12700 = vmatmul.mubr.msk.f32.gmra.mxu0 %vm5258_vm9, %v9765_v35  ;;  %v9781_v10 = vrot.slane %v9767_v12, %v19674_v45 }
 0x5ac   : > { %v9635_v50 = vsel %vm13110_vm7, %v19708_v55, %v19707_v21  ;;  %v9640_v22 = vrot.slane %v17818_v62, 7  ;;  %v9643_v31 = vrot.slane %v17798_v51, 7  ;;  %v10428_v40 = vcombine.low %v10420_v29, %v10427_v23 }
 0x5ad   : > { %v9638_v11 = vsel %vm13110_vm7, %v17826_v34, %v19709_v48  ;;  %v19710_v8 = vmov %v19709_v48  ;;  %v10445_v13 = vcombine.low %v10437_v58, %v10444_v47  ;;  %v9564_v53 = vcombine.high %v17798_v51, %v17798_v51 }
 0x5ae   : > { %v9639_v25 = vrot.slane %v19710_v8, 2  ;;  %v9783_v54 = vcombine.low %v9635_v50, %v9638_v11  ;;  %v9650_v52 = vrot.slane %v17809_v27, 7  ;;  %v9782_v34 = vcombine.low %v9774_v14, %v9781_v10  ;;  %12739 = vmatprep.mubr.msk.f32.mxu1 %vm5258_vm9, %v10428_v40 }
 0x5af   : > { %v9642_v60 = vrot.slane %v9640_v22, 2  ;;  %v9645_v35 = vrot.slane %v9643_v31, 2  ;;  %v9646_v12 = vrot.slane %v9564_v53, 7  ;;  %v19711_v24 = vrot.slane %v17776_v1, 9  ;;  %12740 = vmatmul.mubr.msk.f32.gmra.mxu1 %vm5258_vm9, %v10445_v13 }
 0x5b0   : > { %v9641_v59 = vsel %vm13110_vm7, %v9639_v25, %v9640_v22  ;;  %v9791_v58 = vrot.slane %v9783_v54, %v19674_v45  ;;  %v9652_v47 = vrot.slane %v9650_v52, 2  ;;  %12702 = vmatprep.mubr.msk.f32.mxu0 %vm5258_vm9, %v9782_v34  ;;  %v9656_v23 = vrot.slane %v17831_v57, 7 }
 0x5b1   : > { %v9651_v29 = vsel %vm13110_vm7, %v19711_v24, %v9650_v52  ;;  %v9644_v14 = vsel %vm13110_vm7, %v9642_v60, %v9643_v31  ;;  %v10446_v21 = vcombine.low %v17838_v28, %v17917_v33  ;;  %v12060_v55 = vcombine.high %v17917_v33, %v17928_v42 }
 0x5b2   : > { %v9784_v50 = vcombine.low %v9641_v59, %v9644_v14  ;;  %v9647_v48 = vsel %vm13110_vm7, %v9645_v35, %v9646_v12  ;;  %v19712_v11 = vrot.slane %v17795_v36, 7  ;;  %v19713_v25 = vcombine.low %v17854_v39, %v17872_v43 }
 0x5b3   : > { %v9657_v13 = vsel %vm13110_vm7, %v17863_v2, %v9656_v23  ;;  %v9800_v22 = vcombine.low %v9647_v48, %v9651_v29  ;;  %v10454_v31 = vrot.slane %v10446_v21, %v19674_v45  ;;  %v10461_v40 = vrot.slane %v12060_v55, %v19674_v45 }
 0x5b4   : > { %v9654_v8 = vsel %vm13110_vm7, %v9652_v47, %v19712_v11  ;;  %v10471_v10 = vrot.slane %v19713_v25, %v19674_v45  ;;  %v9798_v54 = vrot.slane %v9784_v50, %v19674_v45  ;;  %v19714_v52 = vcombine.low %v17875_v19, %v17884_v4  ;;  %v19720_v11 = vld [vmem:[#allocation22_spill] sm:$0xff] }
 0x5b5   : > { %v9801_v53 = vcombine.low %v9654_v8, %v9657_v13  ;;  %v9658_v59 = vrot.slane %v9656_v23, 2  ;;  %v9808_v60 = vrot.slane %v9800_v22, %v19674_v45  ;;  %v10462_v35 = vcombine.low %v10454_v31, %v10461_v40 }
 0x5b6   : > { %v10478_v34 = vrot.slane %v19714_v52, %v19674_v45  ;;  %v19715_v12 = vrot.slane %v17834_v3, 7  ;;  %v9662_v24 = vrot.slane %v17850_v26, 7  ;;  %v9799_v29 = vcombine.low %v9791_v58, %v9798_v54 }
 0x5b7   : > { %v9815_v47 = vrot.slane %v9801_v53, %v19674_v45  ;;  %12742 = vmatprep.mubr.msk.f32.mxu1 %vm5258_vm9, %v10462_v35  ;;  %v19717_v50 = vrot.slane %v17802_v37, 7  ;;  %v19718_v48 = vrot.slane %v17790_v63, 9  ;;  %v19719_v58 = vrot.slane %v17814_v30, 7 }
 0x5b8   : > { %v9661_v2 = vrot.slane %v19715_v12, 2  ;;  %v10479_v14 = vcombine.low %v10471_v10, %v10478_v34  ;;  %v19716_v21 = vmov %v19715_v12  ;;  %v9566_v25 = vcombine.high %v17917_v33, %v17917_v33  ;;  %12703 = vmatmul.mubr.msk.f32.gmra.mxu0 %vm5258_vm9, %v9799_v29 }
 0x5b9   : > { %v9660_v55 = vsel %vm13110_vm7, %v9658_v59, %v19716_v21  ;;  %v9667_v26 = vsel %vm13110_vm7, %v19718_v48, %v19717_v50  ;;  %v9670_v8 = vsel %vm13110_vm7, %v19720_v11, %v19719_v58  ;;  %v9816_v10 = vcombine.low %v9808_v60, %v9815_v47  ;;  %v19724_v50 = vld [vmem:[#allocation25_spill] sm:$0xff] }
 0x5ba   : > { %v9663_v23 = vsel %vm13110_vm7, %v9661_v2, %v9662_v24  ;;  %12743 = vmatmul.mubr.msk.f32.gmra.mxu1 %vm5258_vm9, %v10479_v14  ;;  %v9818_v22 = vcombine.low %v9667_v26, %v9670_v8  ;;  %v19721_v31 = vmov %v19719_v58  ;;  %v9672_v54 = vrot.slane %v17838_v28, 7 }
 0x5bb   : > { %v9817_v13 = vcombine.low %v9660_v55, %v9663_v23  ;;  %v9671_v40 = vrot.slane %v19721_v31, 2  ;;  %v9675_v53 = vrot.slane %v17917_v33, 7  ;;  %v9678_v52 = vrot.slane %v9566_v25, 7  ;;  %12705 = vmatprep.mubr.msk.f32.mxu0 %vm5258_vm9, %v9816_v10 }
 0x5bc   : > { %v9682_v34 = vrot.slane %v17948_v15, 7  ;;  %v9832_v60 = vrot.slane %v9818_v22, %v19674_v45  ;;  %v9688_v35 = vrot.slane %v17872_v43, 7  ;;  %v19722_v12 = vrot.slane %v17875_v19, 7 }
 0x5bd   : > { %v9825_v59 = vrot.slane %v9817_v13, %v19674_v45  ;;  %v9673_v24 = vsel %vm13110_vm7, %v9671_v40, %v9672_v54  ;;  %v9674_v29 = vrot.slane %v9672_v54, 2  ;;  %v9677_v47 = vrot.slane %v9675_v53, 2 }
 0x5be   : > { %v9693_v2 = vrot.slane %v19722_v12, 2  ;;  %v19723_v14 = vrot.slane %v17928_v42, 9  ;;  %v9684_v23 = vrot.slane %v9682_v34, 2  ;;  %v9689_v48 = vsel %vm13110_vm7, %v19724_v50, %v9688_v35  ;;  %v19733_v50 = vld [vmem:[#allocation98_spill] sm:$0xff] }
 0x5bf   : > { %v9833_v55 = vcombine.low %v9825_v59, %v9832_v60  ;;  %v9690_v26 = vrot.slane %v9688_v35, 2  ;;  %v9676_v58 = vsel %vm13110_vm7, %v9674_v29, %v9675_v53  ;;  %v9679_v11 = vsel %vm13110_vm7, %v9677_v47, %v9678_v52  ;;  %v19727_v53 = vld [vmem:[#allocation88_spill] sm:$0xff]  ;;  %v19728_v52 = vld [vmem:[#allocation94_spill] sm:$0xff] }
 0x5c0   : > { %v9683_v21 = vsel %vm13110_vm7, %v19723_v14, %v9682_v34  ;;  %v9694_v8 = vrot.slane %v17884_v4, 7  ;;  %v10004_v25 = vcombine.low %v17666_v18, %v17688_v41  ;;  %v9834_v10 = vcombine.low %v9673_v24, %v9676_v58  ;;  %v19729_v34 = vld [vmem:[#allocation10_spill] sm:$0xff]  ;;  %v19730_v59 = vld [vmem:[#allocation72_spill] sm:$0xff] }
 0x5c1   : > { %12706 = vmatmul.mubr.msk.f32.gmra.mxu0 %vm5258_vm9, %v9833_v55  ;;  %v9835_v13 = vcombine.low %v9679_v11, %v9683_v21  ;;  %v19725_v22 = vrot.slane %v17854_v39, 7  ;;  %v19726_v40 = vmov %v19722_v12  ;;  %v10003_v4 = vcombine.low %v19728_v52, %v19727_v53  ;;  %v19731_v21 = vld [vmem:[#allocation18_spill] sm:$0xff] }
 0x5c2   : > { %v9692_v54 = vsel %vm13110_vm7, %v9690_v26, %v19726_v40  ;;  %v9695_v18 = vsel %vm13110_vm7, %v9693_v2, %v9694_v8  ;;  %v10021_v60 = vcombine.low %v19730_v59, %v19729_v34  ;;  %v9842_v35 = vrot.slane %v9834_v10, %v19674_v45  ;;  %v12072_v34 = vld [vmem:[%s18571_s9 + $0x8] sm:$0xff]  ;;  %v11152_v59 = vld [vmem:[%s18571_s9] sm:$0xff] }
 0x5c3   : > { %v9686_v31 = vsel %vm13110_vm7, %v9684_v23, %v19725_v22  ;;  %v9849_v12 = vrot.slane %v9835_v13, %v19674_v45  ;;  %v9852_v24 = vcombine.low %v9692_v54, %v9695_v18  ;;  %v10018_v47 = vrot.slane %v10004_v25, %v19674_v45  ;;  %v19732_v23 = vld [vmem:[#allocation31_spill] sm:$0xff] }
 0x5c4   : > { %v9851_v41 = vcombine.low %v9686_v31, %v9689_v48  ;;  %v10037_v14 = vcombine.low %v17692_v17, %v17708_v9  ;;  %v10020_v6 = vcombine.low %v17643_v38, %v19731_v21  ;;  %v10038_v48 = vcombine.low %v19733_v50, %v19732_v23  ;;  %v18272_v23 = vld [vmem:[%s18570_s8] ss:$0 sm:$0xff] }
 0x5c5   : > { %v9850_v2 = vcombine.low %v9842_v35, %v9849_v12  ;;  %v9866_v55 = vrot.slane %v9852_v24, %v19674_v45  ;;  %v10011_v26 = vrot.slane %v10003_v4, %v19674_v45  ;;  %v10035_v58 = vrot.slane %v10021_v60, %v19674_v45 }
 0x5c6   : > { %v9859_v29 = vrot.slane %v9851_v41, %v19674_v45  ;;  %v10055_v11 = vcombine.low %v17762_v16, %v17758_v0  ;;  %v10045_v9 = vrot.slane %v10037_v14, %v19674_v45  ;;  %v10071_v38 = vcombine.low %v17784_v7, %v17723_v46 }
 0x5c7   : > { %12708 = vmatprep.mubr.msk.f32.mxu0 %vm5258_vm9, %v9850_v2  ;;  %v10019_v17 = vcombine.low %v10011_v26, %v10018_v47  ;;  %v10028_v25 = vrot.slane %v10020_v6, %v19674_v45  ;;  %v10054_v10 = vcombine.low %v17697_v20, %v17715_v49  ;;  %v10052_v0 = vrot.slane %v10038_v48, %v19674_v45 }
 0x5c8   : > { %v9867_v8 = vcombine.low %v9859_v29, %v9866_v55  ;;  %v10072_v16 = vcombine.low %v17755_v32, %v17747_v5  ;;  %v10089_v22 = vcombine.low %v17787_v44, %v17818_v62  ;;  %v10069_v46 = vrot.slane %v10055_v11, %v19674_v45 }
 0x5c9   : > { %v10036_v13 = vcombine.low %v10028_v25, %v10035_v58  ;;  %v10053_v7 = vcombine.low %v10045_v9, %v10052_v0  ;;  %v10079_v31 = vrot.slane %v10071_v38, %v19674_v45  ;;  %v10106_v20 = vcombine.low %v17809_v27, %v17795_v36 }
 0x5ca   : > { %12709 = vmatmul.mubr.msk.f32.gmra.mxu0 %vm5258_vm9, %v9867_v8  ;;  %v10088_v49 = vcombine.low %v17765_v61, %v17780_v56  ;;  %v10062_v40 = vrot.slane %v10054_v10, %v19674_v45  ;;  %v10086_v5 = vrot.slane %v10072_v16, %v19674_v45  ;;  %v10105_v62 = vcombine.low %v17798_v51, %v17776_v1 }
 0x5cb   : > { %12713 = vmatprep.mubr.msk.f32.mxu0 %vm5258_vm9, %v10019_v17  ;;  %v10122_v32 = vcombine.low %v17831_v57, %v17834_v3  ;;  %v10103_v27 = vrot.slane %v10089_v22, %v19674_v45  ;;  %v10120_v61 = vrot.slane %v10106_v20, %v19674_v45  ;;  %v10140_v56 = vcombine.low %v17917_v33, %v17928_v42 }
 0x5cc   : > { %v10070_v44 = vcombine.low %v10062_v40, %v10069_v46  ;;  %v10087_v36 = vcombine.low %v10079_v31, %v10086_v5  ;;  %v10096_v54 = vrot.slane %v10088_v49, %v19674_v45  ;;  %v10123_v53 = vcombine.low %v17790_v63, %v17802_v37 }
 0x5cd   : > { %v10113_v1 = vrot.slane %v10105_v62, %v19674_v45  ;;  %v10139_v51 = vcombine.low %v17814_v30, %v17838_v28  ;;  %v10130_v57 = vrot.slane %v10122_v32, %v19674_v45  ;;  %v10156_v33 = vcombine.low %v17948_v15, %v17854_v39 }
 0x5ce   : > { %12714 = vmatmul.mubr.msk.f32.vlgmr.msra.gmra.mxu0 %vm5258_vm9, %v10036_v13  ;;  %v10104_v3 = vcombine.low %v10096_v54, %v10103_v27  ;;  %v10154_v52 = vrot.slane %v10140_v56, %v19674_v45  ;;  %v10137_v37 = vrot.slane %v10123_v53, %v19674_v45  ;;  %v10157_v63 = vcombine.low %v17872_v43, %v17875_v19 }
 0x5cf   : > { %12716 = vmatprep.mubr.msk.f32.mxu0 %vm5258_vm9, %v10053_v7  ;;  %v10121_v42 = vcombine.low %v10113_v1, %v10120_v61  ;;  %v10147_v30 = vrot.slane %v10139_v51, %v19674_v45  ;;  %v10164_v4 = vrot.slane %v10156_v33, %v19674_v45  ;;  %v12935_v41 = vmov 0.0  }
 0x5d0   : > { %v10138_v28 = vcombine.low %v10130_v57, %v10137_v37  ;;  %v10171_v39 = vrot.slane %v10157_v63, %v19674_v45  ;;  %12745 = vmatprep.subr.mxu0 %v12935_v41  ;;  %12750 = vmatprep.subr.mxu1 %v12935_v41 }
 0x5d1   : > { %v10155_v18 = vcombine.low %v10147_v30, %v10154_v52  ;;  %12746 = vmatpush3.msra.mxu0 %v12072_v34  ;;  %12751 = vmatpush3.msra.mxu1 %v11152_v59 }
 0x5d2   : > { %12717 = vmatmul.mubr.msk.f32.gmra.mxu0 %vm5258_vm9, %v10070_v44  ;;  %v10172_v15 = vcombine.low %v10164_v4, %v10171_v39  ;;  %12755 = vmatprep.subr.mxu0 %v12935_v41 }
 0x5d3   : > { %12719 = vmatprep.mubr.msk.f32.mxu0 %vm5258_vm9, %v10087_v36  ;;  %12752 = vmatprep.mubr.msk.f32.mxu1 %vm12936_vm15, %v12935_v41 }
 0x5d4   : > { %12760 = vmatprep.subr.mxu1 %v12935_v41 }
 0x5d6   : > { %12720 = vmatmul.mubr.msk.f32.gmra.mxu0 %vm5258_vm9, %v10104_v3 }
 0x5d7   : > { %12722 = vmatprep.mubr.msk.f32.mxu0 %vm5258_vm9, %v10121_v42 }
 0x5da   : > { %12723 = vmatmul.mubr.msk.f32.gmra.mxu0 %vm5258_vm9, %v10138_v28 }
 0x5db   : > { %12725 = vmatprep.mubr.msk.f32.mxu0 %vm5258_vm9, %v10155_v18 }
 0x5de   : > { %12726 = vmatmul.mubr.msk.f32.gmra.mxu0 %vm5258_vm9, %v10172_v15 }
 0x5df   : > { %12747 = vmatprep.mubr.msk.f32.mxu0 %vm12936_vm15, %v12935_v41 }
 0x651   : > { %v12732_v6 = vpop.f32.mrf.mxu1 }
 0x653   : > { %v10566_v48 = vpop.f32.mrf.mxu1 }
 0x65d   : > { %v12735_v25 = vpop.f32.mrf.mxu1 }
 0x65f   : > { %v12698_v43 = vpop.f32.mrf.mxu0  ;;  %v10576_v31 = vpop.f32.mrf.mxu1 }
 0x661   : > { %v9954_v19 = vpop.f32.mrf.mxu0 }
 0x66b   : > { %v12701_v60 = vpop.f32.mrf.mxu0 }
 0x66d   : > { %v9964_v35 = vpop.f32.mrf.mxu0 }
 0x678   : > { %v18257_v12 = vpop.f32.mrf.mxu0 }
 0x67a   : > { %v18259_v24 = vpop.f32.mrf.mxu0 }
 0x681   : > { %v18261_v29 = vpop.f32.mrf.mxu0 }
 0x683   : > { %v18263_v47 = vpop.f32.mrf.mxu0 }
 0x68a   : > { %v18265_v14 = vpop.f32.mrf.mxu0 }
 0x68c   : > { %v18267_v21 = vpop.f32.mrf.mxu0 }
 0x68e   : > { %v12715_v2 = vpop.f32.mrf.mxu0 }
 0x68f   : > { %v10265_v55 = vadd.f32 %v12715_v2, %v12698_v43 }
 0x690   : > { %v10259_v50 = vpop.f32.mrf.mxu0 }
 0x691   : > { %v10616_v26 = vadd.f32 %v12732_v6, %v10265_v55  ;;  %v10260_v58 = vadd.f32 %v10259_v50, %v9954_v19 }
 0x692   : > { %v12718_v11 = vpop.f32.mrf.mxu0 }
 0x693   : > { %v10633_v8 = vadd.f32 %v18272_v23, %v10616_v26  ;;  %v10615_v17 = vadd.f32 %v10566_v48, %v10260_v58  ;;  %v10275_v9 = vadd.f32 %v12718_v11, %v12701_v60 }
 0x694   : > { %v10269_v38 = vpop.f32.mrf.mxu0 }
 0x695   : > { %v10643_v10 = vmax.f32 %v10633_v8, 0.0  ;;  %v10632_v0 = vadd.f32 %v18272_v23, %v10615_v17  ;;  %v10618_v16 = vadd.f32 %v12735_v25, %v10275_v9  ;;  %v10270_v13 = vadd.f32 %v10269_v38, %v9964_v35 }
 0x697   : > { %v10679_v22 = vcombine.high %v10643_v10, %v10643_v10  ;;  %v10686_v46 = vrot.slane %v10643_v10, %v19674_v45  ;;  %v10642_v7 = vmax.f32 %v10632_v0, 0.0  ;;  %v10635_v44 = vadd.f32 %v18272_v23, %v10618_v16 }
 0x698   : > { %v10617_v27 = vadd.f32 %v10576_v31, %v10270_v13 }
 0x699   : > { %v10693_v20 = vrot.slane %v10679_v22, %v19674_v45  ;;  %v10694_v49 = vcombine.high %v10686_v46, %v10686_v46  ;;  %v10900_v40 = vsel %vm7703_vm10, %v10686_v46, -inf  ;;  %v10662_v5 = vcombine.high %v10642_v7, %v10642_v7  ;;  %v12721_v46 = vpop.f32.mrf.mxu0 }
 0x69a   : > { %v10901_v62 = vrot.slane %v10900_v40, 4  ;;  %v10669_v32 = vrot.slane %v10642_v7, %v19674_v45  ;;  %v10645_v26 = vmax.f32 %v10635_v44, 0.0  ;;  %v10634_v10 = vadd.f32 %v18272_v23, %v10617_v27 }
 0x69b   : > { %v10695_v36 = vcombine.high %v10693_v20, %v10693_v20  ;;  %v10907_v61 = vsel %vm7703_vm10, %v10694_v49, -inf  ;;  %v10914_v56 = vsel %vm7703_vm10, %v10693_v20, -inf  ;;  %v10676_v54 = vrot.slane %v10662_v5, %v19674_v45 }
 0x69c   : > { %v10902_v53 = vmax.f32 %v10900_v40, %v10901_v62  ;;  %v10908_v1 = vrot.slane %v10907_v61, 4  ;;  %v10915_v51 = vrot.slane %v10914_v56, 4  ;;  %v10677_v3 = vcombine.high %v10669_v32, %v10669_v32 }
 0x69d   : > { %v10921_v57 = vsel %vm7703_vm10, %v10695_v36, -inf  ;;  %v10678_v33 = vcombine.high %v10676_v54, %v10676_v54  ;;  %v10872_v42 = vsel %vm7703_vm10, %v10669_v32, -inf  ;;  %v10886_v52 = vsel %vm7703_vm10, %v10676_v54, -inf }
 0x69e   : > { %v10903_v37 = vrot.slane %v10902_v53, 2  ;;  %v10909_v63 = vmax.f32 %v10907_v61, %v10908_v1  ;;  %v10916_v30 = vmax.f32 %v10914_v56, %v10915_v51  ;;  %v10922_v28 = vrot.slane %v10921_v57, 4 }
 0x69f   : > { %v10873_v4 = vrot.slane %v10872_v42, 4  ;;  %v10879_v18 = vsel %vm7703_vm10, %v10677_v3, -inf  ;;  %v10887_v39 = vrot.slane %v10886_v52, 4  ;;  %v10893_v15 = vsel %vm7703_vm10, %v10678_v33, -inf }
 0x6a0   : > { %v10904_v43 = vmax.f32 %v10902_v53, %v10903_v37  ;;  %v10910_v19 = vrot.slane %v10909_v63, 2  ;;  %v10917_v34 = vrot.slane %v10916_v30, 2  ;;  %v10923_v59 = vmax.f32 %v10921_v57, %v10922_v28 }
 0x6a1   : > { %v10874_v60 = vmax.f32 %v10872_v42, %v10873_v4  ;;  %v10880_v35 = vrot.slane %v10879_v18, 4  ;;  %v10888_v6 = vmax.f32 %v10886_v52, %v10887_v39  ;;  %v10894_v2 = vrot.slane %v10893_v15, 4 }
 0x6a2   : > { %v10911_v55 = vmax.f32 %v10909_v63, %v10910_v19  ;;  %v10918_v50 = vmax.f32 %v10916_v30, %v10917_v34  ;;  %v10924_v48 = vrot.slane %v10923_v59, 2  ;;  %v10905_v9 = vrot.slane %v10904_v43, 1 }
 0x6a3   : > { %v10875_v58 = vrot.slane %v10874_v60, 2  ;;  %v10881_v11 = vmax.f32 %v10879_v18, %v10880_v35  ;;  %v10889_v8 = vrot.slane %v10888_v6, 2  ;;  %v10895_v17 = vmax.f32 %v10893_v15, %v10894_v2 }
 0x6a4   : > { %v10912_v38 = vrot.slane %v10911_v55, 1  ;;  %v10925_v25 = vmax.f32 %v10923_v59, %v10924_v48  ;;  %v10919_v7 = vrot.slane %v10918_v50, 1  ;;  %v10713_v31 = vcombine.high %v10645_v26, %v10645_v26 }
 0x6a5   : > { %v10876_v0 = vmax.f32 %v10874_v60, %v10875_v58  ;;  %v10882_v16 = vrot.slane %v10881_v11, 2  ;;  %v10890_v13 = vmax.f32 %v10888_v6, %v10889_v8  ;;  %v10896_v22 = vrot.slane %v10895_v17, 2 }
 0x6a6   : > { %v10926_v20 = vrot.slane %v10925_v25, 1  ;;  %v18290_v62 = vmax.f32 %v10904_v43, %v10905_v9  ;;  %v10720_v32 = vrot.slane %v10645_v26, %v19674_v45  ;;  %v10727_v44 = vrot.slane %v10713_v31, %v19674_v45 }
 0x6a7   : > { %v10877_v49 = vrot.slane %v10876_v0, 1  ;;  %v10883_v40 = vmax.f32 %v10881_v11, %v10882_v16  ;;  %v10897_v5 = vmax.f32 %v10895_v17, %v10896_v22  ;;  %v10285_v36 = vadd.f32 %v12721_v46, %v18257_v12 }
 0x6a8   : > { %v10913_v27 = vmax.f32 %v10911_v55, %v10912_v38  ;;  %v10891_v56 = vrot.slane %v10890_v13, 1  ;;  %v10644_v54 = vmax.f32 %v10634_v10, 0.0  ;;  %v10728_v53 = vcombine.high %v10720_v32, %v10720_v32  ;;  %v10279_v10 = vpop.f32.mrf.mxu0 }
 0x6a9   : > { %v10884_v61 = vrot.slane %v10883_v40, 1  ;;  %v10729_v1 = vcombine.high %v10727_v44, %v10727_v44  ;;  %v10956_v51 = vsel %vm7703_vm10, %v10720_v32, -inf  ;;  %v10970_v3 = vsel %vm7703_vm10, %v10727_v44, -inf }
 0x6aa   : > { %v10920_v57 = vmax.f32 %v10918_v50, %v10919_v7  ;;  %v10927_v33 = vmax.f32 %v10925_v25, %v10926_v20  ;;  %v10878_v42 = vmax.f32 %v10876_v0, %v10877_v49  ;;  %v10898_v52 = vrot.slane %v10897_v5, 1  ;;  %v12738_v0 = vpop.f32.mrf.mxu1 }
 0x6ab   : > { %v10957_v37 = vrot.slane %v10956_v51, 4  ;;  %v10963_v63 = vsel %vm7703_vm10, %v10728_v53, -inf  ;;  %v10971_v30 = vrot.slane %v10970_v3, 4  ;;  %v10977_v12 = vsel %vm7703_vm10, %v10729_v1, -inf  ;;  %v12724_v53 = vpop.f32.mrf.mxu0 }
 0x6ac   : > { %v10892_v28 = vmax.f32 %v10890_v13, %v10891_v56  ;;  %v10964_v4 = vrot.slane %v10963_v63, 4  ;;  %v10978_v18 = vrot.slane %v10977_v12, 4  ;;  %v10696_v39 = vcombine.high %v10644_v54, %v10644_v54 }
 0x6ad   : > { %v10885_v15 = vmax.f32 %v10883_v40, %v10884_v61  ;;  %v10958_v43 = vmax.f32 %v10956_v51, %v10957_v37  ;;  %v10972_v19 = vmax.f32 %v10970_v3, %v10971_v30  ;;  %v10703_v34 = vrot.slane %v10644_v54, %v19674_v45 }
 0x6ae   : > { %v18300_v59 = vmax.f32 %v10897_v5, %v10898_v52  ;;  %v10965_v60 = vmax.f32 %v10963_v63, %v10964_v4  ;;  %v10979_v35 = vmax.f32 %v10977_v12, %v10978_v18  ;;  %v10710_v6 = vrot.slane %v10696_v39, %v19674_v45  ;;  %v10586_v52 = vpop.f32.mrf.mxu1 }
 0x6af   : > { %v10959_v2 = vrot.slane %v10958_v43, 2  ;;  %v10973_v55 = vrot.slane %v10972_v19, 2  ;;  %v10711_v50 = vcombine.high %v10703_v34, %v10703_v34  ;;  %v10928_v48 = vsel %vm7703_vm10, %v10703_v34, -inf }
 0x6b0   : > { %v10966_v26 = vrot.slane %v10965_v60, 2  ;;  %v10980_v58 = vrot.slane %v10979_v35, 2  ;;  %v10712_v11 = vcombine.high %v10710_v6, %v10710_v6  ;;  %v10929_v8 = vrot.slane %v10928_v48, 4 }
 0x6b1   : > { %v18305_v17 = vsel %vm8587_vm11, %v10913_v27, %v10878_v42  ;;  %v10960_v9 = vmax.f32 %v10958_v43, %v10959_v2  ;;  %v10935_v38 = vsel %vm7703_vm10, %v10711_v50, -inf  ;;  %v10942_v25 = vsel %vm7703_vm10, %v10710_v6, -inf  ;;  %v12741_v50 = vpop.f32.mrf.mxu1 }
 0x6b2   : > { %v10967_v16 = vmax.f32 %v10965_v60, %v10966_v26  ;;  %v10974_v13 = vmax.f32 %v10972_v19, %v10973_v55  ;;  %v10930_v22 = vmax.f32 %v10928_v48, %v10929_v8  ;;  %v10936_v46 = vrot.slane %v10935_v38, 4 }
 0x6b3   : > { %v10981_v7 = vmax.f32 %v10979_v35, %v10980_v58  ;;  %v10943_v31 = vrot.slane %v10942_v25, 4  ;;  %v10949_v20 = vsel %vm7703_vm10, %v10712_v11, -inf  ;;  %v10620_v49 = vadd.f32 %v12738_v0, %v10285_v36 }
 0x6b4   : > { %v10961_v40 = vrot.slane %v10960_v9, 1  ;;  %v10931_v5 = vrot.slane %v10930_v22, 2  ;;  %v10937_v32 = vmax.f32 %v10935_v38, %v10936_v46  ;;  %v10280_v44 = vadd.f32 %v10279_v10, %v18259_v24 }
 0x6b5   : > { %v18312_v27 = vsel %vm8587_vm11, %v10920_v57, %v10885_v15  ;;  %v11339_v61 = vsel %vm8587_vm11, %v10927_v33, %v10892_v28  ;;  %v10944_v56 = vmax.f32 %v10942_v25, %v10943_v31  ;;  %v10950_v54 = vrot.slane %v10949_v20, 4  ;;  %v10289_v15 = vpop.f32.mrf.mxu0 }
 0x6b6   : > { %v10968_v1 = vrot.slane %v10967_v16, 1  ;;  %v10975_v51 = vrot.slane %v10974_v13, 1  ;;  %v10932_v3 = vmax.f32 %v10930_v22, %v10931_v5  ;;  %v10938_v42 = vrot.slane %v10937_v32, 2 }
 0x6b7   : > { %v10982_v37 = vrot.slane %v10981_v7, 1  ;;  %v10945_v36 = vrot.slane %v10944_v56, 2  ;;  %v10951_v63 = vmax.f32 %v10949_v20, %v10950_v54  ;;  %v10637_v30 = vadd.f32 %v18272_v23, %v10620_v49 }
 0x6b8   : > { %v10962_v12 = vmax.f32 %v10960_v9, %v10961_v40  ;;  %v10933_v24 = vrot.slane %v10932_v3, 1  ;;  %v10939_v4 = vmax.f32 %v10937_v32, %v10938_v42  ;;  %v10619_v57 = vadd.f32 %v10586_v52, %v10280_v44 }
 0x6b9   : > { %v10946_v18 = vmax.f32 %v10944_v56, %v10945_v36  ;;  %v10952_v39 = vrot.slane %v10951_v63, 2  ;;  %v10647_v33 = vmax.f32 %v10637_v30, 0.0  ;;  %v10295_v28 = vadd.f32 %v12724_v53, %v18261_v29 }
 0x6ba   : > { %v18317_v43 = vmax.f32 %v10967_v16, %v10968_v1  ;;  %v18319_v19 = vmax.f32 %v10974_v13, %v10975_v51  ;;  %v10940_v34 = vrot.slane %v10939_v4, 1  ;;  %v10636_v60 = vadd.f32 %v18272_v23, %v10619_v57 }
 0x6bb   : > { %v10947_v35 = vrot.slane %v10946_v18, 1  ;;  %v18322_v6 = vmax.f32 %v10951_v63, %v10952_v39  ;;  %v10747_v2 = vcombine.high %v10647_v33, %v10647_v33  ;;  %v10754_v55 = vrot.slane %v10647_v33, %v19674_v45 }
 0x6bc   : > { %v18325_v48 = vmax.f32 %v10981_v7, %v10982_v37  ;;  %v18328_v26 = vsel %vm1054_vm2, %v10962_v12, %v11339_v61  ;;  %v10646_v29 = vmax.f32 %v10636_v60, 0.0  ;;  %v18331_v58 = vadd.f32 %v10289_v15, %v18263_v47 }
 0x6bd   : > { %v10934_v11 = vmax.f32 %v10932_v3, %v10933_v24  ;;  %v10761_v8 = vrot.slane %v10747_v2, %v19674_v45  ;;  %v10762_v9 = vcombine.high %v10754_v55, %v10754_v55  ;;  %v10622_v38 = vadd.f32 %v12741_v50, %v10295_v28 }
 0x6be   : > { %v10941_v25 = vmax.f32 %v10939_v4, %v10940_v34  ;;  %v11012_v10 = vsel %vm7703_vm10, %v10754_v55, -inf  ;;  %v10730_v0 = vcombine.high %v10646_v29, %v10646_v29  ;;  %v10737_v16 = vrot.slane %v10646_v29, %v19674_v45 }
 0x6bf   : > { %v10948_v13 = vmax.f32 %v10946_v18, %v10947_v35  ;;  %v10954_v22 = vrot.slane %v18322_v6, 1  ;;  %v10763_v46 = vcombine.high %v10761_v8, %v10761_v8  ;;  %v11013_v7 = vrot.slane %v11012_v10, 4  ;;  %v12727_v35 = vpop.f32.mrf.mxu0 }
 0x6c0   : > { %v11019_v31 = vsel %vm7703_vm10, %v10762_v9, -inf  ;;  %v11026_v47 = vsel %vm7703_vm10, %v10761_v8, -inf  ;;  %v10744_v20 = vrot.slane %v10730_v0, %v19674_v45  ;;  %v10745_v49 = vcombine.high %v10737_v16, %v10737_v16  ;;  %v10596_v8 = vpop.f32.mrf.mxu1 }
 0x6c1   : > { %v11014_v40 = vmax.f32 %v11012_v10, %v11013_v7  ;;  %v11020_v5 = vrot.slane %v11019_v31, 4  ;;  %v11027_v32 = vrot.slane %v11026_v47, 4  ;;  %v11033_v44 = vsel %vm7703_vm10, %v10763_v46, -inf }
 0x6c2   : > { %v11034_v61 = vrot.slane %v11033_v44, 4  ;;  %v10746_v56 = vcombine.high %v10744_v20, %v10744_v20  ;;  %v10984_v54 = vsel %vm7703_vm10, %v10737_v16, -inf  ;;  %v10991_v53 = vsel %vm7703_vm10, %v10745_v49, -inf }
 0x6c3   : > { %v11015_v1 = vrot.slane %v11014_v40, 2  ;;  %v11021_v51 = vmax.f32 %v11019_v31, %v11020_v5  ;;  %v11028_v3 = vmax.f32 %v11026_v47, %v11027_v32  ;;  %v10985_v42 = vrot.slane %v10984_v54, 4 }
 0x6c4   : > { %v11035_v52 = vmax.f32 %v11033_v44, %v11034_v61  ;;  %v10992_v37 = vrot.slane %v10991_v53, 4  ;;  %v10998_v36 = vsel %vm7703_vm10, %v10744_v20, -inf  ;;  %v11005_v63 = vsel %vm7703_vm10, %v10746_v56, -inf  ;;  %v12744_v61 = vpop.f32.mrf.mxu1 }
 0x6c5   : > { %v11016_v30 = vmax.f32 %v11014_v40, %v11015_v1  ;;  %v11022_v12 = vrot.slane %v11021_v51, 2  ;;  %v11029_v24 = vrot.slane %v11028_v3, 2  ;;  %v10986_v4 = vmax.f32 %v10984_v54, %v10985_v42 }
 0x6c6   : > { %v11036_v57 = vrot.slane %v11035_v52, 2  ;;  %v10993_v18 = vmax.f32 %v10991_v53, %v10992_v37  ;;  %v10999_v39 = vrot.slane %v10998_v36, 4  ;;  %v11006_v33 = vrot.slane %v11005_v63, 4  ;;  %v10606_v37 = vpop.f32.mrf.mxu1 }
 0x6c7   : > { %v11017_v28 = vrot.slane %v11016_v30, 1  ;;  %v11023_v15 = vmax.f32 %v11021_v51, %v11022_v12  ;;  %v11030_v34 = vmax.f32 %v11028_v3, %v11029_v24  ;;  %v10987_v60 = vrot.slane %v10986_v4, 2 }
 0x6c8   : > { %v11037_v2 = vmax.f32 %v11035_v52, %v11036_v57  ;;  %v10994_v55 = vrot.slane %v10993_v18, 2  ;;  %v11000_v50 = vmax.f32 %v10998_v36, %v10999_v39  ;;  %v11007_v29 = vmax.f32 %v11005_v63, %v11006_v33 }
 0x6c9   : > { %v18347_v9 = vsel %vm8587_vm11, %v10934_v11, %v18300_v59  ;;  %v11024_v10 = vrot.slane %v11023_v15, 1  ;;  %v10988_v0 = vmax.f32 %v10986_v4, %v10987_v60  ;;  %v10639_v16 = vadd.f32 %v18272_v23, %v10622_v38  ;;  %v10299_v11 = vpop.f32.mrf.mxu0 }
 0x6ca   : > { %v11031_v46 = vrot.slane %v11030_v34, 1  ;;  %v10995_v7 = vmax.f32 %v10993_v18, %v10994_v55  ;;  %v11001_v31 = vrot.slane %v11000_v50, 2  ;;  %v11008_v47 = vrot.slane %v11007_v29, 2 }
 0x6cb   : > { %v10955_v20 = vmax.f32 %v18322_v6, %v10954_v22  ;;  %v18353_v49 = vsel %vm1054_vm2, %v10948_v13, %v18305_v17  ;;  %v18357_v40 = vsel %vm8587_vm11, %v10941_v25, %v18290_v62  ;;  %v10989_v59 = vrot.slane %v10988_v0, 1 }
 0x6cc   : > { %v18359_v5 = vmax.f32 %v11016_v30, %v11017_v28  ;;  %v11038_v32 = vrot.slane %v11037_v2, 1  ;;  %v10996_v38 = vrot.slane %v10995_v7, 1  ;;  %v11002_v44 = vmax.f32 %v11000_v50, %v11001_v31 }
 0x6cd   : > { %v18361_v56 = vmax.f32 %v11023_v15, %v11024_v10  ;;  %v10649_v54 = vmax.f32 %v10639_v16, 0.0  ;;  %v10621_v6 = vadd.f32 %v10596_v8, %v18331_v58  ;;  %v10305_v17 = vadd.f32 %v12727_v35, %v18265_v14 }
 0x6ce   : > { %v18365_v13 = vmax.f32 %v11030_v34, %v11031_v46  ;;  %v10990_v22 = vmax.f32 %v10988_v0, %v10989_v59  ;;  %v11009_v62 = vmax.f32 %v11007_v29, %v11008_v47  ;;  %v10300_v25 = vadd.f32 %v10299_v11, %v18267_v21 }
 0x6cf   : > { %v11164_v53 = vsel %vm1054_vm2, %v10955_v20, %v18312_v27  ;;  %v10781_v1 = vcombine.high %v10649_v54, %v10649_v54  ;;  %v10788_v51 = vrot.slane %v10649_v54, %v19674_v45  ;;  %v10638_v3 = vadd.f32 %v18272_v23, %v10621_v6 }
 0x6d0   : > { %v18372_v42 = vmax.f32 %v11037_v2, %v11038_v32  ;;  %v18374_v52 = vmax.f32 %v10995_v7, %v10996_v38  ;;  %v11003_v58 = vrot.slane %v11002_v44, 1  ;;  %v10624_v14 = vadd.f32 %v12744_v61, %v10305_v17 }
 0x6d1   : > { %v10795_v36 = vrot.slane %v10781_v1, %v19674_v45  ;;  %v10796_v63 = vcombine.high %v10788_v51, %v10788_v51  ;;  %v11068_v21 = vsel %vm7703_vm10, %v10788_v51, -inf  ;;  %v10648_v30 = vmax.f32 %v10638_v3, 0.0 }
 0x6d2   : > { %v11010_v12 = vrot.slane %v11009_v62, 1  ;;  %v11165_v27 = vsel %vm8590_vm12, %v10990_v22, %v11164_v53  ;;  %v11069_v24 = vrot.slane %v11068_v21, 4  ;;  %v10623_v4 = vadd.f32 %v10606_v37, %v10300_v25 }
 0x6d3   : > { %v10797_v57 = vcombine.high %v10795_v36, %v10795_v36  ;;  %v11075_v18 = vsel %vm7703_vm10, %v10796_v63, -inf  ;;  %v11082_v39 = vsel %vm7703_vm10, %v10795_v36, -inf  ;;  %v10764_v33 = vcombine.high %v10648_v30, %v10648_v30 }
 0x6d4   : > { %v11070_v28 = vmax.f32 %v11068_v21, %v11069_v24  ;;  %v11076_v15 = vrot.slane %v11075_v18, 4  ;;  %v11083_v34 = vrot.slane %v11082_v39, 4  ;;  %v10771_v60 = vrot.slane %v10648_v30, %v19674_v45 }
 0x6d5   : > { %v18382_v35 = vmax.f32 %v11002_v44, %v11003_v58  ;;  %v11089_v2 = vsel %vm7703_vm10, %v10797_v57, -inf  ;;  %v10778_v55 = vrot.slane %v10764_v33, %v19674_v45  ;;  %v10641_v50 = vadd.f32 %v18272_v23, %v10624_v14 }
 0x6d6   : > { %v11071_v29 = vrot.slane %v11070_v28, 2  ;;  %v11077_v8 = vmax.f32 %v11075_v18, %v11076_v15  ;;  %v11084_v10 = vmax.f32 %v11082_v39, %v11083_v34  ;;  %v11090_v0 = vrot.slane %v11089_v2, 4 }
 0x6d7   : > { %v10779_v16 = vcombine.high %v10771_v60, %v10771_v60  ;;  %v10780_v46 = vcombine.high %v10778_v55, %v10778_v55  ;;  %v11040_v7 = vsel %vm7703_vm10, %v10771_v60, -inf  ;;  %v11054_v31 = vsel %vm7703_vm10, %v10778_v55, -inf }
 0x6d8   : > { %v11072_v47 = vmax.f32 %v11070_v28, %v11071_v29  ;;  %v11085_v20 = vrot.slane %v11084_v10, 2  ;;  %v11091_v59 = vmax.f32 %v11089_v2, %v11090_v0  ;;  %v10640_v11 = vadd.f32 %v18272_v23, %v10623_v4 }
 0x6d9   : > { %v11041_v32 = vrot.slane %v11040_v7, 4  ;;  %v11047_v38 = vsel %vm7703_vm10, %v10779_v16, -inf  ;;  %v11055_v44 = vrot.slane %v11054_v31, 4  ;;  %v11061_v61 = vsel %vm7703_vm10, %v10780_v46, -inf }
 0x6da   : > { %v11078_v54 = vrot.slane %v11077_v8, 2  ;;  %v11086_v6 = vmax.f32 %v11084_v10, %v11085_v20  ;;  %v11092_v17 = vrot.slane %v11091_v59, 2  ;;  %v10651_v22 = vmax.f32 %v10641_v50, 0.0 }
 0x6db   : > { %v11042_v25 = vmax.f32 %v11040_v7, %v11041_v32  ;;  %v11048_v53 = vrot.slane %v11047_v38, 4  ;;  %v11056_v1 = vmax.f32 %v11054_v31, %v11055_v44  ;;  %v11062_v51 = vrot.slane %v11061_v61, 4 }
 0x6dc   : > { %v18392_v3 = vmax.f32 %v11009_v62, %v11010_v12  ;;  %v11073_v58 = vrot.slane %v11072_v47, 1  ;;  %v11093_v14 = vmax.f32 %v11091_v59, %v11092_v17  ;;  %v10650_v37 = vmax.f32 %v10640_v11, 0.0 }
 0x6dd   : > { %v11043_v23 = vrot.slane %v11042_v25, 2  ;;  %v11049_v36 = vmax.f32 %v11047_v38, %v11048_v53  ;;  %v11057_v63 = vrot.slane %v11056_v1, 2  ;;  %v11063_v21 = vmax.f32 %v11061_v61, %v11062_v51 }
 0x6de   : > { %v18394_v30 = vmax.f32 %v11077_v8, %v11078_v54  ;;  %v11087_v24 = vrot.slane %v11086_v6, 1  ;;  %v11094_v4 = vrot.slane %v11093_v14, 1  ;;  %v10815_v57 = vcombine.high %v10651_v22, %v10651_v22 }
 0x6df   : > { %v11044_v18 = vmax.f32 %v11042_v25, %v11043_v23  ;;  %v11050_v39 = vrot.slane %v11049_v36, 2  ;;  %v11058_v33 = vmax.f32 %v11056_v1, %v11057_v63  ;;  %v11064_v28 = vrot.slane %v11063_v21, 2 }
 0x6e0   : > { %v10822_v15 = vrot.slane %v10651_v22, %v19674_v45  ;;  %v10829_v62 = vrot.slane %v10815_v57, %v19674_v45  ;;  %v10798_v12 = vcombine.high %v10650_v37, %v10650_v37  ;;  %v11166_v34 = vsel %vm1056_vm4, %v18361_v56, %v11165_v27 }
 0x6e1   : > { %v11045_v60 = vrot.slane %v11044_v18, 1  ;;  %v11051_v2 = vmax.f32 %v11049_v36, %v11050_v39  ;;  %v11059_v55 = vrot.slane %v11058_v33, 1  ;;  %v11065_v50 = vmax.f32 %v11063_v21, %v11064_v28 }
 0x6e2   : > { %v10830_v29 = vcombine.high %v10822_v15, %v10822_v15  ;;  %v10831_v8 = vcombine.high %v10829_v62, %v10829_v62  ;;  %v11124_v10 = vsel %vm7703_vm10, %v10822_v15, -inf  ;;  %v11138_v0 = vsel %vm7703_vm10, %v10829_v62, -inf }
 0x6e3   : > { %v18402_v16 = vmax.f32 %v11072_v47, %v11073_v58  ;;  %v11080_v46 = vrot.slane %v18394_v30, 1  ;;  %v18405_v7 = vmax.f32 %v11086_v6, %v11087_v24  ;;  %v11095_v31 = vmax.f32 %v11093_v14, %v11094_v4 }
 0x6e4   : > { %v11052_v20 = vrot.slane %v11051_v2, 1  ;;  %v11125_v59 = vrot.slane %v11124_v10, 4  ;;  %v11131_v56 = vsel %vm7703_vm10, %v10830_v29, -inf  ;;  %v11145_v27 = vsel %vm7703_vm10, %v10831_v8, -inf }
 0x6e5   : > { %v18409_v11 = vmax.f32 %v11044_v18, %v11045_v60  ;;  %v11132_v32 = vrot.slane %v11131_v56, 4  ;;  %v11139_v38 = vrot.slane %v11138_v0, 4  ;;  %v10805_v44 = vrot.slane %v10650_v37, %v19674_v45 }
 0x6e6   : > { %v11060_v61 = vmax.f32 %v11058_v33, %v11059_v55  ;;  %v11066_v47 = vrot.slane %v11065_v50, 1  ;;  %v11126_v54 = vmax.f32 %v11124_v10, %v11125_v59  ;;  %v10812_v17 = vrot.slane %v10798_v12, %v19674_v45  ;;  %v12075_v59 = vld [vmem:[%s18571_s9 + $0x10] sm:$0xff] }
 0x6e7   : > { %v11133_v6 = vmax.f32 %v11131_v56, %v11132_v32  ;;  %v11146_v22 = vrot.slane %v11145_v27, 4  ;;  %v10813_v25 = vcombine.high %v10805_v44, %v10805_v44  ;;  %v11096_v53 = vsel %vm7703_vm10, %v10805_v44, -inf }
 0x6e8   : > { %v11053_v1 = vmax.f32 %v11051_v2, %v11052_v20  ;;  %v11127_v51 = vrot.slane %v11126_v54, 2  ;;  %v10814_v58 = vcombine.high %v10812_v17, %v10812_v17  ;;  %v11097_v14 = vrot.slane %v11096_v53, 4 }
 0x6e9   : > { %v11134_v23 = vrot.slane %v11133_v6, 2  ;;  %v11140_v36 = vmax.f32 %v11138_v0, %v11139_v38  ;;  %v11103_v63 = vsel %vm7703_vm10, %v10813_v25, -inf  ;;  %v11110_v37 = vsel %vm7703_vm10, %v10812_v17, -inf }
 0x6ea   : > { %v11128_v21 = vmax.f32 %v11126_v54, %v11127_v51  ;;  %v11098_v24 = vmax.f32 %v11096_v53, %v11097_v14  ;;  %v11104_v4 = vrot.slane %v11103_v63, 4  ;;  %v11167_v45 = vsel %vm8593_vm13, %v11060_v61, %v11166_v34  ;;  %v12079_v14 = vld [vmem:[%s18571_s9 + $0x20] sm:$0xff] }
 0x6eb   : > { %v11135_v57 = vmax.f32 %v11133_v6, %v11134_v23  ;;  %v11147_v18 = vmax.f32 %v11145_v27, %v11146_v22  ;;  %v11111_v39 = vrot.slane %v11110_v37, 4  ;;  %v11117_v33 = vsel %vm7703_vm10, %v10814_v58, -inf }
 0x6ec   : > { %v11129_v28 = vrot.slane %v11128_v21, 1  ;;  %v11099_v15 = vrot.slane %v11098_v24, 2  ;;  %v11105_v62 = vmax.f32 %v11103_v63, %v11104_v4  ;;  %v11118_v12 = vrot.slane %v11117_v33, 4 }
 0x6ed   : > { %v11141_v60 = vrot.slane %v11140_v36, 2  ;;  %v11112_v2 = vmax.f32 %v11110_v37, %v11111_v39  ;;  %v11168_v55 = vsel %vm1058_vm5, %v11095_v31, %v11167_v45  ;;  %v11252_v29 = vsel %vm8590_vm12, %v18325_v48, %v18353_v49 }
 0x6ee   : > { %v11130_v8 = vmax.f32 %v11128_v21, %v11129_v28  ;;  %v11100_v10 = vmax.f32 %v11098_v24, %v11099_v15  ;;  %v11106_v34 = vrot.slane %v11105_v62, 2  ;;  %v11119_v0 = vmax.f32 %v11117_v33, %v11118_v12  ;;  %v11614_v33 = vld [vmem:[%s18573_s11 + $0x30] sm:$0xff]  ;;  %v11613_v28 = vld [vmem:[%s18573_s11 + $0x28] sm:$0xff]  ;;  %v11612_v15 = vld [vmem:[%s18573_s11 + $0x20] sm:$0xff] }
 0x6ef   : > { %v11113_v20 = vrot.slane %v11112_v2, 2  ;;  %v11067_v56 = vmax.f32 %v11065_v50, %v11066_v47  ;;  %v11136_v27 = vrot.slane %v11135_v57, 1  ;;  %v11341_v32 = vsel %vm8590_vm12, %v18374_v52, %v18328_v26  ;;  %v11610_v12 = vld [vmem:[%s18573_s11 + $0x10] sm:$0xff] }
 0x6f0   : > { %v11101_v31 = vrot.slane %v11100_v10, 1  ;;  %v11107_v38 = vmax.f32 %v11105_v62, %v11106_v34  ;;  %v11120_v44 = vrot.slane %v11119_v0, 2  ;;  %v11169_v48 = vsel %vm8596_vm14, %v11130_v8, %v11168_v55  ;;  %v11611_v62 = vld [vmem:[%s18573_s11 + $0x18] sm:$0xff] }
 0x6f1   : > { %v11142_v49 = vmax.f32 %v11140_v36, %v11141_v60  ;;  %v11148_v61 = vrot.slane %v11147_v18, 2  ;;  %v11114_v54 = vmax.f32 %v11112_v2, %v11113_v20  ;;  %12748 = vmatmul.mubr.msk.f32.vlgmr.msra.gmra.mxu0 %vm5258_vm9, %v11169_v48  ;;  %v11253_v17 = vsel %vm1056_vm4, %v18359_v5, %v11252_v29  ;;  %v11609_v60 = vld [vmem:[%s18573_s11 + $0x8] sm:$0xff]  ;;  %v11608_v2 = vld [vmem:[%s18573_s11] sm:$0xff] }
 0x6f2   : > { %v11102_v6 = vmax.f32 %v11100_v10, %v11101_v31  ;;  %v11108_v50 = vrot.slane %v11107_v38, 1  ;;  %v11121_v47 = vmax.f32 %v11119_v0, %v11120_v44  ;;  %12756 = vmatpush3.msra.mxu0 %v12075_v59  ;;  %12757 = vmatprep.mubr.msk.f32.mxu0 %vm12936_vm15, %v12935_v41  ;;  %v11342_v26 = vsel %vm1056_vm4, %v18365_v13, %v11341_v32 }
 0x6f3   : > { %v11115_v52 = vrot.slane %v11114_v54, 1  ;;  %v11137_v22 = vmax.f32 %v11135_v57, %v11136_v27  ;;  %v11343_v25 = vsel %vm8593_vm13, %v11067_v56, %v11342_v26  ;;  %12765 = vmatprep.subr.mxu0 %v12935_v41  ;;  %v11430_v5 = vsel %vm1054_vm2, %v18317_v43, %v18347_v9 }
 0x6f4   : > { %v11122_v53 = vrot.slane %v11121_v47, 1  ;;  %v11254_v51 = vsel %vm8593_vm13, %v11053_v1, %v11253_v17  ;;  %v11344_v58 = vsel %vm1058_vm5, %v11102_v6, %v11343_v25  ;;  %v11431_v13 = vsel %vm8590_vm12, %v18382_v35, %v11430_v5 }
 0x6f5   : > { %v11345_v23 = vsel %vm8596_vm14, %v11137_v22, %v11344_v58  ;;  %v11109_v36 = vmax.f32 %v11107_v38, %v11108_v50  ;;  %v11432_v63 = vsel %vm1056_vm4, %v18372_v42, %v11431_v13  ;;  %v11149_v37 = vmax.f32 %v11147_v18, %v11148_v61  ;;  %v12077_v42 = vld [vmem:[%s18571_s9 + $0x18] sm:$0xff]  ;;  %v12081_v38 = vld [vmem:[%s18572_s10] ss:$0 sm:$0xff] }
 0x6f6   : > { %v11123_v43 = vmax.f32 %v11121_v47, %v11122_v53  ;;  %12758 = vmatmul.mubr.msk.f32.vlgmr.msra.gmra.mxu0 %vm5258_vm9, %v11345_v23  ;;  %v11143_v9 = vrot.slane %v11142_v49, 1  ;;  %v11116_v1 = vmax.f32 %v11114_v54, %v11115_v52  ;;  %v11520_v21 = vsel %vm1054_vm2, %v18319_v19, %v18357_v40  ;;  %v12082_v61 = vld [vmem:[%s18574_s12] ss:$0 sm:$0xff] }
 0x6f7   : > { %v11081_v35 = vmax.f32 %v18394_v30, %v11080_v46  ;;  %v11255_v24 = vsel %vm1058_vm5, %v18405_v7, %v11254_v51  ;;  %12766 = vmatpush3.msra.mxu0 %v12079_v14  ;;  %12767 = vmatprep.mubr.msk.f32.mxu0 %vm12936_vm15, %v12935_v41  ;;  %v11150_v4 = vrot.slane %v11149_v37, 1  ;;  %v11521_v45 = vsel %vm8590_vm12, %v18392_v3, %v11520_v21 }
 0x6f8   : > { %v11256_v19 = vsel %vm8596_vm14, %v11123_v43, %v11255_v24  ;;  %v11433_v40 = vsel %vm8593_vm13, %v18402_v16, %v11432_v63  ;;  %v11522_v30 = vsel %vm1056_vm4, %v18409_v11, %v11521_v45  ;;  %v11144_v3 = vmax.f32 %v11142_v49, %v11143_v9  ;;  %v11615_v11 = vld [vmem:[%s18573_s11 + $0x38] sm:$0xff] }
 0x6f9   : > { %12753 = vmatmul.mubr.msk.f32.vlgmr.msra.gmra.mxu1 %vm5258_vm9, %v11256_v19  ;;  %v11434_v46 = vsel %vm1058_vm5, %v11109_v36, %v11433_v40  ;;  %v11151_v7 = vmax.f32 %v11149_v37, %v11150_v4  ;;  %v11523_v57 = vsel %vm8593_vm13, %v11081_v35, %v11522_v30 }
 0x6fa   : > { %12761 = vmatpush3.msra.mxu1 %v12077_v42  ;;  %12762 = vmatprep.mubr.msk.f32.mxu1 %vm12936_vm15, %v12935_v41  ;;  %v11524_v18 = vsel %vm1058_vm5, %v11116_v1, %v11523_v57  ;;  %v11435_v16 = vsel %vm8596_vm14, %v11144_v3, %v11434_v46 }
 0x6fb   : > { %v11525_v39 = vsel %vm8596_vm14, %v11151_v7, %v11524_v18  ;;  %12770 = vmatprep.subr.mxu1 %v12935_v41 }
 0x6fc   : > { %12768 = vmatmul.mubr.msk.f32.vlgmr.msra.gmra.mxu0 %vm5258_vm9, %v11525_v39 }
 0x6fd   : > { %12763 = vmatmul.mubr.msk.f32.vlgmr.msra.gmra.mxu1 %vm5258_vm9, %v11435_v16 }
 0x6fe   : > { %12786 = vmatprep.mubr.msk.f32.mxu1 %vm12936_vm15, %v12935_v41  ;;  %12771 = vmatpush3.msra.mxu1 %v11615_v11 }
 0x6ff   : > { %12772 = vmatprep.subr.mxu1 %v12935_v41 }
 0x700   : > { %12773 = vmatpush3.msra.mxu1 %v11614_v33 }
 0x701   : > { %12774 = vmatprep.subr.mxu1 %v12935_v41 }
 0x702   : > { %12775 = vmatpush3.msra.mxu1 %v11613_v28 }
 0x703   : > { %12776 = vmatprep.subr.mxu1 %v12935_v41 }
 0x704   : > { %12777 = vmatpush3.msra.mxu1 %v11612_v15 }
 0x705   : > { %12778 = vmatprep.subr.mxu1 %v12935_v41 }
 0x706   : > { %12779 = vmatpush3.msra.mxu1 %v11611_v62 }
 0x707   : > { %12780 = vmatprep.subr.mxu1 %v12935_v41 }
 0x708   : > { %12781 = vmatpush3.msra.mxu1 %v11610_v12 }
 0x709   : > { %12782 = vmatprep.subr.mxu1 %v12935_v41 }
 0x70a   : > { %12783 = vmatpush3.msra.mxu1 %v11609_v60 }
 0x70b   : > { %12784 = vmatprep.subr.mxu1 %v12935_v41 }
 0x70c   : > { %12785 = vmatpush3.msra.mxu1 %v11608_v2 }
 0x7b1   : > { %v11238_v55 = vpop.f32.mrf.mxu0 }
 0x7b3   : > { %v12749_v29 = vpop.f32.mrf.mxu0 }
 0x7b6   : > { %v11414_v8 = vpop.f32.mrf.mxu0 }
 0x7b8   : > { %v12759_v10 = vpop.f32.mrf.mxu0 }
 0x7b9   : > { %v11325_v34 = vpop.f32.mrf.mxu1 }
 0x7ba   : > { %v11326_v0 = vadd.f32 %v11325_v34, %v11238_v55 }
 0x7bb   : > { %v12754_v20 = vpop.f32.mrf.mxu1 }
 0x7bc   : > { %v11418_v59 = vadd.f32 %v11414_v8, %v11326_v0  ;;  %v11594_v56 = vpop.f32.mrf.mxu0 }
 0x7bd   : > { %v11504_v27 = vpop.f32.mrf.mxu1 }
 0x7be   : > { %v11508_v32 = vadd.f32 %v11504_v27, %v11418_v59  ;;  %v12769_v31 = vpop.f32.mrf.mxu0 }
 0x7bf   : > { %v12764_v44 = vpop.f32.mrf.mxu1 }
 0x7c0   : > { %v11598_v41 = vadd.f32 %v11594_v56, %v11508_v32 }
 0x7c2   : > { %v11606_v48 = vadd.f32 %v12081_v38, %v11598_v41 }
 0x7c4   : > { %v11607_v49 = vmax.f32 %v11606_v48, 0.0 }
 0x7c6   : > { %12787 = vmatmul.mubr.msk.f32.vlgmr.msra.gmra.mxu1 %vm11623_vm0, %v11607_v49 }
 0x886   : > { %v11693_v54 = vpop.f32.mrf.mxu1 }
 0x887   : > { %v11694_v17 = vadd.f32 %v12082_v61, %v11693_v54 }
 0x888   : > { %v12788_v6 = vpop.f32.mrf.mxu1 }
 0x889   : > { %v12084_v50 = vmul.f32 -1.442695, %v11694_v17 }
 0x88b   : > { %12865 = vpow2.f32 %v12084_v50 }
 0x898   : > { %v12866_v47 = vpop.eup %12865 }
 0x899   : > { %v11700_v26 = vadd.f32 1.0, %v12866_v47 }
 0x89b   : > { %12867 = vrcp.f32 %v11700_v26 }
 0x8a8   : > { %v12868_v52 = vpop.eup %12867 }
 0x8a9   : > { %11703 = vst [vmem:[%s436_s24] sm:$0xff] %v12868_v52 }
 0x8aa   : > { %12885 = shalt.err (!%p12882_p3)
}
 0x8ab   : > { %s12886_s0 = scalar_lea.hbm %s18527_s1, 128  ;;  %s12890_s2 = scalar_lea.hbm %s18575_s13, 256 }
 0x8ac   : > { %p12887_p4 = scmp.ne.s32.totalorder %s18527_s1, %s12886_s0  ;;  %p12891_p9 = scmp.lt.s32.totalorder %s18527_s1, %s18575_s13 }
 0x8ad   : > { %p12892_p10 = scmp.lt.s32.totalorder %s12890_s2, %s12886_s0 }
 0x8ae   : > { %p12888_p7 = pnand %p12887_p4, %p13046_p5 }
 0x8af   : > { %p12893_p11 = por %p12892_p10, %p12891_p9 }
 0x8b0   : > { %p12889_p8 = pneg %p12888_p7 }
 0x8b2   : > { %p12894_p12 = pnand %p12893_p11, %p12889_p8 }
 0x8b4   : > { %12897 = shalt.err (!%p12894_p12)
}
 0x8b5   : > { %12791 = dma.vmem_to_hbm [thread:$0]  (%p13046_p5), %s11719_s30, 128, %s18527_s1, %s11705_s16  }
 0x8b6 PF: > { %p12797_p13 = scmp.ge.s32.totalorder %s12932_s28, 2  ;;  %s11730_s3 = sand.u32 1, %s12920_s25  }
 0x8b7   : > { %s11731_s15 = scalar_lea.sflag [#allocation3], %s11730_s3 }
 0x8b8   : > { %p12794_p0 = pnand %p12797_p13, %p13050_p6 }
 0x8ba   : > { %p12795_p1 = pneg %p12794_p0 }
 0x8bc   : > { %12915 = dma.done.wait (%p12795_p1), %s11731_s15, 128  }
 0x8bd   : > { %12917 = vsyncadd (%p12795_p1), %s11731_s15, 4294967168  ;;  %p23_p2 = scmp.ge.s32.totalorder %s13033_s14, 4   ;;  %s19734_s25 = smov %s12924_s26 }
 0x8be   : > { %s19735_s26 = smov %s12928_s27  ;;  %s19736_s27 = smov %s13044_s17 }
 0x8bf   : > { %s19737_s28 = smov %s13033_s14  ;;  %25 = sbr.rel (!%p23_p2) target bundleno = 8 (0x8), region = 119 }
 0x8c4   :  { %11736 = vsyncpa [#allocation3], 1 }
 0x8c5   :  { %11738 = vsyncpa [#allocation3 + $0x1], 1 }

</bundles_post_ra>
